<compile_context>
chip_gen: v6e
topology: v6e:2x2x1
jax: 0.10.0
libtpu: 0.0.40
codegen_flags: <defaults>
</compile_context>

<pallas_src>
import numpy as np
import jax
import jax.numpy as jnp
from jax.experimental import pallas as pl
from jax.experimental.pallas import tpu as pltpu


def _dot(a, b):
    return jnp.dot(a, b, preferred_element_type=jnp.float32)


def _relu(v):
    return jnp.maximum(v, 0.0)


def _sigmoid(v):
    return 1.0 / (1.0 + jnp.exp(-v))


def _shift_rows(v, s):
    # result[i] = v[i - s] for i >= s, else 0   (static sublane shift)
    pad = jnp.zeros((s, v.shape[1]), jnp.float32)
    return jnp.concatenate([pad, v[: v.shape[0] - s, :]], axis=0)


# ----------------------------- fused kernel ---------------------------------
def _decoder_kernel(z_ref, wf_ref, bf_ref, e1_ref,
                    w2_ref, b2_ref, mh2_ref, mw2_ref, p2_ref,
                    w3_ref, b3_ref, mh3_ref, mw3_ref, p3_ref,
                    w4_ref, b4_ref, mh4_ref, mw4_ref,
                    out_ref):
    # ---- dec_fc folded into tconv1 (module has no activation in between) ---
    # lanes of a1 are (kh, kw, co)
    a1 = _relu(_dot(z_ref[...], wf_ref[...]) + bf_ref[...])       # (B, 9*128)

    # scatter lane block t -> row b*9 + t with tiny 0/1 placement matmuls
    x = _dot(e1_ref[0], a1[:, 0:128])
    for t in range(1, 9):
        x = x + _dot(e1_ref[t], a1[:, t * 128:(t + 1) * 128])     # (B*9, 128)

    # ---- stride-2 transposed conv, parity-decomposed -----------------------
    # weight column blocks (cout wide each):
    #   [4 unshifted taps (ee,eo,oe,oo) | 2 H-shift taps (ee,eo) |
    #    3 W-shift taps (ee,oe,corner-ee; the corner also needs the H shift)]
    def tconv_planes(xin, w_ref, b_ref, mh_ref, mw_ref, cout, width, act):
        p = _dot(xin, w_ref[...])                                  # (R, 9*cout)
        mh = mh_ref[...]                                           # (R, 1)
        mw = mw_ref[...]                                           # (R, 1)
        au = p[:, 0:4 * cout]
        ah = p[:, 4 * cout:6 * cout]
        wg = p[:, 6 * cout:9 * cout]
        sw_all = _shift_rows(wg, 1) * mw                           # shift in W
        sh_ah = _shift_rows(ah, width) * mh                        # shift in H
        shw = _shift_rows(sw_all[:, 2 * cout:3 * cout], width) * mh
        b = b_ref[...]                                             # (1, cout)
        ee = act(au[:, 0:cout] + sh_ah[:, 0:cout] + sw_all[:, 0:cout] + shw + b)
        eo = act(au[:, cout:2 * cout] + sh_ah[:, cout:2 * cout] + b)
        oe = act(au[:, 2 * cout:3 * cout] + sw_all[:, cout:2 * cout] + b)
        oo = act(au[:, 3 * cout:4 * cout] + b)
        return ee, eo, oe, oo

    def interleave(planes, p_ref):                                 # -> next X
        y = _dot(p_ref[0].astype(jnp.float32), planes[0])
        for k in range(1, 4):
            y = y + _dot(p_ref[k].astype(jnp.float32), planes[k])
        return y

    # tconv2: (B,3,3,128) -> (B,6,6,64)
    planes = tconv_planes(x, w2_ref, b2_ref, mh2_ref, mw2_ref, 64, 3, _relu)
    x = interleave(planes, p2_ref)                                 # (B*36, 64)

    # tconv3: -> (B,12,12,32)
    planes = tconv_planes(x, w3_ref, b3_ref, mh3_ref, mw3_ref, 32, 6, _relu)
    x = interleave(planes, p3_ref)                                 # (B*144, 32)

    # tconv4: -> four parity planes of the (B,24,24,1) output, sigmoid
    ee, eo, oe, oo = tconv_planes(x, w4_ref, b4_ref, mh4_ref, mw4_ref, 1, 12,
                                  _sigmoid)
    lane = jax.lax.broadcasted_iota(jnp.int32, out_ref.shape, 1)
    out_ref[...] = jnp.where(lane == 0, ee,
                   jnp.where(lane == 1, eo,
                   jnp.where(lane == 2, oe, oo)))                  # (B*144, 4)


# ---------------------- host-side (one-time) preparation ---------------------
def _shift_masks(B, H, W):
    # column masks (R,1): mh zeroes rows with m==0, mw zeroes rows with n==0
    R = B * H * W
    mh = np.zeros((R, 1), np.float32)
    mw = np.zeros((R, 1), np.float32)
    for b in range(B):
        for m in range(H):
            for n in range(W):
                i = b * H * W + m * W + n
                if m > 0:
                    mh[i, 0] = 1.0
                if n > 0:
                    mw[i, 0] = 1.0
    return mh, mw


def _interleave_mats(B, H, W):
    rin, rout = B * H * W, B * 4 * H * W
    mats = np.zeros((4, rout, rin), np.float32)
    for k in range(4):
        p, q = k // 2, k % 2
        for b in range(B):
            for m in range(H):
                for n in range(W):
                    r, c = 2 * m + p, 2 * n + q
                    mats[k, b * 4 * H * W + r * 2 * W + c,
                         b * H * W + m * W + n] = 1.0
    return mats


def _tap_weight_cat(w):
    # w: torch ConvTranspose2d weight (Cin, Cout, 3, 3); column blocks match
    # the kernel's slicing: unshifted ee,eo,oe,oo | H-shift ee,eo | W-shift
    # ee,oe,corner
    taps = [(0, 0), (0, 1), (1, 0), (1, 1), (2, 0), (2, 1), (0, 2), (1, 2), (2, 2)]
    return np.concatenate([w[:, :, kh, kw] for kh, kw in taps], axis=1)


def build_decoder_params(params, batch):
    P = {k: np.asarray(v, np.float32) for k, v in params.items()}
    prep = {}
    # fold dec_fc into tconv1:  a1 = relu((z@fcw+fcb) @ w1mat + b1_tiled)
    #                              = relu(z @ wf + bf)
    w1mat = np.ascontiguousarray(
        np.transpose(P['w1'], (0, 2, 3, 1)).reshape(256, 9 * 128))
    prep['wf'] = np.ascontiguousarray(P['fc_w'] @ w1mat)           # (L, 1152)
    prep['bf'] = (P['fc_b'] @ w1mat + np.tile(P['b1'], 9)).reshape(1, 9 * 128)
    e1 = np.zeros((9, 9 * batch, batch), np.float32)
    for t in range(9):
        for b in range(batch):
            e1[t, b * 9 + t, b] = 1.0
    prep['e1'] = e1

    for idx, (wname, bname, H) in enumerate(
            [('w2', 'b2', 3), ('w3', 'b3', 6), ('w4', 'b4', 12)], start=2):
        w = P[wname]
        cout = w.shape[1]
        prep[f'w{idx}cat'] = _tap_weight_cat(w)
        prep[f'b{idx}v'] = P[bname].reshape(1, cout)
        mh, mw = _shift_masks(batch, H, H)
        prep[f'mh{idx}'] = mh
        prep[f'mw{idx}'] = mw
        if idx < 4:
            prep[f'p{idx}'] = _interleave_mats(batch, H, H)

    bf16_keys = {'p2', 'p3'}   # exact 0/1 matrices -> half the DMA / VMEM
    return {k: jnp.asarray(v, jnp.bfloat16 if k in bf16_keys else jnp.float32)
            for k, v in prep.items()}


# ------------------------------- forward -------------------------------------
@jax.jit
def decoder_forward(z, prep):
    B = z.shape[0]
    vspec = pl.BlockSpec(memory_space=pltpu.MemorySpace.VMEM)
    out = pl.pallas_call(
        _decoder_kernel,
        out_shape=jax.ShapeDtypeStruct((B * 144, 4), jnp.float32),
        in_specs=[vspec] * 18,
        out_specs=vspec,
    )(z, prep['wf'], prep['bf'], prep['e1'],
      prep['w2cat'], prep['b2v'], prep['mh2'], prep['mw2'], prep['p2'],
      prep['w3cat'], prep['b3v'], prep['mh3'], prep['mw3'], prep['p3'],
      prep['w4cat'], prep['b4v'], prep['mh4'], prep['mw4'])
    # final parity interleave + NCHW (C=1 -> pure reshape), ~4.6 KB of glue
    out = out.reshape(B, 12, 12, 2, 2).transpose(0, 1, 3, 2, 4)
    return out.reshape(B, 1, 24, 24)


# ------------------------------ numpy reference ------------------------------
def _reference_numpy(z, P):
    p = {k: np.asarray(v, np.float32) for k, v in P.items()}
    z = np.asarray(z, np.float32)
    h = z @ p['fc_w'] + p['fc_b']
    x = np.einsum('bc,cokl->bklo', h, p['w1']) + p['b1']
    x = np.maximum(x, 0.0)

    def tconv(xin, W, bb):
        Bn, H, Wd, _ = xin.shape
        Cout = W.shape[1]
        out = np.zeros((Bn, 2 * H + 1, 2 * Wd + 1, Cout), np.float32)
        for kh in range(3):
            for kw in range(3):
                out[:, kh:kh + 2 * H:2, kw:kw + 2 * Wd:2, :] += np.einsum(
                    'bhwc,co->bhwo', xin, W[:, :, kh, kw])
        return out + bb

    x = np.maximum(tconv(x, p['w2'], p['b2']), 0.0)[:, :-1, :-1, :]
    x = np.maximum(tconv(x, p['w3'], p['b3']), 0.0)[:, :-1, :-1, :]
    t = tconv(x, p['w4'], p['b4'])
    x = (1.0 / (1.0 + np.exp(-t)))[:, :-1, :-1, :]
    return np.transpose(x, (0, 3, 1, 2))


if __name__ == "__main__":
    latent, B = 8, 2
    key = jax.random.PRNGKey(0)
    keys = jax.random.split(key, 11)
    s = 0.1
    params = {
        'fc_w': jax.random.normal(keys[0], (latent, 256), jnp.float32) * s,
        'fc_b': jax.random.normal(keys[1], (256,), jnp.float32) * s,
        'w1': jax.random.normal(keys[2], (256, 128, 3, 3), jnp.float32) * s,
        'b1': jax.random.normal(keys[3], (128,), jnp.float32) * s,
        'w2': jax.random.normal(keys[4], (128, 64, 3, 3), jnp.float32) * s,
        'b2': jax.random.normal(keys[5], (64,), jnp.float32) * s,
        'w3': jax.random.normal(keys[6], (64, 32, 3, 3), jnp.float32) * s,
        'b3': jax.random.normal(keys[7], (32,), jnp.float32) * s,
        'w4': jax.random.normal(keys[8], (32, 1, 3, 3), jnp.float32) * s,
        'b4': jax.random.normal(keys[9], (1,), jnp.float32) * s,
    }
    z = jax.random.normal(keys[10], (B, latent), jnp.float32)

    prep = build_decoder_params(params, B)          # one-time host-side prep
    out = decoder_forward(z, prep)
    out = jax.block_until_ready(out)
    assert out.shape == (B, 1, 24, 24), out.shape

    ref = _reference_numpy(z, params)
    err = float(np.max(np.abs(np.asarray(out) - ref)))
    assert np.allclose(np.asarray(out), ref, atol=5e-3, rtol=5e-3), err
    print("KERNEL_OK")
</pallas_src>

<mosaic_0001>
module attributes {stable_mosaic.version = 11 : i64} {
  func.func @_decoder_kernel(%arg0: memref<2x8xf32, #tpu.memory_space<vmem>>, %arg1: memref<8x1152xf32, #tpu.memory_space<vmem>>, %arg2: memref<1x1152xf32, #tpu.memory_space<vmem>>, %arg3: memref<9x18x2xf32, #tpu.memory_space<vmem>>, %arg4: memref<128x576xf32, #tpu.memory_space<vmem>>, %arg5: memref<1x64xf32, #tpu.memory_space<vmem>>, %arg6: memref<18x1xf32, #tpu.memory_space<vmem>>, %arg7: memref<18x1xf32, #tpu.memory_space<vmem>>, %arg8: memref<4x72x18xbf16, #tpu.memory_space<vmem>>, %arg9: memref<64x288xf32, #tpu.memory_space<vmem>>, %arg10: memref<1x32xf32, #tpu.memory_space<vmem>>, %arg11: memref<72x1xf32, #tpu.memory_space<vmem>>, %arg12: memref<72x1xf32, #tpu.memory_space<vmem>>, %arg13: memref<4x288x72xbf16, #tpu.memory_space<vmem>>, %arg14: memref<32x9xf32, #tpu.memory_space<vmem>>, %arg15: memref<1x1xf32, #tpu.memory_space<vmem>>, %arg16: memref<288x1xf32, #tpu.memory_space<vmem>>, %arg17: memref<288x1xf32, #tpu.memory_space<vmem>>, %arg18: memref<288x4xf32, #tpu.memory_space<vmem>>) attributes {dimension_semantics = [], scalar_prefetch = 0 : i64, scratch_operands = 0 : i64, tpu.core_type = #tpu.core_type<tc>} {
    %c0 = arith.constant 0 : index
    %c0_0 = arith.constant 0 : index
    %0 = vector.load %arg0[%c0, %c0_0] : memref<2x8xf32, #tpu.memory_space<vmem>>, vector<2x8xf32>
    %c0_1 = arith.constant 0 : index
    %c0_2 = arith.constant 0 : index
    %1 = vector.load %arg1[%c0_1, %c0_2] : memref<8x1152xf32, #tpu.memory_space<vmem>>, vector<8x1152xf32>
    %cst = arith.constant dense<0.000000e+00> : vector<2x1152xf32>
    %2 = tpu.matmul %0, %1, %cst {dimension_numbers = #tpu.dot_dimension_numbers<[1], [0], [0], [1], [0, 0, 1, 1], [], []>} : vector<2x8xf32>, vector<8x1152xf32>, vector<2x1152xf32> -> vector<2x1152xf32>
    %c0_3 = arith.constant 0 : index
    %c0_4 = arith.constant 0 : index
    %3 = vector.load %arg2[%c0_3, %c0_4] : memref<1x1152xf32, #tpu.memory_space<vmem>>, vector<1x1152xf32>
    %4 = vector.broadcast %3 : vector<1x1152xf32> to vector<2x1152xf32>
    %5 = arith.addf %2, %4 : vector<2x1152xf32>
    %cst_5 = arith.constant 0.000000e+00 : f32
    %6 = vector.broadcast %cst_5 : f32 to vector<2x1152xf32>
    %7 = arith.maximumf %5, %6 : vector<2x1152xf32>
    %c0_6 = arith.constant 0 : index
    %c0_7 = arith.constant 0 : index
    %c0_8 = arith.constant 0 : index
    %8 = vector.load %arg3[%c0_6, %c0_7, %c0_8] : memref<9x18x2xf32, #tpu.memory_space<vmem>>, vector<1x18x2xf32>
    %9 = vector.shape_cast %8 : vector<1x18x2xf32> to vector<18x2xf32>
    %10 = vector.extract_strided_slice %7 {offsets = [0, 0], sizes = [2, 128], strides = [1, 1]} : vector<2x1152xf32> to vector<2x128xf32>
    %cst_9 = arith.constant dense<0.000000e+00> : vector<18x128xf32>
    %11 = tpu.matmul %9, %10, %cst_9 {dimension_numbers = #tpu.dot_dimension_numbers<[1], [0], [0], [1], [0, 0, 1, 1], [], []>} : vector<18x2xf32>, vector<2x128xf32>, vector<18x128xf32> -> vector<18x128xf32>
    %c1 = arith.constant 1 : index
    %c0_10 = arith.constant 0 : index
    %c0_11 = arith.constant 0 : index
    %12 = vector.load %arg3[%c1, %c0_10, %c0_11] : memref<9x18x2xf32, #tpu.memory_space<vmem>>, vector<1x18x2xf32>
    %13 = vector.shape_cast %12 : vector<1x18x2xf32> to vector<18x2xf32>
    %14 = vector.extract_strided_slice %7 {offsets = [0, 128], sizes = [2, 128], strides = [1, 1]} : vector<2x1152xf32> to vector<2x128xf32>
    %cst_12 = arith.constant dense<0.000000e+00> : vector<18x128xf32>
    %15 = tpu.matmul %13, %14, %cst_12 {dimension_numbers = #tpu.dot_dimension_numbers<[1], [0], [0], [1], [0, 0, 1, 1], [], []>} : vector<18x2xf32>, vector<2x128xf32>, vector<18x128xf32> -> vector<18x128xf32>
    %16 = arith.addf %11, %15 : vector<18x128xf32>
    %c2 = arith.constant 2 : index
    %c0_13 = arith.constant 0 : index
    %c0_14 = arith.constant 0 : index
    %17 = vector.load %arg3[%c2, %c0_13, %c0_14] : memref<9x18x2xf32, #tpu.memory_space<vmem>>, vector<1x18x2xf32>
    %18 = vector.shape_cast %17 : vector<1x18x2xf32> to vector<18x2xf32>
    %19 = vector.extract_strided_slice %7 {offsets = [0, 256], sizes = [2, 128], strides = [1, 1]} : vector<2x1152xf32> to vector<2x128xf32>
    %cst_15 = arith.constant dense<0.000000e+00> : vector<18x128xf32>
    %20 = tpu.matmul %18, %19, %cst_15 {dimension_numbers = #tpu.dot_dimension_numbers<[1], [0], [0], [1], [0, 0, 1, 1], [], []>} : vector<18x2xf32>, vector<2x128xf32>, vector<18x128xf32> -> vector<18x128xf32>
    %21 = arith.addf %16, %20 : vector<18x128xf32>
    %c3 = arith.constant 3 : index
    %c0_16 = arith.constant 0 : index
    %c0_17 = arith.constant 0 : index
    %22 = vector.load %arg3[%c3, %c0_16, %c0_17] : memref<9x18x2xf32, #tpu.memory_space<vmem>>, vector<1x18x2xf32>
    %23 = vector.shape_cast %22 : vector<1x18x2xf32> to vector<18x2xf32>
    %24 = vector.extract_strided_slice %7 {offsets = [0, 384], sizes = [2, 128], strides = [1, 1]} : vector<2x1152xf32> to vector<2x128xf32>
    %cst_18 = arith.constant dense<0.000000e+00> : vector<18x128xf32>
    %25 = tpu.matmul %23, %24, %cst_18 {dimension_numbers = #tpu.dot_dimension_numbers<[1], [0], [0], [1], [0, 0, 1, 1], [], []>} : vector<18x2xf32>, vector<2x128xf32>, vector<18x128xf32> -> vector<18x128xf32>
    %26 = arith.addf %21, %25 : vector<18x128xf32>
    %c4 = arith.constant 4 : index
    %c0_19 = arith.constant 0 : index
    %c0_20 = arith.constant 0 : index
    %27 = vector.load %arg3[%c4, %c0_19, %c0_20] : memref<9x18x2xf32, #tpu.memory_space<vmem>>, vector<1x18x2xf32>
    %28 = vector.shape_cast %27 : vector<1x18x2xf32> to vector<18x2xf32>
    %29 = vector.extract_strided_slice %7 {offsets = [0, 512], sizes = [2, 128], strides = [1, 1]} : vector<2x1152xf32> to vector<2x128xf32>
    %cst_21 = arith.constant dense<0.000000e+00> : vector<18x128xf32>
    %30 = tpu.matmul %28, %29, %cst_21 {dimension_numbers = #tpu.dot_dimension_numbers<[1], [0], [0], [1], [0, 0, 1, 1], [], []>} : vector<18x2xf32>, vector<2x128xf32>, vector<18x128xf32> -> vector<18x128xf32>
    %31 = arith.addf %26, %30 : vector<18x128xf32>
    %c5 = arith.constant 5 : index
    %c0_22 = arith.constant 0 : index
    %c0_23 = arith.constant 0 : index
    %32 = vector.load %arg3[%c5, %c0_22, %c0_23] : memref<9x18x2xf32, #tpu.memory_space<vmem>>, vector<1x18x2xf32>
    %33 = vector.shape_cast %32 : vector<1x18x2xf32> to vector<18x2xf32>
    %34 = vector.extract_strided_slice %7 {offsets = [0, 640], sizes = [2, 128], strides = [1, 1]} : vector<2x1152xf32> to vector<2x128xf32>
    %cst_24 = arith.constant dense<0.000000e+00> : vector<18x128xf32>
    %35 = tpu.matmul %33, %34, %cst_24 {dimension_numbers = #tpu.dot_dimension_numbers<[1], [0], [0], [1], [0, 0, 1, 1], [], []>} : vector<18x2xf32>, vector<2x128xf32>, vector<18x128xf32> -> vector<18x128xf32>
    %36 = arith.addf %31, %35 : vector<18x128xf32>
    %c6 = arith.constant 6 : index
    %c0_25 = arith.constant 0 : index
    %c0_26 = arith.constant 0 : index
    %37 = vector.load %arg3[%c6, %c0_25, %c0_26] : memref<9x18x2xf32, #tpu.memory_space<vmem>>, vector<1x18x2xf32>
    %38 = vector.shape_cast %37 : vector<1x18x2xf32> to vector<18x2xf32>
    %39 = vector.extract_strided_slice %7 {offsets = [0, 768], sizes = [2, 128], strides = [1, 1]} : vector<2x1152xf32> to vector<2x128xf32>
    %cst_27 = arith.constant dense<0.000000e+00> : vector<18x128xf32>
    %40 = tpu.matmul %38, %39, %cst_27 {dimension_numbers = #tpu.dot_dimension_numbers<[1], [0], [0], [1], [0, 0, 1, 1], [], []>} : vector<18x2xf32>, vector<2x128xf32>, vector<18x128xf32> -> vector<18x128xf32>
    %41 = arith.addf %36, %40 : vector<18x128xf32>
    %c7 = arith.constant 7 : index
    %c0_28 = arith.constant 0 : index
    %c0_29 = arith.constant 0 : index
    %42 = vector.load %arg3[%c7, %c0_28, %c0_29] : memref<9x18x2xf32, #tpu.memory_space<vmem>>, vector<1x18x2xf32>
    %43 = vector.shape_cast %42 : vector<1x18x2xf32> to vector<18x2xf32>
    %44 = vector.extract_strided_slice %7 {offsets = [0, 896], sizes = [2, 128], strides = [1, 1]} : vector<2x1152xf32> to vector<2x128xf32>
    %cst_30 = arith.constant dense<0.000000e+00> : vector<18x128xf32>
    %45 = tpu.matmul %43, %44, %cst_30 {dimension_numbers = #tpu.dot_dimension_numbers<[1], [0], [0], [1], [0, 0, 1, 1], [], []>} : vector<18x2xf32>, vector<2x128xf32>, vector<18x128xf32> -> vector<18x128xf32>
    %46 = arith.addf %41, %45 : vector<18x128xf32>
    %c8 = arith.constant 8 : index
    %c0_31 = arith.constant 0 : index
    %c0_32 = arith.constant 0 : index
    %47 = vector.load %arg3[%c8, %c0_31, %c0_32] : memref<9x18x2xf32, #tpu.memory_space<vmem>>, vector<1x18x2xf32>
    %48 = vector.shape_cast %47 : vector<1x18x2xf32> to vector<18x2xf32>
    %49 = vector.extract_strided_slice %7 {offsets = [0, 1024], sizes = [2, 128], strides = [1, 1]} : vector<2x1152xf32> to vector<2x128xf32>
    %cst_33 = arith.constant dense<0.000000e+00> : vector<18x128xf32>
    %50 = tpu.matmul %48, %49, %cst_33 {dimension_numbers = #tpu.dot_dimension_numbers<[1], [0], [0], [1], [0, 0, 1, 1], [], []>} : vector<18x2xf32>, vector<2x128xf32>, vector<18x128xf32> -> vector<18x128xf32>
    %51 = arith.addf %46, %50 : vector<18x128xf32>
    %c0_34 = arith.constant 0 : index
    %c0_35 = arith.constant 0 : index
    %52 = vector.load %arg4[%c0_34, %c0_35] : memref<128x576xf32, #tpu.memory_space<vmem>>, vector<128x576xf32>
    %cst_36 = arith.constant dense<0.000000e+00> : vector<18x576xf32>
    %53 = tpu.matmul %51, %52, %cst_36 {dimension_numbers = #tpu.dot_dimension_numbers<[1], [0], [0], [1], [0, 0, 1, 1], [], []>} : vector<18x128xf32>, vector<128x576xf32>, vector<18x576xf32> -> vector<18x576xf32>
    %c0_37 = arith.constant 0 : index
    %c0_38 = arith.constant 0 : index
    %54 = vector.load %arg6[%c0_37, %c0_38] : memref<18x1xf32, #tpu.memory_space<vmem>>, vector<18x1xf32>
    %c0_39 = arith.constant 0 : index
    %c0_40 = arith.constant 0 : index
    %55 = vector.load %arg7[%c0_39, %c0_40] : memref<18x1xf32, #tpu.memory_space<vmem>>, vector<18x1xf32>
    %56 = vector.extract_strided_slice %53 {offsets = [0, 0], sizes = [18, 256], strides = [1, 1]} : vector<18x576xf32> to vector<18x256xf32>
    %57 = vector.extract_strided_slice %53 {offsets = [0, 256], sizes = [18, 128], strides = [1, 1]} : vector<18x576xf32> to vector<18x128xf32>
    %58 = vector.extract_strided_slice %53 {offsets = [0, 384], sizes = [18, 192], strides = [1, 1]} : vector<18x576xf32> to vector<18x192xf32>
    %cst_41 = arith.constant 0.000000e+00 : f32
    %59 = vector.broadcast %cst_41 : f32 to vector<1x192xf32>
    %60 = vector.extract_strided_slice %58 {offsets = [0, 0], sizes = [17, 192], strides = [1, 1]} : vector<18x192xf32> to vector<17x192xf32>
    %61 = tpu.concatenate %59, %60 in 0 : vector<1x192xf32>, vector<17x192xf32> -> vector<18x192xf32>
    %62 = vector.broadcast %55 : vector<18x1xf32> to vector<18x192xf32>
    %63 = arith.mulf %61, %62 : vector<18x192xf32>
    %cst_42 = arith.constant 0.000000e+00 : f32
    %64 = vector.broadcast %cst_42 : f32 to vector<3x128xf32>
    %65 = vector.extract_strided_slice %57 {offsets = [0, 0], sizes = [15, 128], strides = [1, 1]} : vector<18x128xf32> to vector<15x128xf32>
    %66 = tpu.concatenate %64, %65 in 0 : vector<3x128xf32>, vector<15x128xf32> -> vector<18x128xf32>
    %67 = vector.broadcast %54 : vector<18x1xf32> to vector<18x128xf32>
    %68 = arith.mulf %66, %67 : vector<18x128xf32>
    %69 = vector.extract_strided_slice %63 {offsets = [0, 128], sizes = [18, 64], strides = [1, 1]} : vector<18x192xf32> to vector<18x64xf32>
    %cst_43 = arith.constant 0.000000e+00 : f32
    %70 = vector.broadcast %cst_43 : f32 to vector<3x64xf32>
    %71 = vector.extract_strided_slice %69 {offsets = [0, 0], sizes = [15, 64], strides = [1, 1]} : vector<18x64xf32> to vector<15x64xf32>
    %72 = tpu.concatenate %70, %71 in 0 : vector<3x64xf32>, vector<15x64xf32> -> vector<18x64xf32>
    %73 = vector.broadcast %54 : vector<18x1xf32> to vector<18x64xf32>
    %74 = arith.mulf %72, %73 : vector<18x64xf32>
    %c0_44 = arith.constant 0 : index
    %c0_45 = arith.constant 0 : index
    %75 = vector.load %arg5[%c0_44, %c0_45] : memref<1x64xf32, #tpu.memory_space<vmem>>, vector<1x64xf32>
    %76 = vector.extract_strided_slice %56 {offsets = [0, 0], sizes = [18, 64], strides = [1, 1]} : vector<18x256xf32> to vector<18x64xf32>
    %77 = vector.extract_strided_slice %68 {offsets = [0, 0], sizes = [18, 64], strides = [1, 1]} : vector<18x128xf32> to vector<18x64xf32>
    %78 = arith.addf %76, %77 : vector<18x64xf32>
    %79 = vector.extract_strided_slice %63 {offsets = [0, 0], sizes = [18, 64], strides = [1, 1]} : vector<18x192xf32> to vector<18x64xf32>
    %80 = arith.addf %78, %79 : vector<18x64xf32>
    %81 = arith.addf %80, %74 : vector<18x64xf32>
    %82 = vector.broadcast %75 : vector<1x64xf32> to vector<18x64xf32>
    %83 = arith.addf %81, %82 : vector<18x64xf32>
    %cst_46 = arith.constant 0.000000e+00 : f32
    %84 = vector.broadcast %cst_46 : f32 to vector<18x64xf32>
    %85 = arith.maximumf %83, %84 : vector<18x64xf32>
    %86 = vector.extract_strided_slice %56 {offsets = [0, 64], sizes = [18, 64], strides = [1, 1]} : vector<18x256xf32> to vector<18x64xf32>
    %87 = vector.extract_strided_slice %68 {offsets = [0, 64], sizes = [18, 64], strides = [1, 1]} : vector<18x128xf32> to vector<18x64xf32>
    %88 = arith.addf %86, %87 : vector<18x64xf32>
    %89 = vector.broadcast %75 : vector<1x64xf32> to vector<18x64xf32>
    %90 = arith.addf %88, %89 : vector<18x64xf32>
    %cst_47 = arith.constant 0.000000e+00 : f32
    %91 = vector.broadcast %cst_47 : f32 to vector<18x64xf32>
    %92 = arith.maximumf %90, %91 : vector<18x64xf32>
    %93 = vector.extract_strided_slice %56 {offsets = [0, 128], sizes = [18, 64], strides = [1, 1]} : vector<18x256xf32> to vector<18x64xf32>
    %94 = vector.extract_strided_slice %63 {offsets = [0, 64], sizes = [18, 64], strides = [1, 1]} : vector<18x192xf32> to vector<18x64xf32>
    %95 = arith.addf %93, %94 : vector<18x64xf32>
    %96 = vector.broadcast %75 : vector<1x64xf32> to vector<18x64xf32>
    %97 = arith.addf %95, %96 : vector<18x64xf32>
    %cst_48 = arith.constant 0.000000e+00 : f32
    %98 = vector.broadcast %cst_48 : f32 to vector<18x64xf32>
    %99 = arith.maximumf %97, %98 : vector<18x64xf32>
    %100 = vector.extract_strided_slice %56 {offsets = [0, 192], sizes = [18, 64], strides = [1, 1]} : vector<18x256xf32> to vector<18x64xf32>
    %101 = vector.broadcast %75 : vector<1x64xf32> to vector<18x64xf32>
    %102 = arith.addf %100, %101 : vector<18x64xf32>
    %cst_49 = arith.constant 0.000000e+00 : f32
    %103 = vector.broadcast %cst_49 : f32 to vector<18x64xf32>
    %104 = arith.maximumf %102, %103 : vector<18x64xf32>
    %c0_50 = arith.constant 0 : index
    %c0_51 = arith.constant 0 : index
    %c0_52 = arith.constant 0 : index
    %105 = vector.load %arg8[%c0_50, %c0_51, %c0_52] : memref<4x72x18xbf16, #tpu.memory_space<vmem>>, vector<1x72x18xbf16>
    %106 = vector.shape_cast %105 : vector<1x72x18xbf16> to vector<72x18xbf16>
    %107 = arith.extf %106 : vector<72x18xbf16> to vector<72x18xf32>
    %cst_53 = arith.constant dense<0.000000e+00> : vector<72x64xf32>
    %108 = tpu.matmul %107, %85, %cst_53 {dimension_numbers = #tpu.dot_dimension_numbers<[1], [0], [0], [1], [0, 0, 1, 1], [], []>} : vector<72x18xf32>, vector<18x64xf32>, vector<72x64xf32> -> vector<72x64xf32>
    %c1_54 = arith.constant 1 : index
    %c0_55 = arith.constant 0 : index
    %c0_56 = arith.constant 0 : index
    %109 = vector.load %arg8[%c1_54, %c0_55, %c0_56] : memref<4x72x18xbf16, #tpu.memory_space<vmem>>, vector<1x72x18xbf16>
    %110 = vector.shape_cast %109 : vector<1x72x18xbf16> to vector<72x18xbf16>
    %111 = arith.extf %110 : vector<72x18xbf16> to vector<72x18xf32>
    %cst_57 = arith.constant dense<0.000000e+00> : vector<72x64xf32>
    %112 = tpu.matmul %111, %92, %cst_57 {dimension_numbers = #tpu.dot_dimension_numbers<[1], [0], [0], [1], [0, 0, 1, 1], [], []>} : vector<72x18xf32>, vector<18x64xf32>, vector<72x64xf32> -> vector<72x64xf32>
    %113 = arith.addf %108, %112 : vector<72x64xf32>
    %c2_58 = arith.constant 2 : index
    %c0_59 = arith.constant 0 : index
    %c0_60 = arith.constant 0 : index
    %114 = vector.load %arg8[%c2_58, %c0_59, %c0_60] : memref<4x72x18xbf16, #tpu.memory_space<vmem>>, vector<1x72x18xbf16>
    %115 = vector.shape_cast %114 : vector<1x72x18xbf16> to vector<72x18xbf16>
    %116 = arith.extf %115 : vector<72x18xbf16> to vector<72x18xf32>
    %cst_61 = arith.constant dense<0.000000e+00> : vector<72x64xf32>
    %117 = tpu.matmul %116, %99, %cst_61 {dimension_numbers = #tpu.dot_dimension_numbers<[1], [0], [0], [1], [0, 0, 1, 1], [], []>} : vector<72x18xf32>, vector<18x64xf32>, vector<72x64xf32> -> vector<72x64xf32>
    %118 = arith.addf %113, %117 : vector<72x64xf32>
    %c3_62 = arith.constant 3 : index
    %c0_63 = arith.constant 0 : index
    %c0_64 = arith.constant 0 : index
    %119 = vector.load %arg8[%c3_62, %c0_63, %c0_64] : memref<4x72x18xbf16, #tpu.memory_space<vmem>>, vector<1x72x18xbf16>
    %120 = vector.shape_cast %119 : vector<1x72x18xbf16> to vector<72x18xbf16>
    %121 = arith.extf %120 : vector<72x18xbf16> to vector<72x18xf32>
    %cst_65 = arith.constant dense<0.000000e+00> : vector<72x64xf32>
    %122 = tpu.matmul %121, %104, %cst_65 {dimension_numbers = #tpu.dot_dimension_numbers<[1], [0], [0], [1], [0, 0, 1, 1], [], []>} : vector<72x18xf32>, vector<18x64xf32>, vector<72x64xf32> -> vector<72x64xf32>
    %123 = arith.addf %118, %122 : vector<72x64xf32>
    %c0_66 = arith.constant 0 : index
    %c0_67 = arith.constant 0 : index
    %124 = vector.load %arg9[%c0_66, %c0_67] : memref<64x288xf32, #tpu.memory_space<vmem>>, vector<64x288xf32>
    %cst_68 = arith.constant dense<0.000000e+00> : vector<72x288xf32>
    %125 = tpu.matmul %123, %124, %cst_68 {dimension_numbers = #tpu.dot_dimension_numbers<[1], [0], [0], [1], [0, 0, 1, 1], [], []>} : vector<72x64xf32>, vector<64x288xf32>, vector<72x288xf32> -> vector<72x288xf32>
    %c0_69 = arith.constant 0 : index
    %c0_70 = arith.constant 0 : index
    %126 = vector.load %arg11[%c0_69, %c0_70] : memref<72x1xf32, #tpu.memory_space<vmem>>, vector<72x1xf32>
    %c0_71 = arith.constant 0 : index
    %c0_72 = arith.constant 0 : index
    %127 = vector.load %arg12[%c0_71, %c0_72] : memref<72x1xf32, #tpu.memory_space<vmem>>, vector<72x1xf32>
    %128 = vector.extract_strided_slice %125 {offsets = [0, 0], sizes = [72, 128], strides = [1, 1]} : vector<72x288xf32> to vector<72x128xf32>
    %129 = vector.extract_strided_slice %125 {offsets = [0, 128], sizes = [72, 64], strides = [1, 1]} : vector<72x288xf32> to vector<72x64xf32>
    %130 = vector.extract_strided_slice %125 {offsets = [0, 192], sizes = [72, 96], strides = [1, 1]} : vector<72x288xf32> to vector<72x96xf32>
    %cst_73 = arith.constant 0.000000e+00 : f32
    %131 = vector.broadcast %cst_73 : f32 to vector<1x96xf32>
    %132 = vector.extract_strided_slice %130 {offsets = [0, 0], sizes = [71, 96], strides = [1, 1]} : vector<72x96xf32> to vector<71x96xf32>
    %133 = tpu.concatenate %131, %132 in 0 : vector<1x96xf32>, vector<71x96xf32> -> vector<72x96xf32>
    %134 = vector.broadcast %127 : vector<72x1xf32> to vector<72x96xf32>
    %135 = arith.mulf %133, %134 : vector<72x96xf32>
    %cst_74 = arith.constant 0.000000e+00 : f32
    %136 = vector.broadcast %cst_74 : f32 to vector<6x64xf32>
    %137 = vector.extract_strided_slice %129 {offsets = [0, 0], sizes = [66, 64], strides = [1, 1]} : vector<72x64xf32> to vector<66x64xf32>
    %138 = tpu.concatenate %136, %137 in 0 : vector<6x64xf32>, vector<66x64xf32> -> vector<72x64xf32>
    %139 = vector.broadcast %126 : vector<72x1xf32> to vector<72x64xf32>
    %140 = arith.mulf %138, %139 : vector<72x64xf32>
    %141 = vector.extract_strided_slice %135 {offsets = [0, 64], sizes = [72, 32], strides = [1, 1]} : vector<72x96xf32> to vector<72x32xf32>
    %cst_75 = arith.constant 0.000000e+00 : f32
    %142 = vector.broadcast %cst_75 : f32 to vector<6x32xf32>
    %143 = vector.extract_strided_slice %141 {offsets = [0, 0], sizes = [66, 32], strides = [1, 1]} : vector<72x32xf32> to vector<66x32xf32>
    %144 = tpu.concatenate %142, %143 in 0 : vector<6x32xf32>, vector<66x32xf32> -> vector<72x32xf32>
    %145 = vector.broadcast %126 : vector<72x1xf32> to vector<72x32xf32>
    %146 = arith.mulf %144, %145 : vector<72x32xf32>
    %c0_76 = arith.constant 0 : index
    %c0_77 = arith.constant 0 : index
    %147 = vector.load %arg10[%c0_76, %c0_77] : memref<1x32xf32, #tpu.memory_space<vmem>>, vector<1x32xf32>
    %148 = vector.extract_strided_slice %128 {offsets = [0, 0], sizes = [72, 32], strides = [1, 1]} : vector<72x128xf32> to vector<72x32xf32>
    %149 = vector.extract_strided_slice %140 {offsets = [0, 0], sizes = [72, 32], strides = [1, 1]} : vector<72x64xf32> to vector<72x32xf32>
    %150 = arith.addf %148, %149 : vector<72x32xf32>
    %151 = vector.extract_strided_slice %135 {offsets = [0, 0], sizes = [72, 32], strides = [1, 1]} : vector<72x96xf32> to vector<72x32xf32>
    %152 = arith.addf %150, %151 : vector<72x32xf32>
    %153 = arith.addf %152, %146 : vector<72x32xf32>
    %154 = vector.broadcast %147 : vector<1x32xf32> to vector<72x32xf32>
    %155 = arith.addf %153, %154 : vector<72x32xf32>
    %cst_78 = arith.constant 0.000000e+00 : f32
    %156 = vector.broadcast %cst_78 : f32 to vector<72x32xf32>
    %157 = arith.maximumf %155, %156 : vector<72x32xf32>
    %158 = vector.extract_strided_slice %128 {offsets = [0, 32], sizes = [72, 32], strides = [1, 1]} : vector<72x128xf32> to vector<72x32xf32>
    %159 = vector.extract_strided_slice %140 {offsets = [0, 32], sizes = [72, 32], strides = [1, 1]} : vector<72x64xf32> to vector<72x32xf32>
    %160 = arith.addf %158, %159 : vector<72x32xf32>
    %161 = vector.broadcast %147 : vector<1x32xf32> to vector<72x32xf32>
    %162 = arith.addf %160, %161 : vector<72x32xf32>
    %cst_79 = arith.constant 0.000000e+00 : f32
    %163 = vector.broadcast %cst_79 : f32 to vector<72x32xf32>
    %164 = arith.maximumf %162, %163 : vector<72x32xf32>
    %165 = vector.extract_strided_slice %128 {offsets = [0, 64], sizes = [72, 32], strides = [1, 1]} : vector<72x128xf32> to vector<72x32xf32>
    %166 = vector.extract_strided_slice %135 {offsets = [0, 32], sizes = [72, 32], strides = [1, 1]} : vector<72x96xf32> to vector<72x32xf32>
    %167 = arith.addf %165, %166 : vector<72x32xf32>
    %168 = vector.broadcast %147 : vector<1x32xf32> to vector<72x32xf32>
    %169 = arith.addf %167, %168 : vector<72x32xf32>
    %cst_80 = arith.constant 0.000000e+00 : f32
    %170 = vector.broadcast %cst_80 : f32 to vector<72x32xf32>
    %171 = arith.maximumf %169, %170 : vector<72x32xf32>
    %172 = vector.extract_strided_slice %128 {offsets = [0, 96], sizes = [72, 32], strides = [1, 1]} : vector<72x128xf32> to vector<72x32xf32>
    %173 = vector.broadcast %147 : vector<1x32xf32> to vector<72x32xf32>
    %174 = arith.addf %172, %173 : vector<72x32xf32>
    %cst_81 = arith.constant 0.000000e+00 : f32
    %175 = vector.broadcast %cst_81 : f32 to vector<72x32xf32>
    %176 = arith.maximumf %174, %175 : vector<72x32xf32>
    %c0_82 = arith.constant 0 : index
    %c0_83 = arith.constant 0 : index
    %c0_84 = arith.constant 0 : index
    %177 = vector.load %arg13[%c0_82, %c0_83, %c0_84] : memref<4x288x72xbf16, #tpu.memory_space<vmem>>, vector<1x288x72xbf16>
    %178 = vector.shape_cast %177 : vector<1x288x72xbf16> to vector<288x72xbf16>
    %179 = arith.extf %178 : vector<288x72xbf16> to vector<288x72xf32>
    %cst_85 = arith.constant dense<0.000000e+00> : vector<288x32xf32>
    %180 = tpu.matmul %179, %157, %cst_85 {dimension_numbers = #tpu.dot_dimension_numbers<[1], [0], [0], [1], [0, 0, 1, 1], [], []>} : vector<288x72xf32>, vector<72x32xf32>, vector<288x32xf32> -> vector<288x32xf32>
    %c1_86 = arith.constant 1 : index
    %c0_87 = arith.constant 0 : index
    %c0_88 = arith.constant 0 : index
    %181 = vector.load %arg13[%c1_86, %c0_87, %c0_88] : memref<4x288x72xbf16, #tpu.memory_space<vmem>>, vector<1x288x72xbf16>
    %182 = vector.shape_cast %181 : vector<1x288x72xbf16> to vector<288x72xbf16>
    %183 = arith.extf %182 : vector<288x72xbf16> to vector<288x72xf32>
    %cst_89 = arith.constant dense<0.000000e+00> : vector<288x32xf32>
    %184 = tpu.matmul %183, %164, %cst_89 {dimension_numbers = #tpu.dot_dimension_numbers<[1], [0], [0], [1], [0, 0, 1, 1], [], []>} : vector<288x72xf32>, vector<72x32xf32>, vector<288x32xf32> -> vector<288x32xf32>
    %185 = arith.addf %180, %184 : vector<288x32xf32>
    %c2_90 = arith.constant 2 : index
    %c0_91 = arith.constant 0 : index
    %c0_92 = arith.constant 0 : index
    %186 = vector.load %arg13[%c2_90, %c0_91, %c0_92] : memref<4x288x72xbf16, #tpu.memory_space<vmem>>, vector<1x288x72xbf16>
    %187 = vector.shape_cast %186 : vector<1x288x72xbf16> to vector<288x72xbf16>
    %188 = arith.extf %187 : vector<288x72xbf16> to vector<288x72xf32>
    %cst_93 = arith.constant dense<0.000000e+00> : vector<288x32xf32>
    %189 = tpu.matmul %188, %171, %cst_93 {dimension_numbers = #tpu.dot_dimension_numbers<[1], [0], [0], [1], [0, 0, 1, 1], [], []>} : vector<288x72xf32>, vector<72x32xf32>, vector<288x32xf32> -> vector<288x32xf32>
    %190 = arith.addf %185, %189 : vector<288x32xf32>
    %c3_94 = arith.constant 3 : index
    %c0_95 = arith.constant 0 : index
    %c0_96 = arith.constant 0 : index
    %191 = vector.load %arg13[%c3_94, %c0_95, %c0_96] : memref<4x288x72xbf16, #tpu.memory_space<vmem>>, vector<1x288x72xbf16>
    %192 = vector.shape_cast %191 : vector<1x288x72xbf16> to vector<288x72xbf16>
    %193 = arith.extf %192 : vector<288x72xbf16> to vector<288x72xf32>
    %cst_97 = arith.constant dense<0.000000e+00> : vector<288x32xf32>
    %194 = tpu.matmul %193, %176, %cst_97 {dimension_numbers = #tpu.dot_dimension_numbers<[1], [0], [0], [1], [0, 0, 1, 1], [], []>} : vector<288x72xf32>, vector<72x32xf32>, vector<288x32xf32> -> vector<288x32xf32>
    %195 = arith.addf %190, %194 : vector<288x32xf32>
    %c0_98 = arith.constant 0 : index
    %c0_99 = arith.constant 0 : index
    %196 = vector.load %arg14[%c0_98, %c0_99] : memref<32x9xf32, #tpu.memory_space<vmem>>, vector<32x9xf32>
    %cst_100 = arith.constant dense<0.000000e+00> : vector<288x9xf32>
    %197 = tpu.matmul %195, %196, %cst_100 {dimension_numbers = #tpu.dot_dimension_numbers<[1], [0], [0], [1], [0, 0, 1, 1], [], []>} : vector<288x32xf32>, vector<32x9xf32>, vector<288x9xf32> -> vector<288x9xf32>
    %c0_101 = arith.constant 0 : index
    %c0_102 = arith.constant 0 : index
    %198 = vector.load %arg16[%c0_101, %c0_102] : memref<288x1xf32, #tpu.memory_space<vmem>>, vector<288x1xf32>
    %c0_103 = arith.constant 0 : index
    %c0_104 = arith.constant 0 : index
    %199 = vector.load %arg17[%c0_103, %c0_104] : memref<288x1xf32, #tpu.memory_space<vmem>>, vector<288x1xf32>
    %200 = vector.extract_strided_slice %197 {offsets = [0, 0], sizes = [288, 4], strides = [1, 1]} : vector<288x9xf32> to vector<288x4xf32>
    %201 = vector.extract_strided_slice %197 {offsets = [0, 4], sizes = [288, 2], strides = [1, 1]} : vector<288x9xf32> to vector<288x2xf32>
    %202 = vector.extract_strided_slice %197 {offsets = [0, 6], sizes = [288, 3], strides = [1, 1]} : vector<288x9xf32> to vector<288x3xf32>
    %cst_105 = arith.constant 0.000000e+00 : f32
    %203 = vector.broadcast %cst_105 : f32 to vector<1x3xf32>
    %204 = vector.extract_strided_slice %202 {offsets = [0, 0], sizes = [287, 3], strides = [1, 1]} : vector<288x3xf32> to vector<287x3xf32>
    %205 = tpu.concatenate %203, %204 in 0 : vector<1x3xf32>, vector<287x3xf32> -> vector<288x3xf32>
    %206 = vector.broadcast %199 : vector<288x1xf32> to vector<288x3xf32>
    %207 = arith.mulf %205, %206 : vector<288x3xf32>
    %cst_106 = arith.constant 0.000000e+00 : f32
    %208 = vector.broadcast %cst_106 : f32 to vector<12x2xf32>
    %209 = vector.extract_strided_slice %201 {offsets = [0, 0], sizes = [276, 2], strides = [1, 1]} : vector<288x2xf32> to vector<276x2xf32>
    %210 = tpu.concatenate %208, %209 in 0 : vector<12x2xf32>, vector<276x2xf32> -> vector<288x2xf32>
    %211 = vector.broadcast %198 : vector<288x1xf32> to vector<288x2xf32>
    %212 = arith.mulf %210, %211 : vector<288x2xf32>
    %213 = vector.extract_strided_slice %207 {offsets = [0, 2], sizes = [288, 1], strides = [1, 1]} : vector<288x3xf32> to vector<288x1xf32>
    %cst_107 = arith.constant 0.000000e+00 : f32
    %214 = vector.broadcast %cst_107 : f32 to vector<12x1xf32>
    %215 = vector.extract_strided_slice %213 {offsets = [0, 0], sizes = [276, 1], strides = [1, 1]} : vector<288x1xf32> to vector<276x1xf32>
    %216 = tpu.concatenate %214, %215 in 0 : vector<12x1xf32>, vector<276x1xf32> -> vector<288x1xf32>
    %217 = arith.mulf %216, %198 : vector<288x1xf32>
    %c0_108 = arith.constant 0 : index
    %c0_109 = arith.constant 0 : index
    %218 = vector.load %arg15[%c0_108, %c0_109] : memref<1x1xf32, #tpu.memory_space<vmem>>, vector<1x1xf32>
    %219 = vector.extract_strided_slice %200 {offsets = [0, 0], sizes = [288, 1], strides = [1, 1]} : vector<288x4xf32> to vector<288x1xf32>
    %220 = vector.extract_strided_slice %212 {offsets = [0, 0], sizes = [288, 1], strides = [1, 1]} : vector<288x2xf32> to vector<288x1xf32>
    %221 = arith.addf %219, %220 : vector<288x1xf32>
    %222 = vector.extract_strided_slice %207 {offsets = [0, 0], sizes = [288, 1], strides = [1, 1]} : vector<288x3xf32> to vector<288x1xf32>
    %223 = arith.addf %221, %222 : vector<288x1xf32>
    %224 = arith.addf %223, %217 : vector<288x1xf32>
    %225 = vector.broadcast %218 : vector<1x1xf32> to vector<288x1xf32>
    %226 = arith.addf %224, %225 : vector<288x1xf32>
    %cst_110 = arith.constant 0.000000e+00 : f32
    %227 = vector.broadcast %cst_110 : f32 to vector<288x1xf32>
    %228 = arith.subf %227, %226 : vector<288x1xf32>
    %229 = math.exp %228 : vector<288x1xf32>
    %cst_111 = arith.constant 1.000000e+00 : f32
    %230 = vector.broadcast %cst_111 : f32 to vector<288x1xf32>
    %231 = arith.addf %230, %229 : vector<288x1xf32>
    %cst_112 = arith.constant 1.000000e+00 : f32
    %232 = vector.broadcast %cst_112 : f32 to vector<288x1xf32>
    %233 = arith.divf %232, %231 : vector<288x1xf32>
    %234 = vector.extract_strided_slice %200 {offsets = [0, 1], sizes = [288, 1], strides = [1, 1]} : vector<288x4xf32> to vector<288x1xf32>
    %235 = vector.extract_strided_slice %212 {offsets = [0, 1], sizes = [288, 1], strides = [1, 1]} : vector<288x2xf32> to vector<288x1xf32>
    %236 = arith.addf %234, %235 : vector<288x1xf32>
    %237 = vector.broadcast %218 : vector<1x1xf32> to vector<288x1xf32>
    %238 = arith.addf %236, %237 : vector<288x1xf32>
    %cst_113 = arith.constant 0.000000e+00 : f32
    %239 = vector.broadcast %cst_113 : f32 to vector<288x1xf32>
    %240 = arith.subf %239, %238 : vector<288x1xf32>
    %241 = math.exp %240 : vector<288x1xf32>
    %cst_114 = arith.constant 1.000000e+00 : f32
    %242 = vector.broadcast %cst_114 : f32 to vector<288x1xf32>
    %243 = arith.addf %242, %241 : vector<288x1xf32>
    %cst_115 = arith.constant 1.000000e+00 : f32
    %244 = vector.broadcast %cst_115 : f32 to vector<288x1xf32>
    %245 = arith.divf %244, %243 : vector<288x1xf32>
    %246 = vector.extract_strided_slice %200 {offsets = [0, 2], sizes = [288, 1], strides = [1, 1]} : vector<288x4xf32> to vector<288x1xf32>
    %247 = vector.extract_strided_slice %207 {offsets = [0, 1], sizes = [288, 1], strides = [1, 1]} : vector<288x3xf32> to vector<288x1xf32>
    %248 = arith.addf %246, %247 : vector<288x1xf32>
    %249 = vector.broadcast %218 : vector<1x1xf32> to vector<288x1xf32>
    %250 = arith.addf %248, %249 : vector<288x1xf32>
    %cst_116 = arith.constant 0.000000e+00 : f32
    %251 = vector.broadcast %cst_116 : f32 to vector<288x1xf32>
    %252 = arith.subf %251, %250 : vector<288x1xf32>
    %253 = math.exp %252 : vector<288x1xf32>
    %cst_117 = arith.constant 1.000000e+00 : f32
    %254 = vector.broadcast %cst_117 : f32 to vector<288x1xf32>
    %255 = arith.addf %254, %253 : vector<288x1xf32>
    %cst_118 = arith.constant 1.000000e+00 : f32
    %256 = vector.broadcast %cst_118 : f32 to vector<288x1xf32>
    %257 = arith.divf %256, %255 : vector<288x1xf32>
    %258 = vector.extract_strided_slice %200 {offsets = [0, 3], sizes = [288, 1], strides = [1, 1]} : vector<288x4xf32> to vector<288x1xf32>
    %259 = vector.broadcast %218 : vector<1x1xf32> to vector<288x1xf32>
    %260 = arith.addf %258, %259 : vector<288x1xf32>
    %cst_119 = arith.constant 0.000000e+00 : f32
    %261 = vector.broadcast %cst_119 : f32 to vector<288x1xf32>
    %262 = arith.subf %261, %260 : vector<288x1xf32>
    %263 = math.exp %262 : vector<288x1xf32>
    %cst_120 = arith.constant 1.000000e+00 : f32
    %264 = vector.broadcast %cst_120 : f32 to vector<288x1xf32>
    %265 = arith.addf %264, %263 : vector<288x1xf32>
    %cst_121 = arith.constant 1.000000e+00 : f32
    %266 = vector.broadcast %cst_121 : f32 to vector<288x1xf32>
    %267 = arith.divf %266, %265 : vector<288x1xf32>
    %268 = tpu.iota {dimensions = array<i32: 1>} : vector<288x4xi32>
    %c0_i32 = arith.constant 0 : i32
    %269 = vector.broadcast %c0_i32 : i32 to vector<288x4xi32>
    %270 = arith.cmpi eq, %268, %269 : vector<288x4xi32>
    %c1_i32 = arith.constant 1 : i32
    %271 = vector.broadcast %c1_i32 : i32 to vector<288x4xi32>
    %272 = arith.cmpi eq, %268, %271 : vector<288x4xi32>
    %c2_i32 = arith.constant 2 : i32
    %273 = vector.broadcast %c2_i32 : i32 to vector<288x4xi32>
    %274 = arith.cmpi eq, %268, %273 : vector<288x4xi32>
    %275 = vector.shape_cast %257 : vector<288x1xf32> to vector<288x1xf32>
    %276 = vector.broadcast %275 : vector<288x1xf32> to vector<288x4xf32>
    %277 = vector.shape_cast %267 : vector<288x1xf32> to vector<288x1xf32>
    %278 = vector.broadcast %277 : vector<288x1xf32> to vector<288x4xf32>
    %279 = arith.select %274, %276, %278 : vector<288x4xi1>, vector<288x4xf32>
    %280 = vector.shape_cast %245 : vector<288x1xf32> to vector<288x1xf32>
    %281 = vector.broadcast %280 : vector<288x1xf32> to vector<288x4xf32>
    %282 = arith.select %272, %281, %279 : vector<288x4xi1>, vector<288x4xf32>
    %283 = vector.shape_cast %233 : vector<288x1xf32> to vector<288x1xf32>
    %284 = vector.broadcast %283 : vector<288x1xf32> to vector<288x4xf32>
    %285 = arith.select %270, %284, %282 : vector<288x4xi1>, vector<288x4xf32>
    %c0_122 = arith.constant 0 : index
    %c0_123 = arith.constant 0 : index
    %286 = vector.load %arg18[%c0_122, %c0_123] : memref<288x4xf32, #tpu.memory_space<vmem>>, vector<288x4xf32>
    tpu.vector_store %arg18[%c0_122, %c0_123], %285 {strides = array<i32>} : memref<288x4xf32, #tpu.memory_space<vmem>>, vector<288x4xf32>,
    return
  }
}

</mosaic_0001>

<bundles_post_ra>
// kernel: decoder_forward.1
= control target key start
LH: loop header
LB: loop body
LE: loop exit
PB: predicated region body
PF: predicated region fallthrough
CT: control target
= control target key end

     0   :  { %v11413_v2 = vmov 0.0   ;;  %vm120_vm0 = vcmask 64512   ;;  %vm11414_vm1 = vmmov 0   ;;  %v16307_v11 = vlaneseq  ;;  %s11416_s27 = smov 64   ;;  %s11417_s30 = smov 96   ;;  %s16286_s1 = inlined_call_operand.vmem [shape: f32[8,1152], index: 1, kind: input, shape index: {}]   ;;  %s16287_s0 = inlined_call_operand.vmem [shape: f32[2,8], index: 0, kind: input, shape index: {}]   ;;  %s16288_s2 = inlined_call_operand.vmem [shape: f32[1,1152], index: 2, kind: input, shape index: {}]   ;;  %s16289_s3 = inlined_call_operand.vmem [shape: f32[9,18,2], index: 3, kind: input, shape index: {}]   ;;  %s16290_s4 = inlined_call_operand.vmem [shape: f32[128,576], index: 4, kind: input, shape index: {}]   ;;  %s16291_s6 = inlined_call_operand.vmem [shape: f32[18,1], index: 6, kind: input, shape index: {}]   ;;  %s16292_s5 = inlined_call_operand.vmem [shape: f32[1,64], index: 5, kind: input, shape index: {}]   ;;  %s16293_s7 = inlined_call_operand.vmem [shape: f32[18,1], index: 7, kind: input, shape index: {}]   ;;  %s16294_s12 = inlined_call_operand.vmem [shape: f32[72,1], index: 12, kind: input, shape index: {}]   ;;  %s16295_s11 = inlined_call_operand.vmem [shape: f32[72,1], index: 11, kind: input, shape index: {}]   ;;  %s16296_s8 = inlined_call_operand.vmem [shape: bf16[4,72,18], index: 8, kind: input, shape index: {}]   ;;  %s16297_s9 = inlined_call_operand.vmem [shape: f32[64,288], index: 9, kind: input, shape index: {}]   ;;  %s16298_s10 = inlined_call_operand.vmem [shape: f32[1,32], index: 10, kind: input, shape index: {}]   ;;  %s16299_s17 = inlined_call_operand.vmem [shape: f32[288,1], index: 17, kind: input, shape index: {}]   ;;  %s16300_s13 = inlined_call_operand.vmem [shape: bf16[4,288,72], index: 13, kind: input, shape index: {}]   ;;  %s16301_s15 = inlined_call_operand.<no memory space> [shape: f32[1,1], index: 15, kind: input, shape index: {}]   ;;  %s16302_s16 = inlined_call_operand.vmem [shape: f32[288,1], index: 16, kind: input, shape index: {}]   ;;  %s16303_s14 = inlined_call_operand.vmem [shape: f32[32,9], index: 14, kind: input, shape index: {}]   ;;  %s16304_s18 = inlined_call_operand.vmem [shape: f32[288,4], index: 18, kind: output, shape index: {}]  }
   0x1   :  { %16442 = sst [smem:[#allocation136_spill]] %s16286_s1  ;;  %188 = vmatprep.mubr.f32.mxu0 %v11413_v2  ;;  %259 = vmatprep.mubr.f32.mxu1 %v11413_v2  ;;  %vm504_vm2 = vcmask 1041408   ;;  %vm494_vm3 = vcmask 15360   ;;  %v487_v29 = vld [vmem:[%s16289_s3] sm:$0xff]  ;;  %v8813_v35 = vld [vmem:[%s16289_s3 + $0x18] sm:$0xff]  ;;  %v488_v39 = vld [vmem:[%s16289_s3 + $0x8] sm:$0xff] }
   0x2   :  { %16443 = sst [smem:[#allocation137_spill]] %s16287_s0  ;;  %v11572_v12 = vshrl.u32 %v16307_v11, 7  ;;  %v8814_v43 = vld [vmem:[%s16289_s3 + $0x20] sm:$0xff]  ;;  %v489_v46 = vld [vmem:[%s16289_s3 + $0x10] sm:$0x3]  ;;  %v8831_v50 = vld [vmem:[%s16289_s3 + $0x48] sm:$0xff] }
   0x3   :  { %16444 = sst [smem:[#allocation138_spill]] %s16288_s2  ;;  %v8815_v48 = vld [vmem:[%s16289_s3 + $0x28] sm:$0x3]  ;;  %v8824_v54 = vld [vmem:[%s16289_s3 + $0x30] sm:$0xff]  ;;  %v8825_v60 = vld [vmem:[%s16289_s3 + $0x38] sm:$0xff]  ;;  %vm1746_vm4 = vcmask 1042432  }
   0x4   :  { %s16445_s29 = sld [smem:[#allocation136_spill]]  ;;  %v77_v13 = vsub.s32 0, %v11572_v12  ;;  %v85_v15 = vsub.s32 2, %v11572_v12  ;;  %v81_v16 = vsub.s32 1, %v11572_v12  ;;  %v89_v17 = vsub.s32 3, %v11572_v12  ;;  %v8832_v57 = vld [vmem:[%s16289_s3 + $0x50] sm:$0xff] }
   0x5   :  { %s16446_s20 = sld [smem:[#allocation137_spill]]  ;;  %v97_v31 = vsub.s32 5, %v11572_v12  ;;  %v93_v37 = vsub.s32 4, %v11572_v12  ;;  %v105_v52 = vsub.s32 7, %v11572_v12  ;;  %v101_v56 = vsub.s32 6, %v11572_v12  ;;  %s11426_s1 = smov 126  }
   0x6   :  { %s16447_s22 = sld [smem:[#allocation138_spill]]  ;;  %v8833_v62 = vld [vmem:[%s16289_s3 + $0x58] sm:$0x3]  ;;  %v8840_v12 = vld [vmem:[%s16289_s3 + $0x70] sm:$0x3]  ;;  %vm1708_vm5 = vcmask 1040384  }
   0x7   :  { %vm1890_vm6 = vcmask 146432   ;;  %vm2540_vm7 = vcmask 523264   ;;  %vm2976_vm8 = vcmask 1045504   ;;  %vm3453_vm9 = vcmask 588800  }
   0x8   :  { %vm5160_vm10 = vcmask 261120   ;;  %vm6018_vm11 = vcmask 1043456   ;;  %vm8766_vm15 = vcmask 31744  }
   0xa   :  { %v63_v0 = vld [vmem:[%s16445_s29 + $0x8] sm:$0xff]  ;;  %v62_v1 = vld [vmem:[%s16445_s29] sm:$0xff]  ;;  %v65_v4 = vld [vmem:[%s16445_s29 + $0x18] sm:$0xff] }
   0xb   :  { %v61_v3 = vld [vmem:[%s16446_s20] sm:$0x3]  ;;  %154 = vmatprep.subr.mxu0 %v63_v0  ;;  %v64_v5 = vld [vmem:[%s16445_s29 + $0x10] sm:$0xff]  ;;  %v67_v6 = vld [vmem:[%s16445_s29 + $0x28] sm:$0xff]  ;;  %225 = vmatprep.subr.mxu1 %v65_v4 }
   0xc   :  { %155 = vmatpush1.msra.mxu0 %v62_v1  ;;  %v66_v7 = vld [vmem:[%s16445_s29 + $0x20] sm:$0xff]  ;;  %226 = vmatpush1.msra.mxu1 %v64_v5  ;;  %v69_v8 = vld [vmem:[%s16445_s29 + $0x38] sm:$0xff]  ;;  %v68_v9 = vld [vmem:[%s16445_s29 + $0x30] sm:$0xff] }
   0xd   :  { %8808 = vmatmul.mubr.msk.f32.vlgmr.msra.gmra.mxu0 %vm120_vm0, %v61_v3  ;;  %8809 = vmatmul.mubr.msk.f32.vlgmr.msra.gmra.mxu1 %vm120_vm0, %v61_v3  ;;  %v70_v10 = vld [vmem:[%s16445_s29 + $0x40] sm:$0xff] }
   0xe   :  { %296 = vmatprep.subr.mxu0 %v67_v6  ;;  %330 = vmatprep.mubr.f32.mxu0 %v11413_v2  ;;  %v11578_v14 = vld [vmem:[%s16447_s22] sm:$0xff] }
   0xf   :  { %297 = vmatpush1.msra.mxu0 %v66_v7  ;;  %367 = vmatprep.subr.mxu1 %v69_v8  ;;  %v78_v18 = vrot.slane %v11578_v14, %v77_v13  ;;  %v86_v19 = vrot.slane %v11578_v14, %v85_v15  ;;  %v82_v20 = vrot.slane %v11578_v14, %v81_v16  ;;  %v8826_v0 = vld [vmem:[%s16289_s3 + $0x40] sm:$0x3]  ;;  %v8839_v8 = vld [vmem:[%s16289_s3 + $0x68] sm:$0xff]  ;;  %v8852_v15 = vld [vmem:[%s16289_s3 + $0x90] sm:$0xff] }
  0x10   :  { %401 = vmatprep.mubr.f32.mxu1 %v11413_v2  ;;  %368 = vmatpush1.msra.mxu1 %v68_v9  ;;  %v90_v22 = vrot.slane %v11578_v14, %v89_v17  ;;  %v98_v41 = vrot.slane %v11578_v14, %v97_v31  ;;  %v94_v44 = vrot.slane %v11578_v14, %v93_v37  ;;  %v8838_v5 = vld [vmem:[%s16289_s3 + $0x60] sm:$0xff]  ;;  %v8807_v9 = vld [vmem:[%s16447_s22 + $0x8] ss:$0 sm:$0xff]  ;;  %v8860_v17 = vld [vmem:[%s16289_s3 + $0xb0] sm:$0xff] }
  0x11   :  { %8810 = vmatmul.mubr.msk.f32.vlgmr.msra.gmra.mxu0 %vm120_vm0, %v61_v3  ;;  %8811 = vmatmul.mubr.msk.f32.vlgmr.msra.gmra.mxu1 %vm120_vm0, %v61_v3  ;;  %v106_v58 = vrot.slane %v11578_v14, %v105_v52  ;;  %v102_v61 = vrot.slane %v11578_v14, %v101_v56  ;;  %v8846_v7 = vld [vmem:[%s16289_s3 + $0x80] sm:$0xff]  ;;  %v8859_v14 = vld [vmem:[%s16289_s3 + $0xa8] sm:$0xff]  ;;  %v1439_v31 = vld [vmem:[%s16290_s4 + $0x210] sm:$0xff] }
  0x12   :  { %10029 = vmatprep.subr.mxu0 %v11413_v2  ;;  %10031 = vmatprep.mubr.msk.f32.mxu0 %vm11414_vm1, %v11413_v2  ;;  %v1433_v37 = vld [vmem:[%s16290_s4 + $0x1e0] sm:$0xff]  ;;  %v1420_v52 = vld [vmem:[%s16290_s4 + $0x178] sm:$0xff]  ;;  %v1415_v56 = vld [vmem:[%s16290_s4 + $0x150] sm:$0xff] }
  0x13   :  { %10030 = vmatpush3.msra.mxu0 %v70_v10  ;;  %10034 = vmatprep.subr.mxu1 %v11413_v2  ;;  %v8847_v10 = vld [vmem:[%s16289_s3 + $0x88] sm:$0x3] }
  0x14   :  { %10045 = vmatprep.subr.mxu0 %v11413_v2  ;;  %10036 = vmatprep.mubr.msk.f32.mxu1 %vm11414_vm1, %v11413_v2 }
  0x15   :  { %10032 = vmatmul.mubr.msk.f32.vlgmr.msra.gmra.mxu0 %vm120_vm0, %v61_v3  ;;  %v8845_v3 = vld [vmem:[%s16289_s3 + $0x78] sm:$0xff] }
  0x16   :  { %10047 = vmatprep.mubr.msk.f32.mxu0 %vm11414_vm1, %v11413_v2 }
  0xcd   :  { %v190_v21 = vpop.f32.mrf.mxu0  ;;  %v261_v24 = vpop.f32.mrf.mxu1 }
  0xce   :  { %v191_v23 = vadd.f32 %v190_v21, %v78_v18  ;;  %v262_v26 = vadd.f32 %v261_v24, %v86_v19  ;;  %v8853_v18 = vld [vmem:[%s16289_s3 + $0x98] sm:$0xff]  ;;  %v8866_v21 = vld [vmem:[%s16289_s3 + $0xc0] sm:$0xff] }
  0xcf   :  { %v192_v25 = vpop.f32.mrf.mxu0  ;;  %v263_v30 = vpop.f32.mrf.mxu1  ;;  %v8861_v19 = vld [vmem:[%s16289_s3 + $0xb8] sm:$0x3]  ;;  %v1449_v24 = vld [vmem:[%s16290_s4 + $0x260] sm:$0xff] }
  0xd0   :  { %v478_v27 = vmax.f32 %v191_v23, 0.0  ;;  %v193_v28 = vadd.f32 %v192_v25, %v82_v20  ;;  %v264_v32 = vadd.f32 %v263_v30, %v90_v22  ;;  %v480_v36 = vmax.f32 %v262_v26, 0.0  ;;  %v8854_v20 = vld [vmem:[%s16289_s3 + $0xa0] sm:$0x3]  ;;  %v8867_v22 = vld [vmem:[%s16289_s3 + $0xc8] sm:$0xff]  ;;  %v1448_v25 = vld [vmem:[%s16290_s4 + $0x258] sm:$0xff] }
  0xd1   :  { %v332_v33 = vpop.f32.mrf.mxu0  ;;  %v403_v53 = vpop.f32.mrf.mxu1  ;;  %v8868_v23 = vld [vmem:[%s16289_s3 + $0xd0] sm:$0x3]  ;;  %v1446_v30 = vld [vmem:[%s16290_s4 + $0x248] sm:$0xff] }
  0xd2   :  { %v479_v34 = vmax.f32 %v193_v28, 0.0  ;;  %10046 = vmatpush3.msk.msra.mxu0 %vm504_vm2, %v478_v27  ;;  %v481_v40 = vmax.f32 %v264_v32, 0.0  ;;  %v333_v49 = vadd.f32 %v332_v33, %v94_v44  ;;  %v404_v1 = vadd.f32 %v403_v53, %v102_v61  ;;  %v1451_v26 = vld [vmem:[%s16290_s4 + $0x270] sm:$0xff]  ;;  %v1444_v27 = vld [vmem:[%s16290_s4 + $0x238] sm:$0xff]  ;;  %v1450_v28 = vld [vmem:[%s16290_s4 + $0x268] sm:$0xff] }
  0xd3   :  { %10048 = vmatmul.mubr.msk.f32.vlgmr.msra.gmra.mxu0 %vm494_vm3, %v487_v29  ;;  %10067 = vmatprep.subr.mxu0 %v11413_v2  ;;  %v334_v38 = vpop.f32.mrf.mxu0  ;;  %v405_v59 = vpop.f32.mrf.mxu1  ;;  %v1443_v29 = vld [vmem:[%s16290_s4 + $0x230] sm:$0xff]  ;;  %v1445_v32 = vld [vmem:[%s16290_s4 + $0x240] sm:$0xff]  ;;  %v1438_v33 = vld [vmem:[%s16290_s4 + $0x208] sm:$0xff] }
  0xd4   :  { %10035 = vmatpush3.msk.msra.mxu1 %vm504_vm2, %v479_v34  ;;  %10050 = vmatprep.mubr.msk.f32.mxu0 %vm11414_vm1, %v11413_v2  ;;  %v335_v47 = vadd.f32 %v334_v38, %v98_v41  ;;  %v482_v55 = vmax.f32 %v333_v49, 0.0  ;;  %v406_v63 = vadd.f32 %v405_v59, %v106_v58  ;;  %v484_v6 = vmax.f32 %v404_v1, 0.0  ;;  %v1441_v34 = vld [vmem:[%s16290_s4 + $0x220] sm:$0xff]  ;;  %v1436_v38 = vld [vmem:[%s16290_s4 + $0x1f8] sm:$0xff]  ;;  %v1430_v44 = vld [vmem:[%s16290_s4 + $0x1c8] sm:$0xff] }
  0xd5   :  { %10037 = vmatmul.mubr.msk.f32.vlgmr.msra.gmra.mxu1 %vm494_vm3, %v8813_v35  ;;  %10056 = vmatprep.subr.mxu1 %v11413_v2  ;;  %v11607_v42 = vpop.f32.mrf.mxu0  ;;  %v1434_v35 = vld [vmem:[%s16290_s4 + $0x1e8] sm:$0xff]  ;;  %v1428_v41 = vld [vmem:[%s16290_s4 + $0x1b8] sm:$0xff]  ;;  %v1413_v53 = vld [vmem:[%s16290_s4 + $0x140] sm:$0xff] }
  0xd6   :  { %10039 = vmatprep.mubr.msk.f32.mxu1 %vm11414_vm1, %v11413_v2  ;;  %10057 = vmatpush3.msk.msra.mxu1 %vm504_vm2, %v480_v36  ;;  %v483_v51 = vmax.f32 %v335_v47, 0.0  ;;  %v485_v4 = vmax.f32 %v406_v63, 0.0  ;;  %v475_v13 = vadd.f32 %v8807_v9, %v11607_v42  ;;  %v1440_v36 = vld [vmem:[%s16290_s4 + $0x218] sm:$0xff]  ;;  %v1431_v42 = vld [vmem:[%s16290_s4 + $0x1d0] sm:$0xff]  ;;  %v1418_v49 = vld [vmem:[%s16290_s4 + $0x168] sm:$0xff] }
  0xd7   :  { %10051 = vmatmul.mubr.msk.f32.gmra.mxu0 %vm494_vm3, %v488_v39  ;;  %10078 = vmatprep.subr.mxu1 %v11413_v2  ;;  %v10033_v45 = vpop.f32.mrf.mxu0  ;;  %v1429_v39 = vld [vmem:[%s16290_s4 + $0x1c0] sm:$0xff]  ;;  %v1419_v47 = vld [vmem:[%s16290_s4 + $0x170] sm:$0xff]  ;;  %v1404_v59 = vld [vmem:[%s16290_s4 + $0xf8] sm:$0xff] }
  0xd8   :  { %10053 = vmatprep.mubr.msk.f32.mxu0 %vm11414_vm1, %v11413_v2  ;;  %10068 = vmatpush3.msk.msra.mxu0 %vm504_vm2, %v481_v40  ;;  %v486_v16 = vmax.f32 %v475_v13, 0.0  ;;  %v1435_v40 = vld [vmem:[%s16290_s4 + $0x1f0] sm:$0xff]  ;;  %v1398_v1 = vld [vmem:[%s16290_s4 + $0xc8] sm:$0xff]  ;;  %v1384_v13 = vld [vmem:[%s16290_s4 + $0x58] sm:$0xff] }
  0xd9   :  { %10040 = vmatmul.mubr.msk.f32.gmra.mxu1 %vm494_vm3, %v8814_v43  ;;  %10089 = vmatprep.subr.mxu0 %v11413_v2  ;;  %v1424_v43 = vld [vmem:[%s16290_s4 + $0x198] sm:$0xff]  ;;  %v1423_v45 = vld [vmem:[%s16290_s4 + $0x190] sm:$0xff] }
  0xda   :  { %10042 = vmatprep.mubr.msk.f32.mxu1 %vm11414_vm1, %v11413_v2  ;;  %v1411_v58 = vld [vmem:[%s16290_s4 + $0x130] sm:$0xff] }
  0xdb   :  { %10054 = vmatmul.mubr.msk.f32.gmra.mxu0 %vm494_vm3, %v489_v46  ;;  %v1426_v46 = vld [vmem:[%s16290_s4 + $0x1a8] sm:$0xff]  ;;  %v1403_v61 = vld [vmem:[%s16290_s4 + $0xf0] sm:$0xff] }
  0xdc   :  { %10069 = vmatprep.mubr.msk.f32.mxu0 %vm11414_vm1, %v11413_v2  ;;  %v1399_v63 = vld [vmem:[%s16290_s4 + $0xd0] sm:$0xff] }
  0xdd   :  { %10043 = vmatmul.mubr.msk.f32.gmra.mxu1 %vm494_vm3, %v8815_v48  ;;  %v1425_v48 = vld [vmem:[%s16290_s4 + $0x1a0] sm:$0xff]  ;;  %v1395_v9 = vld [vmem:[%s16290_s4 + $0xb0] sm:$0xff] }
  0xde   :  { %10058 = vmatprep.mubr.msk.f32.mxu1 %vm11414_vm1, %v11413_v2 }
  0xdf   :  { %10070 = vmatmul.mubr.msk.f32.vlgmr.msra.gmra.mxu0 %vm494_vm3, %v8831_v50  ;;  %v1421_v50 = vld [vmem:[%s16290_s4 + $0x180] sm:$0xff] }
  0xe0   :  { %10072 = vmatprep.mubr.msk.f32.mxu0 %vm11414_vm1, %v11413_v2  ;;  %10090 = vmatpush3.msk.msra.mxu0 %vm504_vm2, %v483_v51  ;;  %v1414_v51 = vld [vmem:[%s16290_s4 + $0x148] sm:$0xff] }
  0xe1   :  { %10059 = vmatmul.mubr.msk.f32.vlgmr.msra.gmra.mxu1 %vm494_vm3, %v8824_v54  ;;  %10111 = vmatprep.subr.mxu0 %v11413_v2  ;;  %v1416_v54 = vld [vmem:[%s16290_s4 + $0x158] sm:$0xff] }
  0xe2   :  { %10061 = vmatprep.mubr.msk.f32.mxu1 %vm11414_vm1, %v11413_v2  ;;  %10079 = vmatpush3.msk.msra.mxu1 %vm504_vm2, %v482_v55  ;;  %v1409_v55 = vld [vmem:[%s16290_s4 + $0x120] sm:$0xff] }
  0xe3   :  { %10073 = vmatmul.mubr.msk.f32.gmra.mxu0 %vm494_vm3, %v8832_v57  ;;  %10100 = vmatprep.subr.mxu1 %v11413_v2  ;;  %v1408_v57 = vld [vmem:[%s16290_s4 + $0x118] sm:$0xff] }
  0xe4   :  { %10075 = vmatprep.mubr.msk.f32.mxu0 %vm11414_vm1, %v11413_v2 }
  0xe5   :  { %10062 = vmatmul.mubr.msk.f32.gmra.mxu1 %vm494_vm3, %v8825_v60  ;;  %v1410_v60 = vld [vmem:[%s16290_s4 + $0x128] sm:$0xff] }
  0xe6   :  { %10064 = vmatprep.mubr.msk.f32.mxu1 %vm11414_vm1, %v11413_v2 }
  0xe7   :  { %10076 = vmatmul.mubr.msk.f32.gmra.mxu0 %vm494_vm3, %v8833_v62  ;;  %v1406_v62 = vld [vmem:[%s16290_s4 + $0x108] sm:$0xff] }
  0xe8   :  { %10091 = vmatprep.mubr.msk.f32.mxu0 %vm11414_vm1, %v11413_v2 }
  0xe9   :  { %10065 = vmatmul.mubr.msk.f32.gmra.mxu1 %vm494_vm3, %v8826_v0  ;;  %v1405_v0 = vld [vmem:[%s16290_s4 + $0x100] sm:$0xff] }
  0xea   :  { %10080 = vmatprep.mubr.msk.f32.mxu1 %vm11414_vm1, %v11413_v2 }
  0xeb   :  { %10092 = vmatmul.mubr.msk.f32.vlgmr.msra.gmra.mxu0 %vm494_vm3, %v8845_v3  ;;  %v1401_v3 = vld [vmem:[%s16290_s4 + $0xe0] sm:$0xff] }
  0xec   :  { %10094 = vmatprep.mubr.msk.f32.mxu0 %vm11414_vm1, %v11413_v2  ;;  %10112 = vmatpush3.msk.msra.mxu0 %vm504_vm2, %v485_v4  ;;  %v1394_v4 = vld [vmem:[%s16290_s4 + $0xa8] sm:$0xff] }
  0xed   :  { %10081 = vmatmul.mubr.msk.f32.vlgmr.msra.gmra.mxu1 %vm494_vm3, %v8838_v5  ;;  %1453 = vmatprep.subr.mxu0 %v1449_v24  ;;  %v1400_v5 = vld [vmem:[%s16290_s4 + $0xd8] sm:$0xff] }
  0xee   :  { %10083 = vmatprep.mubr.msk.f32.mxu1 %vm11414_vm1, %v11413_v2  ;;  %10101 = vmatpush3.msk.msra.mxu1 %vm504_vm2, %v484_v6  ;;  %v1393_v6 = vld [vmem:[%s16290_s4 + $0xa0] sm:$0xff]  ;;  %v1376_v24 = vld [vmem:[%s16290_s4 + $0x18] sm:$0xff] }
  0xef   :  { %10095 = vmatmul.mubr.msk.f32.gmra.mxu0 %vm494_vm3, %v8846_v7  ;;  %10122 = vmatprep.subr.mxu1 %v11413_v2  ;;  %v1396_v7 = vld [vmem:[%s16290_s4 + $0xb8] sm:$0xff] }
  0xf0   :  { %10097 = vmatprep.mubr.msk.f32.mxu0 %vm11414_vm1, %v11413_v2 }
  0xf1   :  { %10084 = vmatmul.mubr.msk.f32.gmra.mxu1 %vm494_vm3, %v8839_v8  ;;  %v1389_v8 = vld [vmem:[%s16290_s4 + $0x80] sm:$0xff] }
  0xf2   :  { %10086 = vmatprep.mubr.msk.f32.mxu1 %vm11414_vm1, %v11413_v2 }
  0xf3   :  { %10098 = vmatmul.mubr.msk.f32.gmra.mxu0 %vm494_vm3, %v8847_v10  ;;  %v1388_v10 = vld [vmem:[%s16290_s4 + $0x78] sm:$0xff] }
  0xf4   :  { %10113 = vmatprep.mubr.msk.f32.mxu0 %vm11414_vm1, %v11413_v2 }
  0xf5   :  { %10087 = vmatmul.mubr.msk.f32.gmra.mxu1 %vm494_vm3, %v8840_v12  ;;  %v1391_v12 = vld [vmem:[%s16290_s4 + $0x90] sm:$0xff] }
  0xf6   :  { %10102 = vmatprep.mubr.msk.f32.mxu1 %vm11414_vm1, %v11413_v2 }
  0xf7   :  { %10114 = vmatmul.mubr.msk.f32.vlgmr.msra.gmra.mxu0 %vm494_vm3, %v8859_v14  ;;  %v1390_v14 = vld [vmem:[%s16290_s4 + $0x88] sm:$0xff] }
  0xf8   :  { %10116 = vmatprep.mubr.msk.f32.mxu0 %vm11414_vm1, %v11413_v2  ;;  %1454 = vmatpush1.msra.mxu0 %v1448_v25  ;;  %v1375_v25 = vld [vmem:[%s16290_s4 + $0x10] sm:$0xff] }
  0xf9   :  { %10103 = vmatmul.mubr.msk.f32.vlgmr.msra.gmra.mxu1 %vm494_vm3, %v8852_v15  ;;  %1455 = vmatprep.subr.mxu0 %v1444_v27  ;;  %v1383_v15 = vld [vmem:[%s16290_s4 + $0x50] sm:$0xff] }
  0xfa   :  { %10105 = vmatprep.mubr.msk.f32.mxu1 %vm11414_vm1, %v11413_v2  ;;  %10123 = vmatpush3.msk.msra.mxu1 %vm504_vm2, %v486_v16  ;;  %v1386_v16 = vld [vmem:[%s16290_s4 + $0x68] sm:$0xff]  ;;  %v1699_v27 = vld [vmem:[%s16291_s6 + $0x10] sm:$0x3] }
  0xfb   :  { %10117 = vmatmul.mubr.msk.f32.gmra.mxu0 %vm494_vm3, %v8860_v17  ;;  %1536 = vmatprep.subr.mxu1 %v1451_v26  ;;  %v1379_v17 = vld [vmem:[%s16290_s4 + $0x30] sm:$0xff]  ;;  %v16308_v26 = vmov 0  }
  0xfc   :  { %10119 = vmatprep.mubr.msk.f32.mxu0 %vm11414_vm1, %v11413_v2  ;;  %1456 = vmatpush1.msra.mxu0 %v1443_v29  ;;  %v1698_v29 = vld [vmem:[%s16291_s6 + $0x8] sm:$0xff] }
  0xfd   :  { %10106 = vmatmul.mubr.msk.f32.gmra.mxu1 %vm494_vm3, %v8853_v18  ;;  %1457 = vmatprep.subr.mxu0 %v1439_v31  ;;  %v1385_v18 = vld [vmem:[%s16290_s4 + $0x60] sm:$0xff]  ;;  %v1702_v31 = vld [vmem:[%s16293_s7 + $0x10] sm:$0x3] }
  0xfe   :  { %10108 = vmatprep.mubr.msk.f32.mxu1 %vm11414_vm1, %v11413_v2  ;;  %1458 = vmatpush1.msra.mxu0 %v1438_v33  ;;  %v1700_v33 = vld [vmem:[%s16293_s7] sm:$0xff] }
  0xff   :  { %10120 = vmatmul.mubr.msk.f32.gmra.mxu0 %vm494_vm3, %v8861_v19  ;;  %1459 = vmatprep.subr.mxu0 %v1434_v35  ;;  %v1378_v19 = vld [vmem:[%s16290_s4 + $0x28] sm:$0xff] }
 0x100   :  { %1517 = vmatprep.mubr.f32.mxu0 %v11413_v2  ;;  %1460 = vmatpush1.msra.mxu0 %v1433_v37 }
 0x101   :  { %10109 = vmatmul.mubr.msk.f32.gmra.mxu1 %vm494_vm3, %v8854_v20  ;;  %1461 = vmatprep.subr.mxu0 %v1429_v39  ;;  %v1381_v20 = vld [vmem:[%s16290_s4 + $0x40] sm:$0xff] }
 0x102   :  { %10124 = vmatprep.mubr.msk.f32.mxu1 %vm11414_vm1, %v11413_v2  ;;  %1462 = vmatpush1.msra.mxu0 %v1428_v41 }
 0x103   :  { %1463 = vmatprep.subr.mxu0 %v1424_v43  ;;  %10720 = vset.pattern.permute.xlu0 %v16308_v26 }
 0x104   :  { %1464 = vmatpush1.msra.mxu0 %v1423_v45  ;;  %10721 = vset.pattern.permute.xlu1 %v16308_v26 }
 0x105   :  { %10125 = vmatmul.mubr.msk.f32.vlgmr.msra.gmra.mxu1 %vm494_vm3, %v8866_v21  ;;  %1465 = vmatprep.subr.mxu0 %v1419_v47  ;;  %v1374_v21 = vld [vmem:[%s16290_s4 + $0x8] sm:$0xff] }
 0x106   :  { %10127 = vmatprep.mubr.msk.f32.mxu1 %vm11414_vm1, %v11413_v2  ;;  %1537 = vmatpush1.msra.mxu1 %v1450_v28  ;;  %v1697_v28 = vld [vmem:[%s16291_s6] sm:$0xff] }
 0x107   :  { %1538 = vmatprep.subr.mxu1 %v1446_v30  ;;  %1466 = vmatpush1.msra.mxu0 %v1418_v49  ;;  %v11985_v30 = vld [vmem:[%s16292_s5] ss:$0 sm:$0xff] }
 0x108   :  { %1539 = vmatpush1.msra.mxu1 %v1445_v32  ;;  %1467 = vmatprep.subr.mxu0 %v1414_v51  ;;  %v1701_v32 = vld [vmem:[%s16293_s7 + $0x8] sm:$0xff]  ;;  %s11419_s7 = smov 1  }
 0x109   :  { %10128 = vmatmul.mubr.msk.f32.gmra.mxu1 %vm494_vm3, %v8867_v22  ;;  %1540 = vmatprep.subr.mxu1 %v1441_v34  ;;  %v1380_v22 = vld [vmem:[%s16290_s4 + $0x38] sm:$0xff] }
 0x10a   :  { %10130 = vmatprep.mubr.msk.f32.mxu1 %vm11414_vm1, %v11413_v2  ;;  %1541 = vmatpush1.msra.mxu1 %v1440_v36 }
 0x10b   :  { %1542 = vmatprep.subr.mxu1 %v1436_v38  ;;  %1468 = vmatpush1.msra.mxu0 %v1413_v53 }
 0x10c   :  { %1543 = vmatpush1.msra.mxu1 %v1435_v40  ;;  %1469 = vmatprep.subr.mxu0 %v1409_v55 }
 0x10d   :  { %10131 = vmatmul.mubr.msk.f32.gmra.mxu1 %vm494_vm3, %v8868_v23  ;;  %1544 = vmatprep.subr.mxu1 %v1431_v42  ;;  %v1373_v23 = vld [vmem:[%s16290_s4] sm:$0xff] }
 0x10e   :  { %1600 = vmatprep.mubr.f32.mxu1 %v11413_v2  ;;  %1545 = vmatpush1.msra.mxu1 %v1430_v44 }
 0x10f   :  { %1546 = vmatprep.subr.mxu1 %v1426_v46  ;;  %1470 = vmatpush1.msra.mxu0 %v1408_v57 }
 0x110   :  { %1547 = vmatpush1.msra.mxu1 %v1425_v48  ;;  %1471 = vmatprep.subr.mxu0 %v1404_v59 }
 0x111   :  { %1548 = vmatprep.subr.mxu1 %v1421_v50  ;;  %1472 = vmatpush1.msra.mxu0 %v1403_v61 }
 0x112   :  { %1549 = vmatpush1.msra.mxu1 %v1420_v52  ;;  %1473 = vmatprep.subr.mxu0 %v1399_v63 }
 0x113   :  { %1550 = vmatprep.subr.mxu1 %v1416_v54  ;;  %1474 = vmatpush1.msra.mxu0 %v1398_v1 }
 0x114   :  { %1551 = vmatpush1.msra.mxu1 %v1415_v56  ;;  %1475 = vmatprep.subr.mxu0 %v1394_v4 }
 0x115   :  { %1552 = vmatprep.subr.mxu1 %v1411_v58  ;;  %1476 = vmatpush1.msra.mxu0 %v1393_v6 }
 0x116   :  { %1553 = vmatpush1.msra.mxu1 %v1410_v60  ;;  %1477 = vmatprep.subr.mxu0 %v1389_v8 }
 0x117   :  { %1554 = vmatprep.subr.mxu1 %v1406_v62  ;;  %1478 = vmatpush1.msra.mxu0 %v1388_v10 }
 0x118   :  { %1555 = vmatpush1.msra.mxu1 %v1405_v0  ;;  %1479 = vmatprep.subr.mxu0 %v1384_v13 }
 0x119   :  { %1556 = vmatprep.subr.mxu1 %v1401_v3  ;;  %1480 = vmatpush1.msra.mxu0 %v1383_v15 }
 0x11a   :  { %1557 = vmatpush1.msra.mxu1 %v1400_v5  ;;  %1481 = vmatprep.subr.mxu0 %v1379_v17 }
 0x11b   :  { %1558 = vmatprep.subr.mxu1 %v1396_v7  ;;  %1482 = vmatpush1.msra.mxu0 %v1378_v19 }
 0x11c   :  { %1559 = vmatpush1.msra.mxu1 %v1395_v9  ;;  %1483 = vmatprep.subr.mxu0 %v1374_v21 }
 0x11d   :  { %1560 = vmatprep.subr.mxu1 %v1391_v12  ;;  %1484 = vmatpush1.msra.mxu0 %v1373_v23 }
 0x11e   :  { %1561 = vmatpush1.msra.mxu1 %v1390_v14  ;;  %10133 = vmatprep.subr.mxu0 %v11413_v2 }
 0x11f   :  { %1562 = vmatprep.subr.mxu1 %v1386_v16  ;;  %1766 = vperm.xlu0 %10720, %v1699_v27  }
 0x120   :  { %1563 = vmatpush1.msra.mxu1 %v1385_v18  ;;  %1756 = vperm.xlu1 %10721, %v1697_v28  }
 0x121   :  { %1564 = vmatprep.subr.mxu1 %v1381_v20 }
 0x122   :  { %1565 = vmatpush1.msra.mxu1 %v1380_v22 }
 0x123   :  { %1566 = vmatprep.subr.mxu1 %v1376_v24  ;;  %1761 = vperm.xlu0 %10720, %v1698_v29  }
 0x124   :  { %1567 = vmatpush1.msra.mxu1 %v1375_v25  ;;  %1806 = vrot.lane.b32.xlu1 %v11985_v30, %s11416_s27 }
 0x125   :  { %10699 = vmatprep.subr.mxu1 %v11413_v2 }
 0x127   :  { %1736 = vperm.xlu0 %10720, %v1702_v31  }
 0x128   :  { %1731 = vperm.xlu1 %10721, %v1701_v32  }
 0x12b   :  { %1726 = vperm.xlu0 %10720, %v1700_v33  }
 0x193   :  { %v666_v34 = vpop.f32.mrf.mxu0 }
 0x195   :  { %v574_v35 = vpop.f32.mrf.mxu1  ;;  %v10049_v36 = vpop.f32.mrf.mxu0 }
 0x196   :  { %v667_v1 = vadd.f32 %v666_v34, %v574_v35 }
 0x197   :  { %v10038_v37 = vpop.f32.mrf.mxu1  ;;  %v671_v38 = vpop.f32.mrf.mxu0 }
 0x199   :  { %v579_v39 = vpop.f32.mrf.mxu1  ;;  %v10052_v40 = vpop.f32.mrf.mxu0 }
 0x19a   :  { %v672_v8 = vadd.f32 %v671_v38, %v579_v39 }
 0x19b   :  { %v10041_v41 = vpop.f32.mrf.mxu1  ;;  %v676_v42 = vpop.f32.mrf.mxu0 }
 0x19d   :  { %v584_v43 = vpop.f32.mrf.mxu1  ;;  %v10055_v44 = vpop.f32.mrf.mxu0 }
 0x19e   :  { %v677_v16 = vadd.f32 %v676_v42, %v584_v43  ;;  %v1452_v42 = vld [vmem:[%s16290_s4 + $0x278] sm:$0xff] }
 0x19f   :  { %v10044_v45 = vpop.f32.mrf.mxu1  ;;  %v861_v46 = vpop.f32.mrf.mxu0 }
 0x1a1   :  { %v762_v47 = vpop.f32.mrf.mxu1  ;;  %v10071_v48 = vpop.f32.mrf.mxu0 }
 0x1a2   :  { %v776_v5 = vadd.f32 %v762_v47, %v667_v1  ;;  %v1387_v1 = vld [vmem:[%s16290_s4 + $0x70] sm:$0xff] }
 0x1a3   :  { %v10060_v49 = vpop.f32.mrf.mxu1  ;;  %v866_v50 = vpop.f32.mrf.mxu0 }
 0x1a4   :  { %v875_v12 = vadd.f32 %v861_v46, %v776_v5  ;;  %v1447_v46 = vld [vmem:[%s16290_s4 + $0x250] sm:$0xff]  ;;  %v1442_v49 = vld [vmem:[%s16290_s4 + $0x228] sm:$0xff]  ;;  %v12081_v5 = vpop.permute.xlu0 %1766 }
 0x1a5   :  { %v767_v51 = vpop.f32.mrf.mxu1  ;;  %v10074_v52 = vpop.f32.mrf.mxu0 }
 0x1a6   :  { %v777_v13 = vadd.f32 %v767_v51, %v672_v8  ;;  %v1437_v52 = vld [vmem:[%s16290_s4 + $0x200] sm:$0xff]  ;;  %v12085_v8 = vpop.permute.xlu1 %1756 }
 0x1a7   :  { %v10063_v53 = vpop.f32.mrf.mxu1  ;;  %v871_v54 = vpop.f32.mrf.mxu0 }
 0x1a8   :  { %v876_v20 = vadd.f32 %v866_v50, %v777_v13 }
 0x1a9   :  { %v772_v55 = vpop.f32.mrf.mxu1  ;;  %v10077_v56 = vpop.f32.mrf.mxu0 }
 0x1aa   :  { %v778_v21 = vadd.f32 %v772_v55, %v677_v16  ;;  %v1432_v55 = vld [vmem:[%s16290_s4 + $0x1d8] sm:$0xff] }
 0x1ab   :  { %v10066_v57 = vpop.f32.mrf.mxu1  ;;  %v1059_v58 = vpop.f32.mrf.mxu0 }
 0x1ac   :  { %v877_v29 = vadd.f32 %v871_v54, %v778_v21  ;;  %v1427_v57 = vld [vmem:[%s16290_s4 + $0x1b0] sm:$0xff] }
 0x1ad   :  { %v960_v59 = vpop.f32.mrf.mxu1  ;;  %v10093_v60 = vpop.f32.mrf.mxu0 }
 0x1ae   :  { %v974_v17 = vadd.f32 %v960_v59, %v875_v12  ;;  %v1417_v59 = vld [vmem:[%s16290_s4 + $0x160] sm:$0xff]  ;;  %v1412_v60 = vld [vmem:[%s16290_s4 + $0x138] sm:$0xff] }
 0x1af   :  { %v10082_v61 = vpop.f32.mrf.mxu1  ;;  %v1064_v62 = vpop.f32.mrf.mxu0 }
 0x1b0   :  { %v1073_v24 = vadd.f32 %v1059_v58, %v974_v17  ;;  %v1422_v58 = vld [vmem:[%s16290_s4 + $0x188] sm:$0xff]  ;;  %v1407_v61 = vld [vmem:[%s16290_s4 + $0x110] sm:$0xff] }
 0x1b1   :  { %v965_v63 = vpop.f32.mrf.mxu1  ;;  %v10096_v0 = vpop.f32.mrf.mxu0 }
 0x1b2   :  { %v975_v25 = vadd.f32 %v965_v63, %v876_v20  ;;  %v1397_v63 = vld [vmem:[%s16290_s4 + $0xc0] sm:$0xff]  ;;  %v1392_v0 = vld [vmem:[%s16290_s4 + $0x98] sm:$0xff] }
 0x1b3   :  { %v10085_v3 = vpop.f32.mrf.mxu1  ;;  %v1069_v4 = vpop.f32.mrf.mxu0 }
 0x1b4   :  { %v1074_v34 = vadd.f32 %v1064_v62, %v975_v25  ;;  %v1402_v62 = vld [vmem:[%s16290_s4 + $0xe8] sm:$0xff] }
 0x1b5   :  { %v970_v6 = vpop.f32.mrf.mxu1  ;;  %v10099_v7 = vpop.f32.mrf.mxu0  ;;  %v1382_v3 = vld [vmem:[%s16290_s4 + $0x48] sm:$0xff] }
 0x1b6   :  { %v976_v35 = vadd.f32 %v970_v6, %v877_v29  ;;  %v12083_v6 = vpop.permute.xlu0 %1761 }
 0x1b7   :  { %v10088_v9 = vpop.f32.mrf.mxu1  ;;  %v1257_v10 = vpop.f32.mrf.mxu0 }
 0x1b8   :  { %v1075_v40 = vadd.f32 %v1069_v4, %v976_v35  ;;  %v1377_v4 = vld [vmem:[%s16290_s4 + $0x20] sm:$0xff]  ;;  %s11418_s4 = smov 32  }
 0x1b9   :  { %v1158_v14 = vpop.f32.mrf.mxu1  ;;  %v10115_v15 = vpop.f32.mrf.mxu0 }
 0x1ba   :  { %v1172_v31 = vadd.f32 %v1158_v14, %v1073_v24  ;;  %v1737_v7 = vpop.permute.xlu0 %1736 }
 0x1bb   :  { %v10104_v18 = vpop.f32.mrf.mxu1  ;;  %v1262_v19 = vpop.f32.mrf.mxu0 }
 0x1bc   :  { %v1271_v37 = vadd.f32 %v1257_v10, %v1172_v31 }
 0x1bd   :  { %v1163_v22 = vpop.f32.mrf.mxu1  ;;  %v10118_v23 = vpop.f32.mrf.mxu0 }
 0x1be   :  { %v1173_v38 = vadd.f32 %v1163_v22, %v1074_v34  ;;  %v1727_v17 = vpop.permute.xlu0 %1726 }
 0x1bf   :  { %v10107_v27 = vpop.f32.mrf.mxu1  ;;  %v1267_v28 = vpop.f32.mrf.mxu0 }
 0x1c0   :  { %v1272_v44 = vadd.f32 %v1262_v19, %v1173_v38  ;;  %v1807_v19 = vpop.permute.xlu1 %1806 }
 0x1c1   :  { %v1168_v32 = vpop.f32.mrf.mxu1  ;;  %v10121_v33 = vpop.f32.mrf.mxu0 }
 0x1c2   :  { %v1174_v45 = vadd.f32 %v1168_v32, %v1075_v40 }
 0x1c3   :  { %v10110_v36 = vpop.f32.mrf.mxu1 }
 0x1c4   :  { %v1273_v51 = vadd.f32 %v1267_v28, %v1174_v45 }
 0x1c5   :  { %v1356_v39 = vpop.f32.mrf.mxu1 }
 0x1c6   :  { %v11998_v41 = vadd.f32 %v1356_v39, %v1271_v37  ;;  %v1732_v37 = vpop.permute.xlu1 %1731 }
 0x1c7   :  { %v10126_v43 = vpop.f32.mrf.mxu1 }
 0x1c8   :  { %1518 = vmatmul.mubr.f32.vlgmr.msra.gmra.mxu0 %v11998_v41  ;;  %1601 = vmatmul.mubr.f32.vlgmr.msra.gmra.mxu1 %v11998_v41 }
 0x1c9   :  { %10134 = vmatpush3.msra.mxu0 %v1452_v42  ;;  %v1361_v47 = vpop.f32.mrf.mxu1  ;;  %1523 = vmatprep.mubr.f32.mxu0 %v11413_v2 }
 0x1ca   :  { %v1371_v48 = vadd.f32 %v1361_v47, %v1272_v44  ;;  %10135 = vmatprep.subr.mxu0 %v11413_v2  ;;  %1606 = vmatprep.mubr.f32.mxu1 %v11413_v2 }
 0x1cb   :  { %10136 = vmatpush3.msra.mxu0 %v1447_v46  ;;  %v10129_v50 = vpop.f32.mrf.mxu1 }
 0x1cc   :  { %10137 = vmatprep.subr.mxu0 %v11413_v2  ;;  %1524 = vmatmul.mubr.f32.gmra.mxu0 %v1371_v48 }
 0x1cd   :  { %1607 = vmatmul.mubr.f32.gmra.mxu1 %v1371_v48  ;;  %10138 = vmatpush3.msra.mxu0 %v1442_v49  ;;  %v1366_v53 = vpop.f32.mrf.mxu1 }
 0x1ce   :  { %v1372_v54 = vadd.f32 %v1366_v53, %v1273_v51  ;;  %10139 = vmatprep.subr.mxu0 %v11413_v2  ;;  %1529 = vmatprep.mubr.f32.mxu0 %v11413_v2 }
 0x1cf   :  { %10140 = vmatpush3.msra.mxu0 %v1437_v52  ;;  %v10132_v56 = vpop.f32.mrf.mxu1  ;;  %1612 = vmatprep.mubr.f32.mxu1 %v11413_v2 }
 0x1d0   :  { %10141 = vmatprep.subr.mxu0 %v11413_v2  ;;  %1530 = vmatmul.mubr.f32.gmra.mxu0 %v1372_v54 }
 0x1d1   :  { %1613 = vmatmul.mubr.f32.gmra.mxu1 %v1372_v54  ;;  %10142 = vmatpush3.msra.mxu0 %v1432_v55 }
 0x1d2   :  { %10143 = vmatprep.subr.mxu0 %v11413_v2  ;;  %10165 = vmatprep.mubr.msk.f32.mxu0 %vm11414_vm1, %v11413_v2 }
 0x1d3   :  { %10144 = vmatpush3.msra.mxu0 %v1427_v57  ;;  %10198 = vmatprep.mubr.msk.f32.mxu1 %vm11414_vm1, %v11413_v2 }
 0x1d4   :  { %10145 = vmatprep.subr.mxu0 %v11413_v2 }
 0x1d5   :  { %10146 = vmatpush3.msra.mxu0 %v1422_v58 }
 0x1d6   :  { %10147 = vmatprep.subr.mxu0 %v11413_v2 }
 0x1d7   :  { %10148 = vmatpush3.msra.mxu0 %v1417_v59 }
 0x1d8   :  { %10149 = vmatprep.subr.mxu0 %v11413_v2 }
 0x1d9   :  { %10150 = vmatpush3.msra.mxu0 %v1412_v60 }
 0x1da   :  { %10151 = vmatprep.subr.mxu0 %v11413_v2 }
 0x1db   :  { %10152 = vmatpush3.msra.mxu0 %v1407_v61  ;;  %v2806_v61 = vld [vmem:[%s16294_s12] sm:$0xff] }
 0x1dc   :  { %10153 = vmatprep.subr.mxu0 %v11413_v2 }
 0x1dd   :  { %10154 = vmatpush3.msra.mxu0 %v1402_v62 }
 0x1de   :  { %10155 = vmatprep.subr.mxu0 %v11413_v2 }
 0x1df   :  { %10156 = vmatpush3.msra.mxu0 %v1397_v63 }
 0x1e0   :  { %10157 = vmatprep.subr.mxu0 %v11413_v2 }
 0x1e1   :  { %10158 = vmatpush3.msra.mxu0 %v1392_v0  ;;  %v2807_v0 = vld [vmem:[%s16294_s12 + $0x8] sm:$0xff] }
 0x1e2   :  { %10159 = vmatprep.subr.mxu0 %v11413_v2 }
 0x1e3   :  { %10160 = vmatpush3.msra.mxu0 %v1387_v1 }
 0x1e4   :  { %10161 = vmatprep.subr.mxu0 %v11413_v2 }
 0x1e5   :  { %10162 = vmatpush3.msra.mxu0 %v1382_v3  ;;  %v2808_v3 = vld [vmem:[%s16294_s12 + $0x10] sm:$0xff] }
 0x1e6   :  { %10163 = vmatprep.subr.mxu0 %v11413_v2 }
 0x1e7   :  { %10164 = vmatpush3.msra.mxu0 %v1377_v4 }
 0x1e8   :  { %10166 = vmatmul.mubr.f32.vlgmr.msra.gmra.mxu0 %v11998_v41  ;;  %10174 = vmatprep.subr.mxu0 %v11413_v2 }
 0x1e9   :  { %10168 = vmatprep.mubr.msk.f32.mxu0 %vm11414_vm1, %v11413_v2 }
 0x1ec   :  { %10169 = vmatmul.mubr.f32.gmra.mxu0 %v1371_v48 }
 0x1ed   :  { %10171 = vmatprep.mubr.msk.f32.mxu0 %vm11414_vm1, %v11413_v2 }
 0x1f0   :  { %10172 = vmatmul.mubr.f32.gmra.mxu0 %v1372_v54 }
 0x1f1   :  { %10180 = vmatprep.mubr.msk.f32.mxu0 %vm11414_vm1, %v11413_v2 }
 0x288   :  { %v1519_v9 = vpop.f32.mrf.mxu0  ;;  %v1602_v10 = vpop.f32.mrf.mxu1 }
 0x289   :  { %v1747_v12 = vrot.slane %v1602_v10, 5 }
 0x28a   :  { %v12087_v13 = vpop.f32.mrf.mxu0  ;;  %v1604_v14 = vpop.f32.mrf.mxu1 }
 0x28b   :  { %v1753_v15 = vsel %vm1746_vm4, 0.0, %v1747_v12  ;;  %v1709_v16 = vrot.slane %v1604_v14, 7  ;;  %v1836_v57 = vadd.f32 %v1807_v19, %v12087_v13 }
 0x28c   :  { %v1769_v18 = vmul.f32 %v12085_v8, %v1753_v15  ;;  %v1525_v20 = vpop.f32.mrf.mxu0 }
 0x28d   :  { %v1722_v21 = vsel %vm1708_vm5, 0.0, %v1709_v16  ;;  %v1608_v22 = vpop.f32.mrf.mxu1  ;;  %v1839_v60 = vmax.f32 %v1836_v57, 0.0 }
 0x28e   :  { %v1785_v23 = vadd.f32 %v1769_v18, %v1519_v9  ;;  %v1739_v24 = vmul.f32 %v1727_v17, %v1722_v21  ;;  %v1748_v25 = vrot.slane %v1608_v22, 5  ;;  %v12092_v27 = vpop.f32.mrf.mxu0  ;;  %v2811_v22 = vld [vmem:[%s16294_s12 + $0x28] sm:$0xff] }
 0x28f   :  { %v1610_v28 = vpop.f32.mrf.mxu1  ;;  %v1837_v56 = vadd.f32 %v1807_v19, %v12092_v27 }
 0x290   :  { %v12094_v29 = vadd.f32 %v1785_v23, %v1739_v24  ;;  %v1749_v31 = vsel %vm1746_vm4, %v1747_v12, %v1748_v25  ;;  %v1711_v32 = vrot.slane %v1610_v28, 7  ;;  %v1531_v33 = vpop.f32.mrf.mxu0  ;;  %v1771_v34 = vmul.f32 %v12081_v5, %v1748_v25  ;;  %v2809_v12 = vld [vmem:[%s16294_s12 + $0x18] sm:$0xff]  ;;  %v2812_v25 = vld [vmem:[%s16294_s12 + $0x30] sm:$0xff] }
 0x291   :  { %v1770_v35 = vmul.f32 %v12083_v6, %v1749_v31  ;;  %v1614_v36 = vpop.f32.mrf.mxu1  ;;  %v1809_v48 = vadd.f32 %v1807_v19, %v1785_v23  ;;  %v1840_v59 = vmax.f32 %v1837_v56, 0.0 }
 0x292   :  { %v1787_v38 = vadd.f32 %v1771_v34, %v1531_v33  ;;  %v1712_v39 = vsel %vm1708_vm5, %v1709_v16, %v1711_v32  ;;  %v12105_v54 = vpop.f32.mrf.mxu0  ;;  %v2810_v16 = vld [vmem:[%s16294_s12 + $0x20] sm:$0xff] }
 0x293   :  { %v1615_v40 = vpop.f32.mrf.mxu1  ;;  %v1786_v41 = vadd.f32 %v1770_v35, %v1525_v20  ;;  %v1741_v42 = vmul.f32 %v1732_v37, %v1712_v39  ;;  %v1812_v53 = vmax.f32 %v1809_v48, 0.0  ;;  %v1838_v55 = vadd.f32 %v1807_v19, %v12105_v54  ;;  %v2814_v35 = vld [vmem:[%s16294_s12 + $0x40] sm:$0xff]  ;;  %v2802_v39 = vld [vmem:[%s16295_s11 + $0x28] sm:$0xff] }
 0x294   :  { %v1811_v43 = vadd.f32 %v1807_v19, %v1787_v38  ;;  %v1715_v44 = vrot.slane %v1615_v40, 7  ;;  %v2803_v40 = vld [vmem:[%s16295_s11 + $0x30] sm:$0xff] }
 0x295   :  { %v1810_v45 = vadd.f32 %v1807_v19, %v1786_v41  ;;  %v12100_v46 = vadd.f32 %v1786_v41, %v1741_v42  ;;  %v1841_v58 = vmax.f32 %v1838_v55, 0.0  ;;  %v2804_v41 = vld [vmem:[%s16295_s11 + $0x38] sm:$0xff] }
 0x296   :  { %v1814_v47 = vmax.f32 %v1811_v43, 0.0  ;;  %v1716_v49 = vsel %vm1708_vm5, %v1711_v32, %v1715_v44 }
 0x297   :  { %v1813_v50 = vmax.f32 %v1810_v45, 0.0  ;;  %v1743_v51 = vmul.f32 %v1737_v7, %v1716_v49  ;;  %v9604_v49 = vld [vmem:[%s16296_s8 + $0x28] sm:$0xff]  }
 0x298   :  { %1886 = vrot.lane.b32.xlu1 %v1814_v47, %s11416_s27  ;;  %v12191_v47 = vld [vmem:[%s16296_s8 + $0x38] sm:$0xff]   ;;  %v9267_v57 = vunpack.c.l.bf16 %v9604_v49 }
 0x299   :  { %1884 = vrot.lane.b32.xlu0 %v1813_v50, %s11416_s27  ;;  %v1790_v52 = vadd.f32 %v1787_v38, %v1743_v51  ;;  %v2801_v38 = vld [vmem:[%s16295_s11 + $0x20] sm:$0xff]  ;;  %v9276_v55 = vunpack.c.h.bf16 %v12191_v47 }
 0x29c   :  { %1882 = vrot.lane.b32.xlu1 %v1812_v53, %s11416_s27 }
 0x29d   :  { %1822 = vrot.lane.b32.xlu0 %v1743_v51, %s11416_s27 }
 0x2a0   :  { %1820 = vrot.lane.b32.xlu1 %v1741_v42, %s11416_s27  ;;  %v12180_v42 = vld [vmem:[%s16296_s8 + $0x20] sm:$0xff]  }
 0x2a1   :  { %1818 = vrot.lane.b32.xlu0 %v1739_v24, %s11416_s27 }
 0x2a4   :  { %2364 = vrot.lane.b32.xlu1 %v1841_v58, %s11416_s27  ;;  %v9607_v58 = vld [vmem:[%s16296_s8 + $0x40] sm:$0xff]  }
 0x2a5   :  { %2362 = vrot.lane.b32.xlu0 %v1840_v59, %s11416_s27 }
 0x2a8   :  { %2360 = vrot.lane.b32.xlu1 %v1839_v60, %s11416_s27  ;;  %v1684_v62 = vpop.f32.mrf.mxu0 }
 0x2a9   :  { %v1710_v63 = vrot.slane %v1684_v62, 7  ;;  %2924 = vperm.xlu0 %10720, %v2806_v61  }
 0x2aa   :  { %v10167_v1 = vpop.f32.mrf.mxu0 }
 0x2ab   :  { %v1723_v4 = vsel %vm1708_vm5, 0.0, %v1710_v63 }
 0x2ac   :  { %v1740_v7 = vmul.f32 %v1727_v17, %v1723_v4  ;;  %2929 = vperm.xlu1 %10721, %v2807_v0   ;;  %v1689_v9 = vpop.f32.mrf.mxu0  ;;  %v9279_v0 = vunpack.c.l.bf16 %v9607_v58  ;;  %v9268_v4 = vunpack.c.h.bf16 %v9604_v49 }
 0x2ad   :  { %v1713_v10 = vrot.slane %v1689_v9, 7  ;;  %2934 = vperm.xlu0 %10720, %v2808_v3  }
 0x2ae   :  { %v1774_v14 = vrot.slane %v1740_v7, 5  ;;  %v10170_v15 = vpop.f32.mrf.mxu0 }
 0x2af   :  { %v1714_v18 = vsel %vm1708_vm5, %v1710_v63, %v1713_v10 }
 0x2b0   :  { %v1780_v19 = vsel %vm1746_vm4, 0.0, %v1774_v14  ;;  %v1742_v20 = vmul.f32 %v1732_v37, %v1714_v18  ;;  %2939 = vperm.xlu1 %10721, %v2809_v12   ;;  %v1694_v17 = vpop.f32.mrf.mxu0  ;;  %v2800_v37 = vld [vmem:[%s16295_s11 + $0x18] sm:$0xff]  ;;  %v9275_v18 = vunpack.c.l.bf16 %v12191_v47 }
 0x2b1   :  { %v1781_v21 = vmul.f32 %v1780_v19, %v12085_v8  ;;  %2944 = vperm.xlu0 %10720, %v2810_v16   ;;  %v2813_v8 = vld [vmem:[%s16294_s12 + $0x38] sm:$0xff]  ;;  %v9609_v17 = vld [vmem:[%s16296_s8 + $0x50] sm:$0xff]  }
 0x2b2   :  { %v1775_v23 = vrot.slane %v1742_v20, 5  ;;  %v10173_v24 = vpop.f32.mrf.mxu0  ;;  %v9250_v20 = vld [vmem:[%s16296_s8] sm:$0xff]  }
 0x2b3   :  { %v1791_v28 = vadd.f32 %v12094_v29, %v1781_v21  ;;  %v2798_v29 = vld [vmem:[%s16295_s11 + $0x8] sm:$0xff]  ;;  %v9251_v21 = vunpack.c.l.bf16 %v9250_v20  ;;  %v9252_v24 = vunpack.c.h.bf16 %v9250_v20 }
 0x2b4   :  { %v1776_v31 = vsel %vm1746_vm4, %v1774_v14, %v1775_v23  ;;  %v1783_v32 = vmul.f32 %v1775_v23, %v12081_v5  ;;  %2949 = vperm.xlu1 %10721, %v2811_v22   ;;  %v2797_v5 = vld [vmem:[%s16295_s11] sm:$0xff]  ;;  %v9280_v14 = vunpack.c.h.bf16 %v9607_v58  ;;  %v9287_v22 = vunpack.c.l.bf16 %v9609_v17  ;;  %v2517_v20 = vld [vmem:[%s16297_s9 + $0x8] sm:$0xff] }
 0x2b5   :  { %2954 = vperm.xlu0 %10720, %v2812_v25   ;;  %v1782_v33 = vmul.f32 %v1776_v31, %v12083_v6  ;;  %v2799_v6 = vld [vmem:[%s16295_s11 + $0x10] sm:$0xff]  ;;  %v1800_v53 = vadd.f32 %v11985_v30, %v1791_v28  ;;  %v9601_v25 = vld [vmem:[%s16296_s8 + $0x8] sm:$0xff]   ;;  %v9288_v31 = vunpack.c.h.bf16 %v9609_v17  ;;  %v2516_v17 = vld [vmem:[%s16297_s9] sm:$0xff] }
 0x2b6   :  { %v1793_v34 = vadd.f32 %v1790_v52, %v1783_v32  ;;  %v9610_v32 = vld [vmem:[%s16296_s8 + $0x58] sm:$0xff]  }
 0x2b7   :  { %v1792_v36 = vadd.f32 %v12100_v46, %v1782_v33  ;;  %v1870_v46 = vunpack.c.h.bf16 %v12180_v42  ;;  %v1803_v63 = vmax.f32 %v1800_v53, 0.0  ;;  %v9255_v33 = vunpack.c.l.bf16 %v9601_v25  ;;  %v9614_v53 = vld [vmem:[%s16296_s8 + $0x80] sm:$0xff]  }
 0x2b8   :  { %2959 = vperm.xlu1 %10721, %v2813_v8   ;;  %v1802_v45 = vadd.f32 %v11985_v30, %v1793_v34  ;;  %v9291_v34 = vunpack.c.l.bf16 %v9610_v32 }
 0x2b9   :  { %2964 = vperm.xlu0 %10720, %v2814_v35   ;;  %v1801_v48 = vadd.f32 %v11985_v30, %v1792_v36  ;;  %v9256_v35 = vunpack.c.h.bf16 %v9601_v25  ;;  %v9602_v36 = vld [vmem:[%s16296_s8 + $0x10] sm:$0xff]  }
 0x2ba   :  { %v1805_v52 = vmax.f32 %v1802_v45, 0.0 }
 0x2bb   :  { %v1804_v59 = vmax.f32 %v1801_v48, 0.0  ;;  %v9612_v48 = vld [vmem:[%s16296_s8 + $0x70] sm:$0xff]  }
 0x2bc   :  { %3006 = vperm.xlu1 %10721, %v2797_v5   ;;  %v9292_v5 = vunpack.c.h.bf16 %v9610_v32  ;;  %v9299_v49 = vunpack.c.l.bf16 %v9612_v48 }
 0x2bd   :  { %3011 = vperm.xlu0 %10720, %v2798_v29   ;;  %v9611_v29 = vld [vmem:[%s16296_s8 + $0x60] sm:$0xff]  }
 0x2c0   :  { %3016 = vperm.xlu1 %10721, %v2799_v6   ;;  %v9259_v6 = vunpack.c.l.bf16 %v9602_v36 }
 0x2c1   :  { %3021 = vperm.xlu0 %10720, %v2800_v37   ;;  %v9295_v37 = vunpack.c.l.bf16 %v9611_v29 }
 0x2c4   :  { %3026 = vperm.xlu1 %10721, %v2801_v38   ;;  %v9260_v38 = vunpack.c.h.bf16 %v9602_v36 }
 0x2c5   :  { %3031 = vperm.xlu0 %10720, %v2802_v39   ;;  %v9603_v39 = vld [vmem:[%s16296_s8 + $0x18] sm:$0xff]  }
 0x2c6   :  { %v9264_v45 = vunpack.c.h.bf16 %v9603_v39 }
 0x2c8   :  { %3036 = vperm.xlu1 %10721, %v2803_v40   ;;  %v9296_v40 = vunpack.c.h.bf16 %v9611_v29 }
 0x2c9   :  { %3041 = vperm.xlu0 %10720, %v2804_v41   ;;  %v8911_v41 = vld [vmem:[%s16296_s8 + $0x68] sm:$0xff]  }
 0x2ca   :  { %v2348_v47 = vunpack.c.h.bf16 %v8911_v41 }
 0x30a   :  { %v1887_v43 = vpop.permute.xlu1 %1886 }
 0x30b   :  { %v1885_v44 = vpop.permute.xlu0 %1884  ;;  %10175 = vmatpush3.msk.msra.mxu0 %vm504_vm2, %v1887_v43  ;;  %10702 = vmatpush3.msk.msra.mxu1 %vm504_vm2, %v1887_v43  ;;  %v9263_v43 = vunpack.c.l.bf16 %v9603_v39 }
 0x30c   :  { %10176 = vmatprep.subr.mxu0 %v11413_v2  ;;  %10700 = vmatprep.subr.mxu1 %v11413_v2 }
 0x30d   :  { %10177 = vmatpush3.msra.mxu0 %v1885_v44  ;;  %10703 = vmatpush3.msra.mxu1 %v1885_v44  ;;  %v2188_v44 = vunpack.c.l.bf16 %v8911_v41 }
 0x30e   :  { %10178 = vmatprep.subr.mxu0 %v11413_v2  ;;  %10701 = vmatprep.subr.mxu1 %v11413_v2  ;;  %v1883_v50 = vpop.permute.xlu1 %1882 }
 0x30f   :  { %v1823_v51 = vpop.permute.xlu0 %1822  ;;  %10179 = vmatpush3.msra.mxu0 %v1883_v50  ;;  %10704 = vmatpush3.msra.mxu1 %v1883_v50  ;;  %v9613_v50 = vld [vmem:[%s16296_s8 + $0x78] sm:$0xff]  }
 0x310   :  { %v1829_v56 = vadd.f32 %v1823_v51, %v12105_v54  ;;  %10181 = vmatmul.mubr.msk.f32.vlgmr.msra.gmra.mxu0 %vm1890_vm6, %v1870_v46  ;;  %10207 = vmatprep.subr.mxu0 %v11413_v2  ;;  %v1859_v46 = vunpack.c.l.bf16 %v12180_v42  ;;  %v9300_v42 = vunpack.c.h.bf16 %v9612_v48  ;;  %v9303_v51 = vunpack.c.l.bf16 %v9613_v50 }
 0x311   :  { %10208 = vmatpush3.msk.msra.mxu0 %vm504_vm2, %v1805_v52  ;;  %10183 = vmatprep.mubr.msk.f32.mxu0 %vm11414_vm1, %v11413_v2  ;;  %v9304_v52 = vunpack.c.h.bf16 %v9613_v50 }
 0x312   :  { %v1832_v60 = vadd.f32 %v11985_v30, %v1829_v56  ;;  %v1821_v61 = vpop.permute.xlu1 %1820  ;;  %10209 = vmatprep.subr.mxu0 %v11413_v2  ;;  %10240 = vmatprep.subr.mxu1 %v11413_v2  ;;  %v9308_v56 = vunpack.c.h.bf16 %v9614_v53 }
 0x313   :  { %v1828_v54 = vadd.f32 %v1821_v61, %v12092_v27  ;;  %v1819_v62 = vpop.permute.xlu0 %1818  ;;  %10210 = vmatpush3.msra.mxu0 %v1804_v59  ;;  %10199 = vmatmul.mubr.msk.f32.vlgmr.msra.gmra.mxu1 %vm1890_vm6, %v9276_v55  ;;  %v9605_v27 = vld [vmem:[%s16296_s8 + $0x30] sm:$0xff]   ;;  %v9307_v55 = vunpack.c.l.bf16 %v9614_v53  ;;  %v2537_v61 = vld [vmem:[%s16297_s9 + $0xa8] sm:$0xff] }
 0x314   :  { %v1835_v1 = vmax.f32 %v1832_v60, 0.0  ;;  %v1827_v3 = vadd.f32 %v1819_v62, %v12087_v13  ;;  %10184 = vmatmul.mubr.msk.f32.gmra.mxu0 %vm1890_vm6, %v9267_v57  ;;  %10211 = vmatprep.subr.mxu0 %v11413_v2  ;;  %v9271_v12 = vunpack.c.l.bf16 %v9605_v27  ;;  %v9272_v15 = vunpack.c.h.bf16 %v9605_v27  ;;  %v9615_v57 = vld [vmem:[%s16296_s8 + $0x88] sm:$0xff]   ;;  %v2538_v60 = vld [vmem:[%s16297_s9 + $0xb0] sm:$0xff]  ;;  %v2535_v62 = vld [vmem:[%s16297_s9 + $0x98] sm:$0xff] }
 0x315   :  { %v1831_v7 = vadd.f32 %v11985_v30, %v1828_v54  ;;  %10212 = vmatpush3.msra.mxu0 %v1803_v63  ;;  %10186 = vmatprep.mubr.msk.f32.mxu0 %vm11414_vm1, %v11413_v2  ;;  %v9311_v58 = vunpack.c.l.bf16 %v9615_v57  ;;  %v9312_v59 = vunpack.c.h.bf16 %v9615_v57  ;;  %v2539_v54 = vld [vmem:[%s16297_s9 + $0xb8] sm:$0xff]  ;;  %v2534_v63 = vld [vmem:[%s16297_s9 + $0x90] sm:$0xff]  ;;  %v2528_v27 = vld [vmem:[%s16297_s9 + $0x60] sm:$0xff] }
 0x316   :  { %v1830_v9 = vadd.f32 %v11985_v30, %v1827_v3  ;;  %10241 = vmatpush3.msk.msra.mxu1 %vm504_vm2, %v1835_v1  ;;  %10201 = vmatprep.mubr.msk.f32.mxu1 %vm11414_vm1, %v11413_v2  ;;  %v9608_v30 = vld [vmem:[%s16296_s8 + $0x48] sm:$0xff]   ;;  %v2365_v23 = vpop.permute.xlu1 %2364  ;;  %v2532_v1 = vld [vmem:[%s16297_s9 + $0x80] sm:$0xff]  ;;  %v2531_v3 = vld [vmem:[%s16297_s9 + $0x78] sm:$0xff] }
 0x317   :  { %v1834_v13 = vmax.f32 %v1831_v7, 0.0  ;;  %10242 = vmatprep.subr.mxu1 %v11413_v2  ;;  %10202 = vmatmul.mubr.msk.f32.gmra.mxu1 %vm1890_vm6, %v9279_v0  ;;  %v9283_v16 = vunpack.c.l.bf16 %v9608_v30  ;;  %v9284_v19 = vunpack.c.h.bf16 %v9608_v30  ;;  %v2363_v28 = vpop.permute.xlu0 %2362  ;;  %v2536_v0 = vld [vmem:[%s16297_s9 + $0xa0] sm:$0xff]  ;;  %v2529_v7 = vld [vmem:[%s16297_s9 + $0x68] sm:$0xff]  ;;  %v2522_v30 = vld [vmem:[%s16297_s9 + $0x30] sm:$0xff] }
 0x318   :  { %v1833_v10 = vmax.f32 %v1830_v9, 0.0  ;;  %10187 = vmatmul.mubr.msk.f32.gmra.mxu0 %vm1890_vm6, %v9268_v4  ;;  %10204 = vmatprep.mubr.msk.f32.mxu1 %vm11414_vm1, %v11413_v2  ;;  %v2533_v4 = vld [vmem:[%s16297_s9 + $0x88] sm:$0xff]  ;;  %v2530_v9 = vld [vmem:[%s16297_s9 + $0x70] sm:$0xff] }
 0x319   :  { %10243 = vmatpush3.msra.mxu1 %v1834_v13  ;;  %10189 = vmatprep.mubr.msk.f32.mxu0 %vm11414_vm1, %v11413_v2  ;;  %v2526_v13 = vld [vmem:[%s16297_s9 + $0x50] sm:$0xff] }
 0x31a   :  { %10244 = vmatprep.subr.mxu1 %v11413_v2  ;;  %10273 = vmatprep.subr.mxu0 %v11413_v2  ;;  %v2361_v8 = vpop.permute.xlu1 %2360 }
 0x31b   :  { %10245 = vmatpush3.msra.mxu1 %v1833_v10  ;;  %v2525_v10 = vld [vmem:[%s16297_s9 + $0x48] sm:$0xff] }
 0x31c   :  { %10190 = vmatmul.mubr.msk.f32.gmra.mxu0 %vm1890_vm6, %v9271_v12  ;;  %10205 = vmatmul.mubr.msk.f32.gmra.mxu1 %vm1890_vm6, %v9280_v14  ;;  %v2527_v12 = vld [vmem:[%s16297_s9 + $0x58] sm:$0xff] }
 0x31d   :  { %10192 = vmatprep.mubr.msk.f32.mxu0 %vm11414_vm1, %v11413_v2  ;;  %10246 = vmatprep.mubr.msk.f32.mxu1 %vm11414_vm1, %v11413_v2  ;;  %v2523_v14 = vld [vmem:[%s16297_s9 + $0x38] sm:$0xff] }
 0x31e   :  { %2584 = vmatprep.subr.mxu1 %v2538_v60 }
 0x320   :  { %10193 = vmatmul.mubr.msk.f32.gmra.mxu0 %vm1890_vm6, %v9272_v15  ;;  %10247 = vmatmul.mubr.msk.f32.vlgmr.msra.gmra.mxu1 %vm1890_vm6, %v9283_v16  ;;  %v2524_v15 = vld [vmem:[%s16297_s9 + $0x40] sm:$0xff] }
 0x321   :  { %10195 = vmatprep.mubr.msk.f32.mxu0 %vm11414_vm1, %v11413_v2  ;;  %10249 = vmatprep.mubr.msk.f32.mxu1 %vm11414_vm1, %v11413_v2  ;;  %v2520_v16 = vld [vmem:[%s16297_s9 + $0x20] sm:$0xff] }
 0x322   :  { %2585 = vmatpush1.msra.mxu1 %v2537_v61 }
 0x323   :  { %2586 = vmatprep.subr.mxu1 %v2535_v62 }
 0x324   :  { %10196 = vmatmul.mubr.msk.f32.gmra.mxu0 %vm1890_vm6, %v9275_v18  ;;  %10250 = vmatmul.mubr.msk.f32.gmra.mxu1 %vm1890_vm6, %v9284_v19  ;;  %v2519_v18 = vld [vmem:[%s16297_s9 + $0x18] sm:$0xff]  ;;  %v2521_v19 = vld [vmem:[%s16297_s9 + $0x28] sm:$0xff] }
 0x325   :  { %10213 = vmatprep.mubr.msk.f32.mxu0 %vm11414_vm1, %v11413_v2  ;;  %10252 = vmatprep.mubr.msk.f32.mxu1 %vm11414_vm1, %v11413_v2 }
 0x326   :  { %2587 = vmatpush1.msra.mxu1 %v2534_v63 }
 0x327   :  { %2588 = vmatprep.subr.mxu1 %v2532_v1 }
 0x328   :  { %10214 = vmatmul.mubr.msk.f32.vlgmr.msra.gmra.mxu0 %vm1890_vm6, %v9251_v21  ;;  %10253 = vmatmul.mubr.msk.f32.gmra.mxu1 %vm1890_vm6, %v9287_v22  ;;  %v2518_v21 = vld [vmem:[%s16297_s9 + $0x10] sm:$0xff] }
 0x329   :  { %10274 = vmatpush3.msk.msra.mxu0 %vm504_vm2, %v2365_v23  ;;  %10216 = vmatprep.mubr.msk.f32.mxu0 %vm11414_vm1, %v11413_v2 }
 0x32a   :  { %10275 = vmatprep.subr.mxu0 %v11413_v2  ;;  %10255 = vmatprep.mubr.msk.f32.mxu1 %vm11414_vm1, %v11413_v2 }
 0x32b   :  { %10276 = vmatpush3.msra.mxu0 %v2363_v28  ;;  %2589 = vmatpush1.msra.mxu1 %v2531_v3 }
 0x32c   :  { %10277 = vmatprep.subr.mxu0 %v11413_v2  ;;  %10217 = vmatmul.mubr.msk.f32.gmra.mxu0 %vm1890_vm6, %v9252_v24 }
 0x32d   :  { %10278 = vmatpush3.msra.mxu0 %v2361_v8  ;;  %10219 = vmatprep.mubr.msk.f32.mxu0 %vm11414_vm1, %v11413_v2 }
 0x32e   :  { %10256 = vmatmul.mubr.msk.f32.gmra.mxu1 %vm1890_vm6, %v9288_v31  ;;  %10306 = vmatprep.subr.mxu0 %v11413_v2 }
 0x32f   :  { %10258 = vmatprep.mubr.msk.f32.mxu1 %vm11414_vm1, %v11413_v2  ;;  %2590 = vmatprep.subr.mxu1 %v2529_v7 }
 0x330   :  { %10220 = vmatmul.mubr.msk.f32.gmra.mxu0 %vm1890_vm6, %v9255_v33  ;;  %2591 = vmatpush1.msra.mxu1 %v2528_v27 }
 0x331   :  { %10222 = vmatprep.mubr.msk.f32.mxu0 %vm11414_vm1, %v11413_v2  ;;  %2592 = vmatprep.subr.mxu1 %v2526_v13 }
 0x332   :  { %10259 = vmatmul.mubr.msk.f32.gmra.mxu1 %vm1890_vm6, %v9291_v34 }
 0x333   :  { %10261 = vmatprep.mubr.msk.f32.mxu1 %vm11414_vm1, %v11413_v2  ;;  %2593 = vmatpush1.msra.mxu1 %v2525_v10 }
 0x334   :  { %10223 = vmatmul.mubr.msk.f32.gmra.mxu0 %vm1890_vm6, %v9256_v35  ;;  %2594 = vmatprep.subr.mxu1 %v2523_v14 }
 0x335   :  { %10225 = vmatprep.mubr.msk.f32.mxu0 %vm11414_vm1, %v11413_v2  ;;  %2595 = vmatpush1.msra.mxu1 %v2522_v30 }
 0x336   :  { %10262 = vmatmul.mubr.msk.f32.gmra.mxu1 %vm1890_vm6, %v9292_v5  ;;  %2596 = vmatprep.subr.mxu1 %v2520_v16 }
 0x337   :  { %10264 = vmatprep.mubr.msk.f32.mxu1 %vm11414_vm1, %v11413_v2  ;;  %2597 = vmatpush1.msra.mxu1 %v2519_v18 }
 0x338   :  { %10226 = vmatmul.mubr.msk.f32.gmra.mxu0 %vm1890_vm6, %v9259_v6  ;;  %2598 = vmatprep.subr.mxu1 %v2517_v20 }
 0x339   :  { %10228 = vmatprep.mubr.msk.f32.mxu0 %vm11414_vm1, %v11413_v2  ;;  %2599 = vmatpush1.msra.mxu1 %v2516_v17 }
 0x33a   :  { %10265 = vmatmul.mubr.msk.f32.gmra.mxu1 %vm1890_vm6, %v9295_v37 }
 0x33b   :  { %10267 = vmatprep.mubr.msk.f32.mxu1 %vm11414_vm1, %v11413_v2 }
 0x33c   :  { %10229 = vmatmul.mubr.msk.f32.gmra.mxu0 %vm1890_vm6, %v9260_v38 }
 0x33d   :  { %10231 = vmatprep.mubr.msk.f32.mxu0 %vm11414_vm1, %v11413_v2 }
 0x33e   :  { %10268 = vmatmul.mubr.msk.f32.gmra.mxu1 %vm1890_vm6, %v9296_v40 }
 0x33f   :  { %10270 = vmatprep.mubr.msk.f32.mxu1 %vm11414_vm1, %v11413_v2 }
 0x340   :  { %10232 = vmatmul.mubr.msk.f32.gmra.mxu0 %vm1890_vm6, %v9263_v43 }
 0x341   :  { %10234 = vmatprep.mubr.msk.f32.mxu0 %vm11414_vm1, %v11413_v2 }
 0x342   :  { %10271 = vmatmul.mubr.msk.f32.gmra.mxu1 %vm1890_vm6, %v2188_v44 }
 0x343   :  { %2632 = vmatprep.mubr.f32.mxu1 %v11413_v2 }
 0x344   :  { %10235 = vmatmul.mubr.msk.f32.gmra.mxu0 %vm1890_vm6, %v9264_v45 }
 0x345   :  { %10237 = vmatprep.mubr.msk.f32.mxu0 %vm11414_vm1, %v11413_v2 }
 0x348   :  { %10238 = vmatmul.mubr.msk.f32.gmra.mxu0 %vm1890_vm6, %v1859_v46 }
 0x349   :  { %10279 = vmatprep.mubr.msk.f32.mxu0 %vm11414_vm1, %v11413_v2 }
 0x34c   :  { %10280 = vmatmul.mubr.msk.f32.vlgmr.msra.gmra.mxu0 %vm1890_vm6, %v2348_v47 }
 0x34d   :  { %10282 = vmatprep.mubr.msk.f32.mxu0 %vm11414_vm1, %v11413_v2  ;;  %10307 = vmatpush3.msra.mxu0 %v2539_v54 }
 0x34e   :  { %10308 = vmatprep.subr.mxu0 %v11413_v2 }
 0x34f   :  { %10309 = vmatpush3.msra.mxu0 %v2536_v0 }
 0x350   :  { %10283 = vmatmul.mubr.msk.f32.gmra.mxu0 %vm1890_vm6, %v9299_v49  ;;  %10310 = vmatprep.subr.mxu0 %v11413_v2 }
 0x351   :  { %10285 = vmatprep.mubr.msk.f32.mxu0 %vm11414_vm1, %v11413_v2  ;;  %10311 = vmatpush3.msra.mxu0 %v2533_v4 }
 0x352   :  { %10312 = vmatprep.subr.mxu0 %v11413_v2 }
 0x353   :  { %10313 = vmatpush3.msra.mxu0 %v2530_v9 }
 0x354   :  { %10286 = vmatmul.mubr.msk.f32.gmra.mxu0 %vm1890_vm6, %v9300_v42  ;;  %10314 = vmatprep.subr.mxu0 %v11413_v2 }
 0x355   :  { %10288 = vmatprep.mubr.msk.f32.mxu0 %vm11414_vm1, %v11413_v2  ;;  %10315 = vmatpush3.msra.mxu0 %v2527_v12 }
 0x356   :  { %10316 = vmatprep.subr.mxu0 %v11413_v2 }
 0x357   :  { %10317 = vmatpush3.msra.mxu0 %v2524_v15 }
 0x358   :  { %10289 = vmatmul.mubr.msk.f32.gmra.mxu0 %vm1890_vm6, %v9303_v51  ;;  %10318 = vmatprep.subr.mxu0 %v11413_v2 }
 0x359   :  { %10291 = vmatprep.mubr.msk.f32.mxu0 %vm11414_vm1, %v11413_v2  ;;  %10319 = vmatpush3.msra.mxu0 %v2521_v19 }
 0x35a   :  { %10320 = vmatprep.subr.mxu0 %v11413_v2 }
 0x35b   :  { %10321 = vmatpush3.msra.mxu0 %v2518_v21 }
 0x35c   :  { %10292 = vmatmul.mubr.msk.f32.gmra.mxu0 %vm1890_vm6, %v9304_v52 }
 0x35d   :  { %10294 = vmatprep.mubr.msk.f32.mxu0 %vm11414_vm1, %v11413_v2 }
 0x360   :  { %10295 = vmatmul.mubr.msk.f32.gmra.mxu0 %vm1890_vm6, %v9307_v55 }
 0x361   :  { %10297 = vmatprep.mubr.msk.f32.mxu0 %vm11414_vm1, %v11413_v2 }
 0x364   :  { %10298 = vmatmul.mubr.msk.f32.gmra.mxu0 %vm1890_vm6, %v9308_v56 }
 0x365   :  { %10300 = vmatprep.mubr.msk.f32.mxu0 %vm11414_vm1, %v11413_v2 }
 0x368   :  { %10301 = vmatmul.mubr.msk.f32.gmra.mxu0 %vm1890_vm6, %v9311_v58 }
 0x369   :  { %10303 = vmatprep.mubr.msk.f32.mxu0 %vm11414_vm1, %v11413_v2 }
 0x36c   :  { %10304 = vmatmul.mubr.msk.f32.gmra.mxu0 %vm1890_vm6, %v9312_v59 }
 0x36d   :  { %10322 = vmatprep.mubr.msk.f32.mxu0 %vm11414_vm1, %v11413_v2 }
 0x3d0   :  { %v1986_v22 = vpop.f32.mrf.mxu0 }
 0x3d2   :  { %v10182_v23 = vpop.f32.mrf.mxu0 }
 0x3d3   :  { %v12453_v24 = vpop.f32.mrf.mxu1 }
 0x3d4   :  { %v1991_v25 = vpop.f32.mrf.mxu0 }
 0x3d5   :  { %v10200_v28 = vpop.f32.mrf.mxu1 }
 0x3d6   :  { %v10185_v31 = vpop.f32.mrf.mxu0 }
 0x3d7   :  { %v12455_v32 = vpop.f32.mrf.mxu1 }
 0x3d8   :  { %v1996_v8 = vpop.f32.mrf.mxu0 }
 0x3d9   :  { %v10203_v33 = vpop.f32.mrf.mxu1 }
 0x3da   :  { %v10188_v34 = vpop.f32.mrf.mxu0 }
 0x3dc   :  { %v2001_v35 = vpop.f32.mrf.mxu0  ;;  %v12457_v36 = vpop.f32.mrf.mxu1 }
 0x3de   :  { %v10191_v5 = vpop.f32.mrf.mxu0  ;;  %v10206_v29 = vpop.f32.mrf.mxu1 }
 0x3e0   :  { %v12459_v6 = vpop.f32.mrf.mxu0  ;;  %v2285_v37 = vpop.f32.mrf.mxu1 }
 0x3e2   :  { %v10194_v38 = vpop.f32.mrf.mxu0  ;;  %v10248_v39 = vpop.f32.mrf.mxu1 }
 0x3e4   :  { %v12461_v40 = vpop.f32.mrf.mxu0  ;;  %v2290_v41 = vpop.f32.mrf.mxu1 }
 0x3e6   :  { %v10197_v43 = vpop.f32.mrf.mxu0  ;;  %v10251_v44 = vpop.f32.mrf.mxu1 }
 0x3e8   :  { %v2126_v45 = vpop.f32.mrf.mxu0  ;;  %v2295_v46 = vpop.f32.mrf.mxu1 }
 0x3e9   :  { %v2127_v14 = vadd.f32 %v2126_v45, %v1986_v22 }
 0x3ea   :  { %v10215_v47 = vpop.f32.mrf.mxu0  ;;  %v10254_v48 = vpop.f32.mrf.mxu1 }
 0x3eb   :  { %v2329_v16 = vadd.f32 %v2285_v37, %v2127_v14 }
 0x3ec   :  { %v2131_v49 = vpop.f32.mrf.mxu0 }
 0x3ed   :  { %v2132_v18 = vadd.f32 %v2131_v49, %v1991_v25 }
 0x3ee   :  { %v10218_v42 = vpop.f32.mrf.mxu0  ;;  %v2300_v50 = vpop.f32.mrf.mxu1 }
 0x3ef   :  { %v2330_v21 = vadd.f32 %v2290_v41, %v2132_v18 }
 0x3f0   :  { %v2136_v51 = vpop.f32.mrf.mxu0  ;;  %v10257_v52 = vpop.f32.mrf.mxu1 }
 0x3f1   :  { %v2137_v23 = vadd.f32 %v2136_v51, %v1996_v8 }
 0x3f2   :  { %v10221_v53 = vpop.f32.mrf.mxu0  ;;  %v2305_v55 = vpop.f32.mrf.mxu1 }
 0x3f3   :  { %v2331_v33 = vadd.f32 %v2295_v46, %v2137_v23 }
 0x3f4   :  { %v2141_v56 = vpop.f32.mrf.mxu0  ;;  %v10260_v57 = vpop.f32.mrf.mxu1 }
 0x3f5   :  { %v2142_v25 = vadd.f32 %v2141_v56, %v2001_v35 }
 0x3f6   :  { %v10224_v58 = vpop.f32.mrf.mxu0  ;;  %v2310_v59 = vpop.f32.mrf.mxu1 }
 0x3f7   :  { %v2332_v29 = vadd.f32 %v2300_v50, %v2142_v25 }
 0x3f8   :  { %v2146_v60 = vpop.f32.mrf.mxu0  ;;  %v10263_v61 = vpop.f32.mrf.mxu1 }
 0x3f9   :  { %v2147_v37 = vadd.f32 %v2146_v60, %v12459_v6 }
 0x3fa   :  { %v10227_v54 = vpop.f32.mrf.mxu0  ;;  %v12463_v62 = vpop.f32.mrf.mxu1 }
 0x3fb   :  { %v2333_v41 = vadd.f32 %v2305_v55, %v2147_v37 }
 0x3fc   :  { %v2151_v63 = vpop.f32.mrf.mxu0  ;;  %v10266_v0 = vpop.f32.mrf.mxu1 }
 0x3fd   :  { %v2152_v43 = vadd.f32 %v2151_v63, %v12461_v40 }
 0x3fe   :  { %v10230_v1 = vpop.f32.mrf.mxu0  ;;  %v12465_v3 = vpop.f32.mrf.mxu1 }
 0x3ff   :  { %v2334_v46 = vadd.f32 %v2310_v59, %v2152_v43 }
 0x400   :  { %v2156_v4 = vpop.f32.mrf.mxu0  ;;  %v10269_v7 = vpop.f32.mrf.mxu1 }
 0x401   :  { %v2157_v47 = vadd.f32 %v2156_v4, %v12453_v24 }
 0x402   :  { %v10233_v27 = vpop.f32.mrf.mxu0  ;;  %v12467_v9 = vpop.f32.mrf.mxu1 }
 0x403   :  { %v2335_v42 = vadd.f32 %v12463_v62, %v2157_v47 }
 0x404   :  { %v2161_v13 = vpop.f32.mrf.mxu0  ;;  %v10272_v10 = vpop.f32.mrf.mxu1 }
 0x405   :  { %v2162_v50 = vadd.f32 %v2161_v13, %v12455_v32 }
 0x406   :  { %v10236_v12 = vpop.f32.mrf.mxu0 }
 0x407   :  { %v2336_v53 = vadd.f32 %v12465_v3, %v2162_v50 }
 0x408   :  { %v12469_v30 = vpop.f32.mrf.mxu0 }
 0x409   :  { %v2167_v55 = vadd.f32 %v12469_v30, %v12457_v36 }
 0x40a   :  { %v10239_v15 = vpop.f32.mrf.mxu0 }
 0x40b   :  { %v2337_v58 = vadd.f32 %v12467_v9, %v2167_v55 }
 0x40c   :  { %v2463_v19 = vpop.f32.mrf.mxu0 }
 0x40d   :  { %v2507_v20 = vadd.f32 %v2463_v19, %v2329_v16 }
 0x40e   :  { %v10281_v17 = vpop.f32.mrf.mxu0 }
 0x40f   :  { %8941 = vmatmul.mubr.msk.f32.vlgmr.msra.gmra.mxu1 %vm2540_vm7, %v2507_v20  ;;  %10323 = vmatmul.mubr.msk.f32.vlgmr.msra.gmra.mxu0 %vm2540_vm7, %v2507_v20 }
 0x410   :  { %v2468_v28 = vpop.f32.mrf.mxu0  ;;  %2638 = vmatprep.mubr.f32.mxu1 %v11413_v2  ;;  %10325 = vmatprep.mubr.msk.f32.mxu0 %vm11414_vm1, %v11413_v2 }
 0x411   :  { %v2508_v22 = vadd.f32 %v2468_v28, %v2330_v21 }
 0x412   :  { %v10284_v31 = vpop.f32.mrf.mxu0 }
 0x413   :  { %8942 = vmatmul.mubr.msk.f32.gmra.mxu1 %vm2540_vm7, %v2508_v22  ;;  %10326 = vmatmul.mubr.msk.f32.gmra.mxu0 %vm2540_vm7, %v2508_v22 }
 0x414   :  { %v2473_v34 = vpop.f32.mrf.mxu0  ;;  %2644 = vmatprep.mubr.f32.mxu1 %v11413_v2  ;;  %10328 = vmatprep.mubr.msk.f32.mxu0 %vm11414_vm1, %v11413_v2 }
 0x415   :  { %v2509_v8 = vadd.f32 %v2473_v34, %v2331_v33 }
 0x416   :  { %v10287_v5 = vpop.f32.mrf.mxu0 }
 0x417   :  { %8943 = vmatmul.mubr.msk.f32.gmra.mxu1 %vm2540_vm7, %v2509_v8  ;;  %10329 = vmatmul.mubr.msk.f32.gmra.mxu0 %vm2540_vm7, %v2509_v8 }
 0x418   :  { %v2478_v35 = vpop.f32.mrf.mxu0  ;;  %2650 = vmatprep.mubr.f32.mxu1 %v11413_v2  ;;  %10331 = vmatprep.mubr.msk.f32.mxu0 %vm11414_vm1, %v11413_v2 }
 0x419   :  { %v2510_v38 = vadd.f32 %v2478_v35, %v2332_v29 }
 0x41a   :  { %v10290_v39 = vpop.f32.mrf.mxu0 }
 0x41b   :  { %8944 = vmatmul.mubr.msk.f32.gmra.mxu1 %vm2540_vm7, %v2510_v38  ;;  %10332 = vmatmul.mubr.msk.f32.gmra.mxu0 %vm2540_vm7, %v2510_v38 }
 0x41c   :  { %v2483_v6 = vpop.f32.mrf.mxu0  ;;  %2656 = vmatprep.mubr.f32.mxu1 %v11413_v2  ;;  %10334 = vmatprep.mubr.msk.f32.mxu0 %vm11414_vm1, %v11413_v2 }
 0x41d   :  { %v2511_v44 = vadd.f32 %v2483_v6, %v2333_v41 }
 0x41e   :  { %v10293_v45 = vpop.f32.mrf.mxu0 }
 0x41f   :  { %8945 = vmatmul.mubr.msk.f32.gmra.mxu1 %vm2540_vm7, %v2511_v44  ;;  %10335 = vmatmul.mubr.msk.f32.gmra.mxu0 %vm2540_vm7, %v2511_v44 }
 0x420   :  { %v2488_v40 = vpop.f32.mrf.mxu0  ;;  %2662 = vmatprep.mubr.f32.mxu1 %v11413_v2  ;;  %10337 = vmatprep.mubr.msk.f32.mxu0 %vm11414_vm1, %v11413_v2 }
 0x421   :  { %v2512_v48 = vadd.f32 %v2488_v40, %v2334_v46 }
 0x422   :  { %v10296_v49 = vpop.f32.mrf.mxu0 }
 0x423   :  { %8946 = vmatmul.mubr.msk.f32.gmra.mxu1 %vm2540_vm7, %v2512_v48  ;;  %10338 = vmatmul.mubr.msk.f32.gmra.mxu0 %vm2540_vm7, %v2512_v48 }
 0x424   :  { %v2493_v24 = vpop.f32.mrf.mxu0  ;;  %2668 = vmatprep.mubr.f32.mxu1 %v11413_v2  ;;  %10340 = vmatprep.mubr.msk.f32.mxu0 %vm11414_vm1, %v11413_v2 }
 0x425   :  { %v2513_v51 = vadd.f32 %v2493_v24, %v2335_v42 }
 0x426   :  { %v10299_v52 = vpop.f32.mrf.mxu0 }
 0x427   :  { %8947 = vmatmul.mubr.msk.f32.gmra.mxu1 %vm2540_vm7, %v2513_v51  ;;  %10341 = vmatmul.mubr.msk.f32.gmra.mxu0 %vm2540_vm7, %v2513_v51 }
 0x428   :  { %v2498_v32 = vpop.f32.mrf.mxu0  ;;  %2674 = vmatprep.mubr.f32.mxu1 %v11413_v2  ;;  %10343 = vmatprep.mubr.msk.f32.mxu0 %vm11414_vm1, %v11413_v2 }
 0x429   :  { %v2514_v56 = vadd.f32 %v2498_v32, %v2336_v53 }
 0x42a   :  { %v10302_v57 = vpop.f32.mrf.mxu0 }
 0x42b   :  { %8948 = vmatmul.mubr.msk.f32.gmra.mxu1 %vm2540_vm7, %v2514_v56  ;;  %10344 = vmatmul.mubr.msk.f32.gmra.mxu0 %vm2540_vm7, %v2514_v56 }
 0x42c   :  { %v2503_v59 = vpop.f32.mrf.mxu0  ;;  %2680 = vmatprep.mubr.f32.mxu1 %v11413_v2  ;;  %10346 = vmatprep.mubr.msk.f32.mxu0 %vm11414_vm1, %v11413_v2 }
 0x42d   :  { %v2515_v36 = vadd.f32 %v2503_v59, %v2337_v58 }
 0x42e   :  { %v10305_v60 = vpop.f32.mrf.mxu0 }
 0x42f   :  { %8949 = vmatmul.mubr.msk.f32.gmra.mxu1 %vm2540_vm7, %v2515_v36  ;;  %10347 = vmatmul.mubr.msk.f32.gmra.mxu0 %vm2540_vm7, %v2515_v36 }
 0x4cf   :  { %v12522_v61 = vpop.f32.mrf.mxu1  ;;  %v2753_v54 = vpop.f32.mrf.mxu0 }
 0x4d0   :  { %v2834_v62 = vrot.slane %v2753_v54, 7 }
 0x4d1   :  { %v12524_v63 = vpop.f32.mrf.mxu1  ;;  %v10324_v0 = vpop.f32.mrf.mxu0 }
 0x4d2   :  { %v2833_v1 = vrot.slane %v12524_v63, 7  ;;  %2869 = vrot.lane.b32.xlu1 %v2834_v62, %s11416_s27 }
 0x4d3   :  { %v12528_v3 = vpop.f32.mrf.mxu1  ;;  %v2758_v2 = vpop.f32.mrf.mxu0 }
 0x4d4   :  { %v2837_v4 = vrot.slane %v2758_v2, 7  ;;  %2867 = vrot.lane.b32.xlu0 %v2833_v1, %s11416_s27  ;;  %v12598_v2 = vld [vmem:[%s16298_s10] ss:$0 sm:$0xff] }
 0x4d5   :  { %v12531_v7 = vpop.f32.mrf.mxu1  ;;  %v10327_v27 = vpop.f32.mrf.mxu0 }
 0x4d6   :  { %v2835_v9 = vrot.slane %v12531_v7, 7  ;;  %v2838_v13 = vsel %vm1708_vm5, %v2834_v62, %v2837_v4  ;;  %v12610_v27 = vpop.permute.xlu0 %2924 }
 0x4d7   :  { %v12535_v10 = vpop.f32.mrf.mxu1  ;;  %2873 = vrot.lane.b32.xlu1 %v2838_v13, %s11416_s27  ;;  %v2763_v12 = vpop.f32.mrf.mxu0 }
 0x4d8   :  { %v2841_v14 = vrot.slane %v2763_v12, 7  ;;  %v2836_v30 = vsel %vm1708_vm5, %v2833_v1, %v2835_v9 }
 0x4d9   :  { %2871 = vrot.lane.b32.xlu0 %v2836_v30, %s11416_s27  ;;  %v12540_v15 = vpop.f32.mrf.mxu1  ;;  %v10330_v16 = vpop.f32.mrf.mxu0 }
 0x4da   :  { %v2839_v18 = vrot.slane %v12540_v15, 7  ;;  %v2842_v19 = vsel %vm1708_vm5, %v2837_v4, %v2841_v14  ;;  %v2805_v4 = vld [vmem:[%s16295_s11 + $0x40] sm:$0xff]  ;;  %v12612_v13 = vpop.permute.xlu0 %2934  ;;  %s11424_s11 = smov 124  }
 0x4db   :  { %v12544_v20 = vpop.f32.mrf.mxu1  ;;  %2877 = vrot.lane.b32.xlu1 %v2842_v19, %s11416_s27  ;;  %v2768_v17 = vpop.f32.mrf.mxu0 }
 0x4dc   :  { %v2845_v21 = vrot.slane %v2768_v17, 7  ;;  %v2840_v23 = vsel %vm1708_vm5, %v2835_v9, %v2839_v18  ;;  %v2930_v9 = vpop.permute.xlu1 %2929 }
 0x4dd   :  { %2875 = vrot.lane.b32.xlu0 %v2840_v23, %s11416_s27  ;;  %v12549_v28 = vpop.f32.mrf.mxu1  ;;  %v10333_v22 = vpop.f32.mrf.mxu0 }
 0x4de   :  { %v2843_v31 = vrot.slane %v12549_v28, 7  ;;  %v2846_v33 = vsel %vm1708_vm5, %v2841_v14, %v2845_v21  ;;  %v12614_v14 = vpop.permute.xlu0 %2944 }
 0x4df   :  { %v12553_v25 = vpop.f32.mrf.mxu1  ;;  %2881 = vrot.lane.b32.xlu1 %v2846_v33, %s11416_s27  ;;  %v2773_v34 = vpop.f32.mrf.mxu0 }
 0x4e0   :  { %v2849_v8 = vrot.slane %v2773_v34, 7  ;;  %v2844_v5 = vsel %vm1708_vm5, %v2839_v18, %v2843_v31  ;;  %v2940_v12 = vpop.permute.xlu1 %2939 }
 0x4e1   :  { %2879 = vrot.lane.b32.xlu0 %v2844_v5, %s11416_s27  ;;  %v12558_v29 = vpop.f32.mrf.mxu1  ;;  %v10336_v37 = vpop.f32.mrf.mxu0  ;;  %v2978_v5 = vrot.slane %v12531_v7, 2 }
 0x4e2   :  { %v2847_v35 = vrot.slane %v12558_v29, 7  ;;  %v2850_v38 = vsel %vm1708_vm5, %v2845_v21, %v2849_v8  ;;  %v12616_v16 = vpop.permute.xlu0 %2954  ;;  %v2977_v37 = vrot.slane %v12524_v63, 2 }
 0x4e3   :  { %v12562_v39 = vpop.f32.mrf.mxu1  ;;  %2885 = vrot.lane.b32.xlu1 %v2850_v38, %s11416_s27  ;;  %v2778_v41 = vpop.f32.mrf.mxu0 }
 0x4e4   :  { %v2853_v43 = vrot.slane %v2778_v41, 7  ;;  %v2848_v6 = vsel %vm1708_vm5, %v2843_v31, %v2847_v35  ;;  %v2950_v30 = vpop.permute.xlu1 %2949  ;;  %v2979_v38 = vsel %vm2976_vm8, %v2977_v37, %v2978_v5 }
 0x4e5   :  { %2883 = vrot.lane.b32.xlu0 %v2848_v6, %s11416_s27  ;;  %v12567_v44 = vpop.f32.mrf.mxu1  ;;  %v10339_v45 = vpop.f32.mrf.mxu0 }
 0x4e6   :  { %v2851_v46 = vrot.slane %v12567_v44, 7  ;;  %v2854_v47 = vsel %vm1708_vm5, %v2849_v8, %v2853_v43  ;;  %v12618_v19 = vpop.permute.xlu0 %2964  ;;  %v2982_v45 = vrot.slane %v12549_v28, 2 }
 0x4e7   :  { %v12571_v40 = vpop.f32.mrf.mxu1  ;;  %2889 = vrot.lane.b32.xlu1 %v2854_v47, %s11416_s27  ;;  %v2783_v48 = vpop.f32.mrf.mxu0  ;;  %v2980_v47 = vrot.slane %v12540_v15, 2  ;;  %v2986_v15 = vrot.slane %v12567_v44, 2 }
 0x4e8   :  { %v2857_v49 = vrot.slane %v2783_v48, 7  ;;  %v2852_v42 = vsel %vm1708_vm5, %v2847_v35, %v2851_v46  ;;  %v2960_v18 = vpop.permute.xlu1 %2959 }
 0x4e9   :  { %2887 = vrot.lane.b32.xlu0 %v2852_v42, %s11416_s27  ;;  %v12576_v50 = vpop.f32.mrf.mxu1  ;;  %v10342_v24 = vpop.f32.mrf.mxu0  ;;  %v2983_v42 = vsel %vm2976_vm8, %v2980_v47, %v2982_v45 }
 0x4ea   :  { %v2855_v51 = vrot.slane %v12576_v50, 7  ;;  %v2858_v52 = vsel %vm1708_vm5, %v2853_v43, %v2857_v49  ;;  %v12622_v21 = vpop.permute.xlu0 %3011 }
 0x4eb   :  { %v12580_v53 = vpop.f32.mrf.mxu1  ;;  %2893 = vrot.lane.b32.xlu1 %v2858_v52, %s11416_s27  ;;  %v2788_v55 = vpop.f32.mrf.mxu0  ;;  %v3050_v6 = vmul.f32 %v12622_v21, %v2979_v38 }
 0x4ec   :  { %v2861_v32 = vrot.slane %v2788_v55, 7  ;;  %v2856_v56 = vsel %vm1708_vm5, %v2851_v46, %v2855_v51  ;;  %v12620_v17 = vpop.permute.xlu1 %3006 }
 0x4ed   :  { %2891 = vrot.lane.b32.xlu0 %v2856_v56, %s11416_s27  ;;  %v12585_v57 = vpop.f32.mrf.mxu1  ;;  %v10345_v58 = vpop.f32.mrf.mxu0 }
 0x4ee   :  { %v2859_v59 = vrot.slane %v12585_v57, 7  ;;  %v2862_v36 = vsel %vm1708_vm5, %v2857_v49, %v2861_v32  ;;  %v12626_v22 = vpop.permute.xlu0 %3021  ;;  %v3123_v49 = vadd.f32 %v3050_v6, %v12528_v3 }
 0x4ef   :  { %2897 = vrot.lane.b32.xlu1 %v2862_v36, %s11416_s27  ;;  %v2793_v60 = vpop.f32.mrf.mxu0  ;;  %v3052_v28 = vmul.f32 %v12626_v22, %v2983_v42 }
 0x4f0   :  { %v2865_v54 = vrot.slane %v2793_v60, 7  ;;  %v2860_v62 = vsel %vm1708_vm5, %v2855_v51, %v2859_v59  ;;  %v12624_v23 = vpop.permute.xlu1 %3016 }
 0x4f1   :  { %2895 = vrot.lane.b32.xlu0 %v2860_v62, %s11416_s27  ;;  %v10348_v0 = vpop.f32.mrf.mxu0  ;;  %v3125_v60 = vadd.f32 %v3052_v28, %v12544_v20 }
 0x4f2   :  { %v2866_v1 = vsel %vm1708_vm5, %v2861_v32, %v2865_v54  ;;  %v12630_v33 = vpop.permute.xlu0 %3031  ;;  %v2984_v32 = vrot.slane %v12558_v29, 2  ;;  %v2990_v29 = vrot.slane %v12585_v57, 2 }
 0x4f3   :  { %2901 = vrot.lane.b32.xlu1 %v2866_v1, %s11416_s27 }
 0x4f4   :  { %v12628_v31 = vpop.permute.xlu1 %3026  ;;  %v2987_v54 = vsel %vm2976_vm8, %v2984_v32, %v2986_v15 }
 0x4f5   :  { %3251 = vrot.lane.b32.xlu0 %v12598_v2, %s11417_s30  ;;  %v3054_v44 = vmul.f32 %v12630_v33, %v2987_v54 }
 0x4f6   :  { %v12634_v8 = vpop.permute.xlu0 %3041 }
 0x4f7   :  { %3046 = vperm.xlu1 %10721, %v2805_v4   ;;  %v3127_v6 = vadd.f32 %v3054_v44, %v12562_v39 }
 0x4f8   :  { %v12632_v34 = vpop.permute.xlu1 %3036 }
 0x4fb   :  { %3173 = vrot.lane.b32.xlu1 %v12598_v2, %s11418_s4 }
 0x4ff   :  { %3230 = vrot.lane.b32.xlu1 %v12598_v2, %s11416_s27 }
 0x544   :  { %v12638_v35 = vpop.permute.xlu1 %2869 }
 0x546   :  { %v12641_v41 = vpop.permute.xlu0 %2867 }
 0x549   :  { %v2874_v43 = vpop.permute.xlu1 %2873 }
 0x54b   :  { %v2872_v46 = vpop.permute.xlu0 %2871 }
 0x54c   :  { %v2904_v48 = vsel %vm2540_vm7, %v2872_v46, %v2874_v43 }
 0x54d   :  { %v12647_v7 = vmul.f32 %v2930_v9, %v2904_v48  ;;  %v12649_v63 = vpop.permute.xlu1 %2877  ;;  %v2988_v9 = vrot.slane %v12576_v50, 2 }
 0x54f   :  { %v12653_v24 = vpop.permute.xlu0 %2875  ;;  %v12656_v51 = vadd.f32 %v3123_v49, %v12647_v7  ;;  %v2991_v46 = vsel %vm2976_vm8, %v2988_v9, %v2990_v29 }
 0x551   :  { %v2882_v52 = vpop.permute.xlu1 %2881 }
 0x553   :  { %v2880_v55 = vpop.permute.xlu0 %2879 }
 0x554   :  { %v2906_v56 = vsel %vm2540_vm7, %v2880_v55, %v2882_v52  ;;  %v3056_v52 = vmul.f32 %v12634_v8, %v2991_v46 }
 0x555   :  { %v12662_v58 = vmul.f32 %v2940_v12, %v2906_v56  ;;  %v12664_v36 = vpop.permute.xlu1 %2885 }
 0x556   :  { %v3129_v56 = vadd.f32 %v3056_v52, %v12580_v53 }
 0x557   :  { %v12668_v62 = vpop.permute.xlu0 %2883  ;;  %v12671_v0 = vadd.f32 %v3125_v60, %v12662_v58 }
 0x559   :  { %v2890_v1 = vpop.permute.xlu1 %2889 }
 0x55b   :  { %v2888_v4 = vpop.permute.xlu0 %2887 }
 0x55c   :  { %v2908_v12 = vsel %vm2540_vm7, %v2888_v4, %v2890_v1  ;;  %v3003_v1 = vsel %vm2976_vm8, 0.0, %v2977_v37  ;;  %v2981_v4 = vsel %vm2976_vm8, %v2978_v5, %v2980_v47 }
 0x55d   :  { %v12677_v38 = vmul.f32 %v2950_v30, %v2908_v12  ;;  %v12679_v43 = vpop.permute.xlu1 %2893  ;;  %v3049_v12 = vmul.f32 %v12620_v17, %v3003_v1  ;;  %v3051_v11 = vmul.f32 %v12624_v23, %v2981_v4 }
 0x55f   :  { %v12685_v48 = vpop.permute.xlu0 %2891  ;;  %v12688_v42 = vadd.f32 %v3127_v6, %v12677_v38  ;;  %v12716_v5 = vadd.f32 %v3051_v11, %v12535_v10 }
 0x561   :  { %v2898_v50 = vpop.permute.xlu1 %2897 }
 0x563   :  { %v2896_v28 = vpop.permute.xlu0 %2895 }
 0x564   :  { %v2910_v30 = vsel %vm2540_vm7, %v2896_v28, %v2898_v50  ;;  %v12708_v50 = vadd.f32 %v3049_v12, %v12522_v61  ;;  %v12723_v12 = vpop.f32.mrf.mxu1 }
 0x565   :  { %v12692_v55 = vmul.f32 %v2960_v18, %v2910_v30  ;;  %v12699_v44 = vpop.permute.xlu1 %2901  ;;  %v2985_v18 = vsel %vm2976_vm8, %v2982_v45, %v2984_v32  ;;  %v2989_v30 = vsel %vm2976_vm8, %v2986_v15, %v2988_v9 }
 0x566   :  { %v3053_v47 = vmul.f32 %v12628_v31, %v2985_v18 }
 0x567   :  { %v12696_v54 = vadd.f32 %v3129_v56, %v12692_v55 }
 0x568   :  { %v12728_v11 = vadd.f32 %v3053_v47, %v12553_v25 }
 0x572   :  { %v12703_v46 = vpop.permute.xlu1 %3046 }
 0x576   :  { %v12710_v52 = vpop.permute.xlu1 %3173 }
 0x577   :  { %v3177_v28 = vadd.f32 %v12710_v52, %v3123_v49  ;;  %v3176_v37 = vadd.f32 %v12710_v52, %v12708_v50  ;;  %v3179_v45 = vadd.f32 %v12710_v52, %v3125_v60  ;;  %v3178_v32 = vadd.f32 %v12710_v52, %v12716_v5 }
 0x578   :  { %v3055_v49 = vmul.f32 %v12632_v34, %v2989_v30  ;;  %v3181_v9 = vadd.f32 %v12710_v52, %v3127_v6  ;;  %v3180_v60 = vadd.f32 %v12710_v52, %v12728_v11  ;;  %v2903_v6 = vsel %vm2540_vm7, %v12641_v41, %v12638_v35 }
 0x579   :  { %v3186_v1 = vmax.f32 %v3177_v28, 0.0  ;;  %v3185_v4 = vmax.f32 %v3176_v37, 0.0  ;;  %v3188_v18 = vmax.f32 %v3179_v45, 0.0  ;;  %v3187_v15 = vmax.f32 %v3178_v32, 0.0  ;;  %v2684_v28 = vpop.f32.mrf.mxu1 }
 0x57a   :  { %v12737_v37 = vadd.f32 %v3055_v49, %v12571_v40  ;;  %v3189_v47 = vmax.f32 %v3180_v60, 0.0  ;;  %v2921_v45 = vsel %vm1708_vm5, 0.0, %v2903_v6  ;;  %v3183_v49 = vadd.f32 %v12710_v52, %v3129_v56  ;;  %v3252_v6 = vpop.permute.xlu0 %3251 }
 0x57b   :  { %3428 = vrot.lane.b32.xlu0 %v3186_v1, %s11417_s30  ;;  %3426 = vrot.lane.b32.xlu1 %v3185_v4, %s11417_s30  ;;  %v3190_v1 = vmax.f32 %v3181_v9, 0.0  ;;  %v2863_v4 = vrot.slane %v2684_v28, 7  ;;  %v3068_v41 = vrot.slane %v12647_v7, 2  ;;  %v3072_v60 = vrot.slane %v12662_v58, 2 }
 0x57c   :  { %v3182_v30 = vadd.f32 %v12710_v52, %v12737_v37  ;;  %v3192_v35 = vmax.f32 %v3183_v49, 0.0  ;;  %v3254_v49 = vadd.f32 %v3252_v6, %v12522_v61 }
 0x57e   :  { %v3191_v32 = vmax.f32 %v3182_v30, 0.0 }
 0x57f   :  { %3432 = vrot.lane.b32.xlu0 %v3188_v18, %s11417_s30  ;;  %3430 = vrot.lane.b32.xlu1 %v3187_v15, %s11417_s30  ;;  %v2864_v18 = vsel %vm1708_vm5, %v2859_v59, %v2863_v4  ;;  %v12754_v15 = vmul.f32 %v12610_v27, %v2921_v45  ;;  %v2905_v59 = vsel %vm2540_vm7, %v12653_v24, %v12649_v63  ;;  %v3080_v4 = vrot.slane %v12692_v55, 2 }
 0x580   :  { %v12769_v27 = vmul.f32 %v12612_v13, %v2905_v59  ;;  %v2907_v63 = vsel %vm2540_vm7, %v12668_v62, %v12664_v36  ;;  %v2992_v13 = vrot.slane %v2684_v28, 2 }
 0x581   :  { %v3067_v56 = vrot.slane %v12754_v15, 2 }
 0x582   :  { %v2993_v36 = vsel %vm2976_vm8, %v2990_v29, %v2992_v13  ;;  %v3261_v13 = vadd.f32 %v3252_v6, %v12580_v53 }
 0x583   :  { %3436 = vrot.lane.b32.xlu0 %v3190_v1, %s11417_s30  ;;  %3434 = vrot.lane.b32.xlu1 %v3189_v47, %s11417_s30  ;;  %v3069_v9 = vsel %vm2976_vm8, %v3067_v56, %v3068_v41  ;;  %v12784_v1 = vmul.f32 %v12614_v14, %v2907_v63  ;;  %v2909_v14 = vsel %vm2540_vm7, %v12685_v48, %v12679_v43 }
 0x584   :  { %v3057_v28 = vmul.f32 %v12703_v46, %v2993_v36 }
 0x585   :  { %v3074_v62 = vrot.slane %v12784_v1, 2 }
 0x586   :  { %v12807_v57 = vadd.f32 %v3057_v28, %v12723_v12 }
 0x587   :  { %2899 = vrot.lane.b32.xlu0 %v2864_v18, %s11416_s27  ;;  %3438 = vrot.lane.b32.xlu1 %v3191_v32, %s11417_s30  ;;  %v3075_v29 = vsel %vm2976_vm8, %v3072_v60, %v3074_v62  ;;  %v3255_v32 = vadd.f32 %v3252_v6, %v12528_v3 }
 0x588   :  { %v3184_v48 = vadd.f32 %v12710_v52, %v12807_v57 }
 0x589   :  { %v3264_v52 = vmax.f32 %v3255_v32, 0.0  ;;  %v5557_v32 = vld [vmem:[%s16299_s17 + $0x38] sm:$0xff] }
 0x58a   :  { %v3193_v45 = vmax.f32 %v3184_v48, 0.0  ;;  %v5553_v48 = vld [vmem:[%s16299_s17 + $0x18] sm:$0xff] }
 0x58b   :  { %3440 = vrot.lane.b32.xlu0 %v3192_v35, %s11417_s30  ;;  %3196 = vrot.lane.b32.xlu1 %v12647_v7, %s11418_s4  ;;  %v3070_v7 = vrot.slane %v12769_v27, 2  ;;  %v3263_v35 = vmax.f32 %v3254_v49, 0.0  ;;  %v5560_v49 = vld [vmem:[%s16299_s17 + $0x50] sm:$0xff] }
 0x58d   :  { %v3073_v24 = vsel %vm2976_vm8, %v3070_v7, %v3072_v60  ;;  %v3071_v47 = vsel %vm2976_vm8, %v3068_v41, %v3070_v7  ;;  %v3257_v41 = vadd.f32 %v3252_v6, %v12544_v20  ;;  %v3259_v60 = vadd.f32 %v3252_v6, %v12562_v39 }
 0x58e   :  { %v3258_v7 = vadd.f32 %v3252_v6, %v12553_v25 }
 0x58f   :  { %3194 = vrot.lane.b32.xlu0 %v12754_v15, %s11418_s4  ;;  %3086 = vrot.lane.b32.xlu1 %v3069_v9, %s11416_s27  ;;  %v3266_v59 = vmax.f32 %v3257_v41, 0.0  ;;  %v3268_v63 = vmax.f32 %v3259_v60, 0.0  ;;  %v12883_v41 = vpop.permute.xlu1 %3230 }
 0x593   :  { %3084 = vrot.lane.b32.xlu0 %v3067_v56, %s11416_s27  ;;  %3200 = vrot.lane.b32.xlu1 %v12662_v58, %s11418_s4  ;;  %v3076_v58 = vrot.slane %v12677_v38, 2  ;;  %v3256_v56 = vadd.f32 %v3252_v6, %v12535_v10 }
 0x595   :  { %v3077_v30 = vsel %vm2976_vm8, %v3074_v62, %v3076_v58  ;;  %v3265_v9 = vmax.f32 %v3256_v56, 0.0  ;;  %v3262_v62 = vadd.f32 %v3252_v6, %v12723_v12 }
 0x597   :  { %3198 = vrot.lane.b32.xlu0 %v12769_v27, %s11418_s4  ;;  %3090 = vrot.lane.b32.xlu1 %v3073_v24, %s11416_s27  ;;  %v3267_v24 = vmax.f32 %v3258_v7, 0.0  ;;  %v3271_v28 = vmax.f32 %v3262_v62, 0.0 }
 0x59b   :  { %3088 = vrot.lane.b32.xlu0 %v3071_v47, %s11416_s27  ;;  %3204 = vrot.lane.b32.xlu1 %v12677_v38, %s11418_s4  ;;  %v12804_v38 = vmul.f32 %v12616_v16, %v2909_v14  ;;  %v3260_v47 = vadd.f32 %v3252_v6, %v12571_v40  ;;  %v5550_v14 = vld [vmem:[%s16299_s17] sm:$0xff]  ;;  %v5556_v6 = vld [vmem:[%s16299_s17 + $0x30] sm:$0xff] }
 0x59d   :  { %v3078_v43 = vrot.slane %v12804_v38, 2  ;;  %v3269_v36 = vmax.f32 %v3260_v47, 0.0 }
 0x59f   :  { %3202 = vrot.lane.b32.xlu0 %v12784_v1, %s11418_s4  ;;  %3094 = vrot.lane.b32.xlu1 %v3077_v30, %s11416_s27  ;;  %v3081_v16 = vsel %vm2976_vm8, %v3078_v43, %v3080_v4  ;;  %v3079_v18 = vsel %vm2976_vm8, %v3076_v58, %v3078_v43  ;;  %v3270_v58 = vmax.f32 %v3261_v13, 0.0  ;;  %v5552_v30 = vld [vmem:[%s16299_s17 + $0x10] sm:$0xff]  ;;  %v5554_v43 = vld [vmem:[%s16299_s17 + $0x20] sm:$0xff] }
 0x5a3   :  { %3092 = vrot.lane.b32.xlu0 %v3075_v29, %s11416_s27  ;;  %3208 = vrot.lane.b32.xlu1 %v12692_v55, %s11418_s4  ;;  %v5551_v29 = vld [vmem:[%s16299_s17 + $0x8] sm:$0xff] }
 0x5a7   :  { %3206 = vrot.lane.b32.xlu0 %v12804_v38, %s11418_s4  ;;  %3098 = vrot.lane.b32.xlu1 %v3081_v16, %s11416_s27  ;;  %v5555_v16 = vld [vmem:[%s16299_s17 + $0x28] sm:$0xff] }
 0x5ab   :  { %3096 = vrot.lane.b32.xlu0 %v3079_v18, %s11416_s27  ;;  %3442 = vrot.lane.b32.xlu1 %v3193_v45, %s11417_s30  ;;  %v5558_v45 = vld [vmem:[%s16299_s17 + $0x40] sm:$0xff]  ;;  %v5559_v18 = vld [vmem:[%s16299_s17 + $0x48] sm:$0xff]  ;;  %s11423_s30 = smov 122  }
 0x5af   :  { %4742 = vrot.lane.b32.xlu0 %v3264_v52, %s11418_s4  ;;  %4740 = vrot.lane.b32.xlu1 %v3263_v35, %s11418_s4  ;;  %v5562_v52 = vld [vmem:[%s16299_s17 + $0x60] sm:$0xff]  ;;  %v5561_v35 = vld [vmem:[%s16299_s17 + $0x58] sm:$0xff] }
 0x5b3   :  { %4746 = vrot.lane.b32.xlu0 %v3266_v59, %s11418_s4  ;;  %4744 = vrot.lane.b32.xlu1 %v3265_v9, %s11418_s4 }
 0x5b7   :  { %4750 = vrot.lane.b32.xlu0 %v3268_v63, %s11418_s4  ;;  %4748 = vrot.lane.b32.xlu1 %v3267_v24, %s11418_s4 }
 0x5bb   :  { %4754 = vrot.lane.b32.xlu0 %v3270_v58, %s11418_s4  ;;  %4752 = vrot.lane.b32.xlu1 %v3269_v36, %s11418_s4 }
 0x5bf   :  { %5804 = vperm.xlu0 %10720, %v5550_v14   ;;  %4756 = vrot.lane.b32.xlu1 %v3271_v28, %s11418_s4 }
 0x5c3   :  { %5814 = vperm.xlu0 %10720, %v5552_v30   ;;  %5809 = vperm.xlu1 %10721, %v5551_v29  }
 0x5c7   :  { %5824 = vperm.xlu0 %10720, %v5554_v43   ;;  %5819 = vperm.xlu1 %10721, %v5553_v48  }
 0x5cb   :  { %5834 = vperm.xlu0 %10720, %v5556_v6   ;;  %5829 = vperm.xlu1 %10721, %v5555_v16  }
 0x5cf   :  { %5844 = vperm.xlu0 %10720, %v5558_v45   ;;  %5839 = vperm.xlu1 %10721, %v5557_v32  }
 0x5d3   :  { %5854 = vperm.xlu0 %10720, %v5560_v49   ;;  %5849 = vperm.xlu1 %10721, %v5559_v18  }
 0x5d7   :  { %5864 = vperm.xlu0 %10720, %v5562_v52   ;;  %5859 = vperm.xlu1 %10721, %v5561_v35  }
 0x5ed   :  { %v12885_v56 = vpop.permute.xlu0 %3428  ;;  %v12887_v59 = vpop.permute.xlu1 %3426 }
 0x5f1   :  { %v12889_v9 = vpop.permute.xlu0 %3432  ;;  %v12891_v60 = vpop.permute.xlu1 %3430 }
 0x5f5   :  { %v12893_v7 = vpop.permute.xlu0 %3436  ;;  %v12895_v63 = vpop.permute.xlu1 %3434 }
 0x5f9   :  { %v2900_v24 = vpop.permute.xlu0 %2899  ;;  %v12897_v13 = vpop.permute.xlu1 %3438 }
 0x5fa   :  { %v2911_v47 = vsel %vm2540_vm7, %v2900_v24, %v12699_v44 }
 0x5fb   :  { %v12902_v58 = vmul.f32 %v12618_v19, %v2911_v47 }
 0x5fd   :  { %v3082_v36 = vrot.slane %v12902_v58, 2  ;;  %3210 = vrot.lane.b32.xlu0 %v12902_v58, %s11418_s4  ;;  %v12907_v62 = vpop.permute.xlu0 %3440  ;;  %v3197_v14 = vpop.permute.xlu1 %3196 }
 0x5fe   :  { %v3222_v28 = vadd.f32 %v3197_v14, %v12528_v3 }
 0x5ff   :  { %v3083_v30 = vsel %vm2976_vm8, %v3080_v4, %v3082_v36  ;;  %v12936_v36 = vld [vmem:[%s16300_s13] sm:$0xff]  }
 0x600   :  { %v3234_v29 = vadd.f32 %v12883_v41, %v3222_v28  ;;  %v9315_v14 = vunpack.c.l.bf16 %v12936_v36 }
 0x601   :  { %3100 = vrot.lane.b32.xlu0 %v3083_v30, %s11416_s27  ;;  %v3195_v19 = vpop.permute.xlu0 %3194  ;;  %v12915_v44 = vpop.permute.xlu1 %3086 }
 0x602   :  { %v3243_v43 = vmax.f32 %v3234_v29, 0.0  ;;  %v3221_v48 = vadd.f32 %v3195_v19, %v12522_v61  ;;  %10439 = vmatprep.mubr.msk.f32.mxu0 %vm3453_vm9, %v9315_v14  ;;  %v23_v19 = vstv %s16301_s15 }
 0x603   :  { %24 = vst [vmem:[#allocation2] sm:$0x1] %v23_v19  ;;  %v5577_v19 = vld [vmem:[%s16299_s17 + $0xd8] sm:$0xff] }
 0x604   :  { %v3233_v6 = vadd.f32 %v12883_v41, %v3221_v48  ;;  %4244 = vrot.lane.b32.xlu1 %v3243_v43, %s11416_s27 }
 0x605   :  { %v12920_v16 = vpop.permute.xlu0 %3084  ;;  %v3201_v3 = vpop.permute.xlu1 %3200 }
 0x606   :  { %v3242_v55 = vmax.f32 %v3233_v6, 0.0  ;;  %v3224_v4 = vadd.f32 %v3201_v3, %v12544_v20 }
 0x608   :  { %v3236_v45 = vadd.f32 %v12883_v41, %v3224_v4  ;;  %4242 = vrot.lane.b32.xlu0 %v3242_v55, %s11416_s27 }
 0x609   :  { %v3199_v32 = vpop.permute.xlu0 %3198  ;;  %v12925_v49 = vpop.permute.xlu1 %3090 }
 0x60a   :  { %v3245_v18 = vmax.f32 %v3236_v45, 0.0  ;;  %v3223_v61 = vadd.f32 %v3199_v32, %v12535_v10 }
 0x60c   :  { %v3235_v52 = vadd.f32 %v12883_v41, %v3223_v61  ;;  %4248 = vrot.lane.b32.xlu1 %v3245_v18, %s11416_s27 }
 0x60d   :  { %v12930_v35 = vpop.permute.xlu0 %3088  ;;  %v3205_v24 = vpop.permute.xlu1 %3204 }
 0x60e   :  { %v3244_v47 = vmax.f32 %v3235_v52, 0.0  ;;  %v3226_v20 = vadd.f32 %v3205_v24, %v12562_v39  ;;  %v5563_v24 = vld [vmem:[%s16299_s17 + $0x68] sm:$0xff] }
 0x610   :  { %v3238_v10 = vadd.f32 %v12883_v41, %v3226_v20  ;;  %4246 = vrot.lane.b32.xlu0 %v3244_v47, %s11416_s27  ;;  %v5565_v47 = vld [vmem:[%s16299_s17 + $0x78] sm:$0xff]  ;;  %v5566_v20 = vld [vmem:[%s16299_s17 + $0x80] sm:$0xff] }
 0x611   :  { %v3203_v28 = vpop.permute.xlu0 %3202  ;;  %v12941_v30 = vpop.permute.xlu1 %3094 }
 0x612   :  { %v3247_v29 = vmax.f32 %v3238_v10, 0.0  ;;  %v3225_v39 = vadd.f32 %v3203_v28, %v12553_v25  ;;  %v5572_v10 = vld [vmem:[%s16299_s17 + $0xb0] sm:$0xff]  ;;  %v5574_v28 = vld [vmem:[%s16299_s17 + $0xc0] sm:$0xff] }
 0x614   :  { %v3237_v43 = vadd.f32 %v12883_v41, %v3225_v39  ;;  %4252 = vrot.lane.b32.xlu1 %v3247_v29, %s11416_s27  ;;  %v5576_v39 = vld [vmem:[%s16299_s17 + $0xd0] sm:$0xff] }
 0x615   :  { %v12950_v48 = vpop.permute.xlu0 %3092  ;;  %v3209_v6 = vpop.permute.xlu1 %3208 }
 0x616   :  { %v3246_v3 = vmax.f32 %v3237_v43, 0.0  ;;  %v3228_v55 = vadd.f32 %v3209_v6, %v12580_v53  ;;  %v5578_v6 = vld [vmem:[%s16299_s17 + $0xe0] sm:$0xff] }
 0x618   :  { %v3240_v4 = vadd.f32 %v12883_v41, %v3228_v55  ;;  %4250 = vrot.lane.b32.xlu0 %v3246_v3, %s11416_s27  ;;  %v5579_v3 = vld [vmem:[%s16299_s17 + $0xe8] sm:$0xff]  ;;  %v5580_v55 = vld [vmem:[%s16299_s17 + $0xf0] sm:$0xff] }
 0x619   :  { %v3207_v25 = vpop.permute.xlu0 %3206  ;;  %v12955_v45 = vpop.permute.xlu1 %3098 }
 0x61a   :  { %v3249_v32 = vmax.f32 %v3240_v4, 0.0  ;;  %v3227_v18 = vadd.f32 %v3207_v25, %v12571_v40  ;;  %v5564_v40 = vld [vmem:[%s16299_s17 + $0x70] sm:$0xff]  ;;  %v5581_v4 = vld [vmem:[%s16299_s17 + $0xf8] sm:$0xff] }
 0x61c   :  { %v3239_v61 = vadd.f32 %v12883_v41, %v3227_v18  ;;  %4256 = vrot.lane.b32.xlu1 %v3249_v32, %s11416_s27  ;;  %v5582_v32 = vld [vmem:[%s16299_s17 + $0x100] sm:$0xff]  ;;  %v5583_v18 = vld [vmem:[%s16299_s17 + $0x108] sm:$0xff] }
 0x61d   :  { %v3443_v52 = vpop.permute.xlu1 %3442  ;;  %v12992_v14 = vpop.permute.xlu0 %3096 }
 0x61e   :  { %v3248_v53 = vmax.f32 %v3239_v61, 0.0  ;;  %10349 = vmatprep.subr.mxu1 %v3443_v52 }
 0x61f   :  { %10350 = vmatpush3.msra.mxu1 %v3443_v52  ;;  %v5584_v52 = vld [vmem:[%s16299_s17 + $0x110] sm:$0xff] }
 0x620   :  { %4254 = vrot.lane.b32.xlu0 %v3248_v53, %s11416_s27  ;;  %5869 = vperm.xlu1 %10721, %v5563_v24   ;;  %v5585_v24 = vld [vmem:[%s16299_s17 + $0x118] sm:$0xff] }
 0x621   :  { %10351 = vmatprep.subr.mxu1 %v12907_v62 }
 0x622   :  { %10352 = vmatpush3.msra.mxu1 %v12907_v62  ;;  %v5567_v62 = vld [vmem:[%s16299_s17 + $0x88] sm:$0xff] }
 0x623   :  { %10353 = vmatprep.subr.mxu1 %v12897_v13 }
 0x624   :  { %10354 = vmatpush3.msra.mxu1 %v12897_v13  ;;  %5874 = vperm.xlu0 %10720, %v5564_v40   ;;  %v5568_v13 = vld [vmem:[%s16299_s17 + $0x90] sm:$0xff]  ;;  %v5515_v40 = vld [vmem:[%s16302_s16 + $0x8] sm:$0xff] }
 0x625   :  { %5879 = vperm.xlu1 %10721, %v5565_v47   ;;  %10355 = vmatprep.subr.mxu1 %v12893_v7  ;;  %v5514_v47 = vld [vmem:[%s16302_s16] sm:$0xff] }
 0x626   :  { %10356 = vmatpush3.msra.mxu1 %v12893_v7  ;;  %v5569_v7 = vld [vmem:[%s16299_s17 + $0x98] sm:$0xff] }
 0x627   :  { %10357 = vmatprep.subr.mxu1 %v12895_v63 }
 0x628   :  { %10358 = vmatpush3.msra.mxu1 %v12895_v63  ;;  %5884 = vperm.xlu0 %10720, %v5566_v20   ;;  %v5570_v63 = vld [vmem:[%s16299_s17 + $0xa0] sm:$0xff]  ;;  %v5517_v20 = vld [vmem:[%s16302_s16 + $0x18] sm:$0xff] }
 0x629   :  { %5889 = vperm.xlu1 %10721, %v5567_v62   ;;  %10359 = vmatprep.subr.mxu1 %v12889_v9  ;;  %v5516_v62 = vld [vmem:[%s16302_s16 + $0x10] sm:$0xff] }
 0x62a   :  { %10360 = vmatpush3.msra.mxu1 %v12889_v9  ;;  %v5571_v9 = vld [vmem:[%s16299_s17 + $0xa8] sm:$0xff] }
 0x62b   :  { %10361 = vmatprep.subr.mxu1 %v12891_v60 }
 0x62c   :  { %10362 = vmatpush3.msra.mxu1 %v12891_v60  ;;  %5894 = vperm.xlu0 %10720, %v5568_v13   ;;  %v13006_v60 = vpop.permute.xlu0 %4742 }
 0x62d   :  { %5899 = vperm.xlu1 %10721, %v5569_v7   ;;  %10363 = vmatprep.subr.mxu1 %v12885_v56  ;;  %v5519_v7 = vld [vmem:[%s16302_s16 + $0x28] sm:$0xff] }
 0x62e   :  { %10364 = vmatpush3.msra.mxu1 %v12885_v56  ;;  %v5573_v56 = vld [vmem:[%s16299_s17 + $0xb8] sm:$0xff] }
 0x62f   :  { %10365 = vmatprep.subr.mxu1 %v12887_v59 }
 0x630   :  { %10366 = vmatpush3.msra.mxu1 %v12887_v59  ;;  %5904 = vperm.xlu0 %10720, %v5570_v63   ;;  %v5575_v59 = vld [vmem:[%s16299_s17 + $0xc8] sm:$0xff]  ;;  %v13020_v29 = vpop.permute.xlu0 %4746  ;;  %v5518_v63 = vld [vmem:[%s16302_s16 + $0x20] sm:$0xff]  ;;  %s11420_s17 = smov 3  }
 0x631   :  { %5909 = vperm.xlu1 %10721, %v5571_v9  }
 0x634   :  { %5914 = vperm.xlu0 %10720, %v5572_v10   ;;  %v13028_v43 = vpop.permute.xlu0 %4750  ;;  %v5521_v10 = vld [vmem:[%s16302_s16 + $0x38] sm:$0xff] }
 0x635   :  { %5919 = vperm.xlu1 %10721, %v5573_v56   ;;  %v5520_v56 = vld [vmem:[%s16302_s16 + $0x30] sm:$0xff] }
 0x638   :  { %5924 = vperm.xlu0 %10720, %v5574_v28   ;;  %v13042_v25 = vpop.permute.xlu0 %4754  ;;  %v5523_v28 = vld [vmem:[%s16302_s16 + $0x48] sm:$0xff] }
 0x639   :  { %5929 = vperm.xlu1 %10721, %v5575_v59   ;;  %v5522_v59 = vld [vmem:[%s16302_s16 + $0x40] sm:$0xff] }
 0x63c   :  { %5934 = vperm.xlu0 %10720, %v5576_v39   ;;  %v13050_v61 = vpop.permute.xlu0 %5804 }
 0x63d   :  { %5939 = vperm.xlu1 %10721, %v5577_v19   ;;  %16448 = vst [vmem:[#allocation3_spill] sm:$0xff] %v13050_v61  ;;  %v5525_v19 = vld [vmem:[%s16302_s16 + $0x58] sm:$0xff] }
 0x640   :  { %5944 = vperm.xlu0 %10720, %v5578_v6   ;;  %v13058_v53 = vpop.permute.xlu0 %5814  ;;  %v5524_v6 = vld [vmem:[%s16302_s16 + $0x50] sm:$0xff] }
 0x641   :  { %5949 = vperm.xlu1 %10721, %v5579_v3   ;;  %16449 = vst [vmem:[#allocation4_spill] sm:$0xff] %v13058_v53  ;;  %v9633_v3 = vld [vmem:[%s16300_s13 + $0x90] sm:$0xff]  }
 0x644   :  { %5954 = vperm.xlu0 %10720, %v5580_v55   ;;  %v13072_v13 = vpop.permute.xlu0 %5824 }
 0x645   :  { %5959 = vperm.xlu1 %10721, %v5581_v4   ;;  %16450 = vst [vmem:[#allocation5_spill] sm:$0xff] %v13072_v13  ;;  %v5527_v4 = vld [vmem:[%s16302_s16 + $0x68] sm:$0xff] }
 0x648   :  { %5964 = vperm.xlu0 %10720, %v5582_v32   ;;  %v13080_v9 = vpop.permute.xlu0 %5834  ;;  %v9387_v32 = vunpack.c.l.bf16 %v9633_v3 }
 0x649   :  { %5969 = vperm.xlu1 %10721, %v5583_v18   ;;  %16451 = vst [vmem:[#allocation6_spill] sm:$0xff] %v13080_v9  ;;  %v9388_v18 = vunpack.c.h.bf16 %v9633_v3  ;;  %v9636_v3 = vld [vmem:[%s16300_s13 + $0xa8] sm:$0xff]  }
 0x64a   :  { %10367 = vmatprep.mubr.msk.f32.mxu1 %vm3453_vm9, %v9387_v32  ;;  %v9399_v32 = vunpack.c.l.bf16 %v9636_v3 }
 0x64b   :  { %10368 = vmatmul.mubr.msk.f32.vlgmr.msra.gmra.mxu1 %vm3453_vm9, %v9388_v18  ;;  %v9400_v18 = vunpack.c.h.bf16 %v9636_v3 }
 0x64c   :  { %5974 = vperm.xlu0 %10720, %v5584_v52   ;;  %v13094_v39 = vpop.permute.xlu0 %5844  ;;  %v5526_v52 = vld [vmem:[%s16302_s16 + $0x60] sm:$0xff] }
 0x64d   :  { %5979 = vperm.xlu1 %10721, %v5585_v24   ;;  %16452 = vst [vmem:[#allocation7_spill] sm:$0xff] %v13094_v39  ;;  %v9634_v24 = vld [vmem:[%s16300_s13 + $0x98] sm:$0xff]  }
 0x650   :  { %6201 = vperm.xlu0 %10720, %v5515_v40   ;;  %v13105_v55 = vpop.permute.xlu0 %5854  ;;  %v5529_v40 = vld [vmem:[%s16302_s16 + $0x78] sm:$0xff] }
 0x651   :  { %6196 = vperm.xlu1 %10721, %v5514_v47   ;;  %16453 = vst [vmem:[#allocation8_spill] sm:$0xff] %v13105_v55  ;;  %v9391_v47 = vunpack.c.l.bf16 %v9634_v24 }
 0x653   :  { %10370 = vmatprep.mubr.msk.f32.mxu1 %vm3453_vm9, %v9391_v47  ;;  %v3117_v47 = vmul.f32 %v12941_v30, %v12630_v33 }
 0x654   :  { %6211 = vperm.xlu0 %10720, %v5517_v20   ;;  %v9392_v20 = vunpack.c.h.bf16 %v9634_v24  ;;  %v3139_v24 = vadd.f32 %v12807_v57, %v12902_v58  ;;  %v5535_v57 = vld [vmem:[%s16302_s16 + $0xa8] sm:$0xff] }
 0x655   :  { %6206 = vperm.xlu1 %10721, %v5516_v62   ;;  %v5528_v62 = vld [vmem:[%s16302_s16 + $0x70] sm:$0xff] }
 0x656   :  { %10371 = vmatmul.mubr.msk.f32.gmra.mxu1 %vm3453_vm9, %v9392_v20 }
 0x658   :  { %6221 = vperm.xlu0 %10720, %v5519_v7   ;;  %v13124_v7 = vpop.permute.xlu0 %5864 }
 0x659   :  { %6216 = vperm.xlu1 %10721, %v5518_v63   ;;  %16454 = vst [vmem:[#allocation9_spill] sm:$0xff] %v13124_v7  ;;  %v9635_v63 = vld [vmem:[%s16300_s13 + $0xa0] sm:$0xff]  }
 0x65c   :  { %6231 = vperm.xlu0 %10720, %v5521_v10   ;;  %v5531_v10 = vld [vmem:[%s16302_s16 + $0x88] sm:$0xff] }
 0x65d   :  { %6226 = vperm.xlu1 %10721, %v5520_v56   ;;  %v9395_v56 = vunpack.c.l.bf16 %v9635_v63 }
 0x65f   :  { %10373 = vmatprep.mubr.msk.f32.mxu1 %vm3453_vm9, %v9395_v56 }
 0x660   :  { %6241 = vperm.xlu0 %10720, %v5523_v28   ;;  %v9396_v28 = vunpack.c.h.bf16 %v9635_v63  ;;  %v3135_v63 = vadd.f32 %v12728_v11, %v12784_v1  ;;  %v3114_v11 = vmul.f32 %v12930_v35, %v12624_v23  ;;  %v3113_v23 = vmul.f32 %v12915_v44, %v12622_v21 }
 0x661   :  { %6236 = vperm.xlu1 %10721, %v5522_v59   ;;  %v5530_v59 = vld [vmem:[%s16302_s16 + $0x80] sm:$0xff] }
 0x662   :  { %10374 = vmatmul.mubr.msk.f32.gmra.mxu1 %vm3453_vm9, %v9396_v28 }
 0x663   :  { %10376 = vmatprep.mubr.msk.f32.mxu1 %vm3453_vm9, %v9399_v32 }
 0x664   :  { %6251 = vperm.xlu0 %10720, %v5525_v19  }
 0x665   :  { %6246 = vperm.xlu1 %10721, %v5524_v6   ;;  %v3119_v6 = vmul.f32 %v12955_v45, %v12634_v8  ;;  %v5532_v8 = vld [vmem:[%s16302_s16 + $0x90] sm:$0xff]  ;;  %v3137_v45 = vadd.f32 %v12737_v37, %v12804_v38  ;;  %v13167_v38 = vpop.permute.xlu1 %4740 }
 0x666   :  { %10377 = vmatmul.mubr.msk.f32.gmra.mxu1 %vm3453_vm9, %v9400_v18  ;;  %v9637_v37 = vld [vmem:[%s16300_s13 + $0xb0] sm:$0xff]  }
 0x667   :  { %v3147_v20 = vadd.f32 %v12696_v54, %v3119_v6  ;;  %v9403_v58 = vunpack.c.l.bf16 %v9637_v37  ;;  %v9404_v33 = vunpack.c.h.bf16 %v9637_v37  ;;  %v3116_v54 = vmul.f32 %v12950_v48, %v12628_v31  ;;  %v9638_v48 = vld [vmem:[%s16300_s13 + $0xb8] sm:$0xff]  }
 0x668   :  { %6261 = vperm.xlu0 %10720, %v5527_v4   ;;  %v5533_v4 = vld [vmem:[%s16302_s16 + $0x98] sm:$0xff]  ;;  %v9407_v1 = vunpack.c.l.bf16 %v9638_v48  ;;  %v9408_v3 = vunpack.c.h.bf16 %v9638_v48 }
 0x669   :  { %6256 = vperm.xlu1 %10721, %v5526_v52   ;;  %v3118_v52 = vmul.f32 %v12992_v14, %v12632_v34  ;;  %v5534_v14 = vld [vmem:[%s16302_s16 + $0xa0] sm:$0xff]  ;;  %10379 = vmatprep.mubr.msk.f32.mxu1 %vm3453_vm9, %v9403_v58  ;;  %v3162_v31 = vadd.f32 %v12598_v2, %v3147_v20 }
 0x66a   :  { %10380 = vmatmul.mubr.msk.f32.gmra.mxu1 %vm3453_vm9, %v9404_v33 }
 0x66b   :  { %10382 = vmatprep.mubr.msk.f32.mxu1 %vm3453_vm9, %v9407_v1  ;;  %v3171_v32 = vmax.f32 %v3162_v31, 0.0  ;;  %v13260_v1 = vld [vmem:[%s16300_s13 + $0xd8] sm:$0xff]  }
 0x66c   :  { %6271 = vperm.xlu0 %10720, %v5529_v40  }
 0x66d   :  { %6266 = vperm.xlu1 %10721, %v5528_v62   ;;  %v3115_v62 = vmul.f32 %v12925_v49, %v12626_v22  ;;  %v3111_v22 = vsel %vm2976_vm8, 0.0, %v12920_v16  ;;  %v3144_v49 = vadd.f32 %v3135_v63, %v3116_v54  ;;  %v3133_v16 = vadd.f32 %v12716_v5, %v12769_v27  ;;  %v5539_v27 = vld [vmem:[%s16302_s16 + $0xc8] sm:$0xff] }
 0x66e   :  { %v3112_v5 = vmul.f32 %v3111_v22, %v12620_v17  ;;  %10383 = vmatmul.mubr.msk.f32.gmra.mxu1 %vm3453_vm9, %v9408_v3  ;;  %v3141_v17 = vadd.f32 %v12656_v51, %v3113_v23  ;;  %v5541_v51 = vld [vmem:[%s16302_s16 + $0xd8] sm:$0xff]  ;;  %v9316_v3 = vunpack.c.h.bf16 %v12936_v36  ;;  %v9617_v23 = vld [vmem:[%s16300_s13 + $0x10] sm:$0xff]   ;;  %v5546_v36 = vld [vmem:[%s16302_s16 + $0x100] sm:$0xff] }
 0x66f   :  { %v13137_v19 = vpop.permute.xlu0 %3210  ;;  %v3143_v35 = vadd.f32 %v12671_v0, %v3115_v62  ;;  %v3142_v44 = vadd.f32 %v3133_v16, %v3114_v11  ;;  %v5538_v0 = vld [vmem:[%s16302_s16 + $0xc0] sm:$0xff]  ;;  %v9641_v62 = vld [vmem:[%s16300_s13 + $0xd0] sm:$0xff]  }
 0x670   :  { %6281 = vperm.xlu0 %10720, %v5531_v10   ;;  %v3145_v10 = vadd.f32 %v12688_v42, %v3117_v47  ;;  %v5537_v42 = vld [vmem:[%s16302_s16 + $0xb8] sm:$0xff]  ;;  %v9419_v63 = vunpack.c.l.bf16 %v9641_v62  ;;  %v9420_v48 = vunpack.c.h.bf16 %v9641_v62 }
 0x671   :  { %6276 = vperm.xlu1 %10721, %v5530_v59   ;;  %v5536_v59 = vld [vmem:[%s16302_s16 + $0xb0] sm:$0xff]  ;;  %v3158_v20 = vadd.f32 %v12598_v2, %v3143_v35  ;;  %v3157_v33 = vadd.f32 %v12598_v2, %v3142_v44 }
 0x672   :  { %v3160_v18 = vadd.f32 %v12598_v2, %v3145_v10  ;;  %v5542_v10 = vld [vmem:[%s16302_s16 + $0xe0] sm:$0xff]  ;;  %v5548_v44 = vld [vmem:[%s16302_s16 + $0x110] sm:$0xff] }
 0x673   :  { %v3101_v40 = vpop.permute.xlu0 %3100 }
 0x674   :  { %v3120_v34 = vmul.f32 %v3101_v40, %v12703_v46  ;;  %6291 = vperm.xlu0 %10720, %v5533_v4   ;;  %v3146_v46 = vadd.f32 %v3137_v45, %v3118_v52  ;;  %v13202_v4 = vpop.permute.xlu1 %4744  ;;  %v9639_v52 = vld [vmem:[%s16300_s13 + $0xc0] sm:$0xff]   ;;  %v3159_v45 = vadd.f32 %v12598_v2, %v3144_v49  ;;  %v3131_v40 = vadd.f32 %v12708_v50, %v12754_v15  ;;  %v5540_v50 = vld [vmem:[%s16302_s16 + $0xd0] sm:$0xff]  ;;  %v5545_v49 = vld [vmem:[%s16302_s16 + $0xf8] sm:$0xff] }
 0x675   :  { %6286 = vperm.xlu1 %10721, %v5532_v8   ;;  %v9411_v21 = vunpack.c.l.bf16 %v9639_v52  ;;  %v3169_v47 = vmax.f32 %v3160_v18, 0.0 }
 0x676   :  { %v3148_v30 = vadd.f32 %v3139_v24, %v3120_v34  ;;  %v3161_v6 = vadd.f32 %v12598_v2, %v3146_v46  ;;  %v9412_v24 = vunpack.c.h.bf16 %v9639_v52  ;;  %v9640_v34 = vld [vmem:[%s16300_s13 + $0xc8] sm:$0xff]   ;;  %v3140_v58 = vadd.f32 %v3131_v40, %v3112_v5 }
 0x677   :  { %10385 = vmatprep.mubr.msk.f32.mxu1 %vm3453_vm9, %v9411_v21  ;;  %v3168_v15 = vmax.f32 %v3159_v45, 0.0  ;;  %v9416_v54 = vunpack.c.h.bf16 %v9640_v34  ;;  %v3167_v46 = vmax.f32 %v3158_v20, 0.0  ;;  %v9323_v5 = vunpack.c.l.bf16 %v9617_v23  ;;  %v5549_v21 = vld [vmem:[%s16302_s16 + $0x118] sm:$0xff]  ;;  %v9643_v20 = vld [vmem:[%s16300_s13 + $0xe0] sm:$0xff]  }
 0x678   :  { %6301 = vperm.xlu0 %10720, %v5535_v57   ;;  %v3163_v56 = vadd.f32 %v12598_v2, %v3148_v30  ;;  %v3170_v8 = vmax.f32 %v3161_v6, 0.0  ;;  %v13229_v37 = vpop.permute.xlu1 %4748  ;;  %v9415_v57 = vunpack.c.l.bf16 %v9640_v34  ;;  %10386 = vmatmul.mubr.msk.f32.gmra.mxu1 %vm3453_vm9, %v9412_v24  ;;  %v11372_v30 = vld [vmem:[%s16298_s10] ss:$0 sm:$0xff]  ;;  %v5543_v2 = vld [vmem:[%s16302_s16 + $0xe8] sm:$0xff]  ;;  %v3229_v40 = vadd.f32 %v13137_v19, %v12723_v12 }
 0x679   :  { %6296 = vperm.xlu1 %10721, %v5534_v14   ;;  %v3156_v14 = vadd.f32 %v11372_v30, %v3141_v17  ;;  %v3155_v31 = vadd.f32 %v11372_v30, %v3140_v58  ;;  %v9248_v24 = vld [vmem:[#allocation2] ss:$0 sm:$0xff]  ;;  %v9424_v17 = vunpack.c.h.bf16 %v13260_v1  ;;  %v9620_v12 = vld [vmem:[%s16300_s13 + $0x28] sm:$0xff]   ;;  %v9427_v19 = vunpack.c.l.bf16 %v9643_v20  ;;  %v9622_v30 = vld [vmem:[%s16300_s13 + $0x38] sm:$0xff]  }
 0x67a   :  { %v3172_v28 = vmax.f32 %v3163_v56, 0.0  ;;  %10388 = vmatprep.mubr.msk.f32.mxu1 %vm3453_vm9, %v9415_v57  ;;  %v3166_v56 = vmax.f32 %v3157_v33, 0.0  ;;  %v13282_v52 = vpop.permute.xlu0 %4242  ;;  %v9644_v57 = vld [vmem:[%s16300_s13 + $0xe8] sm:$0xff]  }
 0x67b   :  { %v3165_v11 = vmax.f32 %v3156_v14, 0.0  ;;  %v3164_v6 = vmax.f32 %v3155_v31, 0.0  ;;  %v9432_v14 = vunpack.c.h.bf16 %v9644_v57 }
 0x67c   :  { %10421 = vmatprep.subr.mxu0 %v3172_v28  ;;  %6311 = vperm.xlu0 %10720, %v5537_v42   ;;  %v4753_v22 = vpop.permute.xlu1 %4752  ;;  %v9616_v42 = vld [vmem:[%s16300_s13 + $0x8] sm:$0xff]  }
 0x67d   :  { %6306 = vperm.xlu1 %10721, %v5536_v59   ;;  %10422 = vmatpush3.msra.mxu0 %v3172_v28  ;;  %v9423_v28 = vunpack.c.l.bf16 %v13260_v1  ;;  %v5544_v59 = vld [vmem:[%s16302_s16 + $0xf0] sm:$0xff]  ;;  %v9319_v16 = vunpack.c.l.bf16 %v9616_v42  ;;  %v9320_v18 = vunpack.c.h.bf16 %v9616_v42 }
 0x67e   :  { %10423 = vmatprep.subr.mxu0 %v3171_v32  ;;  %10389 = vmatmul.mubr.msk.f32.gmra.mxu1 %vm3453_vm9, %v9416_v54  ;;  %v9645_v54 = vld [vmem:[%s16300_s13 + $0xf0] sm:$0xff]  }
 0x67f   :  { %10424 = vmatpush3.msra.mxu0 %v3171_v32  ;;  %10391 = vmatprep.mubr.msk.f32.mxu1 %vm3453_vm9, %v9419_v63  ;;  %v5547_v32 = vld [vmem:[%s16302_s16 + $0x108] sm:$0xff]  ;;  %v9435_v62 = vunpack.c.l.bf16 %v9645_v54  ;;  %v9436_v31 = vunpack.c.h.bf16 %v9645_v54 }
 0x680   :  { %6321 = vperm.xlu0 %10720, %v5539_v27   ;;  %10425 = vmatprep.subr.mxu0 %v3170_v8  ;;  %v4757_v35 = vpop.permute.xlu1 %4756  ;;  %v9618_v27 = vld [vmem:[%s16300_s13 + $0x18] sm:$0xff]  }
 0x681   :  { %6316 = vperm.xlu1 %10721, %v5538_v0   ;;  %10426 = vmatpush3.msra.mxu0 %v3170_v8  ;;  %v9324_v0 = vunpack.c.h.bf16 %v9617_v23  ;;  %v9327_v45 = vunpack.c.l.bf16 %v9618_v27 }
 0x682   :  { %10427 = vmatprep.subr.mxu0 %v3169_v47  ;;  %10392 = vmatmul.mubr.msk.f32.gmra.mxu1 %vm3453_vm9, %v9420_v48  ;;  %v13297_v8 = vpop.permute.xlu0 %4246 }
 0x683   :  { %10428 = vmatpush3.msra.mxu0 %v3169_v47  ;;  %10394 = vmatprep.mubr.msk.f32.mxu1 %vm3453_vm9, %v9423_v28  ;;  %v9328_v47 = vunpack.c.h.bf16 %v9618_v27 }
 0x684   :  { %6331 = vperm.xlu0 %10720, %v5541_v51   ;;  %10429 = vmatprep.subr.mxu0 %v3168_v15  ;;  %v3241_v51 = vadd.f32 %v12883_v41, %v3229_v40  ;;  %v9621_v41 = vld [vmem:[%s16300_s13 + $0x30] sm:$0xff]  }
 0x685   :  { %6326 = vperm.xlu1 %10721, %v5540_v50   ;;  %10430 = vmatpush3.msra.mxu0 %v3168_v15  ;;  %v9428_v50 = vunpack.c.h.bf16 %v9643_v20  ;;  %v9431_v15 = vunpack.c.l.bf16 %v9644_v57  ;;  %v9628_v57 = vld [vmem:[%s16300_s13 + $0x68] sm:$0xff]  }
 0x686   :  { %10431 = vmatprep.subr.mxu0 %v3167_v46  ;;  %10395 = vmatmul.mubr.msk.f32.gmra.mxu1 %vm3453_vm9, %v9424_v17  ;;  %v3250_v33 = vmax.f32 %v3241_v51, 0.0  ;;  %v9368_v54 = vunpack.c.h.bf16 %v9628_v57 }
 0x687   :  { %10432 = vmatpush3.msra.mxu0 %v3167_v46  ;;  %10397 = vmatprep.mubr.msk.f32.mxu1 %vm3453_vm9, %v9427_v19  ;;  %v13419_v19 = vld [vmem:[%s16300_s13 + $0x120] sm:$0xff]  }
 0x688   :  { %6341 = vperm.xlu0 %10720, %v5543_v2   ;;  %10433 = vmatprep.subr.mxu0 %v3166_v56  ;;  %v9340_v2 = vunpack.c.h.bf16 %v9621_v41 }
 0x689   :  { %6336 = vperm.xlu1 %10721, %v5542_v10   ;;  %10434 = vmatpush3.msra.mxu0 %v3166_v56  ;;  %v9343_v10 = vunpack.c.l.bf16 %v9622_v30  ;;  %v9623_v56 = vld [vmem:[%s16300_s13 + $0x40] sm:$0xff]  }
 0x68a   :  { %10435 = vmatprep.subr.mxu0 %v3165_v11  ;;  %v13313_v34 = vpop.permute.xlu0 %4250  ;;  %10398 = vmatmul.mubr.msk.f32.gmra.mxu1 %vm3453_vm9, %v9428_v50  ;;  %v9347_v1 = vunpack.c.l.bf16 %v9623_v56 }
 0x68b   :  { %10436 = vmatpush3.msra.mxu0 %v3165_v11  ;;  %10400 = vmatprep.mubr.msk.f32.mxu1 %vm3453_vm9, %v9431_v15  ;;  %v9647_v11 = vld [vmem:[%s16300_s13 + $0x100] sm:$0xff]  }
 0x68c   :  { %6351 = vperm.xlu0 %10720, %v5545_v49   ;;  %10437 = vmatprep.subr.mxu0 %v3164_v6  ;;  %v9624_v49 = vld [vmem:[%s16300_s13 + $0x48] sm:$0xff]  }
 0x68d   :  { %6346 = vperm.xlu1 %10721, %v5544_v59   ;;  %10438 = vmatpush3.msra.mxu0 %v3164_v6  ;;  %v9443_v59 = vunpack.c.l.bf16 %v9647_v11  ;;  %v9348_v6 = vunpack.c.h.bf16 %v9623_v56  ;;  %v9351_v23 = vunpack.c.l.bf16 %v9624_v49 }
 0x68e   :  { %10565 = vmatprep.subr.mxu0 %v4757_v35  ;;  %10440 = vmatmul.mubr.msk.f32.vlgmr.msra.gmra.mxu0 %vm3453_vm9, %v9316_v3  ;;  %v9648_v3 = vld [vmem:[%s16300_s13 + $0x108] sm:$0xff]  }
 0x68f   :  { %10566 = vmatpush3.msra.mxu0 %v4757_v35  ;;  %10442 = vmatprep.mubr.msk.f32.mxu0 %vm3453_vm9, %v9319_v16  ;;  %v9625_v35 = vld [vmem:[%s16300_s13 + $0x50] sm:$0xff]  }
 0x690   :  { %6361 = vperm.xlu0 %10720, %v5547_v32   ;;  %10567 = vmatprep.subr.mxu0 %v13042_v25  ;;  %v9444_v32 = vunpack.c.h.bf16 %v9647_v11 }
 0x691   :  { %6356 = vperm.xlu1 %10721, %v5546_v36   ;;  %10568 = vmatpush3.msra.mxu0 %v13042_v25  ;;  %v9619_v25 = vld [vmem:[%s16300_s13 + $0x20] sm:$0xff]   ;;  %v9447_v36 = vunpack.c.l.bf16 %v9648_v3 }
 0x692   :  { %10569 = vmatprep.subr.mxu0 %v4753_v22  ;;  %10443 = vmatmul.mubr.msk.f32.gmra.mxu0 %vm3453_vm9, %v9320_v18  ;;  %v13330_v58 = vpop.permute.xlu0 %4254  ;;  %v9352_v18 = vunpack.c.h.bf16 %v9624_v49 }
 0x693   :  { %10570 = vmatpush3.msra.mxu0 %v4753_v22  ;;  %10445 = vmatprep.mubr.msk.f32.mxu0 %vm3453_vm9, %v9323_v5  ;;  %v9344_v22 = vunpack.c.h.bf16 %v9622_v30  ;;  %v9649_v5 = vld [vmem:[%s16300_s13 + $0x110] sm:$0xff]  }
 0x694   :  { %6371 = vperm.xlu0 %10720, %v5549_v21   ;;  %10571 = vmatprep.subr.mxu0 %v13028_v43  ;;  %v9355_v21 = vunpack.c.l.bf16 %v9625_v35  ;;  %v9452_v20 = vunpack.c.h.bf16 %v9649_v5 }
 0x695   :  { %6366 = vperm.xlu1 %10721, %v5548_v44   ;;  %10572 = vmatpush3.msra.mxu0 %v13028_v43  ;;  %v9331_v43 = vunpack.c.l.bf16 %v9619_v25  ;;  %v9626_v44 = vld [vmem:[%s16300_s13 + $0x58] sm:$0xff]  }
 0x696   :  { %10573 = vmatprep.subr.mxu0 %v13229_v37  ;;  %10446 = vmatmul.mubr.msk.f32.gmra.mxu0 %vm3453_vm9, %v9324_v0  ;;  %v9448_v0 = vunpack.c.h.bf16 %v9648_v3  ;;  %v9359_v40 = vunpack.c.l.bf16 %v9626_v44 }
 0x697   :  { %10574 = vmatpush3.msra.mxu0 %v13229_v37  ;;  %10448 = vmatprep.mubr.msk.f32.mxu0 %vm3453_vm9, %v9327_v45  ;;  %v9332_v37 = vunpack.c.h.bf16 %v9619_v25  ;;  %v9451_v45 = vunpack.c.l.bf16 %v9649_v5  ;;  %v9356_v25 = vunpack.c.h.bf16 %v9625_v35 }
 0x698   :  { %7023 = vrot.lane.b32.xlu0 %v9248_v24, %s11419_s7  ;;  %10575 = vmatprep.subr.mxu0 %v13020_v29 }
 0x699   :  { %10576 = vmatpush3.msra.mxu0 %v13020_v29  ;;  %v9335_v29 = vunpack.c.l.bf16 %v9620_v12  ;;  %10401 = vmatmul.mubr.msk.f32.gmra.mxu1 %vm3453_vm9, %v9432_v14  ;;  %v9630_v14 = vld [vmem:[%s16300_s13 + $0x78] sm:$0xff]  }
 0x69a   :  { %10577 = vmatprep.subr.mxu0 %v13202_v4  ;;  %10449 = vmatmul.mubr.msk.f32.gmra.mxu0 %vm3453_vm9, %v9328_v47  ;;  %v9627_v47 = vld [vmem:[%s16300_s13 + $0x60] sm:$0xff]   ;;  %v9376_v56 = vunpack.c.h.bf16 %v9630_v14 }
 0x69b   :  { %10578 = vmatpush3.msra.mxu0 %v13202_v4  ;;  %10451 = vmatprep.mubr.msk.f32.mxu0 %vm3453_vm9, %v9331_v43  ;;  %v9336_v4 = vunpack.c.h.bf16 %v9620_v12  ;;  %v9360_v12 = vunpack.c.h.bf16 %v9626_v44  ;;  %v9364_v50 = vunpack.c.h.bf16 %v9627_v47 }
 0x69c   :  { %7678 = vrot.lane.b32.xlu0 %v9248_v24, %s11420_s17  ;;  %10579 = vmatprep.subr.mxu0 %v13006_v60  ;;  %v9650_v24 = vld [vmem:[%s16300_s13 + $0x118] sm:$0xff]  }
 0x69d   :  { %10580 = vmatpush3.msra.mxu0 %v13006_v60  ;;  %v9339_v60 = vunpack.c.l.bf16 %v9621_v41  ;;  %10403 = vmatprep.mubr.msk.f32.mxu1 %vm3453_vm9, %v9435_v62  ;;  %v9455_v43 = vunpack.c.l.bf16 %v9650_v24  ;;  %v9459_v41 = vunpack.c.l.bf16 %v13419_v19 }
 0x69e   :  { %10581 = vmatprep.subr.mxu0 %v13167_v38  ;;  %10452 = vmatmul.mubr.msk.f32.gmra.mxu0 %vm3453_vm9, %v9332_v37  ;;  %v9363_v37 = vunpack.c.l.bf16 %v9627_v47 }
 0x69f   :  { %v13345_v46 = vpop.permute.xlu0 %5874  ;;  %10582 = vmatpush3.msra.mxu0 %v13167_v38  ;;  %10454 = vmatprep.mubr.msk.f32.mxu0 %vm3453_vm9, %v9335_v29  ;;  %v9646_v38 = vld [vmem:[%s16300_s13 + $0xf8] sm:$0xff]   ;;  %v9456_v29 = vunpack.c.h.bf16 %v9650_v24 }
 0x6a0   :  { %16455 = vst [vmem:[#allocation10_spill] sm:$0xff] %v13345_v46  ;;  %4258 = vrot.lane.b32.xlu0 %v3250_v33, %s11416_s27  ;;  %v9439_v48 = vunpack.c.l.bf16 %v9646_v38  ;;  %10404 = vmatmul.mubr.msk.f32.gmra.mxu1 %vm3453_vm9, %v9436_v31  ;;  %v9440_v28 = vunpack.c.h.bf16 %v9646_v38  ;;  %v9367_v33 = vunpack.c.l.bf16 %v9628_v57  ;;  %v9375_v38 = vunpack.c.l.bf16 %v9630_v14 }
 0x6a2   :  { %10455 = vmatmul.mubr.msk.f32.gmra.mxu0 %vm3453_vm9, %v9336_v4  ;;  %10406 = vmatprep.mubr.msk.f32.mxu1 %vm3453_vm9, %v9439_v48  ;;  %v9629_v4 = vld [vmem:[%s16300_s13 + $0x70] sm:$0xff]  }
 0x6a3   :  { %v13359_v63 = vpop.permute.xlu0 %5884  ;;  %10457 = vmatprep.mubr.msk.f32.mxu0 %vm3453_vm9, %v9339_v60  ;;  %v9371_v30 = vunpack.c.l.bf16 %v9629_v4  ;;  %v9372_v62 = vunpack.c.h.bf16 %v9629_v4 }
 0x6a4   :  { %16456 = vst [vmem:[#allocation11_spill] sm:$0xff] %v13359_v63  ;;  %10407 = vmatmul.mubr.msk.f32.gmra.mxu1 %vm3453_vm9, %v9440_v28  ;;  %v9669_v28 = vld [vmem:[%s16300_s13 + $0x1b0] sm:$0xff]  }
 0x6a5   :  { %10409 = vmatprep.mubr.msk.f32.mxu1 %vm3453_vm9, %v9443_v59  ;;  %v9531_v3 = vunpack.c.l.bf16 %v9669_v28  ;;  %v9532_v35 = vunpack.c.h.bf16 %v9669_v28 }
 0x6a6   :  { %10458 = vmatmul.mubr.msk.f32.gmra.mxu0 %vm3453_vm9, %v9340_v2 }
 0x6a7   :  { %v13371_v42 = vpop.permute.xlu0 %5894  ;;  %10460 = vmatprep.mubr.msk.f32.mxu0 %vm3453_vm9, %v9343_v10  ;;  %v9631_v10 = vld [vmem:[%s16300_s13 + $0x80] sm:$0xff]  }
 0x6a8   :  { %16457 = vst [vmem:[#allocation12_spill] sm:$0xff] %v13371_v42  ;;  %10410 = vmatmul.mubr.msk.f32.gmra.mxu1 %vm3453_vm9, %v9444_v32  ;;  %v9379_v48 = vunpack.c.l.bf16 %v9631_v10  ;;  %v9380_v11 = vunpack.c.h.bf16 %v9631_v10 }
 0x6a9   :  { %10412 = vmatprep.mubr.msk.f32.mxu1 %vm3453_vm9, %v9447_v36 }
 0x6aa   :  { %10461 = vmatmul.mubr.msk.f32.gmra.mxu0 %vm3453_vm9, %v9344_v22  ;;  %v9632_v22 = vld [vmem:[%s16300_s13 + $0x88] sm:$0xff]  }
 0x6ab   :  { %v13383_v16 = vpop.permute.xlu0 %5904  ;;  %10463 = vmatprep.mubr.msk.f32.mxu0 %vm3453_vm9, %v9347_v1  ;;  %v9383_v49 = vunpack.c.l.bf16 %v9632_v22  ;;  %v9384_v59 = vunpack.c.h.bf16 %v9632_v22 }
 0x6ac   :  { %16458 = vst [vmem:[#allocation13_spill] sm:$0xff] %v13383_v16  ;;  %10413 = vmatmul.mubr.msk.f32.gmra.mxu1 %vm3453_vm9, %v9448_v0  ;;  %v9672_v0 = vld [vmem:[%s16300_s13 + $0x1c8] sm:$0xff]  }
 0x6ad   :  { %10415 = vmatprep.mubr.msk.f32.mxu1 %vm3453_vm9, %v9451_v45  ;;  %v9543_v24 = vunpack.c.l.bf16 %v9672_v0  ;;  %v9544_v47 = vunpack.c.h.bf16 %v9672_v0 }
 0x6ae   :  { %10464 = vmatmul.mubr.msk.f32.gmra.mxu0 %vm3453_vm9, %v9348_v6 }
 0x6af   :  { %v13395_v27 = vpop.permute.xlu0 %5914  ;;  %10466 = vmatprep.mubr.msk.f32.mxu0 %vm3453_vm9, %v9351_v23  ;;  %v9670_v23 = vld [vmem:[%s16300_s13 + $0x1b8] sm:$0xff]  }
 0x6b0   :  { %16459 = vst [vmem:[#allocation14_spill] sm:$0xff] %v13395_v27  ;;  %10416 = vmatmul.mubr.msk.f32.gmra.mxu1 %vm3453_vm9, %v9452_v20  ;;  %v9535_v36 = vunpack.c.l.bf16 %v9670_v23  ;;  %v9536_v5 = vunpack.c.h.bf16 %v9670_v23 }
 0x6b1   :  { %10418 = vmatprep.mubr.msk.f32.mxu1 %vm3453_vm9, %v9455_v43 }
 0x6b2   :  { %10467 = vmatmul.mubr.msk.f32.gmra.mxu0 %vm3453_vm9, %v9352_v18  ;;  %v9671_v18 = vld [vmem:[%s16300_s13 + $0x1c0] sm:$0xff]  }
 0x6b3   :  { %v13407_v17 = vpop.permute.xlu0 %5924  ;;  %10469 = vmatprep.mubr.msk.f32.mxu0 %vm3453_vm9, %v9355_v21  ;;  %v9539_v44 = vunpack.c.l.bf16 %v9671_v18  ;;  %v9540_v45 = vunpack.c.h.bf16 %v9671_v18 }
 0x6b4   :  { %16460 = vst [vmem:[#allocation15_spill] sm:$0xff] %v13407_v17  ;;  %10419 = vmatmul.mubr.msk.f32.gmra.mxu1 %vm3453_vm9, %v9456_v29 }
 0x6b5   :  { %10511 = vmatprep.mubr.msk.f32.mxu1 %vm3453_vm9, %v9459_v41  ;;  %v9675_v41 = vld [vmem:[%s16300_s13 + $0x1e0] sm:$0xff]  }
 0x6b6   :  { %10470 = vmatmul.mubr.msk.f32.gmra.mxu0 %vm3453_vm9, %v9356_v25  ;;  %v9555_v4 = vunpack.c.l.bf16 %v9675_v41 }
 0x6b7   :  { %v13421_v51 = vpop.permute.xlu0 %5934  ;;  %10472 = vmatprep.mubr.msk.f32.mxu0 %vm3453_vm9, %v9359_v40  ;;  %v9673_v40 = vld [vmem:[%s16300_s13 + $0x1d0] sm:$0xff]  }
 0x6b8   :  { %16461 = vst [vmem:[#allocation16_spill] sm:$0xff] %v13421_v51  ;;  %v9547_v43 = vunpack.c.l.bf16 %v9673_v40 }
 0x6ba   :  { %10473 = vmatmul.mubr.msk.f32.gmra.mxu0 %vm3453_vm9, %v9360_v12  ;;  %v9674_v12 = vld [vmem:[%s16300_s13 + $0x1d8] sm:$0xff]  }
 0x6bb   :  { %v13431_v15 = vpop.permute.xlu0 %5944  ;;  %10475 = vmatprep.mubr.msk.f32.mxu0 %vm3453_vm9, %v9363_v37  ;;  %v9548_v37 = vunpack.c.h.bf16 %v9673_v40  ;;  %v9551_v29 = vunpack.c.l.bf16 %v9674_v12  ;;  %v9681_v40 = vld [vmem:[%s16300_s13 + $0x210] sm:$0xff]  }
 0x6bc   :  { %16462 = vst [vmem:[#allocation17_spill] sm:$0xff] %v13431_v15 }
 0x6be   :  { %10476 = vmatmul.mubr.msk.f32.gmra.mxu0 %vm3453_vm9, %v9364_v50  ;;  %v9552_v50 = vunpack.c.h.bf16 %v9674_v12  ;;  %v9579_v12 = vunpack.c.l.bf16 %v9681_v40 }
 0x6bf   :  { %v13440_v60 = vpop.permute.xlu0 %5954  ;;  %10478 = vmatprep.mubr.msk.f32.mxu0 %vm3453_vm9, %v9367_v33 }
 0x6c0   :  { %16463 = vst [vmem:[#allocation18_spill] sm:$0xff] %v13440_v60 }
 0x6c2   :  { %10479 = vmatmul.mubr.msk.f32.gmra.mxu0 %vm3453_vm9, %v9368_v54  ;;  %v9676_v54 = vld [vmem:[%s16300_s13 + $0x1e8] sm:$0xff]  }
 0x6c3   :  { %v13447_v2 = vpop.permute.xlu0 %5964  ;;  %10481 = vmatprep.mubr.msk.f32.mxu0 %vm3453_vm9, %v9371_v30  ;;  %v9556_v30 = vunpack.c.h.bf16 %v9675_v41  ;;  %v9560_v10 = vunpack.c.h.bf16 %v9676_v54  ;;  %v9580_v41 = vunpack.c.h.bf16 %v9681_v40 }
 0x6c4   :  { %16464 = vst [vmem:[#allocation19_spill] sm:$0xff] %v13447_v2 }
 0x6c6   :  { %10482 = vmatmul.mubr.msk.f32.gmra.mxu0 %vm3453_vm9, %v9372_v62  ;;  %v9559_v62 = vunpack.c.l.bf16 %v9676_v54  ;;  %v9683_v54 = vld [vmem:[%s16300_s13 + $0x220] sm:$0xff]  }
 0x6c7   :  { %v13454_v31 = vpop.permute.xlu0 %5974  ;;  %10484 = vmatprep.mubr.msk.f32.mxu0 %vm3453_vm9, %v9375_v38  ;;  %v9677_v38 = vld [vmem:[%s16300_s13 + $0x1f0] sm:$0xff]  }
 0x6c8   :  { %16465 = vst [vmem:[#allocation20_spill] sm:$0xff] %v13454_v31  ;;  %v9563_v22 = vunpack.c.l.bf16 %v9677_v38 }
 0x6ca   :  { %10485 = vmatmul.mubr.msk.f32.gmra.mxu0 %vm3453_vm9, %v9376_v56  ;;  %v13524_v56 = vpop.permute.xlu1 %5809 }
 0x6cb   :  { %v13461_v1 = vpop.permute.xlu0 %6201  ;;  %10487 = vmatprep.mubr.msk.f32.mxu0 %vm3453_vm9, %v9379_v48  ;;  %16475 = vst [vmem:[#allocation30_spill] sm:$0xff] %v13524_v56 }
 0x6cc   :  { %16466 = vst [vmem:[#allocation21_spill] sm:$0xff] %v13461_v1 }
 0x6ce   :  { %10488 = vmatmul.mubr.msk.f32.gmra.mxu0 %vm3453_vm9, %v9380_v11  ;;  %v9678_v11 = vld [vmem:[%s16300_s13 + $0x1f8] sm:$0xff]   ;;  %v13539_v23 = vpop.permute.xlu1 %5819 }
 0x6cf   :  { %v13468_v6 = vpop.permute.xlu0 %6211  ;;  %10490 = vmatprep.mubr.msk.f32.mxu0 %vm3453_vm9, %v9383_v49  ;;  %v9564_v49 = vunpack.c.h.bf16 %v9677_v38  ;;  %16478 = vst [vmem:[#allocation33_spill] sm:$0xff] %v13539_v23 }
 0x6d0   :  { %16467 = vst [vmem:[#allocation22_spill] sm:$0xff] %v13468_v6 }
 0x6d2   :  { %10491 = vmatmul.mubr.msk.f32.gmra.mxu0 %vm3453_vm9, %v9384_v59  ;;  %v9567_v59 = vunpack.c.l.bf16 %v9678_v11  ;;  %v13549_v0 = vpop.permute.xlu1 %5829 }
 0x6d3   :  { %v13475_v32 = vpop.permute.xlu0 %6221  ;;  %10583 = vmatprep.mubr.msk.f32.mxu0 %vm3453_vm9, %v9531_v3  ;;  %v9679_v3 = vld [vmem:[%s16300_s13 + $0x200] sm:$0xff]   ;;  %16480 = vst [vmem:[#allocation35_spill] sm:$0xff] %v13549_v0 }
 0x6d4   :  { %16468 = vst [vmem:[#allocation23_spill] sm:$0xff] %v13475_v32  ;;  %v9571_v18 = vunpack.c.l.bf16 %v9679_v3 }
 0x6d6   :  { %10584 = vmatmul.mubr.msk.f32.vlgmr.msra.gmra.mxu0 %vm3453_vm9, %v9532_v35  ;;  %v9568_v35 = vunpack.c.h.bf16 %v9678_v11  ;;  %v9588_v11 = vunpack.c.h.bf16 %v9683_v54 }
 0x6d7   :  { %v13482_v21 = vpop.permute.xlu0 %6231  ;;  %10586 = vmatprep.mubr.msk.f32.mxu0 %vm3453_vm9, %v9535_v36 }
 0x6d8   :  { %16469 = vst [vmem:[#allocation24_spill] sm:$0xff] %v13482_v21 }
 0x6da   :  { %10587 = vmatmul.mubr.msk.f32.gmra.mxu0 %vm3453_vm9, %v9536_v5  ;;  %v9680_v5 = vld [vmem:[%s16300_s13 + $0x208] sm:$0xff]  }
 0x6db   :  { %v13489_v25 = vpop.permute.xlu0 %6241  ;;  %10589 = vmatprep.mubr.msk.f32.mxu0 %vm3453_vm9, %v9539_v44  ;;  %v9572_v44 = vunpack.c.h.bf16 %v9679_v3  ;;  %v9685_v3 = vld [vmem:[%s16300_s13 + $0x230] sm:$0xff]  }
 0x6dc   :  { %16470 = vst [vmem:[#allocation25_spill] sm:$0xff] %v13489_v25 }
 0x6de   :  { %10590 = vmatmul.mubr.msk.f32.gmra.mxu0 %vm3453_vm9, %v9540_v45 }
 0x6df   :  { %v13496_v20 = vpop.permute.xlu0 %6251  ;;  %10592 = vmatprep.mubr.msk.f32.mxu0 %vm3453_vm9, %v9543_v24  ;;  %v9575_v24 = vunpack.c.l.bf16 %v9680_v5 }
 0x6e0   :  { %16471 = vst [vmem:[#allocation26_spill] sm:$0xff] %v13496_v20 }
 0x6e2   :  { %10593 = vmatmul.mubr.msk.f32.gmra.mxu0 %vm3453_vm9, %v9544_v47  ;;  %v9576_v47 = vunpack.c.h.bf16 %v9680_v5 }
 0x6e3   :  { %v13503_v57 = vpop.permute.xlu0 %6261  ;;  %10595 = vmatprep.mubr.msk.f32.mxu0 %vm3453_vm9, %v9547_v43 }
 0x6e4   :  { %16472 = vst [vmem:[#allocation27_spill] sm:$0xff] %v13503_v57 }
 0x6e6   :  { %10596 = vmatmul.mubr.msk.f32.gmra.mxu0 %vm3453_vm9, %v9548_v37  ;;  %v9682_v37 = vld [vmem:[%s16300_s13 + $0x218] sm:$0xff]  }
 0x6e7   :  { %v13510_v33 = vpop.permute.xlu0 %6271  ;;  %10598 = vmatprep.mubr.msk.f32.mxu0 %vm3453_vm9, %v9551_v29  ;;  %v13564_v29 = vpop.permute.xlu1 %5839 }
 0x6e8   :  { %16473 = vst [vmem:[#allocation28_spill] sm:$0xff] %v13510_v33  ;;  %16483 = vst [vmem:[#allocation38_spill] sm:$0xff] %v13564_v29 }
 0x6ea   :  { %10599 = vmatmul.mubr.msk.f32.gmra.mxu0 %vm3453_vm9, %v9552_v50 }
 0x6eb   :  { %v13517_v14 = vpop.permute.xlu0 %6281  ;;  %10601 = vmatprep.mubr.msk.f32.mxu0 %vm3453_vm9, %v9555_v4  ;;  %v9583_v4 = vunpack.c.l.bf16 %v9682_v37 }
 0x6ec   :  { %16474 = vst [vmem:[#allocation29_spill] sm:$0xff] %v13517_v14 }
 0x6ee   :  { %10602 = vmatmul.mubr.msk.f32.gmra.mxu0 %vm3453_vm9, %v9556_v30  ;;  %v9584_v30 = vunpack.c.h.bf16 %v9682_v37 }
 0x6ef   :  { %v13526_v48 = vpop.permute.xlu0 %6291  ;;  %10604 = vmatprep.mubr.msk.f32.mxu0 %vm3453_vm9, %v9559_v62  ;;  %v13574_v62 = vpop.permute.xlu1 %5849 }
 0x6f0   :  { %16476 = vst [vmem:[#allocation31_spill] sm:$0xff] %v13526_v48  ;;  %16485 = vst [vmem:[#allocation40_spill] sm:$0xff] %v13574_v62 }
 0x6f2   :  { %10605 = vmatmul.mubr.msk.f32.gmra.mxu0 %vm3453_vm9, %v9560_v10  ;;  %v9587_v10 = vunpack.c.l.bf16 %v9683_v54 }
 0x6f3   :  { %v13533_v28 = vpop.permute.xlu0 %6301  ;;  %10607 = vmatprep.mubr.msk.f32.mxu0 %vm3453_vm9, %v9563_v22  ;;  %v9684_v22 = vld [vmem:[%s16300_s13 + $0x228] sm:$0xff]  }
 0x6f4   :  { %16477 = vst [vmem:[#allocation32_spill] sm:$0xff] %v13533_v28 }
 0x6f6   :  { %10608 = vmatmul.mubr.msk.f32.gmra.mxu0 %vm3453_vm9, %v9564_v49 }
 0x6f7   :  { %v13542_v36 = vpop.permute.xlu0 %6311  ;;  %10610 = vmatprep.mubr.msk.f32.mxu0 %vm3453_vm9, %v9567_v59  ;;  %v9591_v59 = vunpack.c.l.bf16 %v9684_v22 }
 0x6f8   :  { %16479 = vst [vmem:[#allocation34_spill] sm:$0xff] %v13542_v36 }
 0x6fa   :  { %10611 = vmatmul.mubr.msk.f32.gmra.mxu0 %vm3453_vm9, %v9568_v35  ;;  %v13589_v35 = vpop.permute.xlu1 %5859 }
 0x6fb   :  { %v13551_v45 = vpop.permute.xlu0 %6321  ;;  %10613 = vmatprep.mubr.msk.f32.mxu0 %vm3453_vm9, %v9571_v18  ;;  %16488 = vst [vmem:[#allocation43_spill] sm:$0xff] %v13589_v35  ;;  %v9592_v18 = vunpack.c.h.bf16 %v9684_v22 }
 0x6fc   :  { %16481 = vst [vmem:[#allocation36_spill] sm:$0xff] %v13551_v45 }
 0x6fe   :  { %10614 = vmatmul.mubr.msk.f32.gmra.mxu0 %vm3453_vm9, %v9572_v44  ;;  %v9595_v44 = vunpack.c.l.bf16 %v9685_v3  ;;  %v4245_v40 = vpop.permute.xlu1 %4244 }
 0x6ff   :  { %v13558_v43 = vpop.permute.xlu0 %6331  ;;  %10616 = vmatprep.mubr.msk.f32.mxu0 %vm3453_vm9, %v9575_v24  ;;  %v9686_v24 = vld [vmem:[%s16300_s13 + $0x238] sm:$0xff]  }
 0x700   :  { %16482 = vst [vmem:[#allocation37_spill] sm:$0xff] %v13558_v43  ;;  %v9599_v37 = vunpack.c.l.bf16 %v9686_v24 }
 0x702   :  { %10617 = vmatmul.mubr.msk.f32.gmra.mxu0 %vm3453_vm9, %v9576_v47  ;;  %v9596_v47 = vunpack.c.h.bf16 %v9685_v3 }
 0x703   :  { %v13567_v50 = vpop.permute.xlu0 %6341  ;;  %10619 = vmatprep.mubr.msk.f32.mxu0 %vm3453_vm9, %v9579_v12 }
 0x704   :  { %16484 = vst [vmem:[#allocation39_spill] sm:$0xff] %v13567_v50 }
 0x706   :  { %10620 = vmatmul.mubr.msk.f32.gmra.mxu0 %vm3453_vm9, %v9580_v41  ;;  %v4249_v41 = vpop.permute.xlu1 %4248 }
 0x707   :  { %v13576_v38 = vpop.permute.xlu0 %6351  ;;  %10622 = vmatprep.mubr.msk.f32.mxu0 %vm3453_vm9, %v9583_v4  ;;  %v9600_v4 = vunpack.c.h.bf16 %v9686_v24 }
 0x708   :  { %16486 = vst [vmem:[#allocation41_spill] sm:$0xff] %v13576_v38 }
 0x70a   :  { %10623 = vmatmul.mubr.msk.f32.gmra.mxu0 %vm3453_vm9, %v9584_v30  ;;  %v4253_v30 = vpop.permute.xlu1 %4252 }
 0x70b   :  { %v13583_v49 = vpop.permute.xlu0 %6361  ;;  %10625 = vmatprep.mubr.msk.f32.mxu0 %vm3453_vm9, %v9587_v10 }
 0x70c   :  { %16487 = vst [vmem:[#allocation42_spill] sm:$0xff] %v13583_v49 }
 0x70e   :  { %10626 = vmatmul.mubr.msk.f32.gmra.mxu0 %vm3453_vm9, %v9588_v11  ;;  %v4257_v22 = vpop.permute.xlu1 %4256  ;;  %v9652_v11 = vld [vmem:[%s16300_s13 + $0x128] sm:$0xff]  }
 0x70f   :  { %v13592_v5 = vpop.permute.xlu0 %6371  ;;  %10628 = vmatprep.mubr.msk.f32.mxu0 %vm3453_vm9, %v9591_v59  ;;  %v13615_v59 = vpop.f32.mrf.mxu1 }
 0x710   :  { %16489 = vst [vmem:[#allocation44_spill] sm:$0xff] %v13592_v5 }
 0x711   :  { %v13619_v3 = vpop.f32.mrf.mxu1 }
 0x712   :  { %10629 = vmatmul.mubr.msk.f32.gmra.mxu0 %vm3453_vm9, %v9592_v18  ;;  %v9463_v18 = vunpack.c.l.bf16 %v9652_v11 }
 0x713   :  { %v13599_v12 = vpop.permute.xlu0 %7023  ;;  %10631 = vmatprep.mubr.msk.f32.mxu0 %vm3453_vm9, %v9595_v44  ;;  %v9653_v44 = vld [vmem:[%s16300_s13 + $0x130] sm:$0xff]  }
 0x714   :  { %16490 = vst [vmem:[#allocation45_spill] sm:$0xff] %v13599_v12 }
 0x716   :  { %10632 = vmatmul.mubr.msk.f32.gmra.mxu0 %vm3453_vm9, %v9596_v47  ;;  %v13628_v24 = vpop.f32.mrf.mxu1  ;;  %v9654_v47 = vld [vmem:[%s16300_s13 + $0x138] sm:$0xff]  }
 0x717   :  { %v13603_v54 = vpop.permute.xlu0 %7678  ;;  %10634 = vmatprep.mubr.msk.f32.mxu0 %vm3453_vm9, %v9599_v37 }
 0x718   :  { %16491 = vst [vmem:[#allocation46_spill] sm:$0xff] %v13603_v54 }
 0x71a   :  { %10635 = vmatmul.mubr.msk.f32.gmra.mxu0 %vm3453_vm9, %v9600_v4  ;;  %v9471_v4 = vunpack.c.l.bf16 %v9654_v47 }
 0x71b   :  { %v4259_v10 = vpop.permute.xlu0 %4258 }
 0x71c   :  { %10493 = vmatprep.subr.mxu1 %v4259_v10 }
 0x71d   :  { %10494 = vmatpush3.msra.mxu1 %v4259_v10 }
 0x71e   :  { %10495 = vmatprep.subr.mxu1 %v4257_v22 }
 0x71f   :  { %10496 = vmatpush3.msra.mxu1 %v4257_v22  ;;  %v9472_v22 = vunpack.c.h.bf16 %v9654_v47  ;;  %v9657_v47 = vld [vmem:[%s16300_s13 + $0x150] sm:$0xff]  }
 0x720   :  { %10497 = vmatprep.subr.mxu1 %v13330_v58  ;;  %v9483_v26 = vunpack.c.l.bf16 %v9657_v47 }
 0x721   :  { %10498 = vmatpush3.msra.mxu1 %v13330_v58  ;;  %v9460_v58 = vunpack.c.h.bf16 %v13419_v19  ;;  %v13632_v19 = vpop.f32.mrf.mxu1 }
 0x722   :  { %10499 = vmatprep.subr.mxu1 %v4253_v30 }
 0x723   :  { %10500 = vmatpush3.msra.mxu1 %v4253_v30  ;;  %v13638_v37 = vpop.f32.mrf.mxu1  ;;  %v9655_v30 = vld [vmem:[%s16300_s13 + $0x140] sm:$0xff]  }
 0x724   :  { %10501 = vmatprep.subr.mxu1 %v13313_v34 }
 0x725   :  { %10502 = vmatpush3.msra.mxu1 %v13313_v34  ;;  %v5159_v34 = vld [vmem:[%s16303_s14 + $0x18] sm:$0xff] }
 0x726   :  { %10503 = vmatprep.subr.mxu1 %v4249_v41 }
 0x727   :  { %10504 = vmatpush3.msra.mxu1 %v4249_v41  ;;  %v9468_v41 = vunpack.c.h.bf16 %v9653_v44 }
 0x728   :  { %10505 = vmatprep.subr.mxu1 %v13297_v8 }
 0x729   :  { %10506 = vmatpush3.msra.mxu1 %v13297_v8  ;;  %v9464_v8 = vunpack.c.h.bf16 %v9652_v11 }
 0x72a   :  { %10507 = vmatprep.subr.mxu1 %v4245_v40 }
 0x72b   :  { %10508 = vmatpush3.msra.mxu1 %v4245_v40  ;;  %v9467_v40 = vunpack.c.l.bf16 %v9653_v44  ;;  %v9476_v44 = vunpack.c.h.bf16 %v9655_v30 }
 0x72c   :  { %10509 = vmatprep.subr.mxu1 %v13282_v52 }
 0x72d   :  { %10510 = vmatpush3.msra.mxu1 %v13282_v52  ;;  %v13641_v52 = vpop.f32.mrf.mxu1 }
 0x72e   :  { %10512 = vmatmul.mubr.msk.f32.vlgmr.msra.gmra.mxu1 %vm3453_vm9, %v9460_v58  ;;  %10637 = vmatprep.subr.mxu1 %v5159_v34  ;;  %v9475_v58 = vunpack.c.l.bf16 %v9655_v30  ;;  %v9658_v30 = vld [vmem:[%s16300_s13 + $0x158] sm:$0xff]  }
 0x72f   :  { %10514 = vmatprep.mubr.msk.f32.mxu1 %vm3453_vm9, %v9463_v18  ;;  %10638 = vmatpush3.msra.mxu1 %v5159_v34  ;;  %v13647_v10 = vpop.f32.mrf.mxu1  ;;  %v9656_v18 = vld [vmem:[%s16300_s13 + $0x148] sm:$0xff]   ;;  %v9488_v5 = vunpack.c.h.bf16 %v9658_v30 }
 0x731   :  { %v13650_v11 = vpop.f32.mrf.mxu1 }
 0x732   :  { %10515 = vmatmul.mubr.msk.f32.gmra.mxu1 %vm3453_vm9, %v9464_v8 }
 0x733   :  { %10517 = vmatprep.mubr.msk.f32.mxu1 %vm3453_vm9, %v9467_v40  ;;  %v13656_v34 = vpop.f32.mrf.mxu1  ;;  %v9479_v40 = vunpack.c.l.bf16 %v9656_v18 }
 0x735   :  { %v13659_v8 = vpop.f32.mrf.mxu1 }
 0x736   :  { %10518 = vmatmul.mubr.msk.f32.gmra.mxu1 %vm3453_vm9, %v9468_v41  ;;  %v9480_v41 = vunpack.c.h.bf16 %v9656_v18  ;;  %v9659_v18 = vld [vmem:[%s16300_s13 + $0x160] sm:$0xff]  }
 0x737   :  { %10520 = vmatprep.mubr.msk.f32.mxu1 %vm3453_vm9, %v9471_v4  ;;  %v13666_v4 = vpop.f32.mrf.mxu1  ;;  %v9491_v2 = vunpack.c.l.bf16 %v9659_v18 }
 0x73a   :  { %10521 = vmatmul.mubr.msk.f32.gmra.mxu1 %vm3453_vm9, %v9472_v22  ;;  %v13672_v22 = vpop.f32.mrf.mxu1 }
 0x73b   :  { %10523 = vmatprep.mubr.msk.f32.mxu1 %vm3453_vm9, %v9475_v58  ;;  %v9484_v58 = vunpack.c.h.bf16 %v9657_v47  ;;  %v9660_v47 = vld [vmem:[%s16300_s13 + $0x168] sm:$0xff]  }
 0x73c   :  { %v13675_v31 = vpop.f32.mrf.mxu1  ;;  %v9495_v49 = vunpack.c.l.bf16 %v9660_v47 }
 0x73e   :  { %10524 = vmatmul.mubr.msk.f32.gmra.mxu1 %vm3453_vm9, %v9476_v44  ;;  %v9487_v44 = vunpack.c.l.bf16 %v9658_v30 }
 0x73f   :  { %10526 = vmatprep.mubr.msk.f32.mxu1 %vm3453_vm9, %v9479_v40  ;;  %v13681_v40 = vpop.f32.mrf.mxu1 }
 0x742   :  { %10527 = vmatmul.mubr.msk.f32.gmra.mxu1 %vm3453_vm9, %v9480_v41  ;;  %v13688_v41 = vpop.f32.mrf.mxu1 }
 0x743   :  { %10529 = vmatprep.mubr.msk.f32.mxu1 %vm3453_vm9, %v9483_v26  ;;  %v9492_v26 = vunpack.c.h.bf16 %v9659_v18 }
 0x744   :  { %v13695_v30 = vpop.f32.mrf.mxu1 }
 0x746   :  { %10530 = vmatmul.mubr.msk.f32.gmra.mxu1 %vm3453_vm9, %v9484_v58  ;;  %v9661_v58 = vld [vmem:[%s16300_s13 + $0x170] sm:$0xff]   ;;  %v13708_v43 = vpop.f32.mrf.mxu1 }
 0x747   :  { %10532 = vmatprep.mubr.msk.f32.mxu1 %vm3453_vm9, %v9487_v44  ;;  %v9496_v44 = vunpack.c.h.bf16 %v9660_v47  ;;  %v9499_v60 = vunpack.c.l.bf16 %v9661_v58  ;;  %v9500_v47 = vunpack.c.h.bf16 %v9661_v58 }
 0x74a   :  { %10533 = vmatmul.mubr.msk.f32.gmra.mxu1 %vm3453_vm9, %v9488_v5 }
 0x74b   :  { %10535 = vmatprep.mubr.msk.f32.mxu1 %vm3453_vm9, %v9491_v2  ;;  %v9662_v2 = vld [vmem:[%s16300_s13 + $0x178] sm:$0xff]  }
 0x74c   :  { %v9504_v58 = vunpack.c.h.bf16 %v9662_v2 }
 0x74e   :  { %10536 = vmatmul.mubr.msk.f32.gmra.mxu1 %vm3453_vm9, %v9492_v26  ;;  %v10441_v38 = vpop.f32.mrf.mxu0 }
 0x74f   :  { %10538 = vmatprep.mubr.msk.f32.mxu1 %vm3453_vm9, %v9495_v49  ;;  %v13700_v50 = vadd.f32 %v10441_v38, %v13615_v59  ;;  %v9503_v49 = vunpack.c.l.bf16 %v9662_v2  ;;  %v9663_v59 = vld [vmem:[%s16300_s13 + $0x180] sm:$0xff]  }
 0x750   :  { %v3981_v5 = vpop.f32.mrf.mxu0  ;;  %v9508_v2 = vunpack.c.h.bf16 %v9663_v59 }
 0x751   :  { %v13706_v18 = vadd.f32 %v3981_v5, %v13619_v3  ;;  %v13721_v5 = vpop.f32.mrf.mxu1 }
 0x752   :  { %10539 = vmatmul.mubr.msk.f32.gmra.mxu1 %vm3453_vm9, %v9496_v44  ;;  %v10444_v26 = vpop.f32.mrf.mxu0 }
 0x753   :  { %10541 = vmatprep.mubr.msk.f32.mxu1 %vm3453_vm9, %v9499_v60  ;;  %v13713_v38 = vadd.f32 %v10444_v26, %v13628_v24  ;;  %v9507_v60 = vunpack.c.l.bf16 %v9663_v59  ;;  %v9664_v26 = vld [vmem:[%s16300_s13 + $0x188] sm:$0xff]  }
 0x754   :  { %v3991_v15 = vpop.f32.mrf.mxu0 }
 0x755   :  { %v13719_v3 = vadd.f32 %v3991_v15, %v13632_v19  ;;  %v13734_v19 = vpop.f32.mrf.mxu1 }
 0x756   :  { %10542 = vmatmul.mubr.msk.f32.gmra.mxu1 %vm3453_vm9, %v9500_v47  ;;  %v10447_v44 = vpop.f32.mrf.mxu0 }
 0x757   :  { %10544 = vmatprep.mubr.msk.f32.mxu1 %vm3453_vm9, %v9503_v49  ;;  %v13726_v24 = vadd.f32 %v10447_v44, %v13638_v37  ;;  %v9511_v49 = vunpack.c.l.bf16 %v9664_v26  ;;  %v9665_v44 = vld [vmem:[%s16300_s13 + $0x190] sm:$0xff]   ;;  %v3718_v51 = vpop.f32.mrf.mxu1 }
 0x758   :  { %v4001_v45 = vpop.f32.mrf.mxu0 }
 0x759   :  { %v13732_v15 = vadd.f32 %v4001_v45, %v13641_v52  ;;  %v9512_v52 = vunpack.c.h.bf16 %v9664_v26  ;;  %v10399_v28 = vpop.f32.mrf.mxu1 }
 0x75a   :  { %10545 = vmatmul.mubr.msk.f32.gmra.mxu1 %vm3453_vm9, %v9504_v58  ;;  %v10450_v47 = vpop.f32.mrf.mxu0  ;;  %v9515_v58 = vunpack.c.l.bf16 %v9665_v44 }
 0x75b   :  { %10547 = vmatprep.mubr.msk.f32.mxu1 %vm3453_vm9, %v9507_v60  ;;  %v13739_v37 = vadd.f32 %v10450_v47, %v13647_v10  ;;  %v9666_v10 = vld [vmem:[%s16300_s13 + $0x198] sm:$0xff]   ;;  %v3728_v26 = vpop.f32.mrf.mxu1 }
 0x75c   :  { %v4011_v36 = vpop.f32.mrf.mxu0 }
 0x75d   :  { %v13745_v45 = vadd.f32 %v4011_v36, %v13650_v11  ;;  %v9516_v36 = vunpack.c.h.bf16 %v9665_v44  ;;  %v10402_v14 = vpop.f32.mrf.mxu1  ;;  %v9520_v44 = vunpack.c.h.bf16 %v9666_v10 }
 0x75e   :  { %10548 = vmatmul.mubr.msk.f32.gmra.mxu1 %vm3453_vm9, %v9508_v2  ;;  %v10453_v59 = vpop.f32.mrf.mxu0  ;;  %v9519_v2 = vunpack.c.l.bf16 %v9666_v10 }
 0x75f   :  { %10550 = vmatprep.mubr.msk.f32.mxu1 %vm3453_vm9, %v9511_v49  ;;  %v13750_v60 = vadd.f32 %v10453_v59, %v13656_v34  ;;  %v9667_v49 = vld [vmem:[%s16300_s13 + $0x1a0] sm:$0xff]  }
 0x760   :  { %v4021_v47 = vpop.f32.mrf.mxu0 }
 0x761   :  { %v13756_v48 = vadd.f32 %v4021_v47, %v13659_v8  ;;  %v3738_v47 = vpop.f32.mrf.mxu1 }
 0x762   :  { %10551 = vmatmul.mubr.msk.f32.gmra.mxu1 %vm3453_vm9, %v9512_v52  ;;  %v10456_v11 = vpop.f32.mrf.mxu0 }
 0x763   :  { %10553 = vmatprep.mubr.msk.f32.mxu1 %vm3453_vm9, %v9515_v58  ;;  %v13761_v34 = vadd.f32 %v10456_v11, %v13666_v4  ;;  %v9523_v58 = vunpack.c.l.bf16 %v9667_v49  ;;  %v9668_v11 = vld [vmem:[%s16300_s13 + $0x1a8] sm:$0xff]  }
 0x764   :  { %v4031_v59 = vpop.f32.mrf.mxu0  ;;  %v9528_v27 = vunpack.c.h.bf16 %v9668_v11 }
 0x765   :  { %v13767_v8 = vadd.f32 %v4031_v59, %v13672_v22  ;;  %v9524_v22 = vunpack.c.h.bf16 %v9667_v49 }
 0x766   :  { %10554 = vmatmul.mubr.msk.f32.gmra.mxu1 %vm3453_vm9, %v9516_v36  ;;  %v10459_v52 = vpop.f32.mrf.mxu0  ;;  %v10405_v36 = vpop.f32.mrf.mxu1 }
 0x767   :  { %10556 = vmatprep.mubr.msk.f32.mxu1 %vm3453_vm9, %v9519_v2  ;;  %v13772_v4 = vadd.f32 %v10459_v52, %v13675_v31  ;;  %v9527_v2 = vunpack.c.l.bf16 %v9668_v11 }
 0x768   :  { %v4041_v17 = vpop.f32.mrf.mxu0 }
 0x769   :  { %v13778_v33 = vadd.f32 %v4041_v17, %v13681_v40  ;;  %v3748_v40 = vpop.f32.mrf.mxu1 }
 0x76a   :  { %10557 = vmatmul.mubr.msk.f32.gmra.mxu1 %vm3453_vm9, %v9520_v44  ;;  %v10462_v10 = vpop.f32.mrf.mxu0 }
 0x76b   :  { %10559 = vmatprep.mubr.msk.f32.mxu1 %vm3453_vm9, %v9523_v58  ;;  %v13783_v59 = vadd.f32 %v10462_v10, %v13688_v41  ;;  %v5158_v41 = vld [vmem:[%s16303_s14 + $0x10] sm:$0xff] }
 0x76c   :  { %v4051_v31 = vpop.f32.mrf.mxu0  ;;  %10639 = vmatprep.subr.mxu1 %v5158_v41 }
 0x76d   :  { %v13786_v52 = vadd.f32 %v4051_v31, %v13695_v30  ;;  %10640 = vmatpush3.msra.mxu1 %v5158_v41 }
 0x76e   :  { %10560 = vmatmul.mubr.msk.f32.gmra.mxu1 %vm3453_vm9, %v9524_v22  ;;  %v10465_v17 = vpop.f32.mrf.mxu0  ;;  %v10408_v22 = vpop.f32.mrf.mxu1 }
 0x76f   :  { %10562 = vmatprep.mubr.msk.f32.mxu1 %vm3453_vm9, %v9527_v2  ;;  %v13791_v49 = vadd.f32 %v10465_v17, %v13708_v43  ;;  %v5157_v43 = vld [vmem:[%s16303_s14 + $0x8] sm:$0xff] }
 0x770   :  { %v4061_v44 = vpop.f32.mrf.mxu0  ;;  %10641 = vmatprep.subr.mxu1 %v5157_v43  ;;  %v3758_v31 = vpop.f32.mrf.mxu1 }
 0x771   :  { %v13794_v58 = vadd.f32 %v4061_v44, %v13721_v5  ;;  %10642 = vmatpush3.msra.mxu1 %v5157_v43 }
 0x772   :  { %10563 = vmatmul.mubr.msk.f32.gmra.mxu1 %vm3453_vm9, %v9528_v27  ;;  %v10468_v30 = vpop.f32.mrf.mxu0  ;;  %v5156_v27 = vld [vmem:[%s16303_s14] sm:$0xff]  ;;  %s11421_s14 = smov 2  }
 0x773   :  { %v13801_v11 = vadd.f32 %v10468_v30, %v13734_v19  ;;  %10643 = vmatprep.subr.mxu1 %v5156_v27  ;;  %v10411_v30 = vpop.f32.mrf.mxu1 }
 0x774   :  { %v4071_v10 = vpop.f32.mrf.mxu0  ;;  %10644 = vmatpush3.msra.mxu1 %v5156_v27 }
 0x775   :  { %v13806_v5 = vadd.f32 %v4071_v10, %v3718_v51  ;;  %v3768_v16 = vpop.f32.mrf.mxu1 }
 0x776   :  { %v10471_v2 = vpop.f32.mrf.mxu0 }
 0x777   :  { %v13811_v17 = vadd.f32 %v10471_v2, %v10399_v28  ;;  %v10414_v2 = vpop.f32.mrf.mxu1 }
 0x778   :  { %v4081_v19 = vpop.f32.mrf.mxu0 }
 0x779   :  { %v13813_v44 = vadd.f32 %v4081_v19, %v3728_v26 }
 0x77a   :  { %v10474_v41 = vpop.f32.mrf.mxu0 }
 0x77b   :  { %v13815_v57 = vadd.f32 %v10474_v41, %v10402_v14  ;;  %v3778_v14 = vpop.f32.mrf.mxu1 }
 0x77c   :  { %v4091_v51 = vpop.f32.mrf.mxu0 }
 0x77d   :  { %v13817_v10 = vadd.f32 %v4091_v51, %v3738_v47 }
 0x77e   :  { %v10477_v43 = vpop.f32.mrf.mxu0 }
 0x77f   :  { %v13819_v20 = vadd.f32 %v10477_v43, %v10405_v36  ;;  %v10417_v36 = vpop.f32.mrf.mxu1 }
 0x780   :  { %v4101_v25 = vpop.f32.mrf.mxu0 }
 0x781   :  { %v13821_v42 = vadd.f32 %v4101_v25, %v3748_v40  ;;  %v3788_v46 = vpop.f32.mrf.mxu1 }
 0x782   :  { %v10480_v28 = vpop.f32.mrf.mxu0 }
 0x783   :  { %v13823_v27 = vadd.f32 %v10480_v28, %v10408_v22  ;;  %v10420_v32 = vpop.f32.mrf.mxu1 }
 0x784   :  { %v4111_v26 = vpop.f32.mrf.mxu0 }
 0x785   :  { %v13825_v19 = vadd.f32 %v4111_v26, %v3758_v31  ;;  %v13853_v1 = vpop.f32.mrf.mxu1 }
 0x786   :  { %v10483_v63 = vpop.f32.mrf.mxu0  ;;  %16496 = vst [vmem:[#allocation51_spill] sm:$0xff] %v13853_v1 }
 0x787   :  { %v13827_v41 = vadd.f32 %v10483_v63, %v10411_v30 }
 0x788   :  { %v4121_v47 = vpop.f32.mrf.mxu0 }
 0x789   :  { %v13829_v51 = vadd.f32 %v4121_v47, %v3768_v16 }
 0x78a   :  { %v10486_v21 = vpop.f32.mrf.mxu0 }
 0x78b   :  { %v13831_v43 = vadd.f32 %v10486_v21, %v10414_v2 }
 0x78c   :  { %v4131_v25 = vpop.f32.mrf.mxu0 }
 0x78d   :  { %v13833_v40 = vadd.f32 %v4131_v25, %v3778_v14 }
 0x78e   :  { %v10489_v22 = vpop.f32.mrf.mxu0 }
 0x78f   :  { %v13835_v28 = vadd.f32 %v10489_v22, %v10417_v36 }
 0x790   :  { %v4141_v31 = vpop.f32.mrf.mxu0 }
 0x791   :  { %16492 = vst [vmem:[#allocation47_spill] sm:$0xff] %v13835_v28  ;;  %v13837_v26 = vadd.f32 %v4141_v31, %v3788_v46 }
 0x792   :  { %v10492_v63 = vpop.f32.mrf.mxu0 }
 0x793   :  { %16493 = vst [vmem:[#allocation48_spill] sm:$0xff] %v13837_v26  ;;  %v13839_v30 = vadd.f32 %v10492_v63, %v10420_v32 }
 0x794   :  { %v13841_v16 = vpop.f32.mrf.mxu0 }
 0x795   :  { %16494 = vst [vmem:[#allocation49_spill] sm:$0xff] %v13839_v30  ;;  %16495 = vst [vmem:[#allocation50_spill] sm:$0xff] %v13841_v16 }
 0x796   :  { %v10585_v47 = vpop.f32.mrf.mxu0 }
 0x798   :  { %v4941_v7 = vpop.f32.mrf.mxu0 }
 0x79a   :  { %v10588_v21 = vpop.f32.mrf.mxu0 }
 0x79c   :  { %v4951_v2 = vpop.f32.mrf.mxu0 }
 0x79e   :  { %v10591_v6 = vpop.f32.mrf.mxu0 }
 0x7a0   :  { %v4961_v14 = vpop.f32.mrf.mxu0 }
 0x7a2   :  { %v10594_v25 = vpop.f32.mrf.mxu0 }
 0x7a4   :  { %v4971_v35 = vpop.f32.mrf.mxu0 }
 0x7a6   :  { %v10597_v55 = vpop.f32.mrf.mxu0 }
 0x7a8   :  { %v4981_v36 = vpop.f32.mrf.mxu0 }
 0x7aa   :  { %v10600_v22 = vpop.f32.mrf.mxu0 }
 0x7ac   :  { %v4991_v62 = vpop.f32.mrf.mxu0 }
 0x7ae   :  { %v13843_v46 = vpop.f32.mrf.mxu0 }
 0x7b0   :  { %v13845_v31 = vpop.f32.mrf.mxu0 }
 0x7b2   :  { %v13847_v32 = vpop.f32.mrf.mxu0 }
 0x7b4   :  { %v13849_v63 = vpop.f32.mrf.mxu0 }
 0x7b6   :  { %v13851_v39 = vpop.f32.mrf.mxu0 }
 0x7b8   :  { %v13855_v29 = vpop.f32.mrf.mxu0 }
 0x7ba   :  { %v13858_v23 = vpop.f32.mrf.mxu0 }
 0x7bc   :  { %v13862_v16 = vpop.f32.mrf.mxu0 }
 0x7be   :  { %v13868_v28 = vpop.f32.mrf.mxu0 }
 0x7ee   :  { %v10513_v9 = vpop.f32.mrf.mxu1 }
 0x7ef   :  { %v4623_v0 = vadd.f32 %v10513_v9, %v13700_v50 }
 0x7f0   :  { %v4443_v13 = vpop.f32.mrf.mxu1 }
 0x7f1   :  { %v4622_v53 = vadd.f32 %v4443_v13, %v13706_v18  ;;  %v5121_v12 = vadd.f32 %v10585_v47, %v4623_v0 }
 0x7f2   :  { %v10516_v56 = vpop.f32.mrf.mxu1 }
 0x7f3   :  { %v5120_v61 = vadd.f32 %v4941_v7, %v4622_v53  ;;  %v4625_v54 = vadd.f32 %v10516_v56, %v13713_v38 }
 0x7f4   :  { %v4453_v30 = vpop.f32.mrf.mxu1 }
 0x7f5   :  { %v4624_v1 = vadd.f32 %v4453_v30, %v13719_v3  ;;  %10645 = vmatprep.mubr.msk.f32.mxu1 %vm5160_vm10, %v5120_v61  ;;  %v5123_v50 = vadd.f32 %v10588_v21, %v4625_v54 }
 0x7f6   :  { %v10519_v26 = vpop.f32.mrf.mxu1  ;;  %10646 = vmatmul.mubr.msk.f32.vlgmr.msra.gmra.mxu1 %vm5160_vm10, %v5121_v12  ;;  %v13874_v12 = vpop.f32.mrf.mxu0 }
 0x7f7   :  { %v5122_v9 = vadd.f32 %v4951_v2, %v4624_v1  ;;  %v4627_v13 = vadd.f32 %v10519_v26, %v13726_v24 }
 0x7f8   :  { %v4463_v18 = vpop.f32.mrf.mxu1  ;;  %v13880_v30 = vpop.f32.mrf.mxu0 }
 0x7f9   :  { %v4626_v53 = vadd.f32 %v4463_v18, %v13732_v15  ;;  %10648 = vmatprep.mubr.msk.f32.mxu1 %vm5160_vm10, %v5122_v9  ;;  %v5125_v0 = vadd.f32 %v10591_v6, %v4627_v13 }
 0x7fa   :  { %v10522_v7 = vpop.f32.mrf.mxu1  ;;  %10649 = vmatmul.mubr.msk.f32.gmra.mxu1 %vm5160_vm10, %v5123_v50 }
 0x7fb   :  { %v5124_v56 = vadd.f32 %v4961_v14, %v4626_v53  ;;  %v4629_v61 = vadd.f32 %v10522_v7, %v13739_v37  ;;  %v5051_v14 = vpop.f32.mrf.mxu0 }
 0x7fc   :  { %v4473_v38 = vpop.f32.mrf.mxu1 }
 0x7fd   :  { %v4628_v1 = vadd.f32 %v4473_v38, %v13745_v45  ;;  %10651 = vmatprep.mubr.msk.f32.mxu1 %vm5160_vm10, %v5124_v56  ;;  %v5127_v24 = vadd.f32 %v10594_v25, %v4629_v61  ;;  %v10621_v13 = vpop.f32.mrf.mxu0 }
 0x7fe   :  { %v10525_v54 = vpop.f32.mrf.mxu1  ;;  %10652 = vmatmul.mubr.msk.f32.gmra.mxu1 %vm5160_vm10, %v5125_v0 }
 0x7ff   :  { %v5126_v3 = vadd.f32 %v4971_v35, %v4628_v1  ;;  %v4631_v15 = vadd.f32 %v10525_v54, %v13750_v60 }
 0x800   :  { %v4483_v26 = vpop.f32.mrf.mxu1 }
 0x801   :  { %v4630_v6 = vadd.f32 %v4483_v26, %v13756_v48  ;;  %10654 = vmatprep.mubr.msk.f32.mxu1 %vm5160_vm10, %v5126_v3  ;;  %v5129_v47 = vadd.f32 %v10597_v55, %v4631_v15 }
 0x802   :  { %v10528_v37 = vpop.f32.mrf.mxu1  ;;  %10655 = vmatmul.mubr.msk.f32.gmra.mxu1 %vm5160_vm10, %v5127_v24 }
 0x803   :  { %v5128_v45 = vadd.f32 %v4981_v36, %v4630_v6  ;;  %v4633_v21 = vadd.f32 %v10528_v37, %v13761_v34 }
 0x804   :  { %v4493_v2 = vpop.f32.mrf.mxu1 }
 0x805   :  { %v4632_v35 = vadd.f32 %v4493_v2, %v13767_v8  ;;  %10657 = vmatprep.mubr.msk.f32.mxu1 %vm5160_vm10, %v5128_v45  ;;  %v5131_v48 = vadd.f32 %v10600_v22, %v4633_v21 }
 0x806   :  { %v10531_v60 = vpop.f32.mrf.mxu1  ;;  %10658 = vmatmul.mubr.msk.f32.gmra.mxu1 %vm5160_vm10, %v5129_v47 }
 0x807   :  { %v5130_v25 = vadd.f32 %v4991_v62, %v4632_v35  ;;  %v4635_v9 = vadd.f32 %v10531_v60, %v13772_v4  ;;  %v5061_v62 = vpop.f32.mrf.mxu0 }
 0x808   :  { %v4503_v50 = vpop.f32.mrf.mxu1 }
 0x809   :  { %v4634_v36 = vadd.f32 %v4503_v50, %v13778_v33  ;;  %10660 = vmatprep.mubr.msk.f32.mxu1 %vm5160_vm10, %v5130_v25  ;;  %v5133_v8 = vadd.f32 %v13843_v46, %v4635_v9  ;;  %v10624_v0 = vpop.f32.mrf.mxu0 }
 0x80a   :  { %v10534_v55 = vpop.f32.mrf.mxu1  ;;  %10661 = vmatmul.mubr.msk.f32.gmra.mxu1 %vm5160_vm10, %v5131_v48 }
 0x80b   :  { %v5132_v34 = vadd.f32 %v13845_v31, %v4634_v36  ;;  %v4637_v18 = vadd.f32 %v10534_v55, %v13783_v59  ;;  %v5071_v1 = vpop.f32.mrf.mxu0 }
 0x80c   :  { %v4513_v53 = vpop.f32.mrf.mxu1 }
 0x80d   :  { %v4636_v22 = vadd.f32 %v4513_v53, %v13786_v52  ;;  %10663 = vmatprep.mubr.msk.f32.mxu1 %vm5160_vm10, %v5132_v34  ;;  %v5135_v7 = vadd.f32 %v13847_v32, %v4637_v18  ;;  %v10627_v24 = vpop.f32.mrf.mxu0  ;;  %v16497_v53 = vld [vmem:[#allocation47_spill] sm:$0xff] }
 0x80e   :  { %v10537_v4 = vpop.f32.mrf.mxu1  ;;  %10664 = vmatmul.mubr.msk.f32.gmra.mxu1 %vm5160_vm10, %v5133_v8 }
 0x80f   :  { %v5134_v33 = vadd.f32 %v13849_v63, %v4636_v22  ;;  %v4639_v56 = vadd.f32 %v10537_v4, %v13791_v49  ;;  %v5081_v6 = vpop.f32.mrf.mxu0 }
 0x810   :  { %v4523_v31 = vpop.f32.mrf.mxu1 }
 0x811   :  { %v4638_v46 = vadd.f32 %v4523_v31, %v13794_v58  ;;  %10666 = vmatprep.mubr.msk.f32.mxu1 %vm5160_vm10, %v5134_v33  ;;  %v5137_v61 = vadd.f32 %v13851_v39, %v4639_v56  ;;  %v16498_v33 = vld [vmem:[#allocation48_spill] sm:$0xff]  ;;  %v16499_v56 = vld [vmem:[#allocation51_spill] sm:$0xff] }
 0x812   :  { %v10540_v59 = vpop.f32.mrf.mxu1  ;;  %10667 = vmatmul.mubr.msk.f32.gmra.mxu1 %vm5160_vm10, %v5135_v7 }
 0x813   :  { %v5136_v52 = vadd.f32 %v13855_v29, %v4638_v46  ;;  %v4641_v38 = vadd.f32 %v10540_v59, %v13801_v11  ;;  %v16501_v59 = vld [vmem:[#allocation49_spill] sm:$0xff] }
 0x814   :  { %v4533_v63 = vpop.f32.mrf.mxu1 }
 0x815   :  { %v4640_v32 = vadd.f32 %v4533_v63, %v13806_v5  ;;  %10669 = vmatprep.mubr.msk.f32.mxu1 %vm5160_vm10, %v5136_v52  ;;  %v5139_v54 = vadd.f32 %v13858_v23, %v4641_v38 }
 0x816   :  { %v10543_v49 = vpop.f32.mrf.mxu1  ;;  %10670 = vmatmul.mubr.msk.f32.gmra.mxu1 %vm5160_vm10, %v5137_v61 }
 0x817   :  { %v5138_v58 = vadd.f32 %v13862_v16, %v4640_v32  ;;  %v4643_v3 = vadd.f32 %v10543_v49, %v13811_v17  ;;  %v11373_v49 = vld [vmem:[#allocation2] ss:$0 sm:$0xff] }
 0x818   :  { %v4543_v29 = vpop.f32.mrf.mxu1  ;;  %7423 = vrot.lane.b32.xlu1 %v11373_v49, %s11421_s14 }
 0x819   :  { %v4642_v39 = vadd.f32 %v4543_v29, %v13813_v44  ;;  %10672 = vmatprep.mubr.msk.f32.mxu1 %vm5160_vm10, %v5138_v58  ;;  %v5141_v15 = vadd.f32 %v13868_v28, %v4643_v3  ;;  %v13951_v58 = vpop.permute.xlu1 %5869 }
 0x81a   :  { %v10546_v11 = vpop.f32.mrf.mxu1  ;;  %10673 = vmatmul.mubr.msk.f32.gmra.mxu1 %vm5160_vm10, %v5139_v54 }
 0x81b   :  { %v5140_v5 = vadd.f32 %v13874_v12, %v4642_v39  ;;  %v4645_v26 = vadd.f32 %v10546_v11, %v13815_v57  ;;  %v10630_v12 = vpop.f32.mrf.mxu0 }
 0x81c   :  { %v4553_v16 = vpop.f32.mrf.mxu1 }
 0x81d   :  { %v4644_v23 = vadd.f32 %v4553_v16, %v13817_v10  ;;  %10675 = vmatprep.mubr.msk.f32.mxu1 %vm5160_vm10, %v5140_v5  ;;  %v5143_v37 = vadd.f32 %v13880_v30, %v4645_v26  ;;  %v5091_v60 = vpop.f32.mrf.mxu0  ;;  %v13953_v54 = vpop.permute.xlu1 %5879 }
 0x81e   :  { %v10549_v17 = vpop.f32.mrf.mxu1  ;;  %10676 = vmatmul.mubr.msk.f32.gmra.mxu1 %vm5160_vm10, %v5141_v15 }
 0x81f   :  { %v5142_v44 = vadd.f32 %v5051_v14, %v4644_v23  ;;  %v4647_v45 = vadd.f32 %v10549_v17, %v13819_v20  ;;  %v10633_v9 = vpop.f32.mrf.mxu0 }
 0x820   :  { %v4563_v47 = vpop.f32.mrf.mxu1 }
 0x821   :  { %v4646_v28 = vadd.f32 %v4563_v47, %v13821_v42  ;;  %10678 = vmatprep.mubr.msk.f32.mxu1 %vm5160_vm10, %v5142_v44  ;;  %v5145_v21 = vadd.f32 %v10621_v13, %v4647_v45  ;;  %v5101_v34 = vpop.f32.mrf.mxu0  ;;  %v13955_v3 = vpop.permute.xlu1 %5889 }
 0x822   :  { %v10552_v57 = vpop.f32.mrf.mxu1  ;;  %10679 = vmatmul.mubr.msk.f32.gmra.mxu1 %vm5160_vm10, %v5143_v37 }
 0x823   :  { %v5144_v10 = vadd.f32 %v5061_v62, %v4646_v28  ;;  %v4649_v2 = vadd.f32 %v10552_v57, %v13823_v27  ;;  %v10636_v4 = vpop.f32.mrf.mxu0 }
 0x824   :  { %v4573_v35 = vpop.f32.mrf.mxu1 }
 0x825   :  { %v4648_v14 = vadd.f32 %v4573_v35, %v13825_v19  ;;  %10681 = vmatprep.mubr.msk.f32.mxu1 %vm5160_vm10, %v5144_v10  ;;  %v5147_v42 = vadd.f32 %v10624_v0, %v4649_v2  ;;  %v5111_v38 = vpop.f32.mrf.mxu0  ;;  %v13957_v29 = vpop.permute.xlu1 %5899 }
 0x826   :  { %v10555_v20 = vpop.f32.mrf.mxu1  ;;  %10682 = vmatmul.mubr.msk.f32.gmra.mxu1 %vm5160_vm10, %v5145_v21  ;;  %16502 = vst [vmem:[#allocation47_spill] sm:$0xff] %v13957_v29 }
 0x827   :  { %v5146_v30 = vadd.f32 %v5071_v1, %v4648_v14  ;;  %v4651_v25 = vadd.f32 %v10555_v20, %v13827_v41 }
 0x828   :  { %v4583_v48 = vpop.f32.mrf.mxu1 }
 0x829   :  { %v4650_v50 = vadd.f32 %v4583_v48, %v13829_v51  ;;  %10684 = vmatprep.mubr.msk.f32.mxu1 %vm5160_vm10, %v5146_v30  ;;  %v5149_v19 = vadd.f32 %v10627_v24, %v4651_v25  ;;  %v11422_v24 = vmov 3   ;;  %v13961_v39 = vpop.permute.xlu1 %5909 }
 0x82a   :  { %v10558_v27 = vpop.f32.mrf.mxu1  ;;  %10685 = vmatmul.mubr.msk.f32.gmra.mxu1 %vm5160_vm10, %v5147_v42  ;;  %10722 = vset.pattern.permute.xlu1 %v11422_v24  ;;  %16503 = vst [vmem:[#allocation48_spill] sm:$0xff] %v13961_v39 }
 0x82b   :  { %v5148_v13 = vadd.f32 %v5081_v6, %v4650_v50  ;;  %v4653_v36 = vadd.f32 %v10558_v27, %v13831_v43  ;;  %10723 = vset.pattern.permute.xlu0 %v11422_v24 }
 0x82c   :  { %v4593_v55 = vpop.f32.mrf.mxu1 }
 0x82d   :  { %v4652_v8 = vadd.f32 %v4593_v55, %v13833_v40  ;;  %10687 = vmatprep.mubr.msk.f32.mxu1 %vm5160_vm10, %v5148_v13  ;;  %v5151_v51 = vadd.f32 %v10630_v12, %v4653_v36  ;;  %v16500_v40 = vld [vmem:[#allocation50_spill] sm:$0xff]  ;;  %v13963_v11 = vpop.permute.xlu1 %5919 }
 0x82e   :  { %v10561_v41 = vpop.f32.mrf.mxu1  ;;  %10688 = vmatmul.mubr.msk.f32.gmra.mxu1 %vm5160_vm10, %v5149_v19  ;;  %v4152_v31 = vadd.f32 %v16500_v40, %v16499_v56  ;;  %16504 = vst [vmem:[#allocation51_spill] sm:$0xff] %v13963_v11 }
 0x82f   :  { %v5150_v18 = vadd.f32 %v5091_v60, %v4652_v8  ;;  %v4655_v62 = vadd.f32 %v10561_v41, %v16497_v53 }
 0x830   :  { %v4603_v22 = vpop.f32.mrf.mxu1 }
 0x831   :  { %v4654_v7 = vadd.f32 %v4603_v22, %v16498_v33  ;;  %10690 = vmatprep.mubr.msk.f32.mxu1 %vm5160_vm10, %v5150_v18  ;;  %v5153_v46 = vadd.f32 %v10633_v9, %v4655_v62  ;;  %v13965_v5 = vpop.permute.xlu1 %5929  ;;  %v16516_v22 = vld [vmem:[#allocation46_spill] sm:$0xff] }
 0x832   :  { %v10564_v43 = vpop.f32.mrf.mxu1  ;;  %10691 = vmatmul.mubr.msk.f32.gmra.mxu1 %vm5160_vm10, %v5151_v51  ;;  %16505 = vst [vmem:[#allocation50_spill] sm:$0xff] %v13965_v5 }
 0x833   :  { %v5152_v0 = vadd.f32 %v5101_v34, %v4654_v7  ;;  %v4657_v52 = vadd.f32 %v10564_v43, %v16501_v59 }
 0x834   :  { %v4613_v61 = vpop.f32.mrf.mxu1 }
 0x835   :  { %v4656_v63 = vadd.f32 %v4613_v61, %v4152_v31  ;;  %10693 = vmatprep.mubr.msk.f32.mxu1 %vm5160_vm10, %v5152_v0  ;;  %v5155_v32 = vadd.f32 %v10636_v4, %v4657_v52  ;;  %v13967_v15 = vpop.permute.xlu1 %5939 }
 0x836   :  { %10694 = vmatmul.mubr.msk.f32.gmra.mxu1 %vm5160_vm10, %v5153_v46  ;;  %16506 = vst [vmem:[#allocation49_spill] sm:$0xff] %v13967_v15 }
 0x837   :  { %v5154_v1 = vadd.f32 %v5111_v38, %v4656_v63 }
 0x839   :  { %10696 = vmatprep.mubr.msk.f32.mxu1 %vm5160_vm10, %v5154_v1  ;;  %v13969_v26 = vpop.permute.xlu1 %5949 }
 0x83a   :  { %10697 = vmatmul.mubr.msk.f32.gmra.mxu1 %vm5160_vm10, %v5155_v32  ;;  %16507 = vst [vmem:[#allocation52_spill] sm:$0xff] %v13969_v26 }
 0x83d   :  { %v13971_v16 = vpop.permute.xlu1 %5959 }
 0x83e   :  { %16508 = vst [vmem:[#allocation53_spill] sm:$0xff] %v13971_v16 }
 0x841   :  { %v13973_v6 = vpop.permute.xlu1 %5969 }
 0x842   :  { %16509 = vst [vmem:[#allocation54_spill] sm:$0xff] %v13973_v6 }
 0x845   :  { %v13979_v44 = vpop.permute.xlu1 %5979 }
 0x846   :  { %16512 = vst [vmem:[#allocation57_spill] sm:$0xff] %v13979_v44 }
 0x849   :  { %v6197_v2 = vpop.permute.xlu1 %6196 }
 0x84a   :  { %v6374_v52 = vmul.f32 0.0, %v6197_v2 }
 0x84d   :  { %v14005_v48 = vpop.permute.xlu1 %6206 }
 0x851   :  { %v14019_v8 = vpop.permute.xlu1 %6216 }
 0x855   :  { %v14035_v43 = vpop.permute.xlu1 %6226 }
 0x859   :  { %v14051_v32 = vpop.permute.xlu1 %6236 }
 0x8b6   :  { %v13975_v23 = vpop.f32.mrf.mxu1 }
 0x8b7   :  { %16510 = vst [vmem:[#allocation55_spill] sm:$0xff] %v13975_v23  ;;  %v5623_v47 = vrot.slane %v13975_v23, 7  ;;  %v6020_v10 = vrot.slane %v13975_v23, 4  ;;  %v7682_v4 = vadd.f32 %v13975_v23, %v16516_v22 }
 0x8b8   :  { %v13977_v17 = vpop.f32.mrf.mxu1 }
 0x8b9   :  { %16511 = vst [vmem:[#allocation56_spill] sm:$0xff] %v13977_v17  ;;  %v5622_v37 = vrot.slane %v13977_v17, 7  ;;  %v6019_v57 = vrot.slane %v13977_v17, 4  ;;  %v7718_v0 = vsub.f32 0.0, %v7682_v4  ;;  %v7681_v61 = vadd.f32 %v16516_v22, %v13977_v17 }
 0x8ba   :  { %v13982_v45 = vpop.f32.mrf.mxu1 }
 0x8bb   :  { %5693 = vrot.lane.b32.xlu0 %v5622_v37, %s11423_s30  ;;  %v5624_v12 = vsel %vm1708_vm5, %v5622_v37, %v5623_v47  ;;  %v6021_v60 = vsel %vm6018_vm11, %v6019_v57, %v6020_v10  ;;  %v5627_v20 = vrot.slane %v13982_v45, 7  ;;  %v6024_v50 = vrot.slane %v13982_v45, 4 }
 0x8bc   :  { %v13987_v28 = vpop.f32.mrf.mxu1  ;;  %5695 = vrot.lane.b32.xlu1 %v5624_v12, %s11423_s30  ;;  %v7755_v49 = vmul.f32 1.442695, %v7718_v0  ;;  %v14054_v37 = vadd.f32 %v6374_v52, %v13977_v17 }
 0x8bd   :  { %16513 = vst [vmem:[#allocation58_spill] sm:$0xff] %v13987_v28  ;;  %v5625_v21 = vrot.slane %v13987_v28, 7  ;;  %v6022_v30 = vrot.slane %v13987_v28, 4 }
 0x8be   :  { %v13993_v35 = vpop.f32.mrf.mxu1  ;;  %10796 = vpow2.f32 %v7755_v49 }
 0x8bf   :  { %16514 = vst [vmem:[#allocation59_spill] sm:$0xff] %v13993_v35  ;;  %6088 = vrot.lane.b32.xlu0 %v6019_v57, %s11424_s11  ;;  %v5626_v14 = vsel %vm1708_vm5, %v5623_v47, %v5625_v21  ;;  %v5628_v25 = vsel %vm1708_vm5, %v5625_v21, %v5627_v20  ;;  %v6023_v9 = vsel %vm6018_vm11, %v6020_v10, %v6022_v30  ;;  %v5631_v55 = vrot.slane %v13993_v35, 7 }
 0x8c0   :  { %6090 = vrot.lane.b32.xlu1 %v6021_v60, %s11424_s11  ;;  %v14001_v42 = vpop.f32.mrf.mxu1  ;;  %v6025_v19 = vsel %vm6018_vm11, %v6022_v30, %v6024_v50  ;;  %v6028_v53 = vrot.slane %v13993_v35, 4  ;;  %v7717_v57 = vsub.f32 0.0, %v7681_v61  ;;  %v7684_v10 = vadd.f32 %v13982_v45, %v16516_v22 }
 0x8c1   :  { %v5629_v27 = vrot.slane %v14001_v42, 7  ;;  %v6026_v34 = vrot.slane %v14001_v42, 4 }
 0x8c2   :  { %v14011_v13 = vpop.f32.mrf.mxu1 }
 0x8c3   :  { %5697 = vrot.lane.b32.xlu0 %v5626_v14, %s11423_s30  ;;  %16515 = vst [vmem:[#allocation60_spill] sm:$0xff] %v14011_v13  ;;  %v5630_v36 = vsel %vm1708_vm5, %v5627_v20, %v5629_v27  ;;  %v5632_v18 = vsel %vm1708_vm5, %v5629_v27, %v5631_v55  ;;  %v6027_v51 = vsel %vm6018_vm11, %v6024_v50, %v6026_v34  ;;  %v5635_v40 = vrot.slane %v14011_v13, 7  ;;  %v16520_v14 = vld [vmem:[#allocation45_spill] sm:$0xff] }
 0x8c4   :  { %5699 = vrot.lane.b32.xlu1 %v5628_v25, %s11423_s30  ;;  %v14021_v41 = vpop.f32.mrf.mxu1  ;;  %v6029_v7 = vsel %vm6018_vm11, %v6026_v34, %v6028_v53  ;;  %v6032_v63 = vrot.slane %v14011_v13, 4  ;;  %v7026_v20 = vadd.f32 %v16520_v14, %v14054_v37  ;;  %v7753_v50 = vmul.f32 1.442695, %v7717_v57 }
 0x8c5   :  { %v5633_v62 = vrot.slane %v14021_v41, 7  ;;  %v6030_v31 = vrot.slane %v14021_v41, 4  ;;  %v7720_v27 = vsub.f32 0.0, %v7684_v10 }
 0x8c6   :  { %v14031_v33 = vpop.f32.mrf.mxu1  ;;  %v7062_v34 = vsub.f32 0.0, %v7026_v20  ;;  %10798 = vpow2.f32 %v7753_v50 }
 0x8c7   :  { %6092 = vrot.lane.b32.xlu0 %v6023_v9, %s11424_s11  ;;  %16517 = vst [vmem:[#allocation46_spill] sm:$0xff] %v14031_v33  ;;  %v5634_v56 = vsel %vm1708_vm5, %v5631_v55, %v5633_v62  ;;  %v5636_v59 = vsel %vm1708_vm5, %v5633_v62, %v5635_v40  ;;  %v6031_v38 = vsel %vm6018_vm11, %v6028_v53, %v6030_v31  ;;  %v5639_v2 = vrot.slane %v14031_v33, 7  ;;  %v14072_v9 = vpop.permute.xlu1 %6246 }
 0x8c8   :  { %6094 = vrot.lane.b32.xlu1 %v6025_v19, %s11424_s11  ;;  %v14041_v46 = vpop.f32.mrf.mxu1  ;;  %v6033_v12 = vsel %vm6018_vm11, %v6030_v31, %v6032_v63  ;;  %16522 = vst [vmem:[#allocation63_spill] sm:$0xff] %v14072_v9  ;;  %v7759_v53 = vmul.f32 1.442695, %v7720_v27 }
 0x8c9   :  { %16518 = vst [vmem:[#allocation61_spill] sm:$0xff] %v14041_v46  ;;  %v5637_v1 = vrot.slane %v14041_v46, 7  ;;  %v6034_v60 = vrot.slane %v14041_v46, 4 }
 0x8ca   :  { %v14056_v47 = vpop.f32.mrf.mxu1  ;;  %10800 = vpow2.f32 %v7759_v53 }
 0x8cb   :  { %5701 = vrot.lane.b32.xlu0 %v5630_v36, %s11423_s30  ;;  %16519 = vst [vmem:[#allocation62_spill] sm:$0xff] %v14056_v47  ;;  %v5638_v21 = vsel %vm1708_vm5, %v5635_v40, %v5637_v1  ;;  %v5640_v25 = vsel %vm1708_vm5, %v5637_v1, %v5639_v2  ;;  %v6035_v19 = vsel %vm6018_vm11, %v6032_v63, %v6034_v60  ;;  %v6036_v36 = vrot.slane %v14031_v33, 4  ;;  %v10797_v49 = vpop.eup %10796 }
 0x8cc   :  { %5703 = vrot.lane.b32.xlu1 %v5632_v18, %s11423_s30  ;;  %v14068_v30 = vpop.f32.mrf.mxu1  ;;  %v5643_v4 = vrot.slane %v14056_v47, 7  ;;  %v7098_v40 = vmul.f32 1.442695, %v7062_v34  ;;  %v6040_v61 = vrot.slane %v14056_v47, 4  ;;  %v7683_v63 = vadd.f32 %v16516_v22, %v13987_v28 }
 0x8cd   :  { %16521 = vst [vmem:[#allocation45_spill] sm:$0xff] %v14068_v30  ;;  %v5641_v55 = vrot.slane %v14068_v30, 7  ;;  %v7826_v20 = vadd.f32 1.0, %v10797_v49 }
 0x8ce   :  { %v14078_v18 = vpop.f32.mrf.mxu1  ;;  %10802 = vpow2.f32 %v7098_v40 }
 0x8cf   :  { %6096 = vrot.lane.b32.xlu0 %v6027_v51, %s11424_s11  ;;  %16523 = vst [vmem:[#allocation64_spill] sm:$0xff] %v14078_v18  ;;  %v6037_v51 = vsel %vm6018_vm11, %v6034_v60, %v6036_v36  ;;  %v5642_v62 = vsel %vm1708_vm5, %v5639_v2, %v5641_v55  ;;  %v5644_v0 = vsel %vm1708_vm5, %v5641_v55, %v5643_v4  ;;  %v5647_v2 = vrot.slane %v14078_v18, 7 }
 0x8d0   :  { %6098 = vrot.lane.b32.xlu1 %v6029_v7, %s11424_s11  ;;  %v6038_v7 = vrot.slane %v14068_v30, 4  ;;  %v14088_v31 = vpop.f32.mrf.mxu1  ;;  %v6044_v34 = vrot.slane %v14078_v18, 4  ;;  %10804 = vrcp.f32 %v7826_v20 }
 0x8d1   :  { %16525 = vst [vmem:[#allocation66_spill] sm:$0xff] %v14088_v31  ;;  %v6042_v60 = vrot.slane %v14088_v31, 4 }
 0x8d2   :  { %v6039_v52 = vsel %vm6018_vm11, %v6036_v36, %v6038_v7  ;;  %v14100_v1 = vpop.f32.mrf.mxu1 }
 0x8d3   :  { %5705 = vrot.lane.b32.xlu0 %v5634_v56, %s11423_s30  ;;  %v14086_v56 = vpop.permute.xlu1 %6256  ;;  %16526 = vst [vmem:[#allocation67_spill] sm:$0xff] %v14100_v1  ;;  %v10799_v36 = vpop.eup %10798  ;;  %v6043_v55 = vsel %vm6018_vm11, %v6040_v61, %v6042_v60 }
 0x8d4   :  { %5707 = vrot.lane.b32.xlu1 %v5636_v59, %s11423_s30  ;;  %16524 = vst [vmem:[#allocation65_spill] sm:$0xff] %v14086_v56  ;;  %v7686_v59 = vadd.f32 %v13993_v35, %v16516_v22  ;;  %v14110_v50 = vpop.f32.mrf.mxu1  ;;  %v7825_v40 = vadd.f32 1.0, %v10799_v36 }
 0x8d5   :  { %16528 = vst [vmem:[#allocation69_spill] sm:$0xff] %v14110_v50 }
 0x8d6   :  { %v7722_v10 = vsub.f32 0.0, %v7686_v59 }
 0x8d7   :  { %6100 = vrot.lane.b32.xlu0 %v6031_v38, %s11424_s11  ;;  %v5645_v38 = vrot.slane %v14088_v31, 7  ;;  %v14104_v57 = vpop.permute.xlu1 %6266  ;;  %v10801_v59 = vpop.eup %10800 }
 0x8d8   :  { %6102 = vrot.lane.b32.xlu1 %v6033_v12, %s11424_s11  ;;  %v6041_v12 = vsel %vm6018_vm11, %v6038_v7, %v6040_v61  ;;  %16527 = vst [vmem:[#allocation68_spill] sm:$0xff] %v14104_v57  ;;  %v6045_v7 = vsel %vm6018_vm11, %v6042_v60, %v6044_v34  ;;  %v5651_v61 = vrot.slane %v14100_v1, 7  ;;  %v7828_v60 = vadd.f32 1.0, %v10801_v59 }
 0x8d9   :  { %v5648_v27 = vsel %vm1708_vm5, %v5645_v38, %v5647_v2  ;;  %v7690_v59 = vadd.f32 %v14031_v33, %v16516_v22 }
 0x8db   :  { %5709 = vrot.lane.b32.xlu0 %v5638_v21, %s11423_s30  ;;  %v5646_v21 = vsel %vm1708_vm5, %v5643_v4, %v5645_v38  ;;  %v14118_v53 = vpop.permute.xlu1 %6276  ;;  %v14120_v4 = vpop.f32.mrf.mxu1  ;;  %v6046_v38 = vrot.slane %v14110_v50, 4 }
 0x8dc   :  { %5711 = vrot.lane.b32.xlu1 %v5640_v25, %s11423_s30  ;;  %v7719_v25 = vsub.f32 0.0, %v7683_v63  ;;  %16529 = vst [vmem:[#allocation70_spill] sm:$0xff] %v14118_v53  ;;  %16530 = vst [vmem:[#allocation71_spill] sm:$0xff] %v14120_v4  ;;  %v7685_v63 = vadd.f32 %v16516_v22, %v14001_v42 }
 0x8dd   :  { %v14132_v49 = vpop.f32.mrf.mxu1  ;;  %v6047_v20 = vsel %vm6018_vm11, %v6044_v34, %v6046_v38 }
 0x8de   :  { %16531 = vst [vmem:[#allocation72_spill] sm:$0xff] %v14132_v49  ;;  %v7721_v36 = vsub.f32 0.0, %v7685_v63  ;;  %v5655_v63 = vrot.slane %v14120_v4, 7 }
 0x8df   :  { %6104 = vrot.lane.b32.xlu0 %v6035_v19, %s11424_s11  ;;  %v7763_v19 = vmul.f32 1.442695, %v7722_v10 }
 0x8e0   :  { %6106 = vrot.lane.b32.xlu1 %v6037_v51, %s11424_s11  ;;  %v5649_v51 = vrot.slane %v14110_v50, 7  ;;  %v7761_v34 = vmul.f32 1.442695, %v7721_v36  ;;  %v6052_v36 = vrot.slane %v14120_v4, 4 }
 0x8e1   :  { %10806 = vpow2.f32 %v7763_v19 }
 0x8e2   :  { %v5652_v10 = vsel %vm1708_vm5, %v5649_v51, %v5651_v61 }
 0x8e3   :  { %5713 = vrot.lane.b32.xlu0 %v5642_v62, %s11423_s30  ;;  %v7757_v62 = vmul.f32 1.442695, %v7719_v25  ;;  %v6048_v25 = vrot.slane %v14100_v1, 4 }
 0x8e4   :  { %5715 = vrot.lane.b32.xlu1 %v5644_v0, %s11423_s30  ;;  %v7688_v0 = vadd.f32 %v14011_v13, %v16516_v22 }
 0x8e5   :  { %10808 = vpow2.f32 %v7757_v62 }
 0x8e6   :  { %10810 = vrcp.f32 %v7825_v40 }
 0x8e7   :  { %6108 = vrot.lane.b32.xlu0 %v6039_v52, %s11424_s11  ;;  %v5650_v52 = vsel %vm1708_vm5, %v5647_v2, %v5649_v51  ;;  %v7724_v2 = vsub.f32 0.0, %v7688_v0  ;;  %10812 = vrcp.f32 %v7828_v60 }
 0x8e8   :  { %6110 = vrot.lane.b32.xlu1 %v6041_v12, %s11424_s11  ;;  %v10803_v12 = vpop.eup %10802 }
 0x8e9   :  { %v7170_v19 = vadd.f32 1.0, %v10803_v12  ;;  %v7767_v51 = vmul.f32 1.442695, %v7724_v2  ;;  %v10805_v0 = vpop.eup %10804  ;;  %v14156_v12 = vpop.f32.mrf.mxu1 }
 0x8ea   :  { %16534 = vst [vmem:[#allocation75_spill] sm:$0xff] %v14156_v12 }
 0x8eb   :  { %5717 = vrot.lane.b32.xlu0 %v5646_v21, %s11423_s30  ;;  %v14136_v21 = vpop.permute.xlu1 %6286  ;;  %10814 = vrcp.f32 %v7170_v19  ;;  %v7726_v19 = vsub.f32 0.0, %v7690_v59 }
 0x8ec   :  { %5719 = vrot.lane.b32.xlu1 %v5648_v27, %s11423_s30  ;;  %16532 = vst [vmem:[#allocation73_spill] sm:$0xff] %v14136_v21  ;;  %v5653_v27 = vrot.slane %v14132_v49, 7  ;;  %10816 = vpow2.f32 %v7767_v51 }
 0x8ed   :  { %10818 = vpow2.f32 %v7761_v34  ;;  %v14165_v34 = vpop.f32.mrf.mxu1 }
 0x8ee   :  { %v5654_v62 = vsel %vm1708_vm5, %v5651_v61, %v5653_v27  ;;  %v7687_v61 = vadd.f32 %v16516_v22, %v14021_v41  ;;  %v5656_v60 = vsel %vm1708_vm5, %v5653_v27, %v5655_v63  ;;  %16536 = vst [vmem:[#allocation77_spill] sm:$0xff] %v14165_v34  ;;  %v7771_v27 = vmul.f32 1.442695, %v7726_v19 }
 0x8ef   :  { %6112 = vrot.lane.b32.xlu0 %v6043_v55, %s11424_s11  ;;  %v6049_v55 = vsel %vm6018_vm11, %v6046_v38, %v6048_v25  ;;  %v14147_v40 = vpop.permute.xlu1 %6296  ;;  %v6054_v19 = vrot.slane %v14165_v34, 4 }
 0x8f0   :  { %6114 = vrot.lane.b32.xlu1 %v6045_v7, %s11424_s11  ;;  %v6050_v7 = vrot.slane %v14132_v49, 4  ;;  %16533 = vst [vmem:[#allocation74_spill] sm:$0xff] %v14147_v40 }
 0x8f2   :  { %v6051_v38 = vsel %vm6018_vm11, %v6048_v25, %v6050_v7 }
 0x8f3   :  { %5721 = vrot.lane.b32.xlu0 %v5650_v52, %s11423_s30  ;;  %v10807_v52 = vpop.eup %10806  ;;  %v14160_v2 = vpop.permute.xlu1 %6306 }
 0x8f4   :  { %5723 = vrot.lane.b32.xlu1 %v5652_v10, %s11423_s30  ;;  %v10809_v10 = vpop.eup %10808  ;;  %16535 = vst [vmem:[#allocation76_spill] sm:$0xff] %v14160_v2 }
 0x8f5   :  { %v10811_v25 = vpop.eup %10810  ;;  %v7827_v51 = vadd.f32 1.0, %v10809_v10 }
 0x8f6   :  { %v10813_v59 = vpop.eup %10812 }
 0x8f7   :  { %6116 = vrot.lane.b32.xlu0 %v6047_v20, %s11424_s11  ;;  %v7830_v20 = vadd.f32 1.0, %v10807_v52  ;;  %v5657_v52 = vrot.slane %v14165_v34, 7 }
 0x8f8   :  { %6118 = vrot.lane.b32.xlu1 %v6049_v55, %s11424_s11  ;;  %v16312_v55 = vmov 1  }
 0x8f9   :  { %10820 = vrcp.f32 %v7830_v20  ;;  %v5659_v20 = vrot.slane %v14156_v12, 7 }
 0x8fa   :  { %10822 = vrcp.f32 %v7827_v51  ;;  %v14179_v51 = vpop.f32.mrf.mxu1 }
 0x8fb   :  { %5725 = vrot.lane.b32.xlu0 %v5654_v62, %s11423_s30  ;;  %v7723_v62 = vsub.f32 0.0, %v7687_v61  ;;  %10824 = vpow2.f32 %v7771_v27  ;;  %v7692_v61 = vadd.f32 %v14056_v47, %v16516_v22  ;;  %16538 = vst [vmem:[#allocation79_spill] sm:$0xff] %v14179_v51 }
 0x8fc   :  { %8125 = vperm.xlu1 %10722, %v10805_v0   ;;  %v6053_v0 = vsel %vm6018_vm11, %v6050_v7, %v6052_v36  ;;  %v5658_v7 = vsel %vm1708_vm5, %v5655_v63, %v5657_v52  ;;  %v6055_v63 = vsel %vm6018_vm11, %v6052_v36, %v6054_v19  ;;  %v14189_v6 = vpop.f32.mrf.mxu1 }
 0x8fd   :  { %16540 = vst [vmem:[#allocation81_spill] sm:$0xff] %v14189_v6 }
 0x8ff   :  { %6120 = vrot.lane.b32.xlu0 %v6051_v38, %s11424_s11  ;;  %v14170_v38 = vpop.permute.xlu1 %6316 }
 0x900   :  { %5727 = vrot.lane.b32.xlu1 %v5656_v60, %s11423_s30  ;;  %16537 = vst [vmem:[#allocation78_spill] sm:$0xff] %v14170_v38  ;;  %v7765_v60 = vmul.f32 1.442695, %v7723_v62 }
 0x901   :  { %10724 = vset.pattern.permute.xlu1 %v16312_v55  ;;  %v10815_v55 = vpop.eup %10814 }
 0x902   :  { %v10817_v10 = vpop.eup %10816  ;;  %10826 = vpow2.f32 %v7765_v60  ;;  %v6056_v60 = vrot.slane %v14156_v12, 4 }
 0x903   :  { %8120 = vperm.xlu0 %10723, %v10811_v25   ;;  %v7689_v25 = vadd.f32 %v16516_v22, %v14041_v46  ;;  %v10819_v62 = vpop.eup %10818  ;;  %v14183_v27 = vpop.permute.xlu1 %6326 }
 0x904   :  { %6122 = vrot.lane.b32.xlu1 %v6053_v0, %s11424_s11  ;;  %v5660_v0 = vsel %vm1708_vm5, %v5657_v52, %v5659_v20  ;;  %16539 = vst [vmem:[#allocation80_spill] sm:$0xff] %v14183_v27  ;;  %v7829_v44 = vadd.f32 1.0, %v10819_v62  ;;  %v6057_v52 = vsel %vm6018_vm11, %v6054_v19, %v6056_v60 }
 0x905   :  { %v7725_v17 = vsub.f32 0.0, %v7689_v25  ;;  %v7694_v25 = vadd.f32 %v14078_v18, %v16516_v22 }
 0x907   :  { %8135 = vperm.xlu0 %10723, %v10813_v59   ;;  %v7728_v59 = vsub.f32 0.0, %v7692_v61  ;;  %v10821_v61 = vpop.eup %10820  ;;  %v14195_v36 = vpop.permute.xlu1 %6336 }
 0x908   :  { %8336 = vperm.xlu1 %10724, %v10815_v55   ;;  %v7832_v55 = vadd.f32 1.0, %v10817_v10  ;;  %v5661_v10 = vrot.slane %v14189_v6, 7  ;;  %16541 = vst [vmem:[#allocation82_spill] sm:$0xff] %v14195_v36 }
 0x90a   :  { %10828 = vrcp.f32 %v7832_v55  ;;  %v5662_v19 = vsel %vm1708_vm5, %v5659_v20, %v5661_v10  ;;  %v5663_v55 = vrot.slane %v14179_v51, 7 }
 0x90b   :  { %5729 = vrot.lane.b32.xlu0 %v5658_v7, %s11423_s30  ;;  %v7775_v7 = vmul.f32 1.442695, %v7728_v59  ;;  %10830 = vrcp.f32 %v7829_v44  ;;  %v6058_v59 = vrot.slane %v14189_v6, 4  ;;  %v14204_v44 = vpop.f32.mrf.mxu1 }
 0x90c   :  { %5731 = vrot.lane.b32.xlu1 %v5660_v0, %s11423_s30  ;;  %v7769_v0 = vmul.f32 1.442695, %v7725_v17  ;;  %16542 = vst [vmem:[#allocation83_spill] sm:$0xff] %v14204_v44 }
 0x90d   :  { %10725 = vset.pattern.permute.xlu1 %v11422_v24  ;;  %v10823_v24 = vpop.eup %10822  ;;  %10832 = vpow2.f32 %v7775_v7  ;;  %v14208_v7 = vpop.permute.xlu1 %6346  ;;  %v6059_v20 = vsel %vm6018_vm11, %v6056_v60, %v6058_v59 }
 0x90e   :  { %v10825_v62 = vpop.eup %10824  ;;  %10834 = vpow2.f32 %v7769_v0  ;;  %16543 = vst [vmem:[#allocation84_spill] sm:$0xff] %v14208_v7  ;;  %v6060_v0 = vrot.slane %v14179_v51, 4  ;;  %v14213_v27 = vpop.f32.mrf.mxu1 }
 0x90f   :  { %6124 = vrot.lane.b32.xlu0 %v6055_v63, %s11424_s11  ;;  %v7691_v63 = vadd.f32 %v16516_v22, %v14068_v30  ;;  %v10827_v17 = vpop.eup %10826  ;;  %16544 = vst [vmem:[#allocation85_spill] sm:$0xff] %v14213_v27  ;;  %v7703_v47 = vadd.f32 %v16516_v22, %v14213_v27 }
 0x910   :  { %6126 = vrot.lane.b32.xlu1 %v6057_v52, %s11424_s11  ;;  %v5664_v52 = vsel %vm1708_vm5, %v5661_v10, %v5663_v55  ;;  %v7831_v16 = vadd.f32 1.0, %v10827_v17 }
 0x911   :  { %v7727_v36 = vsub.f32 0.0, %v7691_v63  ;;  %v7696_v63 = vadd.f32 %v14100_v1, %v16516_v22 }
 0x913   :  { %8145 = vperm.xlu0 %10723, %v10821_v61   ;;  %v7834_v61 = vadd.f32 1.0, %v10825_v62  ;;  %v7773_v60 = vmul.f32 1.442695, %v7727_v36 }
 0x914   :  { %8130 = vperm.xlu1 %10725, %v10823_v24   ;;  %v7730_v24 = vsub.f32 0.0, %v7694_v25  ;;  %v5665_v25 = vrot.slane %v14213_v27, 7 }
 0x915   :  { %10836 = vrcp.f32 %v7834_v61  ;;  %v5667_v61 = vrot.slane %v14204_v44, 7 }
 0x916   :  { %v7779_v10 = vmul.f32 1.442695, %v7730_v24  ;;  %10838 = vrcp.f32 %v7831_v16  ;;  %v6062_v24 = vrot.slane %v14213_v27, 4  ;;  %v14228_v16 = vpop.f32.mrf.mxu1  ;;  %v7739_v27 = vsub.f32 0.0, %v7703_v47 }
 0x917   :  { %5733 = vrot.lane.b32.xlu0 %v5662_v19, %s11423_s30  ;;  %v6061_v19 = vsel %vm6018_vm11, %v6058_v59, %v6060_v0  ;;  %v10829_v62 = vpop.eup %10828  ;;  %v5666_v59 = vsel %vm1708_vm5, %v5663_v55, %v5665_v25  ;;  %16546 = vst [vmem:[#allocation87_spill] sm:$0xff] %v14228_v16  ;;  %v6068_v2 = vrot.slane %v14228_v16, 4 }
 0x918   :  { %5735 = vrot.lane.b32.xlu1 %v5664_v52, %s11423_s30  ;;  %v14219_v52 = vpop.permute.xlu1 %6356  ;;  %v10831_v17 = vpop.eup %10830  ;;  %10840 = vpow2.f32 %v7779_v10  ;;  %v5668_v10 = vsel %vm1708_vm5, %v5665_v25, %v5667_v61  ;;  %v6063_v55 = vsel %vm6018_vm11, %v6060_v0, %v6062_v24  ;;  %v7797_v47 = vmul.f32 1.442695, %v7739_v27 }
 0x919   :  { %16545 = vst [vmem:[#allocation86_spill] sm:$0xff] %v14219_v52  ;;  %10842 = vpow2.f32 %v7773_v60  ;;  %v7732_v52 = vsub.f32 0.0, %v7696_v63  ;;  %v6064_v60 = vrot.slane %v14204_v44, 4  ;;  %v14237_v38 = vpop.f32.mrf.mxu1 }
 0x91a   :  { %16548 = vst [vmem:[#allocation89_spill] sm:$0xff] %v14237_v38  ;;  %v7705_v33 = vadd.f32 %v16516_v22, %v14237_v38 }
 0x91b   :  { %6128 = vrot.lane.b32.xlu0 %v6059_v20, %s11424_s11  ;;  %v10833_v20 = vpop.eup %10832  ;;  %v7783_v25 = vmul.f32 1.442695, %v7732_v52 }
 0x91c   :  { %6130 = vrot.lane.b32.xlu1 %v6061_v19, %s11424_s11  ;;  %v7693_v19 = vadd.f32 %v16516_v22, %v14088_v31  ;;  %v10835_v36 = vpop.eup %10834 }
 0x91d   :  { %v7833_v7 = vadd.f32 1.0, %v10835_v36 }
 0x91e   :  { %v7729_v26 = vsub.f32 0.0, %v7693_v19  ;;  %v7698_v19 = vadd.f32 %v14120_v4, %v16516_v22 }
 0x91f   :  { %8155 = vperm.xlu0 %10723, %v10829_v62   ;;  %v14232_v62 = vpop.permute.xlu1 %6366 }
 0x920   :  { %8140 = vperm.xlu1 %10725, %v10831_v17   ;;  %16547 = vst [vmem:[#allocation88_spill] sm:$0xff] %v14232_v62  ;;  %v7836_v17 = vadd.f32 1.0, %v10833_v20  ;;  %v7777_v0 = vmul.f32 1.442695, %v7729_v26  ;;  %v7695_v26 = vadd.f32 %v16516_v22, %v14110_v50  ;;  %v7734_v62 = vsub.f32 0.0, %v7698_v19 }
 0x922   :  { %10844 = vrcp.f32 %v7836_v17  ;;  %v10837_v63 = vpop.eup %10836  ;;  %v5671_v17 = vrot.slane %v14228_v16, 7  ;;  %v7731_v40 = vsub.f32 0.0, %v7695_v26  ;;  %v7787_v19 = vmul.f32 1.442695, %v7734_v62 }
 0x923   :  { %5737 = vrot.lane.b32.xlu0 %v5666_v59, %s11423_s30  ;;  %v6065_v59 = vsel %vm6018_vm11, %v6062_v24, %v6064_v60  ;;  %v14242_v20 = vpop.permute.xlu1 %7423  ;;  %10846 = vrcp.f32 %v7833_v7  ;;  %v10839_v36 = vpop.eup %10838 }
 0x924   :  { %5739 = vrot.lane.b32.xlu1 %v5668_v10, %s11423_s30  ;;  %16549 = vst [vmem:[#allocation90_spill] sm:$0xff] %v14242_v20  ;;  %v5669_v10 = vrot.slane %v14237_v38, 7  ;;  %10848 = vpow2.f32 %v7783_v25  ;;  %v14254_v7 = vpop.f32.mrf.mxu1 }
 0x925   :  { %v10841_v24 = vpop.eup %10840  ;;  %10850 = vpow2.f32 %v7777_v0  ;;  %16550 = vst [vmem:[#allocation91_spill] sm:$0xff] %v14254_v7  ;;  %v6072_v1 = vrot.slane %v14254_v7, 4 }
 0x926   :  { %v5670_v52 = vsel %vm1708_vm5, %v5667_v61, %v5669_v10  ;;  %v7838_v20 = vadd.f32 1.0, %v10841_v24  ;;  %v14265_v4 = vpop.f32.mrf.mxu1 }
 0x927   :  { %6132 = vrot.lane.b32.xlu0 %v6063_v55, %s11424_s11  ;;  %16551 = vst [vmem:[#allocation92_spill] sm:$0xff] %v14265_v4  ;;  %v6070_v21 = vrot.slane %v14265_v4, 4 }
 0x928   :  { %6134 = vrot.lane.b32.xlu1 %v6065_v59, %s11424_s11  ;;  %v6066_v59 = vrot.slane %v14237_v38, 4  ;;  %10852 = vrcp.f32 %v7838_v20 }
 0x92a   :  { %v6067_v0 = vsel %vm6018_vm11, %v6064_v60, %v6066_v59  ;;  %v5673_v60 = vrot.slane %v14265_v4, 7 }
 0x92b   :  { %8165 = vperm.xlu0 %10723, %v10837_v63   ;;  %v10843_v63 = vpop.eup %10842 }
 0x92c   :  { %8150 = vperm.xlu1 %10725, %v10839_v36   ;;  %v5672_v36 = vsel %vm1708_vm5, %v5669_v10, %v5671_v17  ;;  %v7835_v15 = vadd.f32 1.0, %v10843_v63  ;;  %v6069_v10 = vsel %vm6018_vm11, %v6066_v59, %v6068_v2  ;;  %v7781_v63 = vmul.f32 1.442695, %v7731_v40  ;;  %v14286_v40 = vpop.f32.mrf.mxu1 }
 0x92d   :  { %v14247_v55 = vpop.permute.xlu0 %5693  ;;  %v5674_v59 = vsel %vm1708_vm5, %v5671_v17, %v5673_v60  ;;  %16552 = vst [vmem:[#allocation93_spill] sm:$0xff] %v14286_v40 }
 0x92e   :  { %v14256_v25 = vpop.permute.xlu1 %5695  ;;  %10854 = vrcp.f32 %v7835_v15  ;;  %v7697_v15 = vadd.f32 %v16516_v22, %v14132_v49  ;;  %v14297_v11 = vpop.f32.mrf.mxu1 }
 0x92f   :  { %5741 = vrot.lane.b32.xlu0 %v5670_v52, %s11423_s30  ;;  %v10845_v52 = vpop.eup %10844  ;;  %10856 = vpow2.f32 %v7787_v19  ;;  %16553 = vst [vmem:[#allocation94_spill] sm:$0xff] %v14297_v11 }
 0x930   :  { %5743 = vrot.lane.b32.xlu1 %v5672_v36, %s11423_s30  ;;  %v10847_v36 = vpop.eup %10846  ;;  %10858 = vpow2.f32 %v7781_v63  ;;  %v6071_v63 = vsel %vm6018_vm11, %v6068_v2, %v6070_v21  ;;  %v7733_v50 = vsub.f32 0.0, %v7697_v15  ;;  %v7699_v2 = vadd.f32 %v16516_v22, %v14165_v34 }
 0x931   :  { %v14261_v61 = vpop.permute.xlu0 %6088  ;;  %v10849_v62 = vpop.eup %10848  ;;  %v5677_v15 = vrot.slane %v14297_v11, 7 }
 0x932   :  { %v14267_v5 = vpop.permute.xlu1 %6090  ;;  %v7735_v34 = vsub.f32 0.0, %v7699_v2 }
 0x933   :  { %6136 = vrot.lane.b32.xlu0 %v6067_v0, %s11424_s11  ;;  %v7700_v0 = vadd.f32 %v14156_v12, %v16516_v22  ;;  %v7840_v12 = vadd.f32 1.0, %v10849_v62 }
 0x934   :  { %6138 = vrot.lane.b32.xlu1 %v6069_v10, %s11424_s11  ;;  %v5675_v10 = vrot.slane %v14254_v7, 7  ;;  %v7789_v56 = vmul.f32 1.442695, %v7735_v34 }
 0x935   :  { %v14272_v24 = vpop.permute.xlu0 %5697  ;;  %v7736_v53 = vsub.f32 0.0, %v7700_v0  ;;  %10860 = vrcp.f32 %v7840_v12 }
 0x936   :  { %v14275_v26 = vpop.permute.xlu1 %5699  ;;  %v5678_v18 = vsel %vm1708_vm5, %v5675_v10, %v5677_v15 }
 0x937   :  { %8175 = vperm.xlu0 %10723, %v10845_v52   ;;  %v10851_v52 = vpop.eup %10850  ;;  %v7791_v0 = vmul.f32 1.442695, %v7736_v53  ;;  %v7701_v53 = vadd.f32 %v16516_v22, %v14189_v6 }
 0x938   :  { %8160 = vperm.xlu1 %10725, %v10847_v36   ;;  %v5676_v36 = vsel %vm1708_vm5, %v5673_v60, %v5675_v10  ;;  %v7837_v49 = vadd.f32 1.0, %v10851_v52  ;;  %v6073_v60 = vsel %vm6018_vm11, %v6070_v21, %v6072_v1  ;;  %v7785_v52 = vmul.f32 1.442695, %v7733_v50 }
 0x939   :  { %v14279_v20 = vpop.permute.xlu0 %6092  ;;  %v7702_v21 = vadd.f32 %v14179_v51, %v16516_v22  ;;  %v5679_v50 = vrot.slane %v14286_v40, 7  ;;  %v7737_v10 = vsub.f32 0.0, %v7701_v53 }
 0x93a   :  { %v14288_v19 = vpop.permute.xlu1 %6094  ;;  %10862 = vrcp.f32 %v7837_v49  ;;  %v6074_v49 = vrot.slane %v14297_v11, 4 }
 0x93b   :  { %5745 = vrot.lane.b32.xlu0 %v5674_v59, %s11423_s30  ;;  %v10853_v59 = vpop.eup %10852  ;;  %10864 = vpow2.f32 %v7791_v0  ;;  %v7738_v51 = vsub.f32 0.0, %v7702_v21  ;;  %v5680_v2 = vsel %vm1708_vm5, %v5677_v15, %v5679_v50  ;;  %v7793_v34 = vmul.f32 1.442695, %v7737_v10 }
 0x93c   :  { %5747 = vrot.lane.b32.xlu1 %v5676_v36, %s11423_s30  ;;  %10866 = vpow2.f32 %v7785_v52  ;;  %v6075_v39 = vsel %vm6018_vm11, %v6072_v1, %v6074_v49  ;;  %v7708_v10 = vadd.f32 %v14254_v7, %v16516_v22  ;;  %v7710_v7 = vadd.f32 %v14286_v40, %v16516_v22 }
 0x93d   :  { %v14293_v17 = vpop.permute.xlu0 %5701  ;;  %v7795_v15 = vmul.f32 1.442695, %v7738_v51 }
 0x93e   :  { %v14299_v57 = vpop.permute.xlu1 %5703 }
 0x93f   :  { %6140 = vrot.lane.b32.xlu0 %v6071_v63, %s11424_s11  ;;  %v10855_v63 = vpop.eup %10854 }
 0x940   :  { %6142 = vrot.lane.b32.xlu1 %v6073_v60, %s11424_s11  ;;  %v10857_v60 = vpop.eup %10856 }
 0x941   :  { %v14304_v62 = vpop.permute.xlu0 %6096  ;;  %v10859_v0 = vpop.eup %10858  ;;  %v7842_v6 = vadd.f32 1.0, %v10857_v60  ;;  %v7706_v60 = vadd.f32 %v14228_v16, %v16516_v22  ;;  %v7741_v16 = vsub.f32 0.0, %v7705_v33 }
 0x942   :  { %v14309_v36 = vpop.permute.xlu1 %6098  ;;  %v7839_v21 = vadd.f32 1.0, %v10859_v0  ;;  %v10861_v0 = vpop.eup %10860 }
 0x943   :  { %8185 = vperm.xlu0 %10723, %v10853_v59   ;;  %v14320_v59 = vpop.f32.mrf.mxu1  ;;  %10868 = vrcp.f32 %v7842_v6 }
 0x944   :  { %8170 = vperm.xlu1 %10725, %v10855_v63   ;;  %16554 = vst [vmem:[#allocation95_spill] sm:$0xff] %v14320_v59  ;;  %v7704_v63 = vadd.f32 %v14204_v44, %v16516_v22  ;;  %10870 = vpow2.f32 %v7789_v56 }
 0x945   :  { %v14315_v12 = vpop.permute.xlu0 %5705  ;;  %v14335_v30 = vpop.f32.mrf.mxu1  ;;  %10872 = vrcp.f32 %v7839_v21  ;;  %v5683_v21 = vrot.slane %v14320_v59, 7 }
 0x946   :  { %v14322_v31 = vpop.permute.xlu1 %5707  ;;  %16555 = vst [vmem:[#allocation96_spill] sm:$0xff] %v14335_v30  ;;  %v7740_v53 = vsub.f32 0.0, %v7704_v63  ;;  %10874 = vpow2.f32 %v7795_v15  ;;  %v7707_v15 = vadd.f32 %v16516_v22, %v14265_v4  ;;  %v7801_v4 = vmul.f32 1.442695, %v7741_v16 }
 0x947   :  { %5749 = vrot.lane.b32.xlu0 %v5678_v18, %s11423_s30  ;;  %v6076_v18 = vrot.slane %v14286_v40, 4  ;;  %v10863_v63 = vpop.eup %10862  ;;  %10876 = vpow2.f32 %v7793_v34 }
 0x948   :  { %5751 = vrot.lane.b32.xlu1 %v5680_v2, %s11423_s30  ;;  %v7799_v6 = vmul.f32 1.442695, %v7740_v53  ;;  %v14360_v53 = vpop.f32.mrf.mxu1 }
 0x949   :  { %v14331_v52 = vpop.permute.xlu0 %6100  ;;  %v6077_v2 = vsel %vm6018_vm11, %v6074_v49, %v6076_v18  ;;  %v7742_v49 = vsub.f32 0.0, %v7706_v60  ;;  %16557 = vst [vmem:[#allocation98_spill] sm:$0xff] %v14360_v53 }
 0x94a   :  { %v14337_v44 = vpop.permute.xlu1 %6102  ;;  %10878 = vpow2.f32 %v7799_v6  ;;  %v7743_v6 = vsub.f32 0.0, %v7707_v15 }
 0x94b   :  { %6144 = vrot.lane.b32.xlu0 %v6075_v39, %s11424_s11  ;;  %v5681_v39 = vrot.slane %v14335_v30, 7  ;;  %v7803_v34 = vmul.f32 1.442695, %v7742_v49  ;;  %10880 = vpow2.f32 %v7797_v47  ;;  %v14375_v49 = vpop.f32.mrf.mxu1  ;;  %v7746_v47 = vsub.f32 0.0, %v7710_v7 }
 0x94c   :  { %6146 = vrot.lane.b32.xlu1 %v6077_v2, %s11424_s11  ;;  %v10865_v2 = vpop.eup %10864  ;;  %16559 = vst [vmem:[#allocation100_spill] sm:$0xff] %v14375_v49 }
 0x94d   :  { %v14344_v1 = vpop.permute.xlu0 %5709  ;;  %v5682_v38 = vsel %vm1708_vm5, %v5679_v50, %v5681_v39  ;;  %v10867_v60 = vpop.eup %10866  ;;  %v5684_v33 = vsel %vm1708_vm5, %v5681_v39, %v5683_v21  ;;  %v7744_v50 = vsub.f32 0.0, %v7708_v10  ;;  %v7709_v39 = vadd.f32 %v16516_v22, %v14297_v11 }
 0x94e   :  { %v14349_v51 = vpop.permute.xlu1 %5711  ;;  %10882 = vpow2.f32 %v7803_v34 }
 0x94f   :  { %8195 = vperm.xlu0 %10723, %v10861_v0   ;;  %v6078_v0 = vrot.slane %v14335_v30, 4  ;;  %v7807_v16 = vmul.f32 1.442695, %v7744_v50  ;;  %v7745_v34 = vsub.f32 0.0, %v7709_v39 }
 0x950   :  { %8180 = vperm.xlu1 %10725, %v10863_v63   ;;  %v7844_v63 = vadd.f32 1.0, %v10865_v2 }
 0x951   :  { %v14353_v56 = vpop.permute.xlu0 %6104 }
 0x952   :  { %16556 = vst [vmem:[#allocation97_spill] sm:$0xff] %v14353_v56  ;;  %v14362_v27 = vpop.permute.xlu1 %6106  ;;  %v7841_v56 = vadd.f32 1.0, %v10867_v60  ;;  %10884 = vrcp.f32 %v7844_v63  ;;  %v10869_v60 = vpop.eup %10868 }
 0x953   :  { %16558 = vst [vmem:[#allocation99_spill] sm:$0xff] %v14362_v27  ;;  %5753 = vrot.lane.b32.xlu0 %v5682_v38, %s11423_s30  ;;  %v6079_v27 = vsel %vm6018_vm11, %v6076_v18, %v6078_v0  ;;  %v6080_v38 = vrot.slane %v14320_v59, 4  ;;  %v7712_v18 = vadd.f32 %v14320_v59, %v16516_v22  ;;  %10886 = vpow2.f32 %v7801_v4  ;;  %v10871_v40 = vpop.eup %10870  ;;  %v14389_v63 = vpop.f32.mrf.mxu1 }
 0x954   :  { %5755 = vrot.lane.b32.xlu1 %v5684_v33, %s11423_s30  ;;  %v5685_v33 = vrot.slane %v14375_v49, 7  ;;  %10888 = vrcp.f32 %v7841_v56  ;;  %v10873_v7 = vpop.eup %10872  ;;  %16561 = vst [vmem:[#allocation102_spill] sm:$0xff] %v14389_v63  ;;  %v7811_v59 = vmul.f32 1.442695, %v7746_v47  ;;  %v7714_v4 = vadd.f32 %v14360_v53, %v16516_v22 }
 0x955   :  { %v14369_v9 = vpop.permute.xlu0 %5713  ;;  %v6081_v2 = vsel %vm6018_vm11, %v6078_v0, %v6080_v38  ;;  %v7711_v0 = vadd.f32 %v16516_v22, %v14335_v30  ;;  %10890 = vpow2.f32 %v7807_v16  ;;  %v7748_v11 = vsub.f32 0.0, %v7712_v18  ;;  %v14403_v18 = vpop.f32.mrf.mxu1 }
 0x956   :  { %v14377_v10 = vpop.permute.xlu1 %5715  ;;  %v7843_v39 = vadd.f32 1.0, %v10871_v40  ;;  %v5686_v30 = vsel %vm1708_vm5, %v5683_v21, %v5685_v33  ;;  %v7713_v16 = vadd.f32 %v16516_v22, %v14375_v49  ;;  %16563 = vst [vmem:[#allocation104_spill] sm:$0xff] %v14403_v18  ;;  %v7750_v46 = vsub.f32 0.0, %v7714_v4 }
 0x957   :  { %6148 = vrot.lane.b32.xlu0 %v6079_v27, %s11424_s11  ;;  %v7805_v27 = vmul.f32 1.442695, %v7743_v6  ;;  %v7747_v29 = vsub.f32 0.0, %v7711_v0  ;;  %v7815_v21 = vmul.f32 1.442695, %v7748_v11  ;;  %v7716_v13 = vadd.f32 %v14389_v63, %v16516_v22 }
 0x958   :  { %6150 = vrot.lane.b32.xlu1 %v6081_v2, %s11424_s11  ;;  %v10875_v2 = vpop.eup %10874  ;;  %v7749_v11 = vsub.f32 0.0, %v7713_v16  ;;  %v7715_v4 = vadd.f32 %v16516_v22, %v14403_v18 }
 0x959   :  { %v14384_v15 = vpop.permute.xlu0 %6108  ;;  %v10877_v6 = vpop.eup %10876  ;;  %10892 = vpow2.f32 %v7805_v27  ;;  %v7846_v47 = vadd.f32 1.0, %v10875_v2  ;;  %v6084_v2 = vrot.slane %v14360_v53, 4 }
 0x95a   :  { %16560 = vst [vmem:[#allocation101_spill] sm:$0xff] %v14384_v15  ;;  %v14391_v50 = vpop.permute.xlu1 %6110  ;;  %v6082_v15 = vrot.slane %v14375_v49, 4  ;;  %v10879_v40 = vpop.eup %10878  ;;  %10894 = vpow2.f32 %v7811_v59  ;;  %v7845_v27 = vadd.f32 1.0, %v10877_v6  ;;  %v7813_v59 = vmul.f32 1.442695, %v7747_v29 }
 0x95b   :  { %8205 = vperm.xlu0 %10723, %v10869_v60   ;;  %16562 = vst [vmem:[#allocation103_spill] sm:$0xff] %v14391_v50  ;;  %v5687_v60 = vrot.slane %v14360_v53, 7  ;;  %v7809_v50 = vmul.f32 1.442695, %v7745_v34  ;;  %10896 = vrcp.f32 %v7843_v39  ;;  %v7848_v39 = vadd.f32 1.0, %v10879_v40 }
 0x95c   :  { %8190 = vperm.xlu1 %10725, %v10873_v7   ;;  %v6085_v6 = vsel %vm6018_vm11, %v6082_v15, %v6084_v2  ;;  %v7819_v49 = vmul.f32 1.442695, %v7750_v46  ;;  %v5689_v29 = vrot.slane %v14403_v18, 7  ;;  %v7817_v22 = vmul.f32 1.442695, %v7749_v11 }
 0x95d   :  { %v14395_v56 = vpop.permute.xlu0 %5717  ;;  %v5688_v7 = vsel %vm1708_vm5, %v5685_v33, %v5687_v60  ;;  %v10881_v33 = vpop.eup %10880  ;;  %10898 = vpow2.f32 %v7809_v50  ;;  %v7751_v53 = vsub.f32 0.0, %v7715_v4 }
 0x95e   :  { %v14409_v34 = vpop.permute.xlu1 %5719  ;;  %10900 = vrcp.f32 %v7846_v47  ;;  %v7847_v50 = vadd.f32 1.0, %v10881_v33  ;;  %v6086_v33 = vrot.slane %v14403_v18, 4 }
 0x95f   :  { %5757 = vrot.lane.b32.xlu0 %v5686_v30, %s11423_s30  ;;  %v6083_v30 = vsel %vm6018_vm11, %v6080_v38, %v6082_v15  ;;  %10902 = vpow2.f32 %v7815_v21  ;;  %v7821_v11 = vmul.f32 1.442695, %v7751_v53 }
 0x960   :  { %5759 = vrot.lane.b32.xlu1 %v5688_v7, %s11423_s30  ;;  %v10883_v7 = vpop.eup %10882  ;;  %10904 = vrcp.f32 %v7845_v27 }
 0x961   :  { %v14411_v0 = vpop.permute.xlu0 %6112  ;;  %v10885_v38 = vpop.eup %10884  ;;  %10906 = vpow2.f32 %v7813_v59  ;;  %v7850_v40 = vadd.f32 1.0, %v10883_v7  ;;  %v5690_v59 = vsel %vm1708_vm5, %v5687_v60, %v5689_v29  ;;  %v6087_v60 = vsel %vm6018_vm11, %v6084_v2, %v6086_v33 }
 0x962   :  { %16564 = vst [vmem:[#allocation105_spill] sm:$0xff] %v14411_v0  ;;  %v7752_v0 = vsub.f32 0.0, %v7716_v13  ;;  %v10887_v16 = vpop.eup %10886  ;;  %10908 = vrcp.f32 %v7848_v39  ;;  %v14421_v15 = vpop.permute.xlu1 %6114  ;;  %v5691_v13 = vrot.slane %v14389_v63, 7 }
 0x963   :  { %6152 = vrot.lane.b32.xlu0 %v6083_v30, %s11424_s11  ;;  %v10889_v47 = vpop.eup %10888  ;;  %10910 = vpow2.f32 %v7819_v49  ;;  %v7849_v30 = vadd.f32 1.0, %v10887_v16 }
 0x964   :  { %6154 = vrot.lane.b32.xlu1 %v6085_v6, %s11424_s11  ;;  %v7823_v46 = vmul.f32 1.442695, %v7752_v0  ;;  %v10891_v27 = vpop.eup %10890  ;;  %10912 = vrcp.f32 %v7847_v50  ;;  %v5692_v39 = vsel %vm1708_vm5, %v5689_v29, %v5691_v13 }
 0x965   :  { %v14423_v21 = vpop.permute.xlu0 %5721  ;;  %10914 = vpow2.f32 %v7817_v22  ;;  %v7852_v49 = vadd.f32 1.0, %v10891_v27 }
 0x966   :  { %v10893_v4 = vpop.eup %10892  ;;  %10916 = vrcp.f32 %v7850_v40  ;;  %v14431_v6 = vpop.permute.xlu1 %5723 }
 0x967   :  { %8215 = vperm.xlu0 %10723, %v10885_v38   ;;  %10918 = vpow2.f32 %v7823_v46  ;;  %v10895_v0 = vpop.eup %10894  ;;  %v7851_v53 = vadd.f32 1.0, %v10893_v4 }
 0x968   :  { %8200 = vperm.xlu1 %10725, %v10889_v47   ;;  %10920 = vrcp.f32 %v7849_v30  ;;  %v10897_v38 = vpop.eup %10896  ;;  %v7854_v29 = vadd.f32 1.0, %v10895_v0 }
 0x969   :  { %v14433_v7 = vpop.permute.xlu0 %6116  ;;  %10922 = vpow2.f32 %v7821_v11 }
 0x96a   :  { %v10899_v50 = vpop.eup %10898  ;;  %10924 = vrcp.f32 %v7852_v49  ;;  %v14437_v46 = vpop.permute.xlu1 %6118 }
 0x96b   :  { %5761 = vrot.lane.b32.xlu0 %v5690_v59, %s11423_s30  ;;  %v10901_v16 = vpop.eup %10900  ;;  %10926 = vrcp.f32 %v7851_v53  ;;  %v7853_v40 = vadd.f32 1.0, %v10899_v50 }
 0x96c   :  { %5763 = vrot.lane.b32.xlu1 %v5692_v39, %s11423_s30  ;;  %v10903_v22 = vpop.eup %10902  ;;  %10928 = vrcp.f32 %v7854_v29 }
 0x96d   :  { %v10905_v47 = vpop.eup %10904  ;;  %v14439_v27 = vpop.permute.xlu0 %5725  ;;  %v7856_v30 = vadd.f32 1.0, %v10903_v22  ;;  %10930 = vrcp.f32 %v7853_v40 }
 0x96e   :  { %v10907_v13 = vpop.eup %10906 }
 0x96f   :  { %6156 = vrot.lane.b32.xlu0 %v6087_v60, %s11424_s11  ;;  %v10909_v2 = vpop.eup %10908  ;;  %v7855_v11 = vadd.f32 1.0, %v10907_v13  ;;  %10932 = vrcp.f32 %v7856_v30 }
 0x970   :  { %8210 = vperm.xlu1 %10725, %v10897_v38   ;;  %v10911_v33 = vpop.eup %10910 }
 0x971   :  { %v10913_v59 = vpop.eup %10912  ;;  %v7858_v0 = vadd.f32 1.0, %v10911_v33  ;;  %v14443_v38 = vpop.permute.xlu0 %6120  ;;  %10934 = vrcp.f32 %v7855_v11 }
 0x972   :  { %v10915_v4 = vpop.eup %10914 }
 0x973   :  { %8225 = vperm.xlu0 %10723, %v10901_v16   ;;  %v10917_v49 = vpop.eup %10916  ;;  %v7857_v50 = vadd.f32 1.0, %v10915_v4  ;;  %10936 = vrcp.f32 %v7858_v0 }
 0x974   :  { %8220 = vperm.xlu1 %10725, %v10905_v47   ;;  %v10919_v60 = vpop.eup %10918 }
 0x975   :  { %v10921_v53 = vpop.eup %10920  ;;  %v7860_v22 = vadd.f32 1.0, %v10919_v60  ;;  %10938 = vrcp.f32 %v7857_v50 }
 0x976   :  { %v10923_v16 = vpop.eup %10922 }
 0x977   :  { %8235 = vperm.xlu0 %10723, %v10909_v2   ;;  %v14441_v39 = vpop.permute.xlu1 %8125  ;;  %v10925_v47 = vpop.eup %10924  ;;  %v7859_v13 = vadd.f32 1.0, %v10923_v16  ;;  %10940 = vrcp.f32 %v7860_v22  ;;  %v5801_v22 = vsel %vm1708_vm5, 0.0, %v14247_v55 }
 0x978   :  { %16565 = vst [vmem:[#allocation106_spill] sm:$0xff] %v14441_v39  ;;  %8230 = vperm.xlu1 %10725, %v10913_v59   ;;  %v10927_v2 = vpop.eup %10926 }
 0x979   :  { %v10929_v33 = vpop.eup %10928  ;;  %10942 = vrcp.f32 %v7859_v13 }
 0x97a   :  { %v10931_v11 = vpop.eup %10930 }
 0x97b   :  { %8245 = vperm.xlu0 %10723, %v10917_v49   ;;  %v14445_v29 = vpop.permute.xlu1 %5727 }
 0x97c   :  { %8240 = vperm.xlu1 %10725, %v10921_v53   ;;  %v10933_v49 = vpop.eup %10932 }
 0x97e   :  { %v14447_v40 = vpop.permute.xlu0 %8120  ;;  %v10935_v60 = vpop.eup %10934 }
 0x97f   :  { %16566 = vst [vmem:[#allocation107_spill] sm:$0xff] %v14447_v40  ;;  %8255 = vperm.xlu0 %10723, %v10925_v47   ;;  %v14449_v30 = vpop.permute.xlu1 %6122 }
 0x980   :  { %8250 = vperm.xlu1 %10725, %v10927_v2   ;;  %v10937_v50 = vpop.eup %10936 }
 0x982   :  { %v14451_v59 = vpop.permute.xlu0 %8135  ;;  %v10939_v47 = vpop.eup %10938 }
 0x983   :  { %16567 = vst [vmem:[#allocation108_spill] sm:$0xff] %v14451_v59  ;;  %8265 = vperm.xlu0 %10723, %v10929_v33   ;;  %v14453_v4 = vpop.permute.xlu1 %8336  ;;  %v16569_v33 = vld [vmem:[#allocation3_spill] sm:$0xff] }
 0x984   :  { %16568 = vst [vmem:[#allocation109_spill] sm:$0xff] %v14453_v4  ;;  %8260 = vperm.xlu1 %10725, %v10931_v11   ;;  %v10941_v2 = vpop.eup %10940  ;;  %v14466_v11 = vmul.f32 %v16569_v33, %v5801_v22 }
 0x986   :  { %v14455_v0 = vpop.permute.xlu0 %5729  ;;  %v10943_v59 = vpop.eup %10942  ;;  %v6445_v55 = vrot.slane %v14466_v11, 4 }
 0x987   :  { %8275 = vperm.xlu0 %10723, %v10933_v49   ;;  %v14457_v53 = vpop.permute.xlu1 %5731  ;;  %v16570_v49 = vld [vmem:[#allocation30_spill] sm:$0xff] }
 0x988   :  { %8270 = vperm.xlu1 %10725, %v10935_v60   ;;  %v14470_v39 = vmul.f32 %v16570_v49, %v14256_v25  ;;  %v16574_v25 = vmov 1  }
 0x98a   :  { %v14459_v16 = vpop.permute.xlu0 %6124  ;;  %16571 = vst [vmem:[#allocation3_spill] sm:$0xff] %v14470_v39 }
 0x98b   :  { %8285 = vperm.xlu0 %10723, %v10937_v50   ;;  %v14463_v13 = vpop.permute.xlu1 %6126  ;;  %v6446_v50 = vrot.slane %v14470_v39, 4 }
 0x98c   :  { %8280 = vperm.xlu1 %10725, %v10939_v47  }
 0x98e   :  { %v14472_v60 = vpop.permute.xlu0 %8145 }
 0x98f   :  { %16572 = vst [vmem:[#allocation30_spill] sm:$0xff] %v14472_v60  ;;  %8295 = vperm.xlu0 %10723, %v10941_v2   ;;  %v14474_v4 = vpop.permute.xlu1 %8130  ;;  %v16575_v2 = vld [vmem:[#allocation4_spill] sm:$0xff] }
 0x990   :  { %16573 = vst [vmem:[#allocation110_spill] sm:$0xff] %v14474_v4  ;;  %8290 = vperm.xlu1 %10725, %v10943_v59   ;;  %v14489_v33 = vmul.f32 %v16575_v2, %v14272_v24  ;;  %v16577_v59 = vld [vmem:[#allocation33_spill] sm:$0xff]  ;;  %v6447_v4 = vsel %vm6018_vm11, %v6445_v55, %v6446_v50 }
 0x991   :  { %v14493_v49 = vmul.f32 %v16577_v59, %v14275_v26 }
 0x992   :  { %v14478_v47 = vpop.permute.xlu0 %5733  ;;  %16576 = vst [vmem:[#allocation4_spill] sm:$0xff] %v14489_v33  ;;  %v6448_v24 = vrot.slane %v14489_v33, 4 }
 0x993   :  { %7281 = vrot.lane.b32.xlu0 %v14470_v39, %s11419_s7  ;;  %v14482_v22 = vpop.permute.xlu1 %5735  ;;  %16578 = vst [vmem:[#allocation33_spill] sm:$0xff] %v14493_v49  ;;  %v6450_v2 = vrot.slane %v14493_v49, 4 }
 0x994   :  { %10726 = vset.pattern.permute.xlu0 %v16574_v25  ;;  %7279 = vrot.lane.b32.xlu1 %v14466_v11, %s11419_s7 }
 0x995   :  { %10727 = vset.pattern.permute.xlu1 %v16574_v25 }
 0x996   :  { %v14495_v60 = vpop.permute.xlu0 %6128 }
 0x997   :  { %6516 = vrot.lane.b32.xlu0 %v6447_v4, %s11426_s1  ;;  %v14500_v40 = vpop.permute.xlu1 %6130  ;;  %v16582_v4 = vld [vmem:[#allocation5_spill] sm:$0xff] }
 0x998   :  { %16579 = vst [vmem:[#allocation111_spill] sm:$0xff] %v14500_v40  ;;  %6514 = vrot.lane.b32.xlu1 %v6445_v55, %s11426_s1  ;;  %v14515_v59 = vmul.f32 %v16582_v4, %v14293_v17  ;;  %v16584_v55 = vld [vmem:[#allocation35_spill] sm:$0xff]  ;;  %v16594_v40 = vld [vmem:[#allocation21_spill] sm:$0xff] }
 0x999   :  { %v14519_v63 = vmul.f32 %v16584_v55, %v14299_v57 }
 0x99a   :  { %v14505_v39 = vpop.permute.xlu0 %8155  ;;  %16583 = vst [vmem:[#allocation5_spill] sm:$0xff] %v14515_v59 }
 0x99b   :  { %16580 = vst [vmem:[#allocation112_spill] sm:$0xff] %v14505_v39  ;;  %7285 = vrot.lane.b32.xlu0 %v14493_v49, %s11419_s7  ;;  %v14509_v26 = vpop.permute.xlu1 %8140  ;;  %16585 = vst [vmem:[#allocation35_spill] sm:$0xff] %v14519_v63  ;;  %v6451_v39 = vsel %vm6018_vm11, %v6448_v24, %v6450_v2  ;;  %v6454_v17 = vrot.slane %v14519_v63, 4 }
 0x99c   :  { %16581 = vst [vmem:[#allocation113_spill] sm:$0xff] %v14509_v26  ;;  %7283 = vrot.lane.b32.xlu1 %v14489_v33, %s11419_s7  ;;  %v6449_v26 = vsel %vm6018_vm11, %v6446_v50, %v6448_v24  ;;  %v6452_v33 = vrot.slane %v14515_v59, 4  ;;  %v16588_v50 = vld [vmem:[#allocation6_spill] sm:$0xff] }
 0x99d   :  { %v14543_v24 = vmul.f32 %v16588_v50, %v14315_v12 }
 0x99e   :  { %v14521_v18 = vpop.permute.xlu0 %5737 }
 0x99f   :  { %6520 = vrot.lane.b32.xlu0 %v6451_v39, %s11426_s1  ;;  %v14525_v49 = vpop.permute.xlu1 %5739  ;;  %v6193_v39 = vsel %vm6018_vm11, 0.0, %v14261_v61  ;;  %16589 = vst [vmem:[#allocation6_spill] sm:$0xff] %v14543_v24  ;;  %v6456_v12 = vrot.slane %v14543_v24, 4 }
 0x9a0   :  { %6518 = vrot.lane.b32.xlu1 %v6449_v26, %s11426_s1  ;;  %v16590_v26 = vld [vmem:[#allocation38_spill] sm:$0xff]  ;;  %v6375_v61 = vmul.f32 %v16594_v40, %v6193_v39  ;;  %v16596_v40 = vld [vmem:[#allocation7_spill] sm:$0xff] }
 0x9a1   :  { %v14547_v55 = vmul.f32 %v16590_v26, %v14322_v31  ;;  %v6376_v26 = vmul.f32 %v14005_v48, %v14267_v5 }
 0x9a2   :  { %v14531_v4 = vpop.permute.xlu0 %6132 }
 0x9a3   :  { %16586 = vst [vmem:[#allocation114_spill] sm:$0xff] %v14531_v4  ;;  %7289 = vrot.lane.b32.xlu0 %v14519_v63, %s11419_s7  ;;  %v14535_v57 = vpop.permute.xlu1 %6134  ;;  %16591 = vst [vmem:[#allocation38_spill] sm:$0xff] %v14547_v55  ;;  %v6455_v63 = vsel %vm6018_vm11, %v6452_v33, %v6454_v17  ;;  %v6458_v50 = vrot.slane %v14547_v55, 4 }
 0x9a4   :  { %16587 = vst [vmem:[#allocation115_spill] sm:$0xff] %v14535_v57  ;;  %7287 = vrot.lane.b32.xlu1 %v14515_v59, %s11419_s7  ;;  %v6453_v59 = vsel %vm6018_vm11, %v6450_v2, %v6452_v33  ;;  %v14569_v33 = vadd.f32 %v13975_v23, %v6375_v61  ;;  %v14575_v2 = vmul.f32 %v16596_v40, %v14344_v1 }
 0x9a5   :  { %v6459_v48 = vsel %vm6018_vm11, %v6456_v12, %v6458_v50 }
 0x9a6   :  { %v14549_v4 = vpop.permute.xlu0 %8165  ;;  %16595 = vst [vmem:[#allocation21_spill] sm:$0xff] %v14569_v33  ;;  %v7027_v1 = vadd.f32 %v16520_v14, %v14569_v33 }
 0x9a7   :  { %16592 = vst [vmem:[#allocation116_spill] sm:$0xff] %v14549_v4  ;;  %6524 = vrot.lane.b32.xlu0 %v6455_v63, %s11426_s1  ;;  %v14553_v57 = vpop.permute.xlu1 %8150  ;;  %v14585_v4 = vadd.f32 %v6376_v26, %v13987_v28  ;;  %v16606_v28 = vld [vmem:[#allocation22_spill] sm:$0xff] }
 0x9a8   :  { %16593 = vst [vmem:[#allocation117_spill] sm:$0xff] %v14553_v57  ;;  %6522 = vrot.lane.b32.xlu1 %v6453_v59, %s11426_s1  ;;  %v16597_v59 = vld [vmem:[#allocation40_spill] sm:$0xff]  ;;  %v6457_v57 = vsel %vm6018_vm11, %v6454_v17, %v6456_v12  ;;  %v11374_v17 = vld [vmem:[%s16302_s16] sm:$0xff] }
 0x9a9   :  { %v14579_v39 = vmul.f32 %v16597_v59, %v14349_v51  ;;  %16599 = vst [vmem:[#allocation40_spill] sm:$0xff] %v14585_v4  ;;  %v6460_v51 = vrot.slane %v14575_v2, 4  ;;  %v7028_v26 = vadd.f32 %v16520_v14, %v14585_v4  ;;  %v6620_v12 = vmul.f32 0.0, %v11374_v17 }
 0x9aa   :  { %v14560_v31 = vpop.permute.xlu0 %5741 }
 0x9ab   :  { %7293 = vrot.lane.b32.xlu0 %v14547_v55, %s11419_s7  ;;  %v14566_v63 = vpop.permute.xlu1 %5743  ;;  %16598 = vst [vmem:[#allocation7_spill] sm:$0xff] %v14579_v39  ;;  %v6462_v40 = vrot.slane %v14579_v39, 4  ;;  %v7064_v17 = vsub.f32 0.0, %v7028_v26 }
 0x9ac   :  { %7291 = vrot.lane.b32.xlu1 %v14543_v24, %s11419_s7  ;;  %v7063_v24 = vsub.f32 0.0, %v7027_v1  ;;  %v6461_v1 = vsel %vm6018_vm11, %v6458_v50, %v6460_v51 }
 0x9ad   :  { %v6463_v33 = vsel %vm6018_vm11, %v6460_v51, %v6462_v40 }
 0x9ae   :  { %v14581_v5 = vpop.permute.xlu0 %6136 }
 0x9af   :  { %6528 = vrot.lane.b32.xlu0 %v6459_v48, %s11426_s1  ;;  %v14588_v61 = vpop.permute.xlu1 %6138 }
 0x9b0   :  { %6526 = vrot.lane.b32.xlu1 %v6457_v57, %s11426_s1  ;;  %v6693_v57 = vadd.f32 %v14054_v37, %v14466_v11  ;;  %v6377_v37 = vmul.f32 %v16606_v28, %v14279_v20  ;;  %v7102_v28 = vmul.f32 1.442695, %v7064_v17 }
 0x9b2   :  { %v14596_v59 = vpop.permute.xlu0 %8175  ;;  %v14636_v20 = vadd.f32 %v13982_v45, %v6377_v37 }
 0x9b3   :  { %16600 = vst [vmem:[#allocation118_spill] sm:$0xff] %v14596_v59  ;;  %7297 = vrot.lane.b32.xlu0 %v14579_v39, %s11419_s7  ;;  %v14602_v48 = vpop.permute.xlu1 %8160  ;;  %v16602_v59 = vld [vmem:[#allocation8_spill] sm:$0xff]  ;;  %v16604_v39 = vld [vmem:[#allocation43_spill] sm:$0xff] }
 0x9b4   :  { %16601 = vst [vmem:[#allocation119_spill] sm:$0xff] %v14602_v48  ;;  %7295 = vrot.lane.b32.xlu1 %v14575_v2, %s11419_s7  ;;  %v14613_v55 = vmul.f32 %v16602_v59, %v14369_v9  ;;  %v14617_v4 = vmul.f32 %v16604_v39, %v14377_v10  ;;  %v6729_v9 = vadd.f32 %v6693_v57, %v6620_v12  ;;  %v7100_v59 = vmul.f32 1.442695, %v7063_v24  ;;  %v11375_v24 = vld [vmem:[#allocation2] ss:$0 sm:$0xff] }
 0x9b5   :  { %v6378_v10 = vmul.f32 %v14019_v8, %v14288_v19  ;;  %v16608_v19 = vld [vmem:[#allocation9_spill] sm:$0xff]  ;;  %v14653_v12 = vmul.f32 %v13951_v58, %v14409_v34  ;;  %v7029_v37 = vadd.f32 %v16520_v14, %v14636_v20 }
 0x9b6   :  { %16603 = vst [vmem:[#allocation8_spill] sm:$0xff] %v14613_v55  ;;  %16605 = vst [vmem:[#allocation43_spill] sm:$0xff] %v14617_v4  ;;  %v14619_v48 = vpop.permute.xlu0 %5745  ;;  %v6464_v39 = vrot.slane %v14613_v55, 4  ;;  %v6466_v26 = vrot.slane %v14617_v4, 4  ;;  %10944 = vpow2.f32 %v7100_v59  ;;  %v14649_v51 = vmul.f32 %v16608_v19, %v14395_v56 }
 0x9b7   :  { %6532 = vrot.lane.b32.xlu0 %v6463_v33, %s11426_s1  ;;  %v14625_v11 = vpop.permute.xlu1 %5747  ;;  %v6771_v33 = vadd.f32 %v11375_v24, %v6729_v9  ;;  %v14643_v8 = vadd.f32 %v6378_v10, %v14001_v42  ;;  %16610 = vst [vmem:[#allocation120_spill] sm:$0xff] %v14653_v12  ;;  %10946 = vpow2.f32 %v7102_v28  ;;  %v6470_v34 = vrot.slane %v14653_v12, 4  ;;  %v16613_v24 = vld [vmem:[#allocation23_spill] sm:$0xff] }
 0x9b8   :  { %6530 = vrot.lane.b32.xlu1 %v6461_v1, %s11426_s1  ;;  %16609 = vst [vmem:[#allocation9_spill] sm:$0xff] %v14649_v51  ;;  %v6467_v17 = vsel %vm6018_vm11, %v6464_v39, %v6466_v26  ;;  %v6465_v9 = vsel %vm6018_vm11, %v6462_v40, %v6464_v39  ;;  %v6468_v58 = vrot.slane %v14649_v51, 4  ;;  %v7065_v28 = vsub.f32 0.0, %v7029_v37 }
 0x9b9   :  { %16607 = vst [vmem:[#allocation22_spill] sm:$0xff] %v14643_v8  ;;  %v6807_v56 = vsub.f32 0.0, %v6771_v33  ;;  %v7030_v59 = vadd.f32 %v16520_v14, %v14643_v8  ;;  %v6379_v19 = vmul.f32 %v16613_v24, %v14304_v62  ;;  %v14687_v62 = vmul.f32 %v13953_v54, %v14431_v6  ;;  %v16639_v8 = vld [vmem:[#allocation45_spill] sm:$0xff] }
 0x9ba   :  { %v14633_v23 = vpop.permute.xlu0 %6140  ;;  %v6471_v24 = vsel %vm6018_vm11, %v6468_v58, %v6470_v34 }
 0x9bb   :  { %7301 = vrot.lane.b32.xlu0 %v14617_v4, %s11419_s7  ;;  %v14640_v50 = vpop.permute.xlu1 %6142  ;;  %v6843_v39 = vmul.f32 1.442695, %v6807_v56  ;;  %v7066_v33 = vsub.f32 0.0, %v7030_v59  ;;  %v7104_v56 = vmul.f32 1.442695, %v7065_v28  ;;  %v14693_v59 = vadd.f32 %v13993_v35, %v6379_v19 }
 0x9bc   :  { %7299 = vrot.lane.b32.xlu1 %v14613_v55, %s11419_s7  ;;  %v6474_v28 = vrot.slane %v14687_v62, 4 }
 0x9bd   :  { %10948 = vpow2.f32 %v6843_v39  ;;  %v7106_v54 = vmul.f32 1.442695, %v7066_v33 }
 0x9be   :  { %v14655_v57 = vpop.permute.xlu0 %8185  ;;  %10950 = vpow2.f32 %v7104_v56 }
 0x9bf   :  { %16611 = vst [vmem:[#allocation121_spill] sm:$0xff] %v14655_v57  ;;  %6536 = vrot.lane.b32.xlu0 %v6467_v17, %s11426_s1  ;;  %v14661_v1 = vpop.permute.xlu1 %8170  ;;  %v6380_v17 = vmul.f32 %v14035_v43, %v14309_v36  ;;  %v6469_v43 = vsel %vm6018_vm11, %v6466_v26, %v6468_v58  ;;  %10952 = vpow2.f32 %v7106_v54  ;;  %v16622_v54 = vld [vmem:[#allocation11_spill] sm:$0xff] }
 0x9c0   :  { %16612 = vst [vmem:[#allocation122_spill] sm:$0xff] %v14661_v1  ;;  %6534 = vrot.lane.b32.xlu1 %v6465_v9, %s11426_s1  ;;  %v16614_v9 = vld [vmem:[#allocation10_spill] sm:$0xff] }
 0x9c1   :  { %v14683_v57 = vmul.f32 %v16614_v9, %v14423_v21  ;;  %16616 = vst [vmem:[#allocation10_spill] sm:$0xff] %v14687_v62  ;;  %v14701_v21 = vadd.f32 %v6380_v17, %v14021_v41  ;;  %v7031_v9 = vadd.f32 %v16520_v14, %v14693_v59  ;;  %v14719_v17 = vmul.f32 %v13955_v3, %v14445_v29 }
 0x9c2   :  { %v14669_v10 = vpop.permute.xlu0 %5749  ;;  %v6382_v29 = vmul.f32 %v14051_v32, %v14337_v44  ;;  %v16626_v32 = vld [vmem:[#allocation61_spill] sm:$0xff] }
 0x9c3   :  { %7305 = vrot.lane.b32.xlu0 %v14653_v12, %s11419_s7  ;;  %v14675_v40 = vpop.permute.xlu1 %5751  ;;  %16615 = vst [vmem:[#allocation23_spill] sm:$0xff] %v14683_v57  ;;  %v10945_v36 = vpop.eup %10944  ;;  %16617 = vst [vmem:[#allocation123_spill] sm:$0xff] %v14701_v21  ;;  %v6472_v6 = vrot.slane %v14683_v57, 4  ;;  %v7032_v33 = vadd.f32 %v16520_v14, %v14701_v21  ;;  %v16637_v21 = vld [vmem:[#allocation46_spill] sm:$0xff] }
 0x9c4   :  { %7303 = vrot.lane.b32.xlu1 %v14649_v51, %s11419_s7  ;;  %v10947_v26 = vpop.eup %10946  ;;  %v7171_v39 = vadd.f32 1.0, %v10945_v36  ;;  %16620 = vst [vmem:[#allocation126_spill] sm:$0xff] %v14719_v17  ;;  %v14749_v44 = vadd.f32 %v6382_v29, %v16626_v32 }
 0x9c5   :  { %v6475_v56 = vsel %vm6018_vm11, %v6472_v6, %v6474_v28  ;;  %v6473_v3 = vsel %vm6018_vm11, %v6470_v34, %v6472_v6 }
 0x9c6   :  { %v14689_v37 = vpop.permute.xlu0 %6144  ;;  %10954 = vrcp.f32 %v7171_v39 }
 0x9c7   :  { %6540 = vrot.lane.b32.xlu0 %v6471_v24, %s11426_s1  ;;  %v14696_v1 = vpop.permute.xlu1 %6146 }
 0x9c8   :  { %6538 = vrot.lane.b32.xlu1 %v6469_v43, %s11426_s1  ;;  %v7172_v43 = vadd.f32 1.0, %v10947_v26  ;;  %v6478_v26 = vrot.slane %v14719_v17, 4 }
 0x9ca   :  { %v14705_v19 = vpop.permute.xlu0 %8195  ;;  %10956 = vrcp.f32 %v7172_v43  ;;  %v10949_v39 = vpop.eup %10948 }
 0x9cb   :  { %16618 = vst [vmem:[#allocation124_spill] sm:$0xff] %v14705_v19  ;;  %7309 = vrot.lane.b32.xlu0 %v14687_v62, %s11419_s7  ;;  %v14711_v58 = vpop.permute.xlu1 %8180  ;;  %v7067_v19 = vsub.f32 0.0, %v7031_v9  ;;  %v7068_v9 = vsub.f32 0.0, %v7032_v33 }
 0x9cc   :  { %16619 = vst [vmem:[#allocation125_spill] sm:$0xff] %v14711_v58  ;;  %7307 = vrot.lane.b32.xlu1 %v14683_v57, %s11419_s7  ;;  %v16621_v58 = vld [vmem:[#allocation24_spill] sm:$0xff]  ;;  %v14729_v57 = vmul.f32 %v16622_v54, %v14439_v27  ;;  %v10951_v54 = vpop.eup %10950 }
 0x9cd   :  { %v6381_v36 = vmul.f32 %v16621_v58, %v14331_v52  ;;  %v7108_v58 = vmul.f32 1.442695, %v7067_v19  ;;  %v7110_v33 = vmul.f32 1.442695, %v7068_v9  ;;  %v16629_v9 = vld [vmem:[#allocation47_spill] sm:$0xff]  ;;  %v7173_v55 = vadd.f32 1.0, %v10951_v54 }
 0x9ce   :  { %v14721_v24 = vpop.permute.xlu0 %5753  ;;  %16623 = vst [vmem:[#allocation24_spill] sm:$0xff] %v14729_v57  ;;  %v6476_v34 = vrot.slane %v14729_v57, 4 }
 0x9cf   :  { %6544 = vrot.lane.b32.xlu0 %v6475_v56, %s11426_s1  ;;  %v14731_v51 = vpop.permute.xlu1 %5755  ;;  %v16624_v56 = vld [vmem:[#allocation60_spill] sm:$0xff]  ;;  %10958 = vpow2.f32 %v7108_v58 }
 0x9d0   :  { %6542 = vrot.lane.b32.xlu1 %v6473_v3, %s11426_s1  ;;  %v14741_v27 = vadd.f32 %v16624_v56, %v6381_v36  ;;  %v6479_v19 = vsel %vm6018_vm11, %v6476_v34, %v6478_v26  ;;  %v6477_v29 = vsel %vm6018_vm11, %v6474_v28, %v6476_v34  ;;  %10960 = vpow2.f32 %v7110_v33  ;;  %v16631_v58 = vld [vmem:[#allocation12_spill] sm:$0xff]  ;;  %v16633_v34 = vld [vmem:[#allocation97_spill] sm:$0xff] }
 0x9d1   :  { %v14771_v62 = vmul.f32 %v16631_v58, %v14455_v0  ;;  %v16636_v58 = vld [vmem:[#allocation63_spill] sm:$0xff] }
 0x9d2   :  { %v14738_v52 = vpop.permute.xlu0 %6148  ;;  %16625 = vst [vmem:[#allocation11_spill] sm:$0xff] %v14741_v27  ;;  %v7033_v36 = vadd.f32 %v16520_v14, %v14741_v27 }
 0x9d3   :  { %7313 = vrot.lane.b32.xlu0 %v14719_v17, %s11419_s7  ;;  %v14746_v6 = vpop.permute.xlu1 %6150  ;;  %v6915_v17 = vadd.f32 1.0, %v10949_v39  ;;  %16632 = vst [vmem:[#allocation12_spill] sm:$0xff] %v14771_v62  ;;  %v16634_v39 = vld [vmem:[#allocation25_spill] sm:$0xff] }
 0x9d4   :  { %7311 = vrot.lane.b32.xlu1 %v14729_v57, %s11419_s7  ;;  %v7034_v57 = vadd.f32 %v16520_v14, %v14749_v44  ;;  %v7069_v28 = vsub.f32 0.0, %v7033_v36  ;;  %v6383_v12 = vmul.f32 %v16634_v39, %v16633_v34  ;;  %v6480_v36 = vrot.slane %v14771_v62, 4 }
 0x9d5   :  { %10962 = vrcp.f32 %v6915_v17 }
 0x9d6   :  { %v14753_v43 = vpop.permute.xlu0 %8205  ;;  %10964 = vrcp.f32 %v7173_v55  ;;  %v7112_v39 = vmul.f32 1.442695, %v7069_v28  ;;  %v14790_v56 = vadd.f32 %v16637_v21, %v6383_v12  ;;  %v16647_v21 = vld [vmem:[#allocation26_spill] sm:$0xff] }
 0x9d7   :  { %16627 = vst [vmem:[#allocation61_spill] sm:$0xff] %v14753_v43  ;;  %6548 = vrot.lane.b32.xlu0 %v6479_v19, %s11426_s1  ;;  %v14759_v3 = vpop.permute.xlu1 %8190  ;;  %v14766_v43 = vmul.f32 %v16629_v9, %v14457_v53  ;;  %v16635_v9 = vld [vmem:[#allocation99_spill] sm:$0xff] }
 0x9d8   :  { %16628 = vst [vmem:[#allocation127_spill] sm:$0xff] %v14759_v3  ;;  %6546 = vrot.lane.b32.xlu1 %v6477_v29, %s11426_s1  ;;  %v10953_v3 = vpop.eup %10952  ;;  %v7070_v29 = vsub.f32 0.0, %v7034_v57  ;;  %v6384_v4 = vmul.f32 %v16636_v58, %v16635_v9  ;;  %16638 = vst [vmem:[#allocation97_spill] sm:$0xff] %v14790_v56  ;;  %v7035_v55 = vadd.f32 %v16520_v14, %v14790_v56 }
 0x9d9   :  { %16630 = vst [vmem:[#allocation47_spill] sm:$0xff] %v14766_v43  ;;  %v10955_v0 = vpop.eup %10954  ;;  %v7174_v33 = vadd.f32 1.0, %v10953_v3  ;;  %v6482_v54 = vrot.slane %v14766_v43, 4 }
 0x9da   :  { %v14773_v19 = vpop.permute.xlu0 %5757  ;;  %v10957_v57 = vpop.eup %10956  ;;  %v7114_v3 = vmul.f32 1.442695, %v7070_v29  ;;  %v14795_v9 = vadd.f32 %v6384_v4, %v16639_v8  ;;  %v16644_v4 = vld [vmem:[#allocation48_spill] sm:$0xff] }
 0x9db   :  { %7317 = vrot.lane.b32.xlu0 %v14766_v43, %s11419_s7  ;;  %v14779_v53 = vpop.permute.xlu1 %5759  ;;  %10966 = vrcp.f32 %v7174_v33  ;;  %v16643_v33 = vmov 0   ;;  %v14809_v29 = vmul.f32 %v16644_v4, %v14482_v22  ;;  %v7071_v43 = vsub.f32 0.0, %v7035_v55  ;;  %v16651_v55 = vld [vmem:[#allocation65_spill] sm:$0xff] }
 0x9dc   :  { %7315 = vrot.lane.b32.xlu1 %v14771_v62, %s11419_s7  ;;  %16640 = vst [vmem:[#allocation25_spill] sm:$0xff] %v14795_v9  ;;  %v6483_v62 = vsel %vm6018_vm11, %v6480_v36, %v6482_v54  ;;  %10968 = vpow2.f32 %v7112_v39  ;;  %v10959_v12 = vpop.eup %10958  ;;  %v7036_v39 = vadd.f32 %v16520_v14, %v14795_v9 }
 0x9dd   :  { %16645 = vst [vmem:[#allocation48_spill] sm:$0xff] %v14809_v29  ;;  %10970 = vpow2.f32 %v7114_v3 }
 0x9de   :  { %v14787_v34 = vpop.permute.xlu0 %6152  ;;  %v7072_v4 = vsub.f32 0.0, %v7036_v39  ;;  %v16654_v39 = vld [vmem:[#allocation66_spill] sm:$0xff] }
 0x9df   :  { %8341 = vperm.xlu0 %10726, %v10955_v0   ;;  %v14792_v17 = vpop.permute.xlu1 %6154  ;;  %v6481_v0 = vsel %vm6018_vm11, %v6478_v26, %v6480_v36  ;;  %v16648_v36 = vld [vmem:[#allocation13_spill] sm:$0xff] }
 0x9e0   :  { %8346 = vperm.xlu1 %10727, %v10957_v57  }
 0x9e2   :  { %v14797_v58 = vpop.permute.xlu0 %8215 }
 0x9e3   :  { %16641 = vst [vmem:[#allocation99_spill] sm:$0xff] %v14797_v58  ;;  %6552 = vrot.lane.b32.xlu0 %v6483_v62, %s11426_s1  ;;  %v14803_v28 = vpop.permute.xlu1 %8200  ;;  %v10961_v62 = vpop.eup %10960  ;;  %v7175_v58 = vadd.f32 1.0, %v10959_v12  ;;  %v16650_v12 = vld [vmem:[#allocation103_spill] sm:$0xff] }
 0x9e4   :  { %16642 = vst [vmem:[#allocation63_spill] sm:$0xff] %v14803_v28  ;;  %10728 = vset.pattern.permute.xlu0 %v16643_v33  ;;  %6550 = vrot.lane.b32.xlu1 %v6481_v0, %s11426_s1  ;;  %v16646_v28 = vld [vmem:[#allocation101_spill] sm:$0xff]  ;;  %v14820_v33 = vmul.f32 %v16648_v36, %v14478_v47  ;;  %v10963_v3 = vpop.eup %10962  ;;  %v7176_v0 = vadd.f32 1.0, %v10961_v62  ;;  %v6386_v9 = vmul.f32 %v16651_v55, %v16650_v12  ;;  %v16652_v47 = vld [vmem:[#allocation62_spill] sm:$0xff]  ;;  %v7118_v62 = vmul.f32 1.442695, %v7072_v4 }
 0x9e5   :  { %v6385_v26 = vmul.f32 %v16647_v21, %v16646_v28  ;;  %10972 = vrcp.f32 %v7175_v58  ;;  %v7116_v21 = vmul.f32 1.442695, %v7071_v43  ;;  %v10965_v36 = vpop.eup %10964  ;;  %v6486_v58 = vrot.slane %v14809_v29, 4  ;;  %v16658_v4 = vld [vmem:[#allocation105_spill] sm:$0xff] }
 0x9e6   :  { %v14814_v57 = vpop.permute.xlu0 %5761  ;;  %16649 = vst [vmem:[#allocation101_spill] sm:$0xff] %v14820_v33  ;;  %v6484_v8 = vrot.slane %v14820_v33, 4  ;;  %10974 = vrcp.f32 %v7176_v0  ;;  %v14839_v27 = vadd.f32 %v6386_v9, %v16654_v39  ;;  %v16659_v9 = vld [vmem:[#allocation27_spill] sm:$0xff] }
 0x9e7   :  { %7321 = vrot.lane.b32.xlu0 %v14809_v29, %s11419_s7  ;;  %v14824_v22 = vpop.permute.xlu1 %5763  ;;  %v14833_v28 = vadd.f32 %v16652_v47, %v6385_v26  ;;  %10976 = vpow2.f32 %v7116_v21  ;;  %v16661_v29 = vld [vmem:[#allocation14_spill] sm:$0xff] }
 0x9e8   :  { %7319 = vrot.lane.b32.xlu1 %v14820_v33, %s11419_s7  ;;  %16655 = vst [vmem:[#allocation13_spill] sm:$0xff] %v14839_v27  ;;  %v10967_v55 = vpop.eup %10966  ;;  %v6485_v0 = vsel %vm6018_vm11, %v6482_v54, %v6484_v8  ;;  %10978 = vpow2.f32 %v7118_v62  ;;  %v7038_v21 = vadd.f32 %v16520_v14, %v14839_v27  ;;  %v6487_v54 = vsel %vm6018_vm11, %v6484_v8, %v6486_v58 }
 0x9e9   :  { %v7037_v43 = vadd.f32 %v16520_v14, %v14833_v28  ;;  %v10969_v26 = vpop.eup %10968 }
 0x9ea   :  { %v14830_v56 = vpop.permute.xlu0 %6156  ;;  %v7177_v33 = vadd.f32 1.0, %v10969_v26  ;;  %v7074_v26 = vsub.f32 0.0, %v7038_v21 }
 0x9eb   :  { %8552 = vperm.xlu0 %10728, %v10963_v3   ;;  %v14836_v35 = vpop.permute.xlu1 %8210 }
 0x9ec   :  { %16653 = vst [vmem:[#allocation26_spill] sm:$0xff] %v14836_v35  ;;  %8351 = vperm.xlu1 %10727, %v10965_v36   ;;  %v6387_v36 = vmul.f32 %v16659_v9, %v16658_v4  ;;  %v10971_v35 = vpop.eup %10970  ;;  %v16665_v4 = vld [vmem:[#allocation68_spill] sm:$0xff]  ;;  %10980 = vrcp.f32 %v7177_v33  ;;  %v7122_v33 = vmul.f32 1.442695, %v7074_v26 }
 0x9ed   :  { %v6388_v9 = vmul.f32 %v16665_v4, %v14421_v15  ;;  %v16670_v15 = vld [vmem:[#allocation69_spill] sm:$0xff] }
 0x9ee   :  { %v14841_v12 = vpop.permute.xlu0 %8225 }
 0x9ef   :  { %16656 = vst [vmem:[#allocation103_spill] sm:$0xff] %v14841_v12  ;;  %10729 = vset.pattern.permute.xlu0 %v16574_v25  ;;  %v14847_v3 = vpop.permute.xlu1 %8220  ;;  %v7073_v25 = vsub.f32 0.0, %v7037_v43  ;;  %v7178_v43 = vadd.f32 1.0, %v10971_v35  ;;  %v14886_v21 = vadd.f32 %v6388_v9, %v16670_v15 }
 0x9f0   :  { %16657 = vst [vmem:[#allocation65_spill] sm:$0xff] %v14847_v3  ;;  %8356 = vperm.xlu0 %10729, %v10967_v55   ;;  %6554 = vrot.lane.b32.xlu1 %v6485_v0, %s11426_s1  ;;  %v14859_v3 = vmul.f32 %v16661_v29, %v14521_v18  ;;  %v16664_v0 = vld [vmem:[#allocation64_spill] sm:$0xff]  ;;  %v16666_v18 = vld [vmem:[#allocation51_spill] sm:$0xff] }
 0x9f1   :  { %v14866_v62 = vadd.f32 %v16664_v0, %v6387_v36  ;;  %v14874_v29 = vmul.f32 %v16666_v18, %v14525_v49  ;;  %16671 = vst [vmem:[#allocation51_spill] sm:$0xff] %v14886_v21  ;;  %v16672_v49 = vld [vmem:[#allocation28_spill] sm:$0xff]  ;;  %10982 = vrcp.f32 %v7178_v43  ;;  %v7040_v0 = vadd.f32 %v16520_v14, %v14886_v21 }
 0x9f2   :  { %v14855_v12 = vpop.permute.xlu0 %8235  ;;  %16662 = vst [vmem:[#allocation66_spill] sm:$0xff] %v14859_v3  ;;  %v6488_v36 = vrot.slane %v14859_v3, 4  ;;  %v6389_v4 = vmul.f32 %v16672_v49, %v14433_v7  ;;  %v16675_v7 = vld [vmem:[#allocation67_spill] sm:$0xff] }
 0x9f3   :  { %16660 = vst [vmem:[#allocation62_spill] sm:$0xff] %v14855_v12  ;;  %v14862_v55 = vpop.permute.xlu1 %8230  ;;  %16667 = vst [vmem:[#allocation27_spill] sm:$0xff] %v14874_v29  ;;  %v7039_v35 = vadd.f32 %v16520_v14, %v14866_v62 }
 0x9f4   :  { %16663 = vst [vmem:[#allocation105_spill] sm:$0xff] %v14862_v55  ;;  %6556 = vrot.lane.b32.xlu0 %v6487_v54, %s11426_s1  ;;  %7323 = vrot.lane.b32.xlu1 %v14859_v3, %s11419_s7  ;;  %v7120_v55 = vmul.f32 1.442695, %v7073_v25  ;;  %v10973_v54 = vpop.eup %10972  ;;  %v6489_v27 = vsel %vm6018_vm11, %v6486_v58, %v6488_v36  ;;  %v16679_v58 = vld [vmem:[#allocation15_spill] sm:$0xff] }
 0x9f5   :  { %v10975_v18 = vpop.eup %10974  ;;  %v7075_v9 = vsub.f32 0.0, %v7039_v35 }
 0x9f6   :  { %v14876_v8 = vpop.permute.xlu0 %8245  ;;  %10984 = vpow2.f32 %v7120_v55  ;;  %v16677_v55 = vld [vmem:[#allocation70_spill] sm:$0xff] }
 0x9f7   :  { %16668 = vst [vmem:[#allocation14_spill] sm:$0xff] %v14876_v8  ;;  %v14879_v12 = vpop.permute.xlu1 %8240  ;;  %v10977_v8 = vpop.eup %10976  ;;  %10986 = vpow2.f32 %v7122_v33  ;;  %v6390_v43 = vmul.f32 %v16677_v55, %v14437_v46  ;;  %v7076_v33 = vsub.f32 0.0, %v7040_v0 }
 0x9f8   :  { %16669 = vst [vmem:[#allocation68_spill] sm:$0xff] %v14879_v12  ;;  %7325 = vrot.lane.b32.xlu0 %v14874_v29, %s11419_s7  ;;  %8361 = vperm.xlu1 %10727, %v10973_v54   ;;  %v6490_v12 = vrot.slane %v14874_v29, 4  ;;  %v14899_v54 = vadd.f32 %v16675_v7, %v6389_v4  ;;  %v10979_v49 = vpop.eup %10978  ;;  %v16719_v7 = vld [vmem:[#allocation83_spill] sm:$0xff] }
 0x9fa   :  { %v14890_v25 = vpop.permute.xlu0 %8255  ;;  %16676 = vst [vmem:[#allocation128_spill] sm:$0xff] %v14899_v54  ;;  %v6491_v35 = vsel %vm6018_vm11, %v6488_v36, %v6490_v12  ;;  %v7041_v46 = vadd.f32 %v16520_v14, %v14899_v54  ;;  %v16684_v36 = vld [vmem:[#allocation72_spill] sm:$0xff] }
 0x9fb   :  { %16673 = vst [vmem:[#allocation69_spill] sm:$0xff] %v14890_v25  ;;  %v14893_v3 = vpop.permute.xlu1 %8250  ;;  %v16681_v25 = vld [vmem:[#allocation29_spill] sm:$0xff] }
 0x9fc   :  { %16674 = vst [vmem:[#allocation28_spill] sm:$0xff] %v14893_v3  ;;  %8366 = vperm.xlu0 %10729, %v10975_v18   ;;  %6558 = vrot.lane.b32.xlu1 %v6489_v27, %s11426_s1  ;;  %v7179_v3 = vadd.f32 1.0, %v10977_v8  ;;  %v14908_v18 = vmul.f32 %v16679_v58, %v14560_v31  ;;  %v6391_v4 = vmul.f32 %v16681_v25, %v14443_v38  ;;  %v7124_v27 = vmul.f32 1.442695, %v7075_v9  ;;  %v16683_v8 = vld [vmem:[#allocation73_spill] sm:$0xff]  ;;  %v16686_v38 = vld [vmem:[#allocation31_spill] sm:$0xff] }
 0x9fd   :  { %v6392_v55 = vmul.f32 %v16683_v8, %v14449_v30  ;;  %v7180_v31 = vadd.f32 1.0, %v10979_v49  ;;  %v14923_v58 = vadd.f32 %v6390_v43, %v16684_v36  ;;  %v6393_v25 = vmul.f32 %v16686_v38, %v14459_v16  ;;  %v16693_v38 = vld [vmem:[#allocation77_spill] sm:$0xff] }
 0x9fe   :  { %v14904_v26 = vpop.permute.xlu0 %8265  ;;  %16680 = vst [vmem:[#allocation15_spill] sm:$0xff] %v14908_v18  ;;  %10988 = vrcp.f32 %v7179_v3  ;;  %v6492_v8 = vrot.slane %v14908_v18, 4  ;;  %v7126_v16 = vmul.f32 1.442695, %v7076_v33  ;;  %v7077_v43 = vsub.f32 0.0, %v7041_v46 }
 0x9ff   :  { %16678 = vst [vmem:[#allocation70_spill] sm:$0xff] %v14904_v26  ;;  %v14913_v29 = vpop.permute.xlu1 %8260  ;;  %16685 = vst [vmem:[#allocation73_spill] sm:$0xff] %v14923_v58  ;;  %v16690_v26 = vld [vmem:[#allocation71_spill] sm:$0xff]  ;;  %10990 = vpow2.f32 %v7124_v27  ;;  %v7042_v3 = vadd.f32 %v16520_v14, %v14923_v58 }
 0xa00   :  { %16682 = vst [vmem:[#allocation29_spill] sm:$0xff] %v14913_v29  ;;  %6560 = vrot.lane.b32.xlu0 %v6491_v35, %s11426_s1  ;;  %7327 = vrot.lane.b32.xlu1 %v14908_v18, %s11419_s7  ;;  %v16687_v35 = vld [vmem:[#allocation50_spill] sm:$0xff]  ;;  %v10981_v29 = vpop.eup %10980  ;;  %v14934_v30 = vadd.f32 %v16690_v26, %v6391_v4  ;;  %10992 = vrcp.f32 %v7180_v31  ;;  %v16695_v4 = vld [vmem:[#allocation75_spill] sm:$0xff]  ;;  %v7128_v31 = vmul.f32 1.442695, %v7077_v43  ;;  %v16704_v43 = vld [vmem:[#allocation16_spill] sm:$0xff] }
 0xa01   :  { %v14929_v9 = vmul.f32 %v16687_v35, %v14566_v63  ;;  %v14942_v63 = vadd.f32 %v6392_v55, %v16693_v38  ;;  %v14947_v35 = vadd.f32 %v16695_v4, %v6393_v25  ;;  %v10983_v26 = vpop.eup %10982  ;;  %v6493_v55 = vsel %vm6018_vm11, %v6490_v12, %v6492_v8  ;;  %v16703_v12 = vld [vmem:[#allocation32_spill] sm:$0xff] }
 0xa02   :  { %v14931_v0 = vpop.permute.xlu0 %8275  ;;  %16691 = vst [vmem:[#allocation50_spill] sm:$0xff] %v14934_v30  ;;  %v7043_v46 = vadd.f32 %v16520_v14, %v14934_v30  ;;  %10994 = vpow2.f32 %v7126_v16 }
 0xa03   :  { %16688 = vst [vmem:[#allocation72_spill] sm:$0xff] %v14929_v9  ;;  %16689 = vst [vmem:[#allocation31_spill] sm:$0xff] %v14931_v0  ;;  %v14937_v49 = vpop.permute.xlu1 %8270  ;;  %v16697_v0 = vld [vmem:[#allocation74_spill] sm:$0xff]  ;;  %v6494_v27 = vrot.slane %v14929_v9, 4  ;;  %v10985_v33 = vpop.eup %10984  ;;  %v7044_v25 = vadd.f32 %v16520_v14, %v14942_v63  ;;  %10996 = vpow2.f32 %v7128_v31  ;;  %v16711_v31 = vld [vmem:[#allocation111_spill] sm:$0xff] }
 0xa04   :  { %16692 = vst [vmem:[#allocation129_spill] sm:$0xff] %v14937_v49  ;;  %7329 = vrot.lane.b32.xlu0 %v14929_v9, %s11419_s7  ;;  %16694 = vst [vmem:[#allocation130_spill] sm:$0xff] %v14942_v63  ;;  %8371 = vperm.xlu1 %10727, %v10981_v29   ;;  %v6394_v49 = vmul.f32 %v16697_v0, %v14463_v13  ;;  %v7078_v13 = vsub.f32 0.0, %v7042_v3  ;;  %v7045_v0 = vadd.f32 %v16520_v14, %v14947_v35 }
 0xa05   :  { %16696 = vst [vmem:[#allocation131_spill] sm:$0xff] %v14947_v35  ;;  %v7181_v58 = vadd.f32 1.0, %v10985_v33  ;;  %v14973_v63 = vmul.f32 %v16704_v43, %v14619_v48  ;;  %v6495_v16 = vsel %vm6018_vm11, %v6492_v8, %v6494_v27  ;;  %v7079_v3 = vsub.f32 0.0, %v7043_v46  ;;  %v16707_v48 = vld [vmem:[#allocation49_spill] sm:$0xff]  ;;  %v16709_v43 = vld [vmem:[#allocation79_spill] sm:$0xff] }
 0xa06   :  { %v14951_v18 = vpop.permute.xlu0 %8285  ;;  %v7130_v46 = vmul.f32 1.442695, %v7078_v13  ;;  %v16716_v13 = vld [vmem:[#allocation78_spill] sm:$0xff] }
 0xa07   :  { %16698 = vst [vmem:[#allocation74_spill] sm:$0xff] %v14951_v18  ;;  %v14956_v29 = vpop.permute.xlu1 %8280  ;;  %v16700_v18 = vld [vmem:[#allocation81_spill] sm:$0xff]  ;;  %16705 = vst [vmem:[#allocation32_spill] sm:$0xff] %v14973_v63  ;;  %10998 = vrcp.f32 %v7181_v58  ;;  %v16715_v58 = vld [vmem:[#allocation115_spill] sm:$0xff] }
 0xa08   :  { %16699 = vst [vmem:[#allocation132_spill] sm:$0xff] %v14956_v29  ;;  %8376 = vperm.xlu0 %10729, %v10983_v26   ;;  %6562 = vrot.lane.b32.xlu1 %v6493_v55, %s11426_s1  ;;  %v14965_v9 = vadd.f32 %v6394_v49, %v16700_v18  ;;  %v10987_v29 = vpop.eup %10986  ;;  %v6395_v26 = vmul.f32 %v16703_v12, %v14495_v60  ;;  %v7080_v49 = vsub.f32 0.0, %v7044_v25  ;;  %v16712_v25 = vld [vmem:[#allocation76_spill] sm:$0xff]  ;;  %v16714_v18 = vld [vmem:[#allocation34_spill] sm:$0xff] }
 0xa09   :  { %v7182_v33 = vadd.f32 1.0, %v10987_v29  ;;  %v14985_v12 = vmul.f32 %v16707_v48, %v14625_v11  ;;  %v7132_v29 = vmul.f32 1.442695, %v7079_v3 }
 0xa0a   :  { %16701 = vst [vmem:[#allocation133_spill] sm:$0xff] %v14965_v9  ;;  %v14967_v4 = vpop.permute.xlu0 %8295  ;;  %v7046_v60 = vadd.f32 %v16520_v14, %v14965_v9  ;;  %v6496_v9 = vrot.slane %v14973_v63, 4  ;;  %v7134_v11 = vmul.f32 1.442695, %v7080_v49 }
 0xa0b   :  { %16702 = vst [vmem:[#allocation134_spill] sm:$0xff] %v14967_v4  ;;  %v14976_v55 = vpop.permute.xlu1 %8290  ;;  %v7081_v4 = vsub.f32 0.0, %v7045_v0  ;;  %16708 = vst [vmem:[#allocation49_spill] sm:$0xff] %v14985_v12  ;;  %v10989_v35 = vpop.eup %10988  ;;  %v16713_v0 = vld [vmem:[#allocation114_spill] sm:$0xff]  ;;  %11000 = vrcp.f32 %v7182_v33  ;;  %v6498_v49 = vrot.slane %v14985_v12, 4  ;;  %v16721_v33 = vld [vmem:[#allocation89_spill] sm:$0xff] }
 0xa0c   :  { %16706 = vst [vmem:[#allocation16_spill] sm:$0xff] %v14976_v55  ;;  %6564 = vrot.lane.b32.xlu0 %v6495_v16, %s11426_s1  ;;  %7331 = vrot.lane.b32.xlu1 %v14973_v63, %s11419_s7  ;;  %v14990_v16 = vadd.f32 %v16709_v43, %v6395_v26  ;;  %v6396_v55 = vmul.f32 %v16712_v25, %v16711_v31  ;;  %v10991_v48 = vpop.eup %10990  ;;  %v7082_v25 = vsub.f32 0.0, %v7046_v60  ;;  %11002 = vpow2.f32 %v7130_v46 }
 0xa0d   :  { %v6397_v21 = vmul.f32 %v16714_v18, %v16713_v0  ;;  %v6398_v26 = vmul.f32 %v16716_v13, %v16715_v58  ;;  %v7136_v31 = vmul.f32 1.442695, %v7081_v4  ;;  %v10993_v43 = vpop.eup %10992  ;;  %v16717_v0 = vld [vmem:[#allocation85_spill] sm:$0xff]  ;;  %11004 = vpow2.f32 %v7132_v29  ;;  %v16723_v13 = vld [vmem:[#allocation36_spill] sm:$0xff] }
 0xa0e   :  { %v14987_v8 = vpop.permute.xlu0 %7281  ;;  %16710 = vst [vmem:[#allocation135_spill] sm:$0xff] %v14990_v16  ;;  %v7047_v18 = vadd.f32 %v16520_v14, %v14990_v16  ;;  %v15008_v63 = vadd.f32 %v6396_v55, %v16717_v0  ;;  %v6497_v4 = vsel %vm6018_vm11, %v6494_v27, %v6496_v9  ;;  %11006 = vpow2.f32 %v7134_v11  ;;  %v16732_v0 = vld [vmem:[#allocation92_spill] sm:$0xff] }
 0xa0f   :  { %v14997_v30 = vpop.permute.xlu1 %7279  ;;  %v15012_v58 = vadd.f32 %v16719_v7, %v6397_v21  ;;  %v15018_v60 = vadd.f32 %v6398_v26, %v16721_v33  ;;  %v7183_v46 = vadd.f32 1.0, %v10991_v48  ;;  %11008 = vpow2.f32 %v7136_v31  ;;  %v10995_v21 = vpop.eup %10994  ;;  %v16730_v33 = vld [vmem:[#allocation80_spill] sm:$0xff] }
 0xa10   :  { %7333 = vrot.lane.b32.xlu0 %v14985_v12, %s11419_s7  ;;  %8381 = vperm.xlu1 %10727, %v10989_v35   ;;  %16718 = vst [vmem:[#allocation111_spill] sm:$0xff] %v15008_v63  ;;  %v7138_v55 = vmul.f32 1.442695, %v7082_v25  ;;  %v6399_v29 = vmul.f32 %v16723_v13, %v14581_v5  ;;  %v7083_v7 = vsub.f32 0.0, %v7047_v18  ;;  %v7048_v27 = vadd.f32 %v16520_v14, %v15008_v63  ;;  %v10997_v25 = vpop.eup %10996 }
 0xa11   :  { %16720 = vst [vmem:[#allocation76_spill] sm:$0xff] %v15012_v58  ;;  %16722 = vst [vmem:[#allocation114_spill] sm:$0xff] %v15018_v60  ;;  %v6499_v26 = vsel %vm6018_vm11, %v6496_v9, %v6498_v49  ;;  %v7049_v48 = vadd.f32 %v16520_v14, %v15012_v58  ;;  %v7050_v5 = vadd.f32 %v16520_v14, %v15018_v60  ;;  %11010 = vrcp.f32 %v7183_v46  ;;  %v16728_v9 = vld [vmem:[#allocation52_spill] sm:$0xff] }
 0xa12   :  { %v15003_v3 = vpop.permute.xlu0 %6516  ;;  %v7184_v18 = vadd.f32 1.0, %v10995_v21  ;;  %v15046_v13 = vmul.f32 %v16728_v9, %v14675_v40  ;;  %11012 = vpow2.f32 %v7138_v55  ;;  %v7084_v63 = vsub.f32 0.0, %v7048_v27  ;;  %v16731_v55 = vld [vmem:[#allocation37_spill] sm:$0xff]  ;;  %v16735_v9 = vld [vmem:[#allocation91_spill] sm:$0xff] }
 0xa13   :  { %v15014_v35 = vpop.permute.xlu1 %6514  ;;  %v7085_v60 = vsub.f32 0.0, %v7049_v48  ;;  %v6400_v16 = vmul.f32 %v16730_v33, %v14588_v61  ;;  %v7185_v40 = vadd.f32 1.0, %v10997_v25  ;;  %v6401_v27 = vmul.f32 %v16731_v55, %v14633_v23  ;;  %v16734_v23 = vld [vmem:[#allocation82_spill] sm:$0xff] }
 0xa14   :  { %8386 = vperm.xlu0 %10729, %v10993_v43   ;;  %6566 = vrot.lane.b32.xlu1 %v6497_v4, %s11426_s1  ;;  %v16724_v43 = vld [vmem:[#allocation17_spill] sm:$0xff]  ;;  %16729 = vst [vmem:[#allocation78_spill] sm:$0xff] %v15046_v13  ;;  %v10999_v58 = vpop.eup %10998  ;;  %11014 = vrcp.f32 %v7184_v18  ;;  %v7142_v33 = vmul.f32 1.442695, %v7084_v63  ;;  %v6402_v55 = vmul.f32 %v16734_v23, %v14640_v50  ;;  %v16740_v50 = vrot.slane %v15046_v13, 4 }
 0xa15   :  { %v15029_v11 = vmul.f32 %v16724_v43, %v14669_v10  ;;  %v16726_v10 = vld [vmem:[#allocation87_spill] sm:$0xff] }
 0xa16   :  { %v15023_v12 = vpop.permute.xlu0 %7285  ;;  %v15042_v4 = vadd.f32 %v16726_v10, %v6399_v29  ;;  %v7086_v29 = vsub.f32 0.0, %v7050_v5  ;;  %v7144_v10 = vmul.f32 1.442695, %v7085_v60  ;;  %v15065_v5 = vadd.f32 %v6400_v16, %v16732_v0  ;;  %v16737_v16 = vld [vmem:[#allocation39_spill] sm:$0xff] }
 0xa17   :  { %16725 = vst [vmem:[#allocation34_spill] sm:$0xff] %v15029_v11  ;;  %v15034_v31 = vpop.permute.xlu1 %7283  ;;  %v6500_v46 = vrot.slane %v15029_v11, 4  ;;  %v15074_v60 = vadd.f32 %v16735_v9, %v6401_v27  ;;  %v6403_v0 = vmul.f32 %v16737_v16, %v14689_v37 }
 0xa18   :  { %6568 = vrot.lane.b32.xlu0 %v6499_v26, %s11426_s1  ;;  %7335 = vrot.lane.b32.xlu1 %v15029_v11, %s11419_s7  ;;  %16727 = vst [vmem:[#allocation115_spill] sm:$0xff] %v15042_v4  ;;  %v7140_v26 = vmul.f32 1.442695, %v7083_v7  ;;  %v7051_v7 = vadd.f32 %v16520_v14, %v15042_v4  ;;  %v11001_v61 = vpop.eup %11000  ;;  %16733 = vst [vmem:[#allocation36_spill] sm:$0xff] %v15065_v5  ;;  %v7146_v4 = vmul.f32 1.442695, %v7086_v29 }
 0xa19   :  { %v11003_v11 = vpop.eup %11002  ;;  %v6501_v25 = vsel %vm6018_vm11, %v6498_v49, %v6500_v46  ;;  %16736 = vst [vmem:[#allocation17_spill] sm:$0xff] %v15074_v60  ;;  %v16738_v29 = vld [vmem:[#allocation18_spill] sm:$0xff]  ;;  %v7052_v27 = vadd.f32 %v16520_v14, %v15065_v5 }
 0xa1a   :  { %v15048_v43 = vpop.permute.xlu0 %6520  ;;  %11016 = vpow2.f32 %v7140_v26  ;;  %v11005_v18 = vpop.eup %11004  ;;  %v7087_v26 = vsub.f32 0.0, %v7051_v7  ;;  %v15082_v54 = vmul.f32 %v16738_v29, %v14721_v24  ;;  %v16743_v24 = vld [vmem:[#allocation84_spill] sm:$0xff]  ;;  %v16746_v29 = vld [vmem:[#allocation53_spill] sm:$0xff] }
 0xa1b   :  { %v15053_v21 = vpop.permute.xlu1 %6518  ;;  %v11007_v63 = vpop.eup %11006  ;;  %11018 = vrcp.f32 %v7185_v40  ;;  %v6503_v40 = vsel %vm6018_vm11, %v6500_v46, %v16740_v50  ;;  %v7187_v7 = vadd.f32 1.0, %v11005_v18  ;;  %v6404_v23 = vmul.f32 %v16743_v24, %v14696_v1  ;;  %v16744_v18 = vld [vmem:[#allocation93_spill] sm:$0xff] }
 0xa1c   :  { %7337 = vrot.lane.b32.xlu0 %v15046_v13, %s11419_s7  ;;  %8391 = vperm.xlu1 %10727, %v10999_v58   ;;  %v11009_v49 = vpop.eup %11008  ;;  %11020 = vpow2.f32 %v7142_v33  ;;  %16739 = vst [vmem:[#allocation52_spill] sm:$0xff] %v15082_v54  ;;  %v7188_v37 = vadd.f32 1.0, %v11007_v63  ;;  %v7148_v46 = vmul.f32 1.442695, %v7087_v26  ;;  %v15102_v16 = vadd.f32 %v16744_v18, %v6403_v0  ;;  %v16747_v24 = vld [vmem:[#allocation41_spill] sm:$0xff]  ;;  %v16748_v0 = vld [vmem:[#allocation96_spill] sm:$0xff] }
 0xa1d   :  { %11022 = vpow2.f32 %v7144_v10  ;;  %v7053_v10 = vadd.f32 %v16520_v14, %v15074_v60  ;;  %v15106_v63 = vmul.f32 %v16746_v29, %v14731_v51  ;;  %v7189_v50 = vadd.f32 1.0, %v11009_v49  ;;  %v16750_v49 = vld [vmem:[#allocation86_spill] sm:$0xff] }
 0xa1e   :  { %v15061_v48 = vpop.permute.xlu0 %7289  ;;  %11024 = vpow2.f32 %v7146_v4  ;;  %16745 = vst [vmem:[#allocation37_spill] sm:$0xff] %v15102_v16  ;;  %v6504_v26 = vrot.slane %v15082_v54, 4  ;;  %v6405_v5 = vmul.f32 %v16747_v24, %v14738_v52  ;;  %v7055_v52 = vadd.f32 %v16520_v14, %v15102_v16 }
 0xa1f   :  { %v15067_v58 = vpop.permute.xlu1 %7287 }
 0xa20   :  { %8396 = vperm.xlu0 %10729, %v11001_v61   ;;  %6570 = vrot.lane.b32.xlu1 %v6501_v25, %s11426_s1  ;;  %v7186_v61 = vadd.f32 1.0, %v11003_v11  ;;  %v16741_v11 = vld [vmem:[#allocation94_spill] sm:$0xff] }
 0xa21   :  { %v15093_v33 = vadd.f32 %v6402_v55, %v16741_v11  ;;  %v11011_v55 = vpop.eup %11010 }
 0xa22   :  { %v15078_v38 = vpop.permute.xlu0 %6524  ;;  %11026 = vrcp.f32 %v7186_v61  ;;  %v11013_v1 = vpop.eup %11012  ;;  %v15120_v61 = vadd.f32 %v6404_v23, %v16748_v0  ;;  %v16751_v0 = vld [vmem:[#allocation95_spill] sm:$0xff] }
 0xa23   :  { %v15089_v25 = vpop.permute.xlu1 %6522  ;;  %16742 = vst [vmem:[#allocation80_spill] sm:$0xff] %v15093_v33  ;;  %11028 = vrcp.f32 %v7187_v7  ;;  %v7054_v51 = vadd.f32 %v16520_v14, %v15093_v33  ;;  %v6406_v7 = vmul.f32 %v16750_v49, %v14746_v6  ;;  %v11015_v24 = vpop.eup %11014  ;;  %v6701_v33 = vadd.f32 %v14749_v44, %v14575_v2  ;;  %v11376_v6 = vld [vmem:[%s16302_s16 + $0x40] sm:$0xff]  ;;  %v16754_v44 = vld [vmem:[#allocation100_spill] sm:$0xff] }
 0xa24   :  { %6572 = vrot.lane.b32.xlu0 %v6503_v40, %s11426_s1  ;;  %7339 = vrot.lane.b32.xlu1 %v15082_v54, %s11419_s7  ;;  %v7088_v40 = vsub.f32 0.0, %v7052_v27  ;;  %11030 = vrcp.f32 %v7188_v37  ;;  %16749 = vst [vmem:[#allocation82_spill] sm:$0xff] %v15120_v61  ;;  %v7089_v27 = vsub.f32 0.0, %v7053_v10  ;;  %v7190_v54 = vadd.f32 1.0, %v11013_v1  ;;  %v16757_v37 = vld [vmem:[#allocation88_spill] sm:$0xff] }
 0xa25   :  { %11032 = vpow2.f32 %v7148_v46  ;;  %v15130_v60 = vadd.f32 %v16751_v0, %v6405_v5  ;;  %v7090_v1 = vsub.f32 0.0, %v7054_v51  ;;  %v7056_v2 = vadd.f32 %v16520_v14, %v15120_v61  ;;  %v16756_v5 = vld [vmem:[#allocation42_spill] sm:$0xff] }
 0xa26   :  { %v15108_v4 = vpop.permute.xlu0 %7293  ;;  %11034 = vrcp.f32 %v7189_v50  ;;  %v7150_v18 = vmul.f32 1.442695, %v7088_v40  ;;  %v15143_v40 = vadd.f32 %v6406_v7, %v16754_v44  ;;  %v6407_v49 = vmul.f32 %v16756_v5, %v14787_v34  ;;  %v16758_v7 = vld [vmem:[#allocation19_spill] sm:$0xff]  ;;  %v16762_v5 = vld [vmem:[#allocation98_spill] sm:$0xff] }
 0xa27   :  { %v15113_v9 = vpop.permute.xlu1 %7291  ;;  %v11017_v23 = vpop.eup %11016  ;;  %16752 = vst [vmem:[#allocation39_spill] sm:$0xff] %v15130_v60  ;;  %v6408_v0 = vmul.f32 %v16757_v37, %v14792_v17  ;;  %11036 = vrcp.f32 %v7190_v54  ;;  %v15156_v61 = vmul.f32 %v16758_v7, %v14773_v19  ;;  %v16760_v34 = vrot.slane %v15106_v63, 4  ;;  %v16768_v44 = vld [vmem:[#allocation102_spill] sm:$0xff] }
 0xa28   :  { %7341 = vrot.lane.b32.xlu0 %v15106_v63, %s11419_s7  ;;  %8401 = vperm.xlu1 %10727, %v11011_v55   ;;  %v16753_v55 = vrot.slane %v15046_v13, 4  ;;  %16755 = vst [vmem:[#allocation18_spill] sm:$0xff] %v15143_v40  ;;  %v11019_v51 = vpop.eup %11018  ;;  %11038 = vpow2.f32 %v7150_v18  ;;  %v7057_v17 = vadd.f32 %v16520_v14, %v15130_v60  ;;  %v7092_v19 = vsub.f32 0.0, %v7056_v2 }
 0xa29   :  { %16759 = vst [vmem:[#allocation94_spill] sm:$0xff] %v15156_v61  ;;  %v6508_v60 = vrot.slane %v15156_v61, 4 }
 0xa2a   :  { %v6529_v29 = vpop.permute.xlu0 %6528  ;;  %v6505_v50 = vsel %vm6018_vm11, %v16753_v55, %v6504_v26  ;;  %v7191_v55 = vadd.f32 1.0, %v11017_v23  ;;  %v7154_v23 = vmul.f32 1.442695, %v7090_v1 }
 0xa2b   :  { %v6628_v46 = vmul.f32 %v11376_v6, %v6529_v29  ;;  %v15135_v10 = vpop.permute.xlu1 %6526  ;;  %v7152_v29 = vmul.f32 1.442695, %v7089_v27  ;;  %v7091_v6 = vsub.f32 0.0, %v7055_v52  ;;  %v11021_v27 = vpop.eup %11020 }
 0xa2c   :  { %8406 = vperm.xlu0 %10729, %v11015_v24   ;;  %6574 = vrot.lane.b32.xlu1 %v6505_v50, %s11426_s1  ;;  %v6507_v50 = vsel %vm6018_vm11, %v6504_v26, %v16760_v34  ;;  %v11023_v54 = vpop.eup %11022  ;;  %v15171_v26 = vadd.f32 %v16762_v5, %v6407_v49  ;;  %v7192_v2 = vadd.f32 1.0, %v11021_v27  ;;  %v7093_v5 = vsub.f32 0.0, %v7057_v17 }
 0xa2d   :  { %v15150_v16 = vadd.f32 %v6701_v33, %v6628_v46  ;;  %v16761_v33 = vld [vmem:[#allocation44_spill] sm:$0xff]  ;;  %v7058_v46 = vadd.f32 %v16520_v14, %v15143_v40  ;;  %v11025_v18 = vpop.eup %11024  ;;  %11040 = vpow2.f32 %v7152_v29  ;;  %v7156_v7 = vmul.f32 1.442695, %v7091_v6 }
 0xa2e   :  { %v15152_v24 = vpop.permute.xlu0 %7297  ;;  %v6409_v52 = vmul.f32 %v16761_v33, %v14830_v56  ;;  %16763 = vst [vmem:[#allocation84_spill] sm:$0xff] %v15171_v26  ;;  %v16764_v56 = vld [vmem:[#allocation54_spill] sm:$0xff]  ;;  %11042 = vrcp.f32 %v7191_v55  ;;  %v7193_v49 = vadd.f32 1.0, %v11023_v54  ;;  %v7059_v55 = vadd.f32 %v16520_v14, %v15171_v26 }
 0xa2f   :  { %v15165_v37 = vpop.permute.xlu1 %7295  ;;  %v15177_v34 = vmul.f32 %v16764_v56, %v14779_v53  ;;  %v11027_v40 = vpop.eup %11026  ;;  %11044 = vpow2.f32 %v7154_v23  ;;  %v7094_v6 = vsub.f32 0.0, %v7058_v46  ;;  %v7194_v17 = vadd.f32 1.0, %v11025_v18  ;;  %v16770_v23 = vld [vmem:[#allocation55_spill] sm:$0xff]  ;;  %v16774_v26 = vld [vmem:[#allocation90_spill] sm:$0xff] }
 0xa30   :  { %6576 = vrot.lane.b32.xlu0 %v6507_v50, %s11426_s1  ;;  %7343 = vrot.lane.b32.xlu1 %v15156_v61, %s11419_s7  ;;  %v16766_v50 = vld [vmem:[#allocation104_spill] sm:$0xff]  ;;  %v15186_v13 = vadd.f32 %v16768_v44, %v6409_v52  ;;  %v15192_v53 = vpop.eup %11028  ;;  %11046 = vpow2.f32 %v7156_v7  ;;  %v7095_v44 = vsub.f32 0.0, %v7059_v55 }
 0xa31   :  { %16765 = vst [vmem:[#allocation53_spill] sm:$0xff] %v15177_v34  ;;  %v15180_v33 = vadd.f32 %v6408_v0, %v16766_v50  ;;  %v7158_v0 = vmul.f32 1.442695, %v7092_v19  ;;  %v15196_v27 = vpop.eup %11030  ;;  %11048 = vrcp.f32 %v7192_v2  ;;  %v7388_v19 = vadd.f32 %v16770_v23, %v14987_v8 }
 0xa32   :  { %v15182_v1 = vpop.permute.xlu0 %6532  ;;  %16769 = vst [vmem:[#allocation86_spill] sm:$0xff] %v15186_v13  ;;  %v11033_v56 = vpop.eup %11032  ;;  %11050 = vrcp.f32 %v7193_v49  ;;  %v7061_v18 = vadd.f32 %v16520_v14, %v15186_v13  ;;  %v7162_v2 = vmul.f32 1.442695, %v7094_v6 }
 0xa33   :  { %16767 = vst [vmem:[#allocation41_spill] sm:$0xff] %v15180_v33  ;;  %v15188_v29 = vpop.permute.xlu1 %6530  ;;  %v7060_v52 = vadd.f32 %v16520_v14, %v15180_v33  ;;  %v15205_v46 = vpop.eup %11034  ;;  %v16771_v33 = vrot.slane %v15106_v63, 4  ;;  %11052 = vpow2.f32 %v7158_v0  ;;  %v7195_v8 = vadd.f32 1.0, %v11033_v56  ;;  %v16772_v14 = vld [vmem:[#allocation20_spill] sm:$0xff] }
 0xa34   :  { %7345 = vrot.lane.b32.xlu0 %v15177_v34, %s11419_s7  ;;  %8411 = vperm.xlu1 %10727, %v11019_v51   ;;  %v7160_v51 = vmul.f32 1.442695, %v7093_v5  ;;  %11054 = vrcp.f32 %v7194_v17  ;;  %v7391_v5 = vadd.f32 %v15067_v58, %v14001_v42  ;;  %v15221_v13 = vmul.f32 %v16772_v14, %v14814_v57  ;;  %v15231_v55 = vpop.eup %11036  ;;  %v16776_v58 = vld [vmem:[#allocation56_spill] sm:$0xff]  ;;  %v16780_v14 = vld [vmem:[#allocation58_spill] sm:$0xff] }
 0xa35   :  { %v6509_v61 = vsel %vm6018_vm11, %v16771_v33, %v6508_v60  ;;  %v7096_v23 = vsub.f32 0.0, %v7060_v52  ;;  %v7427_v33 = vadd.f32 %v16774_v26, %v7388_v19  ;;  %v16775_v0 = vrot.slane %v15177_v34, 4  ;;  %v11039_v52 = vpop.eup %11038  ;;  %v16777_v19 = vld [vmem:[#allocation33_spill] sm:$0xff] }
 0xa36   :  { %v15200_v54 = vpop.permute.xlu0 %7301  ;;  %16773 = vst [vmem:[#allocation42_spill] sm:$0xff] %v15221_v13  ;;  %11056 = vpow2.f32 %v7160_v51  ;;  %v7097_v42 = vsub.f32 0.0, %v7061_v18  ;;  %v7387_v57 = vadd.f32 %v14997_v30, %v16776_v58  ;;  %v7164_v56 = vmul.f32 1.442695, %v7095_v44  ;;  %v16778_v51 = vld [vmem:[#allocation57_spill] sm:$0xff] }
 0xa37   :  { %v15209_v7 = vpop.permute.xlu1 %7299  ;;  %v6511_v6 = vsel %vm6018_vm11, %v6508_v60, %v16775_v0  ;;  %11058 = vpow2.f32 %v7162_v2  ;;  %v7166_v60 = vmul.f32 1.442695, %v7096_v23  ;;  %v15244_v18 = vmul.f32 %v16778_v51, %v14824_v22 }
 0xa38   :  { %8416 = vperm.xlu0 %10729, %v11027_v40   ;;  %6578 = vrot.lane.b32.xlu1 %v6509_v61, %s11426_s1  ;;  %v11377_v40 = vld [vmem:[%s16302_s16 + $0x18] sm:$0xff]  ;;  %v7389_v30 = vadd.f32 %v15034_v31, %v16780_v14  ;;  %11060 = vrcp.f32 %v7195_v8  ;;  %v7463_v44 = vsub.f32 0.0, %v7427_v33  ;;  %v6512_v58 = vrot.slane %v15221_v13, 4 }
 0xa39   :  { %v6623_v61 = vmul.f32 %v11377_v40, %v15053_v21  ;;  %v6696_v21 = vadd.f32 %v14636_v20, %v16777_v19  ;;  %16779 = vst [vmem:[#allocation88_spill] sm:$0xff] %v15244_v18  ;;  %v7430_v40 = vadd.f32 %v16774_v26, %v7391_v5  ;;  %v7168_v23 = vmul.f32 1.442695, %v7097_v42 }
 0xa3a   :  { %v15217_v49 = vpop.permute.xlu0 %6536  ;;  %v11041_v2 = vpop.eup %11040  ;;  %v7426_v19 = vadd.f32 %v16774_v26, %v7387_v57  ;;  %v6619_v22 = vsel %vm6018_vm11, 0.0, %v15014_v35  ;;  %v7196_v31 = vadd.f32 1.0, %v11039_v52  ;;  %11062 = vpow2.f32 %v7164_v56  ;;  %v11378_v35 = vld [vmem:[%s16302_s16 + $0x8] sm:$0xff]  ;;  %v15270_v56 = vld [vmem:[#allocation2] ss:$0 sm:$0xff] }
 0xa3b   :  { %v15235_v17 = vpop.permute.xlu1 %6534  ;;  %v15251_v20 = vpop.eup %11042  ;;  %v7197_v5 = vadd.f32 1.0, %v11041_v2  ;;  %11064 = vpow2.f32 %v7166_v60  ;;  %v7428_v33 = vadd.f32 %v16774_v26, %v7389_v30  ;;  %v6621_v14 = vmul.f32 %v11378_v35, %v6619_v22 }
 0xa3c   :  { %6580 = vrot.lane.b32.xlu0 %v6511_v6, %s11426_s1  ;;  %7347 = vrot.lane.b32.xlu1 %v15221_v13, %s11419_s7  ;;  %v6732_v6 = vadd.f32 %v6696_v21, %v6623_v61  ;;  %v11045_v8 = vpop.eup %11044  ;;  %v7466_v61 = vsub.f32 0.0, %v7430_v40  ;;  %v7500_v21 = vmul.f32 1.442695, %v7463_v44  ;;  %v7390_v52 = vadd.f32 %v13982_v45, %v15023_v12  ;;  %v16782_v12 = vld [vmem:[#allocation3_spill] sm:$0xff] }
 0xa3d   :  { %v11047_v57 = vpop.eup %11046  ;;  %11066 = vpow2.f32 %v7168_v23  ;;  %v7462_v30 = vsub.f32 0.0, %v7426_v19  ;;  %v7393_v40 = vadd.f32 %v15113_v9, %v14021_v41  ;;  %v16781_v44 = vrot.slane %v15177_v34, 4 }
 0xa3e   :  { %v15249_v0 = vpop.permute.xlu0 %7305  ;;  %v11049_v60 = vpop.eup %11048  ;;  %11068 = vrcp.f32 %v7196_v31  ;;  %v7198_v45 = vadd.f32 1.0, %v11045_v8  ;;  %v7199_v19 = vadd.f32 1.0, %v11047_v57  ;;  %v7464_v41 = vsub.f32 0.0, %v7428_v33 }
 0xa3f   :  { %v15257_v51 = vpop.permute.xlu1 %7303  ;;  %v6513_v13 = vsel %vm6018_vm11, %v16781_v44, %v6512_v58  ;;  %v15281_v22 = vpop.eup %11050  ;;  %v7506_v9 = vmul.f32 1.442695, %v7466_v61  ;;  %11070 = vpow2.f32 %v7500_v21  ;;  %v7429_v8 = vadd.f32 %v16774_v26, %v7390_v52  ;;  %v11381_v21 = vld [vmem:[%s16302_s16 + $0x10] sm:$0xff] }
 0xa40   :  { %7349 = vrot.lane.b32.xlu0 %v15244_v18, %s11419_s7  ;;  %8421 = vperm.xlu1 %10727, %v15192_v53   ;;  %v6774_v53 = vadd.f32 %v15270_v56, %v6732_v6  ;;  %v16783_v6 = vld [vmem:[#allocation21_spill] sm:$0xff]  ;;  %v11053_v23 = vpop.eup %11052  ;;  %v11380_v18 = vld [vmem:[%s16302_s16 + $0x28] sm:$0xff]  ;;  %11072 = vrcp.f32 %v7197_v5  ;;  %v7432_v61 = vadd.f32 %v16774_v26, %v7393_v40 }
 0xa41   :  { %v6694_v35 = vadd.f32 %v16783_v6, %v16782_v12  ;;  %v6625_v58 = vmul.f32 %v11380_v18, %v15089_v25  ;;  %v11055_v44 = vpop.eup %11054  ;;  %v16784_v6 = vld [vmem:[#allocation35_spill] sm:$0xff]  ;;  %11074 = vrcp.f32 %v7198_v45  ;;  %v7200_v18 = vadd.f32 1.0, %v11053_v23  ;;  %v16785_v52 = vld [vmem:[#allocation4_spill] sm:$0xff] }
 0xa42   :  { %v15263_v42 = vpop.permute.xlu0 %6540  ;;  %v6810_v12 = vsub.f32 0.0, %v6774_v53  ;;  %v6698_v33 = vadd.f32 %v14693_v59, %v16784_v6  ;;  %v16786_v59 = vld [vmem:[#allocation40_spill] sm:$0xff]  ;;  %11076 = vpow2.f32 %v7506_v9  ;;  %v7465_v45 = vsub.f32 0.0, %v7429_v8 }
 0xa43   :  { %v15275_v2 = vpop.permute.xlu1 %6538  ;;  %v6730_v31 = vadd.f32 %v6694_v35, %v6621_v14  ;;  %v11057_v25 = vpop.eup %11056  ;;  %v6622_v14 = vmul.f32 %v11381_v21, %v15003_v3  ;;  %v6695_v53 = vadd.f32 %v16786_v59, %v16785_v52  ;;  %11078 = vrcp.f32 %v7199_v19 }
 0xa44   :  { %8426 = vperm.xlu0 %10729, %v15196_v27   ;;  %6582 = vrot.lane.b32.xlu1 %v6513_v13, %s11426_s1  ;;  %v7498_v13 = vmul.f32 1.442695, %v7462_v30  ;;  %v11059_v5 = vpop.eup %11058  ;;  %v7502_v30 = vmul.f32 1.442695, %v7464_v41  ;;  %v6734_v40 = vadd.f32 %v6698_v33, %v6625_v58  ;;  %v6849_v23 = vmul.f32 1.442695, %v6810_v12 }
 0xa45   :  { %v11061_v6 = vpop.eup %11060  ;;  %v7468_v34 = vsub.f32 0.0, %v7432_v61  ;;  %v6731_v21 = vadd.f32 %v6695_v53, %v6622_v14  ;;  %v7202_v9 = vadd.f32 1.0, %v11059_v5  ;;  %v7504_v12 = vmul.f32 1.442695, %v7465_v45  ;;  %v16787_v33 = vld [vmem:[#allocation38_spill] sm:$0xff]  ;;  %v16788_v61 = vld [vmem:[#allocation11_spill] sm:$0xff] }
 0xa46   :  { %v15290_v27 = vpop.permute.xlu0 %7309  ;;  %11080 = vpow2.f32 %v7498_v13  ;;  %v6776_v19 = vadd.f32 %v15270_v56, %v6734_v40  ;;  %v7395_v13 = vadd.f32 %v15165_v37, %v16626_v32  ;;  %v16789_v32 = vld [vmem:[#allocation59_spill] sm:$0xff] }
 0xa47   :  { %v15296_v57 = vpop.permute.xlu1 %7307  ;;  %11082 = vrcp.f32 %v7200_v18  ;;  %v11063_v41 = vpop.eup %11062  ;;  %v6773_v59 = vadd.f32 %v15270_v56, %v6731_v21  ;;  %v7392_v37 = vadd.f32 %v16789_v32, %v15061_v48  ;;  %v11384_v32 = vld [vmem:[%s16302_s16 + $0x48] sm:$0xff] }
 0xa48   :  { %8436 = vperm.xlu0 %10729, %v15231_v55   ;;  %8431 = vperm.xlu1 %10727, %v15205_v46   ;;  %v6772_v55 = vadd.f32 %v15270_v56, %v6730_v31  ;;  %v7201_v46 = vadd.f32 1.0, %v11057_v25  ;;  %11084 = vpow2.f32 %v7502_v30  ;;  %v11065_v31 = vpop.eup %11064  ;;  %v6700_v25 = vadd.f32 %v16788_v61, %v16787_v33 }
 0xa49   :  { %11086 = vpow2.f32 %v6849_v23  ;;  %v7203_v52 = vadd.f32 1.0, %v11063_v41  ;;  %v7204_v53 = vadd.f32 1.0, %v11065_v31  ;;  %v7434_v45 = vadd.f32 %v16774_v26, %v7395_v13 }
 0xa4a   :  { %v15306_v35 = vpop.permute.xlu0 %6544  ;;  %v6808_v8 = vsub.f32 0.0, %v6772_v55  ;;  %v11067_v5 = vpop.eup %11066  ;;  %11088 = vrcp.f32 %v7201_v46  ;;  %v16790_v46 = vld [vmem:[#allocation5_spill] sm:$0xff] }
 0xa4b   :  { %v15309_v3 = vpop.permute.xlu1 %6542  ;;  %11090 = vrcp.f32 %v7202_v9  ;;  %v7205_v48 = vadd.f32 1.0, %v11067_v5 }
 0xa4c   :  { %8446 = vperm.xlu0 %10729, %v11049_v60   ;;  %8441 = vperm.xlu1 %10727, %v15251_v20   ;;  %v7510_v60 = vmul.f32 1.442695, %v7468_v34  ;;  %v11382_v20 = vld [vmem:[%s16302_s16 + $0x38] sm:$0xff]  ;;  %v11069_v34 = vpop.eup %11068  ;;  %v6845_v55 = vmul.f32 1.442695, %v6808_v8  ;;  %11092 = vpow2.f32 %v7504_v12 }
 0xa4d   :  { %v6627_v18 = vmul.f32 %v11382_v20, %v15135_v10  ;;  %v11383_v10 = vld [vmem:[%s16302_s16 + $0x20] sm:$0xff]  ;;  %v11071_v23 = vpop.eup %11070 }
 0xa4e   :  { %v15313_v58 = vpop.permute.xlu0 %7313  ;;  %v6624_v30 = vmul.f32 %v11383_v10, %v15048_v43  ;;  %11094 = vpow2.f32 %v7510_v60  ;;  %v11073_v31 = vpop.eup %11072  ;;  %v6809_v43 = vsub.f32 0.0, %v6773_v59  ;;  %v7571_v20 = vadd.f32 1.0, %v11071_v23 }
 0xa4f   :  { %v15323_v14 = vpop.permute.xlu1 %7311  ;;  %v6736_v41 = vadd.f32 %v6700_v25, %v6627_v18  ;;  %11096 = vrcp.f32 %v7203_v52  ;;  %v11075_v8 = vpop.eup %11074  ;;  %v7470_v60 = vsub.f32 0.0, %v7434_v45 }
 0xa50   :  { %8456 = vperm.xlu0 %10729, %v11055_v44   ;;  %8451 = vperm.xlu1 %10727, %v15281_v22   ;;  %v6812_v44 = vsub.f32 0.0, %v6776_v19  ;;  %v16791_v22 = vld [vmem:[#allocation22_spill] sm:$0xff]  ;;  %v7431_v19 = vadd.f32 %v16774_v26, %v7392_v37  ;;  %11098 = vrcp.f32 %v7204_v53  ;;  %v11077_v61 = vpop.eup %11076  ;;  %v6847_v59 = vmul.f32 1.442695, %v6809_v43 }
 0xa51   :  { %v6697_v21 = vadd.f32 %v16791_v22, %v16790_v46  ;;  %11100 = vpow2.f32 %v6845_v55  ;;  %v11079_v25 = vpop.eup %11078  ;;  %v6778_v18 = vadd.f32 %v15270_v56, %v6736_v41  ;;  %v6629_v37 = vmul.f32 %v11384_v32, %v15188_v29  ;;  %v16794_v46 = vld [vmem:[#allocation97_spill] sm:$0xff]  ;;  %v16796_v32 = vld [vmem:[#allocation6_spill] sm:$0xff] }
 0xa52   :  { %v15333_v40 = vpop.permute.xlu0 %6548  ;;  %v6853_v13 = vmul.f32 1.442695, %v6812_v44  ;;  %11102 = vrcp.f32 %v7205_v48  ;;  %v7574_v44 = vadd.f32 1.0, %v11077_v61  ;;  %v7514_v23 = vmul.f32 1.442695, %v7470_v60  ;;  %v16793_v48 = vld [vmem:[#allocation7_spill] sm:$0xff] }
 0xa53   :  { %v15338_v9 = vpop.permute.xlu1 %6546  ;;  %v6733_v12 = vadd.f32 %v6697_v21, %v6624_v30  ;;  %v11081_v52 = vpop.eup %11080  ;;  %v6702_v22 = vadd.f32 %v16794_v46, %v16793_v48  ;;  %v11385_v29 = vld [vmem:[%s16302_s16 + $0x30] sm:$0xff] }
 0xa54   :  { %8466 = vperm.xlu0 %10729, %v11069_v34   ;;  %8461 = vperm.xlu1 %10727, %v11061_v6   ;;  %v7467_v6 = vsub.f32 0.0, %v7431_v19  ;;  %v16792_v34 = vld [vmem:[#allocation45_spill] sm:$0xff]  ;;  %v11083_v10 = vpop.eup %11082  ;;  %11104 = vpow2.f32 %v6853_v13  ;;  %v7570_v41 = vadd.f32 1.0, %v11081_v52  ;;  %v6814_v19 = vsub.f32 0.0, %v6778_v18 }
 0xa55   :  { %v7397_v53 = vadd.f32 %v15209_v7, %v16792_v34  ;;  %v6775_v30 = vadd.f32 %v15270_v56, %v6733_v12  ;;  %v11085_v45 = vpop.eup %11084  ;;  %11106 = vrcp.f32 %v7571_v20  ;;  %v6626_v7 = vmul.f32 %v11385_v29, %v15078_v38  ;;  %v16797_v34 = vld [vmem:[#allocation123_spill] sm:$0xff]  ;;  %v11386_v29 = vld [vmem:[%s16302_s16 + $0x58] sm:$0xff] }
 0xa56   :  { %v15341_v33 = vpop.permute.xlu0 %7317  ;;  %v11087_v21 = vpop.eup %11086  ;;  %11108 = vpow2.f32 %v6847_v59  ;;  %v7508_v12 = vmul.f32 1.442695, %v7467_v6  ;;  %v6738_v13 = vadd.f32 %v6702_v22, %v6629_v37  ;;  %v7572_v60 = vadd.f32 1.0, %v11085_v45 }
 0xa57   :  { %v15344_v5 = vpop.permute.xlu1 %7315  ;;  %v7436_v61 = vadd.f32 %v16774_v26, %v7397_v53  ;;  %v11089_v20 = vpop.eup %11088  ;;  %v6811_v52 = vsub.f32 0.0, %v6775_v30  ;;  %11110 = vrcp.f32 %v7574_v44  ;;  %v6699_v38 = vadd.f32 %v16797_v34, %v16796_v32 }
 0xa58   :  { %8476 = vperm.xlu0 %10729, %v11075_v8   ;;  %8471 = vperm.xlu1 %10727, %v11073_v31   ;;  %v16795_v31 = vld [vmem:[#allocation60_spill] sm:$0xff]  ;;  %v6918_v18 = vadd.f32 1.0, %v11087_v21  ;;  %11112 = vpow2.f32 %v7514_v23  ;;  %v6857_v37 = vmul.f32 1.442695, %v6814_v19  ;;  %v7399_v23 = vadd.f32 %v15257_v51, %v16654_v39 }
 0xa59   :  { %v7394_v43 = vadd.f32 %v16795_v31, %v15108_v4  ;;  %v11091_v4 = vpop.eup %11090  ;;  %11114 = vrcp.f32 %v7570_v41  ;;  %v6735_v59 = vadd.f32 %v6699_v38, %v6626_v7  ;;  %v7472_v30 = vsub.f32 0.0, %v7436_v61 }
 0xa5a   :  { %v15353_v55 = vpop.permute.xlu0 %8341  ;;  %v11093_v46 = vpop.eup %11092  ;;  %11116 = vpow2.f32 %v7508_v12  ;;  %v6851_v45 = vmul.f32 1.442695, %v6811_v52  ;;  %v6631_v7 = vmul.f32 %v11386_v29, %v15235_v17  ;;  %v16799_v52 = vld [vmem:[#allocation46_spill] sm:$0xff]  ;;  %v7438_v32 = vadd.f32 %v16774_v26, %v7399_v23 }
 0xa5b   :  { %v15363_v8 = vpop.permute.xlu1 %8346  ;;  %v7433_v6 = vadd.f32 %v16774_v26, %v7394_v43  ;;  %11118 = vrcp.f32 %v7572_v60  ;;  %v7573_v41 = vadd.f32 1.0, %v11093_v46  ;;  %v6777_v43 = vadd.f32 %v15270_v56, %v6735_v59 }
 0xa5c   :  { %8486 = vperm.xlu0 %10729, %v11083_v10   ;;  %8481 = vperm.xlu1 %10727, %v11079_v25   ;;  %v11095_v25 = vpop.eup %11094  ;;  %v6780_v10 = vadd.f32 %v15270_v56, %v6738_v13  ;;  %11120 = vrcp.f32 %v6918_v18  ;;  %v7518_v61 = vmul.f32 1.442695, %v7472_v30  ;;  %v7396_v17 = vadd.f32 %v16799_v52, %v15152_v24 }
 0xa5d   :  { %v11097_v44 = vpop.eup %11096  ;;  %v7469_v19 = vsub.f32 0.0, %v7433_v6  ;;  %v7576_v12 = vadd.f32 1.0, %v11095_v25  ;;  %11122 = vpow2.f32 %v6857_v37  ;;  %v6813_v59 = vsub.f32 0.0, %v6777_v43 }
 0xa5e   :  { %v15368_v48 = vpop.permute.xlu0 %6552  ;;  %v11099_v21 = vpop.eup %11098  ;;  %v6816_v51 = vsub.f32 0.0, %v6780_v10  ;;  %11124 = vpow2.f32 %v6851_v45  ;;  %v7435_v30 = vadd.f32 %v16774_v26, %v7396_v17  ;;  %v7398_v52 = vadd.f32 %v16652_v47, %v15200_v54 }
 0xa5f   :  { %v15371_v53 = vpop.permute.xlu1 %6550  ;;  %v11101_v31 = vpop.eup %11100  ;;  %11126 = vrcp.f32 %v7573_v41  ;;  %v7512_v6 = vmul.f32 1.442695, %v7469_v19  ;;  %v6855_v29 = vmul.f32 1.442695, %v6813_v59  ;;  %v16801_v54 = vmov 0  }
 0xa60   :  { %8496 = vperm.xlu0 %10729, %v11091_v4   ;;  %8491 = vperm.xlu1 %10727, %v11089_v20   ;;  %v11103_v39 = vpop.eup %11102  ;;  %v16798_v20 = vld [vmem:[#allocation43_spill] sm:$0xff]  ;;  %v6916_v4 = vadd.f32 1.0, %v11101_v31  ;;  %11128 = vrcp.f32 %v7576_v12  ;;  %v6861_v25 = vmul.f32 1.442695, %v6816_v51 }
 0xa61   :  { %v6704_v60 = vadd.f32 %v14833_v28, %v16798_v20  ;;  %v11105_v38 = vpop.eup %11104  ;;  %v16440_v28 = vmov 2   ;;  %11130 = vpow2.f32 %v7518_v61  ;;  %v11387_v61 = vld [vmem:[%s16302_s16 + $0x68] sm:$0xff] }
 0xa62   :  { %v15376_v22 = vpop.permute.xlu0 %7321  ;;  %v11107_v46 = vpop.eup %11106  ;;  %v6920_v10 = vadd.f32 1.0, %v11105_v38  ;;  %11132 = vrcp.f32 %v6916_v4  ;;  %v6633_v20 = vmul.f32 %v11387_v61, %v15275_v2  ;;  %v11388_v4 = vld [vmem:[%s16302_s16 + $0x50] sm:$0xff] }
 0xa63   :  { %v15383_v13 = vpop.permute.xlu1 %7319  ;;  %v6740_v18 = vadd.f32 %v6704_v60, %v6631_v7  ;;  %v11109_v24 = vpop.eup %11108  ;;  %11134 = vpow2.f32 %v7512_v6  ;;  %v7401_v7 = vadd.f32 %v15296_v57, %v16670_v15  ;;  %v6779_v57 = vadd.f32 %v15270_v56, %v15150_v16 }
 0xa64   :  { %8506 = vperm.xlu0 %10729, %v11099_v21   ;;  %8501 = vperm.xlu1 %10727, %v11097_v44   ;;  %v7474_v44 = vsub.f32 0.0, %v7438_v32  ;;  %v11111_v45 = vpop.eup %11110  ;;  %v6917_v19 = vadd.f32 1.0, %v11109_v24  ;;  %11136 = vpow2.f32 %v6861_v25  ;;  %v6630_v2 = vmul.f32 %v11388_v4, %v15182_v1  ;;  %v16802_v24 = vld [vmem:[#allocation8_spill] sm:$0xff] }
 0xa65   :  { %v6782_v23 = vadd.f32 %v15270_v56, %v6740_v18  ;;  %v11113_v41 = vpop.eup %11112  ;;  %11138 = vrcp.f32 %v6920_v10  ;;  %v16800_v18 = vld [vmem:[#allocation120_spill] sm:$0xff]  ;;  %v7440_v16 = vadd.f32 %v16774_v26, %v7401_v7  ;;  %v16803_v10 = vld [vmem:[#allocation25_spill] sm:$0xff] }
 0xa66   :  { %v15390_v34 = vpop.permute.xlu0 %8552  ;;  %v11115_v43 = vpop.eup %11114  ;;  %v7522_v51 = vmul.f32 1.442695, %v7474_v44  ;;  %v7578_v60 = vadd.f32 1.0, %v11113_v41  ;;  %11140 = vpow2.f32 %v6855_v29 }
 0xa67   :  { %v15392_v37 = vpop.permute.xlu1 %8351  ;;  %v11117_v12 = vpop.eup %11116  ;;  %v6818_v17 = vsub.f32 0.0, %v6782_v23  ;;  %11142 = vrcp.f32 %v6917_v19  ;;  %v7476_v19 = vsub.f32 0.0, %v7440_v16 }
 0xa68   :  { %10731 = vset.pattern.permute.xlu0 %v16440_v28  ;;  %8511 = vperm.xlu1 %10727, %v11103_v39   ;;  %v7471_v39 = vsub.f32 0.0, %v7435_v30  ;;  %v11119_v15 = vpop.eup %11118  ;;  %v7575_v47 = vadd.f32 1.0, %v11117_v12  ;;  %v6703_v30 = vadd.f32 %v16803_v10, %v16802_v24  ;;  %11144 = vpow2.f32 %v7522_v51 }
 0xa69   :  { %7945 = vperm.xlu0 %10731, %v11107_v46   ;;  %v11121_v38 = vpop.eup %11120  ;;  %v6706_v46 = vadd.f32 %v14866_v62, %v16800_v18  ;;  %11146 = vrcp.f32 %v7578_v60  ;;  %v7437_v62 = vadd.f32 %v16774_v26, %v7398_v52  ;;  %v6865_v23 = vmul.f32 1.442695, %v6818_v17 }
 0xa6a   :  { %v11123_v6 = vpop.eup %11122  ;;  %v7516_v25 = vmul.f32 1.442695, %v7471_v39  ;;  %11148 = vrcp.f32 %v7575_v47  ;;  %v7403_v60 = vadd.f32 %v15323_v14, %v16684_v36  ;;  %v7526_v4 = vmul.f32 1.442695, %v7476_v19  ;;  %v16804_v36 = vld [vmem:[#allocation64_spill] sm:$0xff] }
 0xa6b   :  { %v15397_v21 = vpop.permute.xlu0 %8356  ;;  %v15401_v31 = vpop.permute.xlu1 %6554  ;;  %v6742_v44 = vadd.f32 %v6706_v46, %v6633_v20  ;;  %v6922_v7 = vadd.f32 1.0, %v11123_v6  ;;  %v7400_v14 = vadd.f32 %v16804_v36, %v15249_v0 }
 0xa6c   :  { %10730 = vset.pattern.permute.xlu1 %v16440_v28  ;;  %v11125_v1 = vpop.eup %11124  ;;  %11150 = vpow2.f32 %v7516_v25  ;;  %v11390_v25 = vld [vmem:[%s16302_s16 + $0x60] sm:$0xff] }
 0xa6d   :  { %7960 = vperm.xlu0 %10731, %v11111_v45   ;;  %7940 = vperm.xlu1 %10730, %v11115_v43   ;;  %v6815_v45 = vsub.f32 0.0, %v6779_v57  ;;  %v11127_v29 = vpop.eup %11126  ;;  %v6739_v43 = vadd.f32 %v6703_v30, %v6630_v2  ;;  %v6919_v61 = vadd.f32 1.0, %v11125_v1  ;;  %v6784_v20 = vadd.f32 %v15270_v56, %v6742_v44  ;;  %v11389_v2 = vld [vmem:[%s16302_s16 + $0x78] sm:$0xff]  ;;  %v16806_v44 = vld [vmem:[#allocation128_spill] sm:$0xff] }
 0xa6e   :  { %v11129_v39 = vpop.eup %11128  ;;  %v7473_v57 = vsub.f32 0.0, %v7437_v62  ;;  %11152 = vpow2.f32 %v6865_v23  ;;  %v6635_v18 = vmul.f32 %v11389_v2, %v15309_v3  ;;  %v6632_v24 = vmul.f32 %v11390_v25, %v15217_v49  ;;  %v16805_v30 = vld [vmem:[#allocation10_spill] sm:$0xff]  ;;  %v16807_v62 = vld [vmem:[#allocation9_spill] sm:$0xff] }
 0xa6f   :  { %v15412_v32 = vpop.permute.xlu0 %6556  ;;  %v15421_v59 = vpop.permute.xlu1 %7323  ;;  %11154 = vrcp.f32 %v6922_v7  ;;  %v6820_v10 = vsub.f32 0.0, %v6784_v20  ;;  %v6708_v1 = vadd.f32 %v16806_v44, %v16805_v30  ;;  %v16808_v23 = vld [vmem:[#allocation13_spill] sm:$0xff]  ;;  %v7439_v20 = vadd.f32 %v16774_v26, %v7400_v14  ;;  %v11391_v14 = vld [vmem:[%s16302_s16 + $0x88] sm:$0xff] }
 0xa70   :  { %v11131_v51 = vpop.eup %11130  ;;  %11156 = vrcp.f32 %v6919_v61  ;;  %v6705_v0 = vadd.f32 %v16808_v23, %v16807_v62 }
 0xa71   :  { %10734 = vset.pattern.permute.xlu0 %v16801_v54  ;;  %7950 = vperm.xlu1 %10730, %v11119_v15   ;;  %v6859_v15 = vmul.f32 1.442695, %v6815_v45  ;;  %v11133_v17 = vpop.eup %11132  ;;  %v7580_v6 = vadd.f32 1.0, %v11131_v51  ;;  %v7520_v45 = vmul.f32 1.442695, %v7473_v57  ;;  %v6744_v19 = vadd.f32 %v6708_v1, %v6635_v18 }
 0xa72   :  { %8567 = vperm.xlu0 %10734, %v11121_v38   ;;  %v6781_v38 = vadd.f32 %v15270_v56, %v6739_v43  ;;  %v11135_v16 = vpop.eup %11134  ;;  %v6741_v57 = vadd.f32 %v6705_v0, %v6632_v24  ;;  %v16809_v24 = vld [vmem:[#allocation77_spill] sm:$0xff]  ;;  %v16811_v0 = vld [vmem:[#allocation126_spill] sm:$0xff] }
 0xa73   :  { %v15427_v41 = vpop.permute.xlu0 %7325  ;;  %v15429_v12 = vpop.permute.xlu1 %8361  ;;  %11158 = vpow2.f32 %v6859_v15  ;;  %v7577_v49 = vadd.f32 1.0, %v11135_v16  ;;  %v6786_v16 = vadd.f32 %v15270_v56, %v6744_v19 }
 0xa74   :  { %v11137_v47 = vpop.eup %11136  ;;  %v6817_v43 = vsub.f32 0.0, %v6781_v38  ;;  %11160 = vpow2.f32 %v7526_v4  ;;  %v6783_v44 = vadd.f32 %v15270_v56, %v6741_v57 }
 0xa75   :  { %7955 = vperm.xlu1 %10730, %v11127_v29   ;;  %v11139_v3 = vpop.eup %11138  ;;  %v7442_v29 = vadd.f32 %v16774_v26, %v7403_v60  ;;  %v6924_v61 = vadd.f32 1.0, %v11137_v47  ;;  %11162 = vrcp.f32 %v7580_v6  ;;  %v6869_v60 = vmul.f32 1.442695, %v6820_v10 }
 0xa76   :  { %10736 = vset.pattern.permute.xlu0 %v16440_v28  ;;  %v11141_v51 = vpop.eup %11140  ;;  %11164 = vpow2.f32 %v7520_v45  ;;  %v6863_v18 = vmul.f32 1.442695, %v6817_v43  ;;  %v7475_v6 = vsub.f32 0.0, %v7439_v20  ;;  %v6637_v47 = vmul.f32 %v11391_v14, %v15338_v9  ;;  %v16810_v45 = vld [vmem:[#allocation67_spill] sm:$0xff] }
 0xa77   :  { %7970 = vperm.xlu0 %10736, %v11129_v39   ;;  %v15435_v52 = vpop.permute.xlu0 %8366  ;;  %v15442_v46 = vpop.permute.xlu1 %6558  ;;  %v7478_v2 = vsub.f32 0.0, %v7442_v29  ;;  %v6921_v4 = vadd.f32 1.0, %v11141_v51  ;;  %11166 = vrcp.f32 %v7577_v49  ;;  %v7405_v10 = vadd.f32 %v15344_v5, %v16809_v24  ;;  %v16812_v29 = vld [vmem:[#allocation50_spill] sm:$0xff]  ;;  %v11392_v5 = vld [vmem:[%s16302_s16 + $0x70] sm:$0xff] }
 0xa78   :  { %v11143_v15 = vpop.eup %11142  ;;  %11168 = vrcp.f32 %v6924_v61  ;;  %v7402_v62 = vadd.f32 %v16810_v45, %v15290_v27  ;;  %v6710_v49 = vadd.f32 %v16812_v29, %v16811_v0  ;;  %v6634_v19 = vmul.f32 %v11392_v5, %v15263_v42 }
 0xa79   :  { %10732 = vset.pattern.permute.xlu1 %v16801_v54  ;;  %11170 = vpow2.f32 %v6869_v60  ;;  %v7530_v23 = vmul.f32 1.442695, %v7478_v2  ;;  %v6822_v51 = vsub.f32 0.0, %v6786_v16  ;;  %v7524_v20 = vmul.f32 1.442695, %v7475_v6  ;;  %v16813_v2 = vld [vmem:[#allocation23_spill] sm:$0xff] }
 0xa7a   :  { %8557 = vperm.xlu1 %10732, %v11133_v17   ;;  %v11145_v17 = vpop.eup %11144  ;;  %11172 = vrcp.f32 %v6921_v4  ;;  %v7444_v57 = vadd.f32 %v16774_v26, %v7405_v10  ;;  %v7441_v14 = vadd.f32 %v16774_v26, %v7402_v62  ;;  %v16815_v62 = vld [vmem:[#allocation81_spill] sm:$0xff] }
 0xa7b   :  { %10738 = vset.pattern.permute.xlu0 %v16801_v54  ;;  %v15457_v7 = vpop.permute.xlu0 %6560  ;;  %v15459_v39 = vpop.permute.xlu1 %7327  ;;  %v7582_v1 = vadd.f32 1.0, %v11145_v17  ;;  %11174 = vpow2.f32 %v6863_v18  ;;  %v6819_v17 = vsub.f32 0.0, %v6783_v44 }
 0xa7c   :  { %8577 = vperm.xlu0 %10738, %v11139_v3   ;;  %v11147_v38 = vpop.eup %11146  ;;  %v7477_v29 = vsub.f32 0.0, %v7441_v14 }
 0xa7d   :  { %v11149_v30 = vpop.eup %11148  ;;  %11176 = vrcp.f32 %v7582_v1  ;;  %v7480_v1 = vsub.f32 0.0, %v7444_v57  ;;  %v6867_v45 = vmul.f32 1.442695, %v6819_v17 }
 0xa7e   :  { %8562 = vperm.xlu1 %10732, %v11143_v15   ;;  %v11151_v3 = vpop.eup %11150  ;;  %v6746_v15 = vadd.f32 %v6710_v49, %v6637_v47  ;;  %11178 = vpow2.f32 %v7530_v23  ;;  %v6873_v47 = vmul.f32 1.442695, %v6822_v51  ;;  %v7407_v23 = vadd.f32 %v15383_v13, %v16815_v62  ;;  %v11393_v49 = vld [vmem:[%s16302_s16 + $0x98] sm:$0xff] }
 0xa7f   :  { %v15462_v36 = vpop.permute.xlu0 %7329  ;;  %v15465_v25 = vpop.permute.xlu1 %8371  ;;  %v7579_v60 = vadd.f32 1.0, %v11151_v3  ;;  %11180 = vpow2.f32 %v7524_v20  ;;  %v7534_v17 = vmul.f32 1.442695, %v7480_v1  ;;  %v7528_v14 = vmul.f32 1.442695, %v7477_v29  ;;  %v16820_v62 = vld [vmem:[#allocation73_spill] sm:$0xff] }
 0xa80   :  { %10740 = vset.pattern.permute.xlu0 %v16440_v28  ;;  %v11153_v43 = vpop.eup %11152  ;;  %v6788_v44 = vadd.f32 %v15270_v56, %v6746_v15  ;;  %v16816_v15 = vld [vmem:[#allocation71_spill] sm:$0xff] }
 0xa81   :  { %7980 = vperm.xlu0 %10740, %v11147_v38   ;;  %v11155_v27 = vpop.eup %11154  ;;  %v16814_v38 = vld [vmem:[#allocation51_spill] sm:$0xff]  ;;  %v6926_v16 = vadd.f32 1.0, %v11153_v43  ;;  %11182 = vrcp.f32 %v7579_v60  ;;  %v6639_v43 = vmul.f32 %v11393_v49, %v15371_v53  ;;  %v7404_v57 = vadd.f32 %v16816_v15, %v15313_v58 }
 0xa82   :  { %10733 = vset.pattern.permute.xlu1 %v16440_v28  ;;  %v6707_v4 = vadd.f32 %v16814_v38, %v16813_v2  ;;  %v11157_v42 = vpop.eup %11156  ;;  %v6824_v60 = vsub.f32 0.0, %v6788_v44  ;;  %v16817_v2 = vld [vmem:[#allocation47_spill] sm:$0xff] }
 0xa83   :  { %v15480_v9 = vpop.permute.xlu0 %8376  ;;  %v15486_v61 = vpop.permute.xlu1 %6562  ;;  %7965 = vperm.xlu1 %10733, %v11149_v30   ;;  %11184 = vrcp.f32 %v6926_v16  ;;  %v16818_v38 = vld [vmem:[#allocation131_spill] sm:$0xff] }
 0xa84   :  { %v11159_v18 = vpop.eup %11158  ;;  %v6743_v6 = vadd.f32 %v6707_v4, %v6634_v19  ;;  %11186 = vpow2.f32 %v6873_v47  ;;  %v6712_v4 = vadd.f32 %v16818_v38, %v16817_v2  ;;  %v6877_v29 = vmul.f32 1.442695, %v6824_v60  ;;  %v16821_v38 = vld [vmem:[#allocation85_spill] sm:$0xff] }
 0xa85   :  { %10742 = vset.pattern.permute.xlu0 %v16801_v54  ;;  %v11161_v30 = vpop.eup %11160  ;;  %v6923_v0 = vadd.f32 1.0, %v11159_v18  ;;  %11188 = vpow2.f32 %v6867_v45  ;;  %v11394_v18 = vld [vmem:[%s16302_s16 + $0x80] sm:$0xff]  ;;  %v16819_v45 = vld [vmem:[#allocation24_spill] sm:$0xff] }
 0xa86   :  { %8587 = vperm.xlu0 %10742, %v11155_v27   ;;  %v11163_v3 = vpop.eup %11162  ;;  %v6785_v51 = vadd.f32 %v15270_v56, %v6743_v6  ;;  %v7584_v27 = vadd.f32 1.0, %v11161_v30  ;;  %v6636_v58 = vmul.f32 %v11394_v18, %v15306_v35  ;;  %v6748_v6 = vadd.f32 %v6712_v4, %v6639_v43 }
 0xa87   :  { %v15493_v24 = vpop.permute.xlu0 %6564  ;;  %v15495_v10 = vpop.permute.xlu1 %7331  ;;  %10735 = vset.pattern.permute.xlu1 %v16801_v54  ;;  %11190 = vrcp.f32 %v6923_v0  ;;  %v7443_v0 = vadd.f32 %v16774_v26, %v7404_v57  ;;  %v7409_v57 = vadd.f32 %v15421_v59, %v16821_v38  ;;  %v16826_v38 = vld [vmem:[#allocation130_spill] sm:$0xff] }
 0xa88   :  { %8572 = vperm.xlu1 %10735, %v11157_v42   ;;  %v11165_v19 = vpop.eup %11164  ;;  %v7446_v42 = vadd.f32 %v16774_v26, %v7407_v23  ;;  %v6821_v44 = vsub.f32 0.0, %v6785_v51  ;;  %11192 = vrcp.f32 %v7584_v27  ;;  %v6709_v23 = vadd.f32 %v16820_v62, %v16819_v45 }
 0xa89   :  { %v11167_v20 = vpop.eup %11166  ;;  %v7581_v30 = vadd.f32 1.0, %v11165_v19  ;;  %11194 = vpow2.f32 %v7534_v17  ;;  %v6790_v51 = vadd.f32 %v15270_v56, %v6748_v6  ;;  %v7479_v4 = vsub.f32 0.0, %v7443_v0 }
 0xa8a   :  { %10744 = vset.pattern.permute.xlu0 %v16440_v28  ;;  %v11169_v53 = vpop.eup %11168  ;;  %v7482_v43 = vsub.f32 0.0, %v7446_v42  ;;  %11196 = vpow2.f32 %v7528_v14  ;;  %v6745_v19 = vadd.f32 %v6709_v23, %v6636_v58  ;;  %v6871_v2 = vmul.f32 1.442695, %v6821_v44  ;;  %v16823_v44 = vld [vmem:[#allocation135_spill] sm:$0xff] }
 0xa8b   :  { %7990 = vperm.xlu0 %10744, %v11163_v3   ;;  %v15506_v5 = vpop.permute.xlu0 %7333  ;;  %v15509_v13 = vpop.permute.xlu1 %8381  ;;  %11198 = vrcp.f32 %v7581_v30  ;;  %v6826_v6 = vsub.f32 0.0, %v6790_v51  ;;  %v16822_v30 = vld [vmem:[#allocation48_spill] sm:$0xff]  ;;  %v7448_v0 = vadd.f32 %v16774_v26, %v7409_v57 }
 0xa8c   :  { %10737 = vset.pattern.permute.xlu1 %v16440_v28  ;;  %v11171_v16 = vpop.eup %11170  ;;  %11200 = vpow2.f32 %v6877_v29  ;;  %v7538_v14 = vmul.f32 1.442695, %v7482_v43  ;;  %v6787_v59 = vadd.f32 %v15270_v56, %v6745_v19  ;;  %v11396_v43 = vld [vmem:[%s16302_s16 + $0x90] sm:$0xff] }
 0xa8d   :  { %7975 = vperm.xlu1 %10737, %v11167_v20   ;;  %v11173_v3 = vpop.eup %11172  ;;  %v6928_v49 = vadd.f32 1.0, %v11171_v16 }
 0xa8e   :  { %v11175_v35 = vpop.eup %11174 }
 0xa8f   :  { %10746 = vset.pattern.permute.xlu0 %v16801_v54  ;;  %v15522_v47 = vpop.permute.xlu0 %8386  ;;  %v15524_v1 = vpop.permute.xlu1 %6566  ;;  %v6925_v17 = vadd.f32 1.0, %v11175_v35  ;;  %11202 = vrcp.f32 %v6928_v49  ;;  %v7532_v49 = vmul.f32 1.442695, %v7479_v4 }
 0xa90   :  { %8597 = vperm.xlu0 %10746, %v11169_v53   ;;  %v11177_v20 = vpop.eup %11176  ;;  %v11395_v53 = vld [vmem:[%s16302_s16 + $0xa8] sm:$0xff]  ;;  %11204 = vpow2.f32 %v6871_v2 }
 0xa91   :  { %10739 = vset.pattern.permute.xlu1 %v16801_v54  ;;  %v11179_v15 = vpop.eup %11178  ;;  %v6641_v42 = vmul.f32 %v11395_v53, %v15401_v31  ;;  %v16824_v31 = vld [vmem:[#allocation75_spill] sm:$0xff]  ;;  %11206 = vrcp.f32 %v6925_v17  ;;  %v16825_v2 = vld [vmem:[#allocation12_spill] sm:$0xff]  ;;  %v6881_v17 = vmul.f32 1.442695, %v6826_v6 }
 0xa92   :  { %8582 = vperm.xlu1 %10739, %v11173_v3   ;;  %v11181_v16 = vpop.eup %11180  ;;  %v7586_v58 = vadd.f32 1.0, %v11179_v15  ;;  %v6714_v3 = vadd.f32 %v16823_v44, %v16822_v30  ;;  %v7406_v23 = vadd.f32 %v16824_v31, %v15341_v33  ;;  %11208 = vpow2.f32 %v7538_v14 }
 0xa93   :  { %v15531_v27 = vpop.permute.xlu0 %6568  ;;  %v15535_v60 = vpop.permute.xlu1 %7335  ;;  %v7583_v51 = vadd.f32 1.0, %v11181_v16  ;;  %v6823_v15 = vsub.f32 0.0, %v6787_v59  ;;  %v6711_v57 = vadd.f32 %v16826_v38, %v16825_v2 }
 0xa94   :  { %10748 = vset.pattern.permute.xlu0 %v16440_v28  ;;  %v11183_v18 = vpop.eup %11182  ;;  %v6750_v19 = vadd.f32 %v6714_v3, %v6641_v42  ;;  %11210 = vrcp.f32 %v7586_v58  ;;  %v7445_v30 = vadd.f32 %v16774_v26, %v7406_v23  ;;  %v16827_v3 = vld [vmem:[#allocation89_spill] sm:$0xff] }
 0xa95   :  { %8000 = vperm.xlu0 %10748, %v11177_v20   ;;  %v11185_v62 = vpop.eup %11184  ;;  %v6638_v20 = vmul.f32 %v11396_v43, %v15333_v40  ;;  %v7484_v40 = vsub.f32 0.0, %v7448_v0  ;;  %11212 = vpow2.f32 %v7532_v49  ;;  %v6875_v6 = vmul.f32 1.442695, %v6823_v15  ;;  %v11397_v49 = vld [vmem:[%s16302_s16 + $0xb8] sm:$0xff] }
 0xa96   :  { %10741 = vset.pattern.permute.xlu1 %v16440_v28  ;;  %v11187_v35 = vpop.eup %11186  ;;  %v6792_v59 = vadd.f32 %v15270_v56, %v6750_v19  ;;  %11214 = vrcp.f32 %v7583_v51  ;;  %v7481_v0 = vsub.f32 0.0, %v7445_v30  ;;  %v6643_v43 = vmul.f32 %v11397_v49, %v15442_v46 }
 0xa97   :  { %v15546_v45 = vpop.permute.xlu0 %7337  ;;  %v15551_v29 = vpop.permute.xlu1 %8391  ;;  %7985 = vperm.xlu1 %10741, %v11183_v18   ;;  %v6930_v18 = vadd.f32 1.0, %v11187_v35  ;;  %v6747_v14 = vadd.f32 %v6711_v57, %v6638_v20  ;;  %11216 = vpow2.f32 %v6881_v17  ;;  %v7542_v35 = vmul.f32 1.442695, %v7484_v40  ;;  %v16828_v57 = vld [vmem:[#allocation79_spill] sm:$0xff]  ;;  %v16831_v40 = vld [vmem:[#allocation101_spill] sm:$0xff] }
 0xa98   :  { %v11189_v33 = vpop.eup %11188  ;;  %v6828_v2 = vsub.f32 0.0, %v6792_v59  ;;  %v7408_v46 = vadd.f32 %v16828_v57, %v15376_v22  ;;  %v16829_v17 = vld [vmem:[#allocation27_spill] sm:$0xff] }
 0xa99   :  { %10750 = vset.pattern.permute.xlu0 %v16801_v54  ;;  %v11191_v53 = vpop.eup %11190  ;;  %v6927_v44 = vadd.f32 1.0, %v11189_v33  ;;  %11218 = vrcp.f32 %v6930_v18  ;;  %v6789_v51 = vadd.f32 %v15270_v56, %v6747_v14 }
 0xa9a   :  { %8607 = vperm.xlu0 %10750, %v11185_v62   ;;  %v11193_v16 = vpop.eup %11192  ;;  %v7411_v62 = vadd.f32 %v15459_v39, %v16827_v3  ;;  %v11398_v39 = vld [vmem:[%s16302_s16 + $0xa0] sm:$0xff]  ;;  %v7447_v57 = vadd.f32 %v16774_v26, %v7408_v46 }
 0xa9b   :  { %v15560_v4 = vpop.permute.xlu0 %8396  ;;  %v15563_v42 = vpop.permute.xlu1 %6570  ;;  %10743 = vset.pattern.permute.xlu1 %v16801_v54  ;;  %v6640_v15 = vmul.f32 %v11398_v39, %v15368_v48  ;;  %11220 = vrcp.f32 %v6927_v44  ;;  %v6825_v49 = vsub.f32 0.0, %v6789_v51 }
 0xa9c   :  { %8592 = vperm.xlu1 %10743, %v11191_v53   ;;  %v11195_v58 = vpop.eup %11194  ;;  %v16830_v53 = vld [vmem:[#allocation76_spill] sm:$0xff]  ;;  %11222 = vpow2.f32 %v6875_v6  ;;  %v7450_v48 = vadd.f32 %v16774_v26, %v7411_v62  ;;  %v6885_v6 = vmul.f32 1.442695, %v6828_v2 }
 0xa9d   :  { %v11197_v23 = vpop.eup %11196  ;;  %v7588_v33 = vadd.f32 1.0, %v11195_v58  ;;  %v6716_v18 = vadd.f32 %v16830_v53, %v16829_v17  ;;  %v7536_v58 = vmul.f32 1.442695, %v7481_v0  ;;  %11224 = vpow2.f32 %v7542_v35  ;;  %v15600_v53 = vld [vmem:[#allocation2] ss:$0 sm:$0xff] }
 0xa9e   :  { %10752 = vset.pattern.permute.xlu0 %v16440_v28  ;;  %v11199_v19 = vpop.eup %11198  ;;  %v7585_v30 = vadd.f32 1.0, %v11197_v23  ;;  %v7486_v17 = vsub.f32 0.0, %v7450_v48  ;;  %v16834_v48 = vld [vmem:[#allocation83_spill] sm:$0xff] }
 0xa9f   :  { %8010 = vperm.xlu0 %10752, %v11193_v16   ;;  %v15570_v31 = vpop.permute.xlu0 %6572  ;;  %v15576_v20 = vpop.permute.xlu1 %7339  ;;  %v16832_v16 = vld [vmem:[#allocation133_spill] sm:$0xff]  ;;  %v6752_v44 = vadd.f32 %v6716_v18, %v6643_v43  ;;  %11226 = vrcp.f32 %v7588_v33 }
 0xaa0   :  { %10745 = vset.pattern.permute.xlu1 %v16440_v28  ;;  %v11201_v38 = vpop.eup %11200  ;;  %v6713_v14 = vadd.f32 %v16832_v16, %v16831_v40  ;;  %11228 = vrcp.f32 %v7585_v30  ;;  %v11400_v40 = vld [vmem:[%s16302_s16 + $0xc8] sm:$0xff] }
 0xaa1   :  { %7995 = vperm.xlu1 %10745, %v11199_v19   ;;  %v11203_v56 = vpop.eup %11202  ;;  %v6932_v39 = vadd.f32 1.0, %v11201_v38  ;;  %11230 = vpow2.f32 %v7536_v58  ;;  %v6794_v51 = vadd.f32 %v15600_v53, %v6752_v44  ;;  %v16833_v38 = vld [vmem:[#allocation92_spill] sm:$0xff]  ;;  %v6645_v16 = vmul.f32 %v11400_v40, %v15486_v61  ;;  %v16836_v61 = vld [vmem:[#allocation115_spill] sm:$0xff] }
 0xaa2   :  { %v11205_v3 = vpop.eup %11204  ;;  %v6749_v23 = vadd.f32 %v6713_v14, %v6640_v15  ;;  %v6879_v15 = vmul.f32 1.442695, %v6825_v49  ;;  %11232 = vpow2.f32 %v6885_v6  ;;  %v7413_v46 = vadd.f32 %v15495_v10, %v16833_v38  ;;  %v11401_v49 = vld [vmem:[%s16302_s16 + $0xb0] sm:$0xff] }
 0xaa3   :  { %10754 = vset.pattern.permute.xlu0 %v16801_v54  ;;  %v15592_v59 = vpop.permute.xlu0 %7341  ;;  %v15594_v22 = vpop.permute.xlu1 %8401  ;;  %v6929_v43 = vadd.f32 1.0, %v11205_v3  ;;  %11234 = vrcp.f32 %v6932_v39  ;;  %v7410_v58 = vadd.f32 %v16834_v48, %v15427_v41  ;;  %v7546_v44 = vmul.f32 1.442695, %v7486_v17  ;;  %v16837_v17 = vld [vmem:[#allocation66_spill] sm:$0xff] }
 0xaa4   :  { %8617 = vperm.xlu0 %10754, %v11203_v56   ;;  %v11207_v19 = vpop.eup %11206  ;;  %v6791_v2 = vadd.f32 %v15600_v53, %v6749_v23  ;;  %v7483_v56 = vsub.f32 0.0, %v7447_v57  ;;  %v6642_v23 = vmul.f32 %v11401_v49, %v15412_v32  ;;  %v6830_v6 = vsub.f32 0.0, %v6794_v51 }
 0xaa5   :  { %10747 = vset.pattern.permute.xlu1 %v16801_v54  ;;  %v11209_v62 = vpop.eup %11208  ;;  %11236 = vrcp.f32 %v6929_v43  ;;  %v7452_v43 = vadd.f32 %v16774_v26, %v7413_v46 }
 0xaa6   :  { %8602 = vperm.xlu1 %10747, %v11207_v19   ;;  %v11211_v35 = vpop.eup %11210  ;;  %v7590_v30 = vadd.f32 1.0, %v11209_v62  ;;  %v16835_v19 = vld [vmem:[#allocation72_spill] sm:$0xff]  ;;  %11238 = vpow2.f32 %v6879_v15  ;;  %v6827_v40 = vsub.f32 0.0, %v6791_v2  ;;  %v7540_v48 = vmul.f32 1.442695, %v7483_v56 }
 0xaa7   :  { %v15598_v0 = vpop.permute.xlu0 %8406  ;;  %v15603_v33 = vpop.permute.xlu1 %6574  ;;  %v6718_v39 = vadd.f32 %v16836_v61, %v16835_v19  ;;  %v7449_v19 = vadd.f32 %v16774_v26, %v7410_v58  ;;  %v6889_v61 = vmul.f32 1.442695, %v6830_v6  ;;  %v7488_v2 = vsub.f32 0.0, %v7452_v43 }
 0xaa8   :  { %10756 = vset.pattern.permute.xlu0 %v16440_v28  ;;  %v11213_v18 = vpop.eup %11212  ;;  %11240 = vrcp.f32 %v7590_v30  ;;  %v6883_v30 = vmul.f32 1.442695, %v6827_v40  ;;  %v7415_v58 = vadd.f32 %v15535_v60, %v16741_v11 }
 0xaa9   :  { %8020 = vperm.xlu0 %10756, %v11211_v35   ;;  %v11215_v14 = vpop.eup %11214  ;;  %v7587_v62 = vadd.f32 1.0, %v11213_v18  ;;  %v16838_v35 = vld [vmem:[#allocation111_spill] sm:$0xff]  ;;  %v6754_v32 = vadd.f32 %v6718_v39, %v6645_v16  ;;  %11242 = vpow2.f32 %v7546_v44  ;;  %v7550_v40 = vmul.f32 1.442695, %v7488_v2 }
 0xaaa   :  { %10749 = vset.pattern.permute.xlu1 %v16440_v28  ;;  %v11217_v10 = vpop.eup %11216  ;;  %v6715_v38 = vadd.f32 %v16838_v35, %v16837_v17 }
 0xaab   :  { %v15616_v3 = vpop.permute.xlu0 %6576  ;;  %v15624_v57 = vpop.permute.xlu1 %7343  ;;  %8005 = vperm.xlu1 %10749, %v11215_v14   ;;  %v6934_v49 = vadd.f32 1.0, %v11217_v10  ;;  %11244 = vrcp.f32 %v7587_v62  ;;  %v6796_v16 = vadd.f32 %v15600_v53, %v6754_v32  ;;  %v7485_v10 = vsub.f32 0.0, %v7449_v19  ;;  %v16841_v32 = vld [vmem:[#allocation17_spill] sm:$0xff] }
 0xaac   :  { %v11219_v41 = vpop.eup %11218  ;;  %v6751_v18 = vadd.f32 %v6715_v38, %v6642_v23  ;;  %11246 = vpow2.f32 %v7540_v48  ;;  %v11402_v23 = vld [vmem:[%s16302_s16 + $0xd8] sm:$0xff]  ;;  %v16839_v38 = vld [vmem:[#allocation87_spill] sm:$0xff]  ;;  %v7454_v19 = vadd.f32 %v16774_v26, %v7415_v58 }
 0xaad   :  { %10758 = vset.pattern.permute.xlu0 %v16801_v54  ;;  %v11221_v51 = vpop.eup %11220  ;;  %11248 = vrcp.f32 %v6934_v49  ;;  %v6647_v6 = vmul.f32 %v11402_v23, %v15524_v1  ;;  %v7412_v43 = vadd.f32 %v16839_v38, %v15462_v36  ;;  %v16840_v48 = vld [vmem:[#allocation49_spill] sm:$0xff]  ;;  %v6832_v49 = vsub.f32 0.0, %v6796_v16  ;;  %v16843_v23 = vld [vmem:[#allocation114_spill] sm:$0xff] }
 0xaae   :  { %8627 = vperm.xlu0 %10758, %v11219_v41   ;;  %v11223_v15 = vpop.eup %11222  ;;  %v6793_v35 = vadd.f32 %v15600_v53, %v6751_v18  ;;  %11250 = vpow2.f32 %v6889_v61  ;;  %v7544_v18 = vmul.f32 1.442695, %v7485_v10  ;;  %v11403_v61 = vld [vmem:[%s16302_s16 + $0xc0] sm:$0xff] }
 0xaaf   :  { %v15631_v14 = vpop.permute.xlu0 %7345  ;;  %v15633_v17 = vpop.permute.xlu1 %8411  ;;  %10751 = vset.pattern.permute.xlu1 %v16801_v54  ;;  %v6931_v44 = vadd.f32 1.0, %v11223_v15  ;;  %11252 = vpow2.f32 %v6883_v30  ;;  %v6644_v36 = vmul.f32 %v11403_v61, %v15457_v7  ;;  %v16842_v10 = vld [vmem:[#allocation15_spill] sm:$0xff]  ;;  %v7451_v38 = vadd.f32 %v16774_v26, %v7412_v43 }
 0xab0   :  { %v11225_v46 = vpop.eup %11224  ;;  %8612 = vperm.xlu1 %10751, %v11221_v51   ;;  %v6720_v51 = vadd.f32 %v16841_v32, %v16840_v48  ;;  %v6829_v30 = vsub.f32 0.0, %v6793_v35  ;;  %v7490_v48 = vsub.f32 0.0, %v7454_v19 }
 0xab1   :  { %v11227_v56 = vpop.eup %11226  ;;  %v7592_v62 = vadd.f32 1.0, %v11225_v46  ;;  %11254 = vrcp.f32 %v6931_v44  ;;  %v7487_v19 = vsub.f32 0.0, %v7451_v38 }
 0xab2   :  { %10760 = vset.pattern.permute.xlu0 %v16440_v28  ;;  %v11229_v41 = vpop.eup %11228  ;;  %v6756_v46 = vadd.f32 %v6720_v51, %v6647_v6  ;;  %v6893_v6 = vmul.f32 1.442695, %v6832_v49 }
 0xab3   :  { %8030 = vperm.xlu0 %10760, %v11227_v56   ;;  %v15644_v39 = vpop.permute.xlu0 %8416  ;;  %v15647_v11 = vpop.permute.xlu1 %6578  ;;  %11256 = vrcp.f32 %v7592_v62 }
 0xab4   :  { %v11231_v60 = vpop.eup %11230  ;;  %10753 = vset.pattern.permute.xlu1 %v16440_v28  ;;  %11258 = vpow2.f32 %v7550_v40  ;;  %v6798_v35 = vadd.f32 %v15600_v53, %v6756_v46  ;;  %v7554_v46 = vmul.f32 1.442695, %v7490_v48 }
 0xab5   :  { %v11233_v1 = vpop.eup %11232  ;;  %8015 = vperm.xlu1 %10753, %v11229_v41   ;;  %v7589_v56 = vadd.f32 1.0, %v11231_v60  ;;  %v6717_v41 = vadd.f32 %v16843_v23, %v16842_v10  ;;  %11260 = vpow2.f32 %v7544_v18  ;;  %v11404_v18 = vld [vmem:[%s16302_s16 + $0xe8] sm:$0xff]  ;;  %v16845_v10 = vld [vmem:[#allocation78_spill] sm:$0xff]  ;;  %v16846_v23 = vld [vmem:[#allocation37_spill] sm:$0xff] }
 0xab6   :  { %v11235_v15 = vpop.eup %11234  ;;  %v6936_v44 = vadd.f32 1.0, %v11233_v1  ;;  %v6887_v1 = vmul.f32 1.442695, %v6829_v30  ;;  %v6649_v61 = vmul.f32 %v11404_v18, %v15563_v42  ;;  %v16847_v42 = vld [vmem:[#allocation91_spill] sm:$0xff]  ;;  %v16848_v18 = vld [vmem:[#allocation32_spill] sm:$0xff] }
 0xab7   :  { %10762 = vset.pattern.permute.xlu0 %v16801_v54  ;;  %v15660_v2 = vpop.permute.xlu0 %6580  ;;  %v15662_v16 = vpop.permute.xlu1 %7347  ;;  %v6753_v62 = vadd.f32 %v6717_v41, %v6644_v36  ;;  %11262 = vrcp.f32 %v7589_v56  ;;  %v6722_v41 = vadd.f32 %v16846_v23, %v16845_v10 }
 0xab8   :  { %8637 = vperm.xlu0 %10762, %v11235_v15   ;;  %v11237_v58 = vpop.eup %11236  ;;  %v16844_v15 = vld [vmem:[#allocation96_spill] sm:$0xff]  ;;  %11264 = vrcp.f32 %v6936_v44 }
 0xab9   :  { %v11239_v7 = vpop.eup %11238  ;;  %10755 = vset.pattern.permute.xlu1 %v16801_v54  ;;  %v7417_v43 = vadd.f32 %v15576_v20, %v16844_v15  ;;  %11266 = vpow2.f32 %v6893_v6  ;;  %v6795_v20 = vadd.f32 %v15600_v53, %v6753_v62  ;;  %v7548_v62 = vmul.f32 1.442695, %v7487_v19 }
 0xaba   :  { %v11241_v32 = vpop.eup %11240  ;;  %8622 = vperm.xlu1 %10755, %v11237_v58   ;;  %v6933_v49 = vadd.f32 1.0, %v11239_v7  ;;  %v6834_v58 = vsub.f32 0.0, %v6798_v35  ;;  %11268 = vpow2.f32 %v6887_v1  ;;  %v7414_v7 = vadd.f32 %v16847_v42, %v15506_v5  ;;  %v11405_v35 = vld [vmem:[%s16302_s16 + $0xd0] sm:$0xff] }
 0xabb   :  { %v15669_v60 = vpop.permute.xlu0 %7349  ;;  %v11243_v51 = vpop.eup %11242  ;;  %v7456_v6 = vadd.f32 %v16774_v26, %v7417_v43  ;;  %v6758_v15 = vadd.f32 %v6722_v41, %v6649_v61  ;;  %v6831_v43 = vsub.f32 0.0, %v6795_v20 }
 0xabc   :  { %v15673_v40 = vpop.permute.xlu1 %8421  ;;  %10764 = vset.pattern.permute.xlu0 %v16440_v28  ;;  %v11245_v36 = vpop.eup %11244  ;;  %v7594_v30 = vadd.f32 1.0, %v11243_v51  ;;  %11270 = vrcp.f32 %v6933_v49  ;;  %v6646_v51 = vmul.f32 %v11405_v35, %v15493_v24  ;;  %v6897_v49 = vmul.f32 1.442695, %v6834_v58 }
 0xabd   :  { %8040 = vperm.xlu0 %10764, %v11241_v32   ;;  %v11247_v56 = vpop.eup %11246  ;;  %11272 = vpow2.f32 %v7554_v46  ;;  %v7492_v24 = vsub.f32 0.0, %v7456_v6  ;;  %v16850_v58 = vmov 2  }
 0xabe   :  { %10757 = vset.pattern.permute.xlu1 %v16440_v28  ;;  %v11249_v38 = vpop.eup %11248  ;;  %v7591_v1 = vadd.f32 1.0, %v11247_v56  ;;  %11274 = vrcp.f32 %v7594_v30  ;;  %v7453_v28 = vadd.f32 %v16774_v26, %v7414_v7  ;;  %v6800_v30 = vadd.f32 %v15600_v53, %v6758_v15  ;;  %v11406_v15 = vld [vmem:[%s16302_s16 + $0xf8] sm:$0xff] }
 0xabf   :  { %v15684_v44 = vpop.permute.xlu0 %8426  ;;  %8025 = vperm.xlu1 %10757, %v11245_v36   ;;  %v11251_v32 = vpop.eup %11250  ;;  %v16849_v36 = vld [vmem:[#allocation36_spill] sm:$0xff]  ;;  %11276 = vpow2.f32 %v7548_v62 }
 0xac0   :  { %v15689_v48 = vpop.permute.xlu1 %6582  ;;  %v11253_v5 = vpop.eup %11252  ;;  %v6719_v10 = vadd.f32 %v16849_v36, %v16848_v18  ;;  %v6938_v42 = vadd.f32 1.0, %v11251_v32  ;;  %11278 = vrcp.f32 %v7591_v1  ;;  %v16851_v32 = vld [vmem:[#allocation100_spill] sm:$0xff]  ;;  %v7489_v62 = vsub.f32 0.0, %v7453_v28 }
 0xac1   :  { %10766 = vset.pattern.permute.xlu0 %v16801_v54  ;;  %v11255_v23 = vpop.eup %11254  ;;  %v6935_v41 = vadd.f32 1.0, %v11253_v5  ;;  %11280 = vpow2.f32 %v6897_v49  ;;  %v7419_v7 = vadd.f32 %v15624_v57, %v16851_v32  ;;  %v6651_v1 = vmul.f32 %v11406_v15, %v15603_v33  ;;  %v16852_v57 = vld [vmem:[#allocation93_spill] sm:$0xff]  ;;  %v16856_v32 = vld [vmem:[#allocation80_spill] sm:$0xff] }
 0xac2   :  { %8647 = vperm.xlu0 %10766, %v11249_v38   ;;  %v11257_v46 = vpop.eup %11256  ;;  %v6755_v56 = vadd.f32 %v6719_v10, %v6646_v51  ;;  %v6891_v38 = vmul.f32 1.442695, %v6831_v43  ;;  %11282 = vrcp.f32 %v6938_v42  ;;  %v7558_v51 = vmul.f32 1.442695, %v7492_v24  ;;  %v16853_v42 = vld [vmem:[#allocation39_spill] sm:$0xff] }
 0xac3   :  { %v15698_v19 = vpop.permute.xlu0 %8436  ;;  %10759 = vset.pattern.permute.xlu1 %v16801_v54  ;;  %v11259_v20 = vpop.eup %11258  ;;  %v7416_v10 = vadd.f32 %v16852_v57, %v15546_v45  ;;  %v6836_v49 = vsub.f32 0.0, %v6800_v30  ;;  %11284 = vrcp.f32 %v6935_v41  ;;  %v6724_v24 = vadd.f32 %v16853_v42, %v15106_v63  ;;  %v16855_v41 = vld [vmem:[#allocation34_spill] sm:$0xff] }
 0xac4   :  { %v15701_v61 = vpop.permute.xlu1 %8431  ;;  %8632 = vperm.xlu1 %10759, %v11255_v23   ;;  %v11261_v35 = vpop.eup %11260  ;;  %v7596_v18 = vadd.f32 1.0, %v11259_v20  ;;  %v6797_v36 = vadd.f32 %v15600_v53, %v6755_v56  ;;  %v11407_v23 = vld [vmem:[%s16302_s16 + $0xe0] sm:$0xff]  ;;  %11286 = vpow2.f32 %v6891_v38  ;;  %v7458_v45 = vadd.f32 %v16774_v26, %v7419_v7 }
 0xac5   :  { %v11263_v43 = vpop.eup %11262  ;;  %v6648_v33 = vmul.f32 %v11407_v23, %v15531_v27  ;;  %v7593_v56 = vadd.f32 1.0, %v11261_v35  ;;  %v7552_v20 = vmul.f32 1.442695, %v7489_v62  ;;  %v6721_v15 = vadd.f32 %v16856_v32, %v16855_v41  ;;  %v16857_v32 = vld [vmem:[#allocation52_spill] sm:$0xff] }
 0xac6   :  { %10768 = vset.pattern.permute.xlu0 %v16850_v58  ;;  %v11265_v28 = vpop.eup %11264  ;;  %11288 = vpow2.f32 %v7558_v51  ;;  %v6760_v57 = vadd.f32 %v6724_v24, %v6651_v1  ;;  %v7455_v38 = vadd.f32 %v16774_v26, %v7416_v10  ;;  %v6901_v35 = vmul.f32 1.442695, %v6836_v49 }
 0xac7   :  { %8050 = vperm.xlu0 %10768, %v11257_v46   ;;  %v15708_v6 = vpop.permute.xlu0 %8446  ;;  %v11267_v46 = vpop.eup %11266  ;;  %11290 = vrcp.f32 %v7596_v18  ;;  %v6757_v42 = vadd.f32 %v6721_v15, %v6648_v33  ;;  %v16858_v15 = vld [vmem:[#allocation82_spill] sm:$0xff] }
 0xac8   :  { %v15714_v5 = vpop.permute.xlu1 %8441  ;;  %10761 = vset.pattern.permute.xlu1 %v16850_v58  ;;  %v11269_v63 = vpop.eup %11268  ;;  %v6940_v23 = vadd.f32 1.0, %v11267_v46  ;;  %11292 = vrcp.f32 %v7593_v56  ;;  %v6802_v18 = vadd.f32 %v15600_v53, %v6760_v57  ;;  %v7491_v49 = vsub.f32 0.0, %v7455_v38 }
 0xac9   :  { %8035 = vperm.xlu1 %10761, %v11263_v43   ;;  %v6833_v43 = vsub.f32 0.0, %v6797_v36  ;;  %v11271_v7 = vpop.eup %11270  ;;  %v6937_v24 = vadd.f32 1.0, %v11269_v63  ;;  %11294 = vpow2.f32 %v7552_v20  ;;  %v6799_v56 = vadd.f32 %v15600_v53, %v6757_v42  ;;  %v16859_v63 = vld [vmem:[#allocation95_spill] sm:$0xff]  ;;  %v16861_v42 = vld [vmem:[#allocation84_spill] sm:$0xff] }
 0xaca   :  { %v11273_v62 = vpop.eup %11272  ;;  %11296 = vpow2.f32 %v6901_v35  ;;  %v6723_v57 = vadd.f32 %v16858_v15, %v16857_v32  ;;  %v11409_v35 = vld [vmem:[%s16302_s16 + $0xf0] sm:$0xff] }
 0xacb   :  { %10770 = vset.pattern.permute.xlu0 %v16801_v54  ;;  %v15728_v30 = vpop.permute.xlu0 %8456  ;;  %v11275_v1 = vpop.eup %11274  ;;  %v6895_v10 = vmul.f32 1.442695, %v6833_v43  ;;  %11298 = vrcp.f32 %v6940_v23  ;;  %v7598_v46 = vadd.f32 1.0, %v11273_v62  ;;  %v7418_v43 = vadd.f32 %v16859_v63, %v15592_v59  ;;  %v16860_v23 = vld [vmem:[#allocation53_spill] sm:$0xff] }
 0xacc   :  { %16854 = vst [vmem:[#allocation19_spill] sm:$0xff] %v15728_v30  ;;  %v15732_v27 = vpop.permute.xlu1 %8451  ;;  %8657 = vperm.xlu0 %10770, %v11265_v28   ;;  %v7494_v30 = vsub.f32 0.0, %v7458_v45  ;;  %v7421_v28 = vadd.f32 %v15662_v16, %v16766_v50  ;;  %v11277_v33 = vpop.eup %11276  ;;  %v11408_v45 = vld [vmem:[%s16302_s16 + $0x108] sm:$0xff]  ;;  %11300 = vrcp.f32 %v6937_v24  ;;  %v6726_v62 = vadd.f32 %v16861_v42, %v16860_v23 }
 0xacd   :  { %10763 = vset.pattern.permute.xlu1 %v16801_v54  ;;  %v6653_v20 = vmul.f32 %v11408_v45, %v15647_v11  ;;  %v11279_v41 = vpop.eup %11278  ;;  %v6650_v11 = vmul.f32 %v11409_v35, %v15570_v31  ;;  %11302 = vpow2.f32 %v6895_v10  ;;  %v7556_v45 = vmul.f32 1.442695, %v7491_v49  ;;  %v11410_v31 = vld [vmem:[%s16302_s16 + $0x118] sm:$0xff] }
 0xace   :  { %8642 = vperm.xlu1 %10763, %v11271_v7   ;;  %v7562_v50 = vmul.f32 1.442695, %v7494_v30  ;;  %v11281_v38 = vpop.eup %11280  ;;  %v6838_v7 = vsub.f32 0.0, %v6802_v18  ;;  %v7595_v30 = vadd.f32 1.0, %v11277_v33  ;;  %v7460_v32 = vadd.f32 %v16774_v26, %v7421_v28 }
 0xacf   :  { %v15736_v51 = vpop.permute.xlu0 %8466  ;;  %v11283_v59 = vpop.eup %11282  ;;  %11304 = vrcp.f32 %v7598_v46  ;;  %v6835_v24 = vsub.f32 0.0, %v6799_v56  ;;  %v6762_v15 = vadd.f32 %v6726_v62, %v6653_v20  ;;  %v6655_v18 = vmul.f32 %v11410_v31, %v15689_v48  ;;  %v16862_v46 = vld [vmem:[#allocation88_spill] sm:$0xff]  ;;  %v16863_v56 = vld [vmem:[#allocation86_spill] sm:$0xff] }
 0xad0   :  { %v15739_v36 = vpop.permute.xlu1 %8461  ;;  %10772 = vset.pattern.permute.xlu0 %v16850_v58  ;;  %v11285_v63 = vpop.eup %11284  ;;  %v7457_v33 = vadd.f32 %v16774_v26, %v7418_v43  ;;  %11306 = vpow2.f32 %v7562_v50  ;;  %v6759_v28 = vadd.f32 %v6723_v57, %v6650_v11  ;;  %v6905_v35 = vmul.f32 1.442695, %v6838_v7 }
 0xad1   :  { %8060 = vperm.xlu0 %10772, %v11275_v1   ;;  %v11287_v49 = vpop.eup %11286  ;;  %v6728_v20 = vadd.f32 %v16863_v56, %v16862_v46  ;;  %11308 = vpow2.f32 %v7556_v45  ;;  %v7496_v48 = vsub.f32 0.0, %v7460_v32  ;;  %v6899_v43 = vmul.f32 1.442695, %v6835_v24 }
 0xad2   :  { %10765 = vset.pattern.permute.xlu1 %v16850_v58  ;;  %11310 = vrcp.f32 %v7595_v30  ;;  %v6804_v50 = vadd.f32 %v15600_v53, %v6762_v15  ;;  %v6939_v57 = vadd.f32 1.0, %v11287_v49  ;;  %v7493_v11 = vsub.f32 0.0, %v7457_v33 }
 0xad3   :  { %v15754_v16 = vpop.permute.xlu0 %8476  ;;  %8045 = vperm.xlu1 %10765, %v11279_v41   ;;  %v6942_v41 = vadd.f32 1.0, %v11281_v38  ;;  %v11289_v42 = vpop.eup %11288  ;;  %v6764_v62 = vadd.f32 %v6728_v20, %v6655_v18  ;;  %v6801_v45 = vadd.f32 %v15600_v53, %v6759_v28  ;;  %v7566_v24 = vmul.f32 1.442695, %v7496_v48  ;;  %v16864_v18 = vld [vmem:[#allocation98_spill] sm:$0xff] }
 0xad4   :  { %v15762_v1 = vpop.permute.xlu1 %8471  ;;  %v11291_v38 = vpop.eup %11290  ;;  %v7600_v31 = vadd.f32 1.0, %v11289_v42  ;;  %v7560_v46 = vmul.f32 1.442695, %v7493_v11  ;;  %v11411_v28 = vld [vmem:[%s16302_s16 + $0x100] sm:$0xff] }
 0xad5   :  { %10774 = vset.pattern.permute.xlu0 %v16801_v54  ;;  %11312 = vrcp.f32 %v6942_v41  ;;  %v6840_v41 = vsub.f32 0.0, %v6804_v50  ;;  %v6806_v33 = vadd.f32 %v15600_v53, %v6764_v62  ;;  %v16866_v50 = vld [vmem:[#allocation18_spill] sm:$0xff] }
 0xad6   :  { %8667 = vperm.xlu0 %10774, %v11283_v59   ;;  %v11293_v59 = vpop.eup %11292  ;;  %11314 = vpow2.f32 %v6905_v35  ;;  %v6652_v35 = vmul.f32 %v11411_v28, %v15616_v3 }
 0xad7   :  { %v15771_v10 = vpop.permute.xlu0 %8486  ;;  %10767 = vset.pattern.permute.xlu1 %v16801_v54  ;;  %v11295_v30 = vpop.eup %11294  ;;  %11316 = vpow2.f32 %v6899_v43  ;;  %v16865_v43 = vld [vmem:[#allocation94_spill] sm:$0xff]  ;;  %v6909_v3 = vmul.f32 1.442695, %v6840_v41 }
 0xad8   :  { %v15775_v23 = vpop.permute.xlu1 %8481  ;;  %8652 = vperm.xlu1 %10767, %v11285_v63   ;;  %v11297_v15 = vpop.eup %11296  ;;  %v7420_v63 = vadd.f32 %v16864_v18, %v15631_v14  ;;  %11318 = vrcp.f32 %v6939_v57  ;;  %v7597_v20 = vadd.f32 1.0, %v11295_v30  ;;  %v6837_v14 = vsub.f32 0.0, %v6801_v45 }
 0xad9   :  { %v11299_v49 = vpop.eup %11298  ;;  %11320 = vrcp.f32 %v7600_v31  ;;  %v6725_v62 = vadd.f32 %v16866_v50, %v16865_v43  ;;  %v16867_v30 = vlaneseq }
 0xada   :  { %10776 = vset.pattern.permute.xlu0 %v16850_v58  ;;  %v11301_v48 = vpop.eup %11300  ;;  %11322 = vpow2.f32 %v7566_v24  ;;  %v7459_v11 = vadd.f32 %v16774_v26, %v7420_v63 }
 0xadb   :  { %8070 = vperm.xlu0 %10776, %v11291_v38   ;;  %v15780_v7 = vpop.permute.xlu0 %8496  ;;  %v6944_v38 = vadd.f32 1.0, %v11297_v15  ;;  %v11303_v57 = vpop.eup %11302  ;;  %11324 = vpow2.f32 %v7560_v46  ;;  %v6761_v31 = vadd.f32 %v6725_v62, %v6652_v35  ;;  %v6903_v15 = vmul.f32 1.442695, %v6837_v14  ;;  %v16868_v14 = vld [vmem:[#allocation102_spill] sm:$0xff] }
 0xadc   :  { %v15783_v32 = vpop.permute.xlu1 %8491  ;;  %10769 = vset.pattern.permute.xlu1 %v16850_v58  ;;  %v11305_v18 = vpop.eup %11304  ;;  %11326 = vrcp.f32 %v7597_v20  ;;  %v6941_v63 = vadd.f32 1.0, %v11303_v57  ;;  %v7422_v50 = vadd.f32 %v16868_v14, %v15669_v60 }
 0xadd   :  { %8055 = vperm.xlu1 %10769, %v11293_v59   ;;  %v6842_v59 = vsub.f32 0.0, %v6806_v33  ;;  %v11307_v45 = vpop.eup %11306  ;;  %11328 = vrcp.f32 %v6944_v38  ;;  %v7495_v33 = vsub.f32 0.0, %v7459_v11  ;;  %v6803_v43 = vadd.f32 %v15600_v53, %v6761_v31  ;;  %v11412_v11 = vld [vmem:[%s16302_s16 + $0x110] sm:$0xff] }
 0xade   :  { %v11309_v41 = vpop.eup %11308  ;;  %11330 = vpow2.f32 %v6909_v3  ;;  %v6654_v3 = vmul.f32 %v11412_v11, %v15660_v2  ;;  %v16872_v2 = vld [vmem:[#allocation109_spill] sm:$0xff] }
 0xadf   :  { %10778 = vset.pattern.permute.xlu0 %v16801_v54  ;;  %v15794_v56 = vpop.permute.xlu0 %8506  ;;  %v6913_v46 = vmul.f32 1.442695, %v6842_v59  ;;  %v11311_v35 = vpop.eup %11310  ;;  %11332 = vpow2.f32 %v6903_v15  ;;  %v7599_v57 = vadd.f32 1.0, %v11309_v41  ;;  %v7564_v60 = vmul.f32 1.442695, %v7495_v33  ;;  %v16870_v15 = vld [vmem:[#allocation42_spill] sm:$0xff] }
 0xae0   :  { %v15796_v42 = vpop.permute.xlu1 %8501  ;;  %8677 = vperm.xlu0 %10778, %v11299_v49   ;;  %v15803_v49 = vand.u32 127, %v16867_v30  ;;  %11334 = vrcp.f32 %v6941_v63  ;;  %v6839_v30 = vsub.f32 0.0, %v6803_v43  ;;  %v16871_v63 = vld [vmem:[#allocation41_spill] sm:$0xff]  ;;  %v7461_v33 = vadd.f32 %v16774_v26, %v7422_v50 }
 0xae1   :  { %10771 = vset.pattern.permute.xlu1 %v16801_v54  ;;  %11336 = vpow2.f32 %v6913_v46  ;;  %v6727_v41 = vadd.f32 %v16871_v63, %v16870_v15 }
 0xae2   :  { %8662 = vperm.xlu1 %10771, %v11301_v48   ;;  %v7602_v48 = vadd.f32 1.0, %v11307_v45  ;;  %v11313_v20 = vpop.eup %11312  ;;  %vm7937_vm12 = vcmp.eq.s32.totalorder %v15803_v49, 2  ;;  %vm7935_vm13 = vcmp.eq.s32.totalorder %v15803_v49, 0  ;;  %vm7936_vm14 = vcmp.eq.s32.totalorder %v15803_v49, 1 }
 0xae3   :  { %v11315_v62 = vpop.eup %11314  ;;  %v6907_v26 = vmul.f32 1.442695, %v6839_v30  ;;  %v7497_v50 = vsub.f32 0.0, %v7461_v33 }
 0xae4   :  { %v15805_v28 = vpop.permute.xlu1 %8511  ;;  %10780 = vset.pattern.permute.xlu0 %v16850_v58  ;;  %v15808_v24 = vpop.permute.xlu0 %7945  ;;  %11338 = vrcp.f32 %v7602_v48  ;;  %v6946_v11 = vadd.f32 1.0, %v11315_v62  ;;  %v6763_v48 = vadd.f32 %v6727_v41, %v6654_v3  ;;  %v16873_v41 = vld [vmem:[#allocation108_spill] sm:$0xff] }
 0xae5   :  { %8080 = vperm.xlu0 %10780, %v11305_v18   ;;  %v16869_v18 = vld [vmem:[#allocation107_spill] sm:$0xff]  ;;  %v11317_v45 = vpop.eup %11316  ;;  %11340 = vrcp.f32 %v7599_v57 }
 0xae6   :  { %10773 = vset.pattern.permute.xlu1 %v16850_v58  ;;  %v11319_v14 = vpop.eup %11318  ;;  %11342 = vpow2.f32 %v7564_v60 }
 0xae7   :  { %8065 = vperm.xlu1 %10773, %v11311_v35   ;;  %11344 = vrcp.f32 %v6946_v11  ;;  %v7568_v11 = vmul.f32 1.442695, %v7497_v50 }
 0xae8   :  { %v15816_v38 = vpop.permute.xlu0 %7960  ;;  %v7941_v59 = vpop.permute.xlu1 %7940 }
 0xae9   :  { %10782 = vset.pattern.permute.xlu0 %v16801_v54  ;;  %v8298_v31 = vsel %vm7937_vm12, %v7941_v59, %v16869_v18  ;;  %v6943_v18 = vadd.f32 1.0, %v11317_v45 }
 0xaea   :  { %8687 = vperm.xlu0 %10782, %v11313_v20   ;;  %v8514_v35 = vsel %vm7936_vm14, %v16872_v2, %v8298_v31  ;;  %v11321_v20 = vpop.eup %11320  ;;  %v6805_v31 = vadd.f32 %v15600_v53, %v6763_v48 }
 0xaeb   :  { %v8730_v46 = vsel %vm7935_vm13, %v15390_v34, %v8514_v35  ;;  %10775 = vset.pattern.permute.xlu1 %v16801_v54  ;;  %v11323_v62 = vpop.eup %11322  ;;  %11346 = vrcp.f32 %v6943_v18  ;;  %v16874_v35 = vld [vmem:[#allocation106_spill] sm:$0xff] }
 0xaec   :  { %8767 = vst.msk [vmem:[%s16304_s18] sm:$0xff] %vm8766_vm15, %v8730_v46  ;;  %v7951_v43 = vpop.permute.xlu1 %7950  ;;  %8672 = vperm.xlu1 %10775, %v11319_v14   ;;  %v11325_v34 = vpop.eup %11324  ;;  %v7604_v3 = vadd.f32 1.0, %v11323_v62  ;;  %11348 = vpow2.f32 %v6907_v26  ;;  %v8299_v53 = vsel %vm7937_vm12, %v15808_v24, %v16874_v35 }
 0xaed   :  { %v8568_v59 = vpop.permute.xlu0 %8567  ;;  %v11327_v57 = vpop.eup %11326  ;;  %v7601_v2 = vadd.f32 1.0, %v11325_v34 }
 0xaee   :  { %10784 = vset.pattern.permute.xlu0 %v16850_v58  ;;  %v11329_v63 = vpop.eup %11328  ;;  %11350 = vrcp.f32 %v7604_v3 }
 0xaef   :  { %8090 = vperm.xlu0 %10784, %v11321_v20   ;;  %v11331_v30 = vpop.eup %11330  ;;  %v6841_v20 = vsub.f32 0.0, %v6805_v31  ;;  %11352 = vrcp.f32 %v7601_v2 }
 0xaf0   :  { %v7956_v15 = vpop.permute.xlu1 %7955  ;;  %10777 = vset.pattern.permute.xlu1 %v16850_v58  ;;  %v11333_v46 = vpop.eup %11332  ;;  %v6948_v48 = vadd.f32 1.0, %v11331_v30  ;;  %11354 = vpow2.f32 %v7568_v11  ;;  %v16876_v11 = vld [vmem:[#allocation30_spill] sm:$0xff] }
 0xaf1   :  { %v8301_v60 = vsel %vm7937_vm12, %v7956_v15, %v16873_v41  ;;  %8075 = vperm.xlu1 %10777, %v11327_v57   ;;  %v11335_v24 = vpop.eup %11334  ;;  %v6945_v3 = vadd.f32 1.0, %v11333_v46  ;;  %v16877_v46 = vld [vmem:[#allocation113_spill] sm:$0xff] }
 0xaf2   :  { %v15847_v45 = vpop.permute.xlu0 %7970  ;;  %v8517_v14 = vsel %vm7936_vm14, %v15392_v37, %v8301_v60  ;;  %v8515_v37 = vsel %vm7936_vm14, %v15353_v55, %v8299_v53  ;;  %v11337_v18 = vpop.eup %11336  ;;  %v6911_v55 = vmul.f32 1.442695, %v6841_v20  ;;  %11356 = vrcp.f32 %v6948_v48 }
 0xaf3   :  { %10786 = vset.pattern.permute.xlu0 %v16801_v54  ;;  %v8733_v33 = vsel %vm7935_vm13, %v8568_v59, %v8517_v14  ;;  %v16875_v59 = vld [vmem:[#allocation110_spill] sm:$0xff]  ;;  %v11339_v57 = vpop.eup %11338  ;;  %11358 = vrcp.f32 %v6945_v3  ;;  %v8302_v20 = vsel %vm7937_vm12, %v15816_v38, %v16877_v46 }
 0xaf4   :  { %8697 = vperm.xlu0 %10786, %v11329_v63   ;;  %8770 = vst.msk [vmem:[%s16304_s18 + $0x18] sm:$0xff] %vm8766_vm15, %v8733_v33  ;;  %v8300_v26 = vsel %vm7937_vm12, %v7951_v43, %v16875_v59  ;;  %v11341_v31 = vpop.eup %11340  ;;  %v6950_v43 = vadd.f32 1.0, %v11337_v18  ;;  %11360 = vpow2.f32 %v6911_v55 }
 0xaf5   :  { %v8558_v62 = vpop.permute.xlu1 %8557  ;;  %10779 = vset.pattern.permute.xlu1 %v16801_v54  ;;  %v8516_v15 = vsel %vm7936_vm14, %v15363_v8, %v8300_v26  ;;  %v11343_v41 = vpop.eup %11342 }
 0xaf6   :  { %v8731_v34 = vsel %vm7935_vm13, %v8558_v62, %v8515_v37  ;;  %8682 = vperm.xlu1 %10779, %v11335_v24   ;;  %v11345_v2 = vpop.eup %11344  ;;  %v7603_v8 = vadd.f32 1.0, %v11343_v41  ;;  %11362 = vrcp.f32 %v6950_v43  ;;  %v16878_v43 = vld [vmem:[#allocation112_spill] sm:$0xff]  ;;  %v16879_v41 = vld [vmem:[#allocation117_spill] sm:$0xff] }
 0xaf7   :  { %v8578_v50 = vpop.permute.xlu0 %8577  ;;  %8768 = vst.msk [vmem:[%s16304_s18 + $0x8] sm:$0xff] %vm8766_vm15, %v8731_v34 }
 0xaf8   :  { %10788 = vset.pattern.permute.xlu0 %v16850_v58  ;;  %v11347_v35 = vpop.eup %11346  ;;  %11364 = vrcp.f32 %v7603_v8 }
 0xaf9   :  { %8100 = vperm.xlu0 %10788, %v11339_v57   ;;  %v8563_v63 = vpop.permute.xlu1 %8562  ;;  %v11349_v14 = vpop.eup %11348 }
 0xafa   :  { %v8732_v60 = vsel %vm7935_vm13, %v8563_v63, %v8516_v15  ;;  %10781 = vset.pattern.permute.xlu1 %v16850_v58  ;;  %v6947_v18 = vadd.f32 1.0, %v11349_v14 }
 0xafb   :  { %8769 = vst.msk [vmem:[%s16304_s18 + $0x10] sm:$0xff] %vm8766_vm15, %v8732_v60  ;;  %8085 = vperm.xlu1 %10781, %v11341_v31   ;;  %v11351_v62 = vpop.eup %11350  ;;  %v8304_v60 = vsel %vm7937_vm12, %v15847_v45, %v16879_v41  ;;  %v16884_v41 = vld [vmem:[#allocation121_spill] sm:$0xff] }
 0xafc   :  { %v15887_v30 = vpop.permute.xlu0 %7980  ;;  %v11353_v38 = vpop.eup %11352  ;;  %11366 = vrcp.f32 %v6947_v18  ;;  %v8520_v45 = vsel %vm7936_vm14, %v15435_v52, %v8304_v60 }
 0xafd   :  { %10790 = vset.pattern.permute.xlu0 %v16801_v54  ;;  %v11355_v26 = vpop.eup %11354 }
 0xafe   :  { %8707 = vperm.xlu0 %10790, %v11345_v2   ;;  %v7966_v53 = vpop.permute.xlu1 %7965  ;;  %v7605_v3 = vadd.f32 1.0, %v11355_v26 }
 0xaff   :  { %v8303_v33 = vsel %vm7937_vm12, %v7966_v53, %v16876_v11  ;;  %10783 = vset.pattern.permute.xlu1 %v16801_v54  ;;  %v11357_v57 = vpop.eup %11356 }
 0xb00   :  { %v8519_v24 = vsel %vm7936_vm14, %v15429_v12, %v8303_v33  ;;  %8692 = vperm.xlu1 %10783, %v11347_v35   ;;  %v8518_v12 = vsel %vm7936_vm14, %v15397_v21, %v8302_v20  ;;  %v11359_v21 = vpop.eup %11358  ;;  %11368 = vrcp.f32 %v7605_v3  ;;  %v16882_v3 = vld [vmem:[#allocation118_spill] sm:$0xff] }
 0xb01   :  { %v8588_v48 = vpop.permute.xlu0 %8587  ;;  %v8735_v37 = vsel %vm7935_vm13, %v8578_v50, %v8519_v24  ;;  %v11361_v31 = vpop.eup %11360  ;;  %v16880_v24 = vld [vmem:[#allocation116_spill] sm:$0xff] }
 0xb02   :  { %10792 = vset.pattern.permute.xlu0 %v16850_v58  ;;  %8772 = vst.msk [vmem:[%s16304_s18 + $0x28] sm:$0xff] %vm8766_vm15, %v8735_v37  ;;  %v6949_v53 = vadd.f32 1.0, %v11361_v31 }
 0xb03   :  { %8110 = vperm.xlu0 %10792, %v11351_v62   ;;  %v8573_v59 = vpop.permute.xlu1 %8572  ;;  %v11363_v63 = vpop.eup %11362 }
 0xb04   :  { %v8734_v34 = vsel %vm7935_vm13, %v8573_v59, %v8518_v12  ;;  %10785 = vset.pattern.permute.xlu1 %v16850_v58  ;;  %11370 = vrcp.f32 %v6949_v53 }
 0xb05   :  { %8771 = vst.msk [vmem:[%s16304_s18 + $0x20] sm:$0xff] %vm8766_vm15, %v8734_v34  ;;  %8095 = vperm.xlu1 %10785, %v11353_v38   ;;  %v11365_v11 = vpop.eup %11364 }
 0xb06   :  { %v7991_v50 = vpop.permute.xlu0 %7990 }
 0xb07   :  { %10794 = vset.pattern.permute.xlu0 %v16801_v54 }
 0xb08   :  { %8717 = vperm.xlu0 %10794, %v11357_v57   ;;  %v7976_v55 = vpop.permute.xlu1 %7975 }
 0xb09   :  { %v8305_v15 = vsel %vm7937_vm12, %v7976_v55, %v16878_v43  ;;  %10787 = vset.pattern.permute.xlu1 %v16801_v54  ;;  %v11367_v20 = vpop.eup %11366 }
 0xb0a   :  { %v8521_v2 = vsel %vm7936_vm14, %v15465_v25, %v8305_v15  ;;  %8702 = vperm.xlu1 %10787, %v11359_v21  }
 0xb0b   :  { %v8598_v8 = vpop.permute.xlu0 %8597  ;;  %v8737_v35 = vsel %vm7935_vm13, %v8588_v48, %v8521_v2  ;;  %v16881_v48 = vld [vmem:[#allocation119_spill] sm:$0xff]  ;;  %v16885_v2 = vld [vmem:[#allocation125_spill] sm:$0xff] }
 0xb0c   :  { %8727 = vperm.xlu0 %10794, %v11363_v63   ;;  %8774 = vst.msk [vmem:[%s16304_s18 + $0x38] sm:$0xff] %vm8766_vm15, %v8737_v35  ;;  %v8306_v62 = vsel %vm7937_vm12, %v15887_v30, %v16881_v48 }
 0xb0d   :  { %v8583_v14 = vpop.permute.xlu1 %8582  ;;  %v8522_v12 = vsel %vm7936_vm14, %v15480_v9, %v8306_v62  ;;  %v11369_v30 = vpop.eup %11368  ;;  %v16883_v9 = vld [vmem:[#allocation122_spill] sm:$0xff] }
 0xb0e   :  { %v8736_v25 = vsel %vm7935_vm13, %v8583_v14, %v8520_v45  ;;  %10789 = vset.pattern.permute.xlu1 %v16850_v58  ;;  %v8308_v55 = vsel %vm7937_vm12, %v7991_v50, %v16883_v9 }
 0xb0f   :  { %8773 = vst.msk [vmem:[%s16304_s18 + $0x30] sm:$0xff] %vm8766_vm15, %v8736_v25  ;;  %8105 = vperm.xlu1 %10789, %v11365_v11  }
 0xb10   :  { %v8001_v33 = vpop.permute.xlu0 %8000 }
 0xb11   :  { %v11371_v57 = vpop.eup %11370 }
 0xb12   :  { %v7986_v46 = vpop.permute.xlu1 %7985 }
 0xb13   :  { %v8307_v52 = vsel %vm7937_vm12, %v7986_v46, %v16880_v24  ;;  %10791 = vset.pattern.permute.xlu1 %v16801_v54 }
 0xb14   :  { %v8523_v37 = vsel %vm7936_vm14, %v15509_v13, %v8307_v52  ;;  %8712 = vperm.xlu1 %10791, %v11367_v20   ;;  %v16887_v20 = vld [vmem:[#allocation127_spill] sm:$0xff] }
 0xb15   :  { %v8608_v18 = vpop.permute.xlu0 %8607  ;;  %v8739_v38 = vsel %vm7935_vm13, %v8598_v8, %v8523_v37  ;;  %v8310_v8 = vsel %vm7937_vm12, %v8001_v33, %v16885_v2  ;;  %v16886_v33 = vld [vmem:[#allocation124_spill] sm:$0xff] }
 0xb16   :  { %8776 = vst.msk [vmem:[%s16304_s18 + $0x48] sm:$0xff] %vm8766_vm15, %v8739_v38  ;;  %v8526_v45 = vsel %vm7936_vm14, %v15560_v4, %v8310_v8  ;;  %v16893_v8 = vld [vmem:[#allocation65_spill] sm:$0xff] }
 0xb17   :  { %v8593_v59 = vpop.permute.xlu1 %8592 }
 0xb18   :  { %v8738_v26 = vsel %vm7935_vm13, %v8593_v59, %v8522_v12  ;;  %10793 = vset.pattern.permute.xlu1 %v16850_v58  ;;  %v16888_v59 = vld [vmem:[#allocation61_spill] sm:$0xff] }
 0xb19   :  { %8775 = vst.msk [vmem:[%s16304_s18 + $0x40] sm:$0xff] %vm8766_vm15, %v8738_v26  ;;  %8115 = vperm.xlu1 %10793, %v11369_v30   ;;  %v16889_v30 = vld [vmem:[#allocation63_spill] sm:$0xff] }
 0xb1a   :  { %v8011_v13 = vpop.permute.xlu0 %8010 }
 0xb1b   :  { %v8312_v24 = vsel %vm7937_vm12, %v8011_v13, %v16887_v20 }
 0xb1c   :  { %v7996_v34 = vpop.permute.xlu1 %7995  ;;  %v8528_v37 = vsel %vm7936_vm14, %v15598_v0, %v8312_v24 }
 0xb1d   :  { %v8309_v21 = vsel %vm7937_vm12, %v7996_v34, %v16882_v3  ;;  %10795 = vset.pattern.permute.xlu1 %v16801_v54  ;;  %v8524_v54 = vsel %vm7936_vm14, %v15522_v47, %v8308_v55  ;;  %v16890_v55 = vld [vmem:[#allocation99_spill] sm:$0xff] }
 0xb1e   :  { %v8525_v58 = vsel %vm7936_vm14, %v15551_v29, %v8309_v21  ;;  %8722 = vperm.xlu1 %10795, %v11371_v57  }
 0xb1f   :  { %v8618_v31 = vpop.permute.xlu0 %8617  ;;  %v8741_v43 = vsel %vm7935_vm13, %v8608_v18, %v8525_v58 }
 0xb20   :  { %8778 = vst.msk [vmem:[%s16304_s18 + $0x58] sm:$0xff] %vm8766_vm15, %v8741_v43 }
 0xb21   :  { %v8603_v15 = vpop.permute.xlu1 %8602 }
 0xb22   :  { %v8740_v50 = vsel %vm7935_vm13, %v8603_v15, %v8524_v54 }
 0xb23   :  { %8777 = vst.msk [vmem:[%s16304_s18 + $0x50] sm:$0xff] %vm8766_vm15, %v8740_v50 }
 0xb24   :  { %v8021_v29 = vpop.permute.xlu0 %8020 }
 0xb25   :  { %v8314_v26 = vsel %vm7937_vm12, %v8021_v29, %v16889_v30 }
 0xb26   :  { %v8006_v63 = vpop.permute.xlu1 %8005  ;;  %v8530_v3 = vsel %vm7936_vm14, %v15644_v39, %v8314_v26  ;;  %v16898_v26 = vld [vmem:[#allocation19_spill] sm:$0xff] }
 0xb27   :  { %v8311_v60 = vsel %vm7937_vm12, %v8006_v63, %v16884_v41 }
 0xb28   :  { %v8527_v47 = vsel %vm7936_vm14, %v15594_v22, %v8311_v60  ;;  %v16892_v60 = vld [vmem:[#allocation103_spill] sm:$0xff] }
 0xb29   :  { %v8628_v35 = vpop.permute.xlu0 %8627  ;;  %v8743_v53 = vsel %vm7935_vm13, %v8618_v31, %v8527_v47  ;;  %v16891_v31 = vld [vmem:[#allocation26_spill] sm:$0xff] }
 0xb2a   :  { %8780 = vst.msk [vmem:[%s16304_s18 + $0x68] sm:$0xff] %vm8766_vm15, %v8743_v53 }
 0xb2b   :  { %v8613_v14 = vpop.permute.xlu1 %8612 }
 0xb2c   :  { %v8742_v11 = vsel %vm7935_vm13, %v8613_v14, %v8526_v45 }
 0xb2d   :  { %8779 = vst.msk [vmem:[%s16304_s18 + $0x60] sm:$0xff] %vm8766_vm15, %v8742_v11 }
 0xb2e   :  { %v8031_v22 = vpop.permute.xlu0 %8030 }
 0xb2f   :  { %v8316_v43 = vsel %vm7937_vm12, %v8031_v22, %v16891_v31 }
 0xb30   :  { %v8016_v25 = vpop.permute.xlu1 %8015  ;;  %v8532_v29 = vsel %vm7936_vm14, %v15684_v44, %v8316_v43 }
 0xb31   :  { %v8313_v46 = vsel %vm7937_vm12, %v8016_v25, %v16886_v33  ;;  %v16894_v25 = vld [vmem:[#allocation62_spill] sm:$0xff] }
 0xb32   :  { %v8529_v4 = vsel %vm7936_vm14, %v15633_v17, %v8313_v46  ;;  %v16895_v46 = vld [vmem:[#allocation105_spill] sm:$0xff] }
 0xb33   :  { %v8638_v52 = vpop.permute.xlu0 %8637  ;;  %v8745_v48 = vsel %vm7935_vm13, %v8628_v35, %v8529_v4 }
 0xb34   :  { %8782 = vst.msk [vmem:[%s16304_s18 + $0x78] sm:$0xff] %vm8766_vm15, %v8745_v48 }
 0xb35   :  { %v8623_v62 = vpop.permute.xlu1 %8622 }
 0xb36   :  { %v8744_v18 = vsel %vm7935_vm13, %v8623_v62, %v8528_v37 }
 0xb37   :  { %8781 = vst.msk [vmem:[%s16304_s18 + $0x70] sm:$0xff] %vm8766_vm15, %v8744_v18  ;;  %v16896_v18 = vld [vmem:[#allocation14_spill] sm:$0xff] }
 0xb38   :  { %v8041_v17 = vpop.permute.xlu0 %8040 }
 0xb39   :  { %v8318_v47 = vsel %vm7937_vm12, %v8041_v17, %v16893_v8 }
 0xb3a   :  { %v8026_v38 = vpop.permute.xlu1 %8025  ;;  %v8534_v45 = vsel %vm7936_vm14, %v15698_v19, %v8318_v47 }
 0xb3b   :  { %v8315_v12 = vsel %vm7937_vm12, %v8026_v38, %v16888_v59  ;;  %v16897_v38 = vld [vmem:[#allocation68_spill] sm:$0xff] }
 0xb3c   :  { %v8531_v0 = vsel %vm7936_vm14, %v15673_v40, %v8315_v12 }
 0xb3d   :  { %v8648_v13 = vpop.permute.xlu0 %8647  ;;  %v8747_v34 = vsel %vm7935_vm13, %v8638_v52, %v8531_v0 }
 0xb3e   :  { %8784 = vst.msk [vmem:[%s16304_s18 + $0x88] sm:$0xff] %vm8766_vm15, %v8747_v34 }
 0xb3f   :  { %v8633_v57 = vpop.permute.xlu1 %8632 }
 0xb40   :  { %v8746_v21 = vsel %vm7935_vm13, %v8633_v57, %v8530_v3  ;;  %v16899_v57 = vld [vmem:[#allocation69_spill] sm:$0xff] }
 0xb41   :  { %8783 = vst.msk [vmem:[%s16304_s18 + $0x80] sm:$0xff] %vm8766_vm15, %v8746_v21  ;;  %v16900_v21 = vld [vmem:[#allocation28_spill] sm:$0xff] }
 0xb42   :  { %v8051_v40 = vpop.permute.xlu0 %8050 }
 0xb43   :  { %v8320_v20 = vsel %vm7937_vm12, %v8051_v40, %v16895_v46 }
 0xb44   :  { %v8036_v9 = vpop.permute.xlu1 %8035  ;;  %v8536_v48 = vsel %vm7936_vm14, %v15708_v6, %v8320_v20  ;;  %v16906_v20 = vld [vmem:[#allocation132_spill] sm:$0xff] }
 0xb45   :  { %v8317_v58 = vsel %vm7937_vm12, %v8036_v9, %v16890_v55 }
 0xb46   :  { %v8533_v39 = vsel %vm7936_vm14, %v15701_v61, %v8317_v58 }
 0xb47   :  { %v8658_v15 = vpop.permute.xlu0 %8657  ;;  %v8749_v54 = vsel %vm7935_vm13, %v8648_v13, %v8533_v39 }
 0xb48   :  { %8786 = vst.msk [vmem:[%s16304_s18 + $0x98] sm:$0xff] %vm8766_vm15, %v8749_v54  ;;  %v16901_v54 = vld [vmem:[#allocation70_spill] sm:$0xff] }
 0xb49   :  { %v8643_v50 = vpop.permute.xlu1 %8642 }
 0xb4a   :  { %v8748_v63 = vsel %vm7935_vm13, %v8643_v50, %v8532_v29  ;;  %v16902_v29 = vld [vmem:[#allocation29_spill] sm:$0xff] }
 0xb4b   :  { %8785 = vst.msk [vmem:[%s16304_s18 + $0x90] sm:$0xff] %vm8766_vm15, %v8748_v63 }
 0xb4c   :  { %v8061_v61 = vpop.permute.xlu0 %8060 }
 0xb4d   :  { %v8322_v59 = vsel %vm7937_vm12, %v8061_v61, %v16897_v38 }
 0xb4e   :  { %v8046_v41 = vpop.permute.xlu1 %8045  ;;  %v8538_v0 = vsel %vm7936_vm14, %v16898_v26, %v8322_v59 }
 0xb4f   :  { %v8319_v2 = vsel %vm7937_vm12, %v8046_v41, %v16892_v60 }
 0xb50   :  { %v8535_v44 = vsel %vm7936_vm14, %v15714_v5, %v8319_v2 }
 0xb51   :  { %v8668_v35 = vpop.permute.xlu0 %8667  ;;  %v8751_v53 = vsel %vm7935_vm13, %v8658_v15, %v8535_v44  ;;  %v16903_v44 = vld [vmem:[#allocation31_spill] sm:$0xff] }
 0xb52   :  { %8788 = vst.msk [vmem:[%s16304_s18 + $0xa8] sm:$0xff] %vm8766_vm15, %v8751_v53  ;;  %v16904_v53 = vld [vmem:[#allocation129_spill] sm:$0xff] }
 0xb53   :  { %v8653_v14 = vpop.permute.xlu1 %8652 }
 0xb54   :  { %v8750_v11 = vsel %vm7935_vm13, %v8653_v14, %v8534_v45 }
 0xb55   :  { %8787 = vst.msk [vmem:[%s16304_s18 + $0xa0] sm:$0xff] %vm8766_vm15, %v8750_v11 }
 0xb56   :  { %v8071_v5 = vpop.permute.xlu0 %8070 }
 0xb57   :  { %v8324_v40 = vsel %vm7937_vm12, %v8071_v5, %v16900_v21 }
 0xb58   :  { %v8056_v22 = vpop.permute.xlu1 %8055  ;;  %v8540_v43 = vsel %vm7936_vm14, %v15736_v51, %v8324_v40 }
 0xb59   :  { %v8321_v33 = vsel %vm7937_vm12, %v8056_v22, %v16894_v25 }
 0xb5a   :  { %v8537_v19 = vsel %vm7936_vm14, %v15732_v27, %v8321_v33  ;;  %v16905_v33 = vld [vmem:[#allocation74_spill] sm:$0xff] }
 0xb5b   :  { %v8753_v24 = vsel %vm7935_vm13, %v8668_v35, %v8537_v19  ;;  %v8678_v4 = vpop.permute.xlu0 %8677 }
 0xb5c   :  { %8790 = vst.msk [vmem:[%s16304_s18 + $0xb8] sm:$0xff] %vm8766_vm15, %v8753_v24 }
 0xb5d   :  { %v8663_v52 = vpop.permute.xlu1 %8662 }
 0xb5e   :  { %v8752_v62 = vsel %vm7935_vm13, %v8663_v52, %v8536_v48 }
 0xb5f   :  { %8789 = vst.msk [vmem:[%s16304_s18 + $0xb0] sm:$0xff] %vm8766_vm15, %v8752_v62 }
 0xb60   :  { %v8081_v27 = vpop.permute.xlu0 %8080 }
 0xb61   :  { %v8326_v63 = vsel %vm7937_vm12, %v8081_v27, %v16902_v29  ;;  %v16907_v27 = vld [vmem:[#allocation134_spill] sm:$0xff] }
 0xb62   :  { %v8066_v37 = vpop.permute.xlu1 %8065  ;;  %v8542_v2 = vsel %vm7936_vm14, %v15754_v16, %v8326_v63 }
 0xb63   :  { %v8323_v17 = vsel %vm7937_vm12, %v8066_v37, %v16896_v18  ;;  %v16908_v18 = vld [vmem:[#allocation16_spill] sm:$0xff] }
 0xb64   :  { %v8539_v6 = vsel %vm7936_vm14, %v15739_v36, %v8323_v17 }
 0xb65   :  { %v8755_v12 = vsel %vm7935_vm13, %v8678_v4, %v8539_v6  ;;  %v8688_v13 = vpop.permute.xlu0 %8687 }
 0xb66   :  { %8792 = vst.msk [vmem:[%s16304_s18 + $0xc8] sm:$0xff] %vm8766_vm15, %v8755_v12 }
 0xb67   :  { %v8673_v30 = vpop.permute.xlu1 %8672 }
 0xb68   :  { %v8754_v34 = vsel %vm7935_vm13, %v8673_v30, %v8538_v0 }
 0xb69   :  { %8791 = vst.msk [vmem:[%s16304_s18 + $0xc0] sm:$0xff] %vm8766_vm15, %v8754_v34 }
 0xb6a   :  { %v8091_v9 = vpop.permute.xlu0 %8090 }
 0xb6b   :  { %v8328_v14 = vsel %vm7937_vm12, %v8091_v9, %v16904_v53 }
 0xb6c   :  { %v8076_v36 = vpop.permute.xlu1 %8075  ;;  %v8544_v5 = vsel %vm7936_vm14, %v15771_v10, %v8328_v14 }
 0xb6d   :  { %v8325_v3 = vsel %vm7937_vm12, %v8076_v36, %v16899_v57 }
 0xb6e   :  { %v8541_v55 = vsel %vm7936_vm14, %v15762_v1, %v8325_v3 }
 0xb6f   :  { %v8757_v58 = vsel %vm7935_vm13, %v8688_v13, %v8541_v55  ;;  %v8698_v1 = vpop.permute.xlu0 %8697 }
 0xb70   :  { %8794 = vst.msk [vmem:[%s16304_s18 + $0xd8] sm:$0xff] %vm8766_vm15, %v8757_v58 }
 0xb71   :  { %v8683_v31 = vpop.permute.xlu1 %8682 }
 0xb72   :  { %v8756_v39 = vsel %vm7935_vm13, %v8683_v31, %v8540_v43 }
 0xb73   :  { %8793 = vst.msk [vmem:[%s16304_s18 + $0xd0] sm:$0xff] %vm8766_vm15, %v8756_v39 }
 0xb74   :  { %v8101_v41 = vpop.permute.xlu0 %8100 }
 0xb75   :  { %v8330_v19 = vsel %vm7937_vm12, %v8101_v41, %v16906_v20 }
 0xb76   :  { %v8086_v15 = vpop.permute.xlu1 %8085  ;;  %v8546_v48 = vsel %vm7936_vm14, %v15780_v7, %v8330_v19 }
 0xb77   :  { %v8327_v50 = vsel %vm7937_vm12, %v8086_v15, %v16901_v54 }
 0xb78   :  { %v8543_v51 = vsel %vm7936_vm14, %v15775_v23, %v8327_v50 }
 0xb79   :  { %v8759_v61 = vsel %vm7935_vm13, %v8698_v1, %v8543_v51  ;;  %v8708_v23 = vpop.permute.xlu0 %8707 }
 0xb7a   :  { %8796 = vst.msk [vmem:[%s16304_s18 + $0xe8] sm:$0xff] %vm8766_vm15, %v8759_v61 }
 0xb7b   :  { %v8693_v60 = vpop.permute.xlu1 %8692 }
 0xb7c   :  { %v8758_v8 = vsel %vm7935_vm13, %v8693_v60, %v8542_v2 }
 0xb7d   :  { %8795 = vst.msk [vmem:[%s16304_s18 + $0xe0] sm:$0xff] %vm8766_vm15, %v8758_v8 }
 0xb7e   :  { %v8111_v22 = vpop.permute.xlu0 %8110 }
 0xb7f   :  { %v8332_v17 = vsel %vm7937_vm12, %v8111_v22, %v16908_v18 }
 0xb80   :  { %v8096_v47 = vpop.permute.xlu1 %8095  ;;  %v8548_v12 = vsel %vm7936_vm14, %v15794_v56, %v8332_v17 }
 0xb81   :  { %v8329_v35 = vsel %vm7937_vm12, %v8096_v47, %v16903_v44 }
 0xb82   :  { %v8545_v16 = vsel %vm7936_vm14, %v15783_v32, %v8329_v35 }
 0xb83   :  { %v8761_v45 = vsel %vm7935_vm13, %v8708_v23, %v8545_v16  ;;  %v8718_v24 = vpop.permute.xlu0 %8717 }
 0xb84   :  { %8798 = vst.msk [vmem:[%s16304_s18 + $0xf8] sm:$0xff] %vm8766_vm15, %v8761_v45 }
 0xb85   :  { %v8703_v11 = vpop.permute.xlu1 %8702 }
 0xb86   :  { %v8760_v25 = vsel %vm7935_vm13, %v8703_v11, %v8544_v5 }
 0xb87   :  { %8797 = vst.msk [vmem:[%s16304_s18 + $0xf0] sm:$0xff] %vm8766_vm15, %v8760_v25  ;;  %v8728_v38 = vpop.permute.xlu0 %8727 }
 0xb8a   :  { %v8106_v32 = vpop.permute.xlu1 %8105 }
 0xb8b   :  { %v8331_v46 = vsel %vm7937_vm12, %v8106_v32, %v16905_v33 }
 0xb8c   :  { %v8547_v10 = vsel %vm7936_vm14, %v15796_v42, %v8331_v46 }
 0xb8d   :  { %v8763_v4 = vsel %vm7935_vm13, %v8718_v24, %v8547_v10 }
 0xb8e   :  { %8800 = vst.msk [vmem:[%s16304_s18 + $0x108] sm:$0xff] %vm8766_vm15, %v8763_v4 }
 0xb8f   :  { %v8713_v52 = vpop.permute.xlu1 %8712 }
 0xb90   :  { %v8762_v62 = vsel %vm7935_vm13, %v8713_v52, %v8546_v48 }
 0xb91   :  { %8799 = vst.msk [vmem:[%s16304_s18 + $0x100] sm:$0xff] %vm8766_vm15, %v8762_v62 }
 0xb94   :  { %v8116_v42 = vpop.permute.xlu1 %8115 }
 0xb95   :  { %v8333_v37 = vsel %vm7937_vm12, %v8116_v42, %v16907_v27 }
 0xb96   :  { %v8549_v7 = vsel %vm7936_vm14, %v15805_v28, %v8333_v37 }
 0xb97   :  { %v8765_v59 = vsel %vm7935_vm13, %v8728_v38, %v8549_v7 }
 0xb98   :  { %8802 = vst.msk [vmem:[%s16304_s18 + $0x118] sm:$0xff] %vm8766_vm15, %v8765_v59 }
 0xb99   :  { %v8723_v6 = vpop.permute.xlu1 %8722 }
 0xb9a   :  { %v8764_v30 = vsel %vm7935_vm13, %v8723_v6, %v8548_v12 }
 0xb9b   :  { %8801 = vst.msk [vmem:[%s16304_s18 + $0x110] sm:$0xff] %vm8766_vm15, %v8764_v30 }

</bundles_post_ra>
